<compile_context>
chip_gen: v7x
topology: tpu7x:2x2x1
jax: 0.10.0
libtpu: 0.0.40
codegen_flags: <defaults>
</compile_context>

<pallas_src>
import jax
import jax.numpy as jnp
from jax.experimental import pallas as pl
from jax.experimental.pallas import tpu as pltpu


# -----------------------------------------------------------------------------
# Kernel factory: builds the Twin forward kernel for a fixed configuration.
# -----------------------------------------------------------------------------
def _build_twin_kernel(N, T, Fd, U, U2, Bt, fc_offs, lstm_offs):
    F32 = jnp.float32
    BF16 = jnp.bfloat16
    LF = T * Fd
    inv_n = 1.0 / N

    def kernel(x_flat_ref, x_lstm_ref, cs_ref, ics_ref, fc_ref, lstm_ref,
               latent_ref, yflat_ref, hseq_ref):
        def fcp(name):
            off, r, c = fc_offs[name]
            return fc_ref[off:off + r, :c]

        def lsp(name):
            off, r, c = lstm_offs[name]
            return lstm_ref[off:off + r, :c]

        relu = lambda v: jnp.maximum(v, 0.0)

        # ------------- frequency path: DFT -> MLP autoencoder -> inverse DFT -------------
        xbf = x_flat_ref[...].astype(BF16)                                  # (Bt, N)
        # x @ [C | S] = [Re(fft) | -Im(fft)]  (sign of Im folded into efc1 weights)
        rexs = jnp.dot(xbf, cs_ref[...], preferred_element_type=F32)        # (Bt, 2N)
        h = relu(jnp.dot(rexs, fcp('efc1_w'), preferred_element_type=F32) + fcp('efc1_b'))
        h = relu(jnp.dot(h, fcp('efc2_w'), preferred_element_type=F32) + fcp('efc2_b'))
        zl = relu(jnp.dot(h, fcp('efc3_w'), preferred_element_type=F32) + fcp('efc3_b'))
        d = relu(jnp.dot(zl, fcp('dfc1_w'), preferred_element_type=F32) + fcp('dfc1_b'))
        d = relu(jnp.dot(d, fcp('dfc2_w'), preferred_element_type=F32) + fcp('dfc2_b'))
        c = jnp.dot(d, fcp('dfc3_w'), preferred_element_type=F32) + fcp('dfc3_b')  # [Re(c)|Im(c)]
        # Re(ifft(c)) = ([Re(c)|Im(c)] @ [C; -S]) / N    (one K=2N dot)
        yflat = jnp.dot(c.astype(BF16), ics_ref[...], preferred_element_type=F32) * inv_n

        # ------------- time path: stacked LSTMs (gate order i, f, o, g) -------------
        def proj(x2d, wih, b):
            if wih.shape[0] == 1:       # K == 1: broadcast multiply-add on the VPU, not MXU
                return x2d * wih + b
            return jnp.dot(x2d, wih, preferred_element_type=F32) + b

        def lstm_layer(xp_fn, hid, whh, *, store=False, collect=False):
            hh = jnp.zeros((Bt, hid), F32)
            cc = jnp.zeros((Bt, hid), F32)
            outs = []
            for t in range(T):
                if hid == 1:            # hidden matmul with K=1 -> VPU outer product
                    rec = hh * whh
                else:
                    rec = jnp.dot(hh, whh, preferred_element_type=F32)
                g = xp_fn(t) + rec
                sg = jax.nn.sigmoid(g[:, :3 * hid])        # i | f | o in one EUP pass
                gg = jnp.tanh(g[:, 3 * hid:])              # g
                cc = sg[:, hid:2 * hid] * cc + sg[:, :hid] * gg
                hh = sg[:, 2 * hid:3 * hid] * jnp.tanh(cc)
                if store:
                    hseq_ref[t * Bt:(t + 1) * Bt, :] = hh  # scratch-backed hidden sequence
                if collect:
                    outs.append(hh)
            return hh, outs

        # contiguous leading-dim merge of the time-major block (no per-step concat)
        xseq = x_lstm_ref[...].reshape(T * Bt, Fd)

        # encoder
        xp = proj(xseq, lsp('e1_wih'), lsp('e1_b'))                          # (T*Bt, 4U)
        lstm_layer(lambda t: xp[t * Bt:(t + 1) * Bt], U, lsp('e1_whh'), store=True)
        xp = proj(hseq_ref[...], lsp('e2_wih'), lsp('e2_b'))
        lstm_layer(lambda t: xp[t * Bt:(t + 1) * Bt], U, lsp('e2_whh'), store=True)
        xp = proj(hseq_ref[...], lsp('e3_wih'), lsp('e3_b'))
        latent, _ = lstm_layer(lambda t: xp[t * Bt:(t + 1) * Bt], U2, lsp('e3_whh'))
        latent_ref[...] = latent

        # decoder (input = latent repeated T times -> constant input projection)
        xp_c = proj(latent, lsp('d1_wih'), lsp('d1_b'))                      # (Bt, 4U)
        lstm_layer(lambda t: xp_c, U, lsp('d1_whh'), store=True)
        xp = proj(hseq_ref[...], lsp('d2_wih'), lsp('d2_b'))
        lstm_layer(lambda t: xp[t * Bt:(t + 1) * Bt], U, lsp('d2_whh'), store=True)
        xp = proj(hseq_ref[...], lsp('d3_wih'), lsp('d3_b'))
        _, hs = lstm_layer(lambda t: xp[t * Bt:(t + 1) * Bt], Fd, lsp('d3_whh'), collect=True)

        # fused residual y[:, -L:, :] += z, written with a single lane-dense store
        z_cols = jnp.concatenate(hs, axis=1) if len(hs) > 1 else hs[0]       # (Bt, T*Fd)
        if LF < N:
            yflat_ref[...] = jnp.concatenate(
                [yflat[:, :N - LF], yflat[:, N - LF:] + z_cols], axis=1)
        else:
            yflat_ref[...] = yflat + z_cols

    return kernel


# -----------------------------------------------------------------------------
# Parameter init (deterministic, PyTorch-like uniform init; weights stored
# pre-transposed as (in, out) / (in, 4H) so both kernel and reference do x @ W;
# LSTM params in PyTorch gate order (i,f,g,o) -- the wrapper permutes to (i,f,o,g))
# -----------------------------------------------------------------------------
def init_params(key, n_features, window_size, latent_dim):
    W, F, L = window_size, n_features, latent_dim
    N = W * F
    U, U2 = L, L // 2
    keys = iter(jax.random.split(key, 64))

    def lin(in_d, out_d):
        s = 1.0 / jnp.sqrt(jnp.float32(in_d))
        w = jax.random.uniform(next(keys), (in_d, out_d), jnp.float32, -s, s)
        b = jax.random.uniform(next(keys), (1, out_d), jnp.float32, -s, s)
        return w, b

    def lstm(in_d, hid):
        s = 1.0 / jnp.sqrt(jnp.float32(hid))
        wih = jax.random.uniform(next(keys), (in_d, 4 * hid), jnp.float32, -s, s)
        whh = jax.random.uniform(next(keys), (hid, 4 * hid), jnp.float32, -s, s)
        # combined bias b_ih + b_hh (approximation; same params used by kernel and ref)
        b = jax.random.uniform(next(keys), (1, 4 * hid), jnp.float32, -s, s) * 2.0
        return wih, whh, b

    p = {}
    p['efc1_w'], p['efc1_b'] = lin(2 * N, 128)
    p['efc2_w'], p['efc2_b'] = lin(128, 64)
    p['efc3_w'], p['efc3_b'] = lin(64, L)
    p['dfc1_w'], p['dfc1_b'] = lin(L, 64)
    p['dfc2_w'], p['dfc2_b'] = lin(64, 128)
    p['dfc3_w'], p['dfc3_b'] = lin(128, 2 * N)

    p['e1_wih'], p['e1_whh'], p['e1_b'] = lstm(F, U)
    p['e2_wih'], p['e2_whh'], p['e2_b'] = lstm(U, U)
    p['e3_wih'], p['e3_whh'], p['e3_b'] = lstm(U, U2)
    p['d1_wih'], p['d1_whh'], p['d1_b'] = lstm(U2, U)
    p['d2_wih'], p['d2_whh'], p['d2_b'] = lstm(U, U)
    p['d3_wih'], p['d3_whh'], p['d3_b'] = lstm(U, F)

    idx = jnp.arange(N, dtype=jnp.float32)
    ang = 2.0 * jnp.pi * jnp.outer(idx, idx) / N
    p['cos'] = jnp.cos(ang).astype(jnp.float32)
    p['sin'] = jnp.sin(ang).astype(jnp.float32)
    return p


# -----------------------------------------------------------------------------
# Wrapper helpers
# -----------------------------------------------------------------------------
def _permute_gates(w, hid):
    # PyTorch gate column order (i, f, g, o) -> (i, f, o, g): the 3 sigmoid gates
    # become one contiguous lane slice.
    return jnp.concatenate(
        [w[..., :2 * hid], w[..., 3 * hid:4 * hid], w[..., 2 * hid:3 * hid]], axis=-1)


def _pack_slab(named_arrays, width, dtype=jnp.float32):
    """Stack 2D arrays into one (rows, width) slab; rows padded to multiples of 8."""
    pieces, offs, off = [], {}, 0
    for name, a in named_arrays:
        r, c = a.shape
        offs[name] = (off, r, c)
        pad_r = (-r) % 8
        pieces.append(jnp.pad(a.astype(dtype), ((0, pad_r), (0, width - c))))
        off += r + pad_r
    return jnp.concatenate(pieces, axis=0), offs


def _pick_batch_tile(B, batch_tile):
    divisors = [d for d in range(1, B + 1) if B % d == 0]
    cand = [d for d in divisors if d <= batch_tile and (d % 8 == 0 or d == B)]
    if not cand:
        cand = [B]
    bt = max(cand)
    if B // bt < 2:                      # prefer a >=2-way grid (v7x megacore)
        two_way = [d for d in cand if B // d >= 2]
        if two_way:
            bt = max(two_way)
    return bt


# -----------------------------------------------------------------------------
# Wrapper
# -----------------------------------------------------------------------------
def twin_forward(params, x, *, window_size, latent_dim, n_features, batch_tile=128):
    B = x.shape[0]
    W, Fd, L = window_size, n_features, latent_dim
    N = W * Fd
    U, U2, T = L, L // 2, L

    x = x.astype(jnp.float32)
    x_flat = x.reshape(B, N)                                  # glue: == x.view(B, -1)
    x_lstm = jnp.transpose(x[:, W - L:, :], (1, 0, 2))        # glue: (T, B, Fd) time-major

    BT = _pick_batch_tile(B, batch_tile)
    grid = (B // BT,)

    # --- fused DFT matrices (bf16 MXU operands, f32 accumulation in kernel) ---
    cos, sin = params['cos'], params['sin']
    cs = jnp.concatenate([cos, sin], axis=1).astype(jnp.bfloat16)       # (N, 2N)
    ics = jnp.concatenate([cos, -sin], axis=0).astype(jnp.bfloat16)     # (2N, N)

    # fold the Im-path sign into encoder fc1 so the kernel can use [Re | -Im] directly
    efc1_w = jnp.concatenate([params['efc1_w'][:N], -params['efc1_w'][N:]], axis=0)

    fc_named = [
        ('efc1_w', efc1_w), ('efc1_b', params['efc1_b']),
        ('efc2_w', params['efc2_w']), ('efc2_b', params['efc2_b']),
        ('efc3_w', params['efc3_w']), ('efc3_b', params['efc3_b']),
        ('dfc1_w', params['dfc1_w']), ('dfc1_b', params['dfc1_b']),
        ('dfc2_w', params['dfc2_w']), ('dfc2_b', params['dfc2_b']),
        ('dfc3_w', params['dfc3_w']), ('dfc3_b', params['dfc3_b']),
    ]
    fc_slab, fc_offs = _pack_slab(fc_named, max(128, 2 * N, L))

    lstm_named = []
    for name in ['e1', 'e2', 'e3', 'd1', 'd2', 'd3']:
        whh = params[name + '_whh']
        hid = whh.shape[0]
        lstm_named += [
            (name + '_wih', _permute_gates(params[name + '_wih'], hid)),
            (name + '_whh', _permute_gates(whh, hid)),
            (name + '_b', _permute_gates(params[name + '_b'], hid)),
        ]
    lcw = max(a.shape[1] for _, a in lstm_named)
    lstm_slab, lstm_offs = _pack_slab(lstm_named, lcw)

    kernel = _build_twin_kernel(N, T, Fd, U, U2, BT, fc_offs, lstm_offs)

    inputs = [x_flat, x_lstm, cs, ics, fc_slab, lstm_slab]
    in_specs = [
        pl.BlockSpec((BT, N), lambda i: (i, 0)),              # x_flat, batch-blocked
        pl.BlockSpec((T, BT, Fd), lambda i: (0, i, 0)),       # x_lstm, batch-blocked
        pl.BlockSpec(cs.shape, lambda i: (0, 0)),             # grid-invariant weights
        pl.BlockSpec(ics.shape, lambda i: (0, 0)),
        pl.BlockSpec(fc_slab.shape, lambda i: (0, 0)),
        pl.BlockSpec(lstm_slab.shape, lambda i: (0, 0)),
    ]
    out_shape = (
        jax.ShapeDtypeStruct((B, U2), jnp.float32),           # latent
        jax.ShapeDtypeStruct((B, N), jnp.float32),            # y (flat, residual included)
    )
    out_specs = (
        pl.BlockSpec((BT, U2), lambda i: (i, 0)),
        pl.BlockSpec((BT, N), lambda i: (i, 0)),
    )

    latent, y_flat = pl.pallas_call(
        kernel,
        out_shape=out_shape,
        grid=grid,
        in_specs=in_specs,
        out_specs=out_specs,
        scratch_shapes=[pltpu.VMEM((T * BT, U), jnp.float32)],   # per-layer hidden sequence
        compiler_params=pltpu.CompilerParams(
            dimension_semantics=("parallel",),
            vmem_limit_bytes=32 * 1024 * 1024,
        ),
    )(*inputs)

    y = y_flat.reshape(B, W, Fd)                              # glue: reshape only
    return latent, y


# -----------------------------------------------------------------------------
# Pure-JAX reference (same math, jnp.fft + un-permuted params) for checking
# -----------------------------------------------------------------------------
def reference_forward(params, x, *, window_size, latent_dim, n_features):
    B = x.shape[0]
    W, F, L = window_size, n_features, latent_dim
    N = W * F
    U, U2 = L, L // 2
    relu = jax.nn.relu

    xf = x.reshape(B, N)
    xc = jnp.fft.fft(xf.astype(jnp.complex64), axis=1)
    feat = jnp.concatenate([jnp.real(xc), jnp.imag(xc)], axis=1).astype(jnp.float32)
    h = relu(feat @ params['efc1_w'] + params['efc1_b'])
    h = relu(h @ params['efc2_w'] + params['efc2_b'])
    zl = relu(h @ params['efc3_w'] + params['efc3_b'])
    d = relu(zl @ params['dfc1_w'] + params['dfc1_b'])
    d = relu(d @ params['dfc2_w'] + params['dfc2_b'])
    d = d @ params['dfc3_w'] + params['dfc3_b']
    xcx = d[:, :N] + 1j * d[:, N:]
    y = jnp.real(jnp.fft.ifft(xcx, axis=1)).astype(jnp.float32).reshape(B, W, F)

    def lstm(seq, wih, whh, b, hid):
        Bn, Tn, _ = seq.shape
        hc = jnp.zeros((Bn, hid), jnp.float32)
        cc = jnp.zeros((Bn, hid), jnp.float32)
        outs = []
        for t in range(Tn):
            g = seq[:, t, :] @ wih + hc @ whh + b
            ig = jax.nn.sigmoid(g[:, :hid])
            fg = jax.nn.sigmoid(g[:, hid:2 * hid])
            gg = jnp.tanh(g[:, 2 * hid:3 * hid])
            og = jax.nn.sigmoid(g[:, 3 * hid:])
            cc = fg * cc + ig * gg
            hc = og * jnp.tanh(cc)
            outs.append(hc)
        return jnp.stack(outs, axis=1)

    xs = x[:, W - L:, :]
    s = lstm(xs, params['e1_wih'], params['e1_whh'], params['e1_b'], U)
    s = lstm(s, params['e2_wih'], params['e2_whh'], params['e2_b'], U)
    s = lstm(s, params['e3_wih'], params['e3_whh'], params['e3_b'], U2)
    latent = s[:, -1, :]
    rep = jnp.tile(latent[:, None, :], (1, L, 1))
    s = lstm(rep, params['d1_wih'], params['d1_whh'], params['d1_b'], U)
    s = lstm(s, params['d2_wih'], params['d2_whh'], params['d2_b'], U)
    z = lstm(s, params['d3_wih'], params['d3_whh'], params['d3_b'], F)
    y = y.at[:, W - L:, :].add(z)
    return latent, y


if __name__ == "__main__":
    # batch, n_features, window_size, latent_dim (small shapes; B=16 -> 2 batch tiles)
    B, F, W, L = 16, 1, 64, 16

    key = jax.random.PRNGKey(0)
    kparam, kx = jax.random.split(key)
    params = init_params(kparam, F, W, L)
    x = jax.random.normal(kx, (B, W, F), jnp.float32)

    latent, y = twin_forward(params, x, window_size=W, latent_dim=L, n_features=F)
    jax.block_until_ready((latent, y))

    assert latent.shape == (B, L // 2)
    assert y.shape == (B, W, F)

    lat_ref, y_ref = reference_forward(params, x, window_size=W, latent_dim=L, n_features=F)
    assert jnp.all(jnp.isfinite(latent)) and jnp.all(jnp.isfinite(y))
    assert jnp.allclose(latent, lat_ref, atol=5e-2, rtol=5e-2), "latent mismatch"
    assert jnp.allclose(y, y_ref, atol=5e-2, rtol=5e-2), "recon mismatch"

    print("KERNEL_OK")
</pallas_src>

<mosaic_0001>
module attributes {stable_mosaic.version = 11 : i64} {
  func.func @kernel(%arg0: i32, %arg1: memref<8x64xf32, #tpu.memory_space<vmem>>, %arg2: memref<16x8x1xf32, #tpu.memory_space<vmem>>, %arg3: memref<64x128xbf16, #tpu.memory_space<vmem>>, %arg4: memref<128x64xbf16, #tpu.memory_space<vmem>>, %arg5: memref<576x128xf32, #tpu.memory_space<vmem>>, %arg6: memref<208x64xf32, #tpu.memory_space<vmem>>, %arg7: memref<8x8xf32, #tpu.memory_space<vmem>>, %arg8: memref<8x64xf32, #tpu.memory_space<vmem>>, %arg9: memref<128x16xf32, #tpu.memory_space<vmem>>) attributes {dimension_semantics = [#tpu.dimension_semantics<parallel>], iteration_bounds = array<i64: 2>, scalar_prefetch = 0 : i64, scratch_operands = 1 : i64, tpu.core_type = #tpu.core_type<tc>, window_params = [{transform_indices = @transform_0, window_bounds = array<i64: 8, 64>}, {transform_indices = @transform_1, window_bounds = array<i64: 16, 8, 1>}, {pipeline_mode = #tpu.pipeline_mode<synchronous>, transform_indices = @transform_2, window_bounds = array<i64: 64, 128>}, {pipeline_mode = #tpu.pipeline_mode<synchronous>, transform_indices = @transform_3, window_bounds = array<i64: 128, 64>}, {pipeline_mode = #tpu.pipeline_mode<synchronous>, transform_indices = @transform_4, window_bounds = array<i64: 576, 128>}, {pipeline_mode = #tpu.pipeline_mode<synchronous>, transform_indices = @transform_5, window_bounds = array<i64: 208, 64>}, {transform_indices = @transform_6, window_bounds = array<i64: 8, 8>}, {transform_indices = @transform_7, window_bounds = array<i64: 8, 64>}]} {
    %c0 = arith.constant 0 : index
    %c0_0 = arith.constant 0 : index
    %0 = vector.load %arg1[%c0, %c0_0] : memref<8x64xf32, #tpu.memory_space<vmem>>, vector<8x64xf32>
    %1 = arith.truncf %0 : vector<8x64xf32> to vector<8x64xbf16>
    %c0_1 = arith.constant 0 : index
    %c0_2 = arith.constant 0 : index
    %2 = vector.load %arg3[%c0_1, %c0_2] : memref<64x128xbf16, #tpu.memory_space<vmem>>, vector<64x128xbf16>
    %cst = arith.constant dense<0.000000e+00> : vector<8x128xf32>
    %3 = tpu.matmul %1, %2, %cst {dimension_numbers = #tpu.dot_dimension_numbers<[1], [0], [0], [1], [0, 0, 1, 1], [], []>} : vector<8x64xbf16>, vector<64x128xbf16>, vector<8x128xf32> -> vector<8x128xf32>
    %c0_3 = arith.constant 0 : index
    %c0_4 = arith.constant 0 : index
    %4 = vector.load %arg5[%c0_3, %c0_4] : memref<576x128xf32, #tpu.memory_space<vmem>>, vector<128x128xf32>
    %cst_5 = arith.constant dense<0.000000e+00> : vector<8x128xf32>
    %5 = tpu.matmul %3, %4, %cst_5 {dimension_numbers = #tpu.dot_dimension_numbers<[1], [0], [0], [1], [0, 0, 1, 1], [], []>} : vector<8x128xf32>, vector<128x128xf32>, vector<8x128xf32> -> vector<8x128xf32>
    %c128 = arith.constant 128 : index
    %c0_6 = arith.constant 0 : index
    %6 = vector.load %arg5[%c128, %c0_6] : memref<576x128xf32, #tpu.memory_space<vmem>>, vector<1x128xf32>
    %7 = vector.broadcast %6 : vector<1x128xf32> to vector<8x128xf32>
    %8 = arith.addf %5, %7 : vector<8x128xf32>
    %cst_7 = arith.constant 0.000000e+00 : f32
    %9 = vector.broadcast %cst_7 : f32 to vector<8x128xf32>
    %10 = arith.maximumf %8, %9 : vector<8x128xf32>
    %c136 = arith.constant 136 : index
    %c0_8 = arith.constant 0 : index
    %11 = vector.load %arg5[%c136, %c0_8] : memref<576x128xf32, #tpu.memory_space<vmem>>, vector<128x64xf32>
    %cst_9 = arith.constant dense<0.000000e+00> : vector<8x64xf32>
    %12 = tpu.matmul %10, %11, %cst_9 {dimension_numbers = #tpu.dot_dimension_numbers<[1], [0], [0], [1], [0, 0, 1, 1], [], []>} : vector<8x128xf32>, vector<128x64xf32>, vector<8x64xf32> -> vector<8x64xf32>
    %c264 = arith.constant 264 : index
    %c0_10 = arith.constant 0 : index
    %13 = vector.load %arg5[%c264, %c0_10] : memref<576x128xf32, #tpu.memory_space<vmem>>, vector<1x64xf32>
    %14 = vector.broadcast %13 : vector<1x64xf32> to vector<8x64xf32>
    %15 = arith.addf %12, %14 : vector<8x64xf32>
    %cst_11 = arith.constant 0.000000e+00 : f32
    %16 = vector.broadcast %cst_11 : f32 to vector<8x64xf32>
    %17 = arith.maximumf %15, %16 : vector<8x64xf32>
    %c272 = arith.constant 272 : index
    %c0_12 = arith.constant 0 : index
    %18 = vector.load %arg5[%c272, %c0_12] : memref<576x128xf32, #tpu.memory_space<vmem>>, vector<64x16xf32>
    %cst_13 = arith.constant dense<0.000000e+00> : vector<8x16xf32>
    %19 = tpu.matmul %17, %18, %cst_13 {dimension_numbers = #tpu.dot_dimension_numbers<[1], [0], [0], [1], [0, 0, 1, 1], [], []>} : vector<8x64xf32>, vector<64x16xf32>, vector<8x16xf32> -> vector<8x16xf32>
    %c336 = arith.constant 336 : index
    %c0_14 = arith.constant 0 : index
    %20 = vector.load %arg5[%c336, %c0_14] : memref<576x128xf32, #tpu.memory_space<vmem>>, vector<1x16xf32>
    %21 = vector.broadcast %20 : vector<1x16xf32> to vector<8x16xf32>
    %22 = arith.addf %19, %21 : vector<8x16xf32>
    %cst_15 = arith.constant 0.000000e+00 : f32
    %23 = vector.broadcast %cst_15 : f32 to vector<8x16xf32>
    %24 = arith.maximumf %22, %23 : vector<8x16xf32>
    %c344 = arith.constant 344 : index
    %c0_16 = arith.constant 0 : index
    %25 = vector.load %arg5[%c344, %c0_16] : memref<576x128xf32, #tpu.memory_space<vmem>>, vector<16x64xf32>
    %cst_17 = arith.constant dense<0.000000e+00> : vector<8x64xf32>
    %26 = tpu.matmul %24, %25, %cst_17 {dimension_numbers = #tpu.dot_dimension_numbers<[1], [0], [0], [1], [0, 0, 1, 1], [], []>} : vector<8x16xf32>, vector<16x64xf32>, vector<8x64xf32> -> vector<8x64xf32>
    %c360 = arith.constant 360 : index
    %c0_18 = arith.constant 0 : index
    %27 = vector.load %arg5[%c360, %c0_18] : memref<576x128xf32, #tpu.memory_space<vmem>>, vector<1x64xf32>
    %28 = vector.broadcast %27 : vector<1x64xf32> to vector<8x64xf32>
    %29 = arith.addf %26, %28 : vector<8x64xf32>
    %cst_19 = arith.constant 0.000000e+00 : f32
    %30 = vector.broadcast %cst_19 : f32 to vector<8x64xf32>
    %31 = arith.maximumf %29, %30 : vector<8x64xf32>
    %c368 = arith.constant 368 : index
    %c0_20 = arith.constant 0 : index
    %32 = vector.load %arg5[%c368, %c0_20] : memref<576x128xf32, #tpu.memory_space<vmem>>, vector<64x128xf32>
    %cst_21 = arith.constant dense<0.000000e+00> : vector<8x128xf32>
    %33 = tpu.matmul %31, %32, %cst_21 {dimension_numbers = #tpu.dot_dimension_numbers<[1], [0], [0], [1], [0, 0, 1, 1], [], []>} : vector<8x64xf32>, vector<64x128xf32>, vector<8x128xf32> -> vector<8x128xf32>
    %c432 = arith.constant 432 : index
    %c0_22 = arith.constant 0 : index
    %34 = vector.load %arg5[%c432, %c0_22] : memref<576x128xf32, #tpu.memory_space<vmem>>, vector<1x128xf32>
    %35 = vector.broadcast %34 : vector<1x128xf32> to vector<8x128xf32>
    %36 = arith.addf %33, %35 : vector<8x128xf32>
    %cst_23 = arith.constant 0.000000e+00 : f32
    %37 = vector.broadcast %cst_23 : f32 to vector<8x128xf32>
    %38 = arith.maximumf %36, %37 : vector<8x128xf32>
    %c440 = arith.constant 440 : index
    %c0_24 = arith.constant 0 : index
    %39 = vector.load %arg5[%c440, %c0_24] : memref<576x128xf32, #tpu.memory_space<vmem>>, vector<128x128xf32>
    %cst_25 = arith.constant dense<0.000000e+00> : vector<8x128xf32>
    %40 = tpu.matmul %38, %39, %cst_25 {dimension_numbers = #tpu.dot_dimension_numbers<[1], [0], [0], [1], [0, 0, 1, 1], [], []>} : vector<8x128xf32>, vector<128x128xf32>, vector<8x128xf32> -> vector<8x128xf32>
    %c568 = arith.constant 568 : index
    %c0_26 = arith.constant 0 : index
    %41 = vector.load %arg5[%c568, %c0_26] : memref<576x128xf32, #tpu.memory_space<vmem>>, vector<1x128xf32>
    %42 = vector.broadcast %41 : vector<1x128xf32> to vector<8x128xf32>
    %43 = arith.addf %40, %42 : vector<8x128xf32>
    %44 = arith.truncf %43 : vector<8x128xf32> to vector<8x128xbf16>
    %c0_27 = arith.constant 0 : index
    %c0_28 = arith.constant 0 : index
    %45 = vector.load %arg4[%c0_27, %c0_28] : memref<128x64xbf16, #tpu.memory_space<vmem>>, vector<128x64xbf16>
    %cst_29 = arith.constant dense<0.000000e+00> : vector<8x64xf32>
    %46 = tpu.matmul %44, %45, %cst_29 {dimension_numbers = #tpu.dot_dimension_numbers<[1], [0], [0], [1], [0, 0, 1, 1], [], []>} : vector<8x128xbf16>, vector<128x64xbf16>, vector<8x64xf32> -> vector<8x64xf32>
    %cst_30 = arith.constant 1.562500e-02 : f32
    %47 = vector.broadcast %cst_30 : f32 to vector<8x64xf32>
    %48 = arith.mulf %46, %47 : vector<8x64xf32>
    %c0_31 = arith.constant 0 : index
    %c0_32 = arith.constant 0 : index
    %c0_33 = arith.constant 0 : index
    %49 = vector.load %arg2[%c0_31, %c0_32, %c0_33] : memref<16x8x1xf32, #tpu.memory_space<vmem>>, vector<16x8x1xf32>
    %50 = vector.shape_cast %49 : vector<16x8x1xf32> to vector<128x1xf32>
    %c0_34 = arith.constant 0 : index
    %c0_35 = arith.constant 0 : index
    %51 = vector.load %arg6[%c0_34, %c0_35] : memref<208x64xf32, #tpu.memory_space<vmem>>, vector<1x64xf32>
    %c24 = arith.constant 24 : index
    %c0_36 = arith.constant 0 : index
    %52 = vector.load %arg6[%c24, %c0_36] : memref<208x64xf32, #tpu.memory_space<vmem>>, vector<1x64xf32>
    %53 = vector.broadcast %50 : vector<128x1xf32> to vector<128x64xf32>
    %54 = vector.broadcast %51 : vector<1x64xf32> to vector<128x64xf32>
    %55 = arith.mulf %53, %54 : vector<128x64xf32>
    %56 = vector.broadcast %52 : vector<1x64xf32> to vector<128x64xf32>
    %57 = arith.addf %55, %56 : vector<128x64xf32>
    %c8 = arith.constant 8 : index
    %c0_37 = arith.constant 0 : index
    %58 = vector.load %arg6[%c8, %c0_37] : memref<208x64xf32, #tpu.memory_space<vmem>>, vector<16x64xf32>
    %cst_38 = arith.constant 0.000000e+00 : f32
    %59 = vector.broadcast %cst_38 : f32 to vector<8x16xf32>
    %cst_39 = arith.constant 0.000000e+00 : f32
    %60 = vector.broadcast %cst_39 : f32 to vector<8x16xf32>
    %cst_40 = arith.constant dense<0.000000e+00> : vector<8x64xf32>
    %61 = tpu.matmul %59, %58, %cst_40 {dimension_numbers = #tpu.dot_dimension_numbers<[1], [0], [0], [1], [0, 0, 1, 1], [], []>} : vector<8x16xf32>, vector<16x64xf32>, vector<8x64xf32> -> vector<8x64xf32>
    %62 = vector.extract_strided_slice %57 {offsets = [0, 0], sizes = [8, 64], strides = [1, 1]} : vector<128x64xf32> to vector<8x64xf32>
    %63 = arith.addf %62, %61 : vector<8x64xf32>
    %64 = vector.extract_strided_slice %63 {offsets = [0, 0], sizes = [8, 48], strides = [1, 1]} : vector<8x64xf32> to vector<8x48xf32>
    %65 = arith.negf %64 : vector<8x48xf32>
    %66 = math.exp %65 : vector<8x48xf32>
    %cst_41 = arith.constant 1.000000e+00 : f32
    %67 = vector.broadcast %cst_41 : f32 to vector<8x48xf32>
    %68 = arith.addf %67, %66 : vector<8x48xf32>
    %69 = arith.divf %67, %68 : vector<8x48xf32>
    %70 = vector.extract_strided_slice %63 {offsets = [0, 48], sizes = [8, 16], strides = [1, 1]} : vector<8x64xf32> to vector<8x16xf32>
    %71 = math.tanh %70 : vector<8x16xf32>
    %72 = vector.extract_strided_slice %69 {offsets = [0, 16], sizes = [8, 16], strides = [1, 1]} : vector<8x48xf32> to vector<8x16xf32>
    %73 = arith.mulf %72, %60 : vector<8x16xf32>
    %74 = vector.extract_strided_slice %69 {offsets = [0, 0], sizes = [8, 16], strides = [1, 1]} : vector<8x48xf32> to vector<8x16xf32>
    %75 = arith.mulf %74, %71 : vector<8x16xf32>
    %76 = arith.addf %73, %75 : vector<8x16xf32>
    %77 = vector.extract_strided_slice %69 {offsets = [0, 32], sizes = [8, 16], strides = [1, 1]} : vector<8x48xf32> to vector<8x16xf32>
    %78 = math.tanh %76 : vector<8x16xf32>
    %79 = arith.mulf %77, %78 : vector<8x16xf32>
    %c0_42 = arith.constant 0 : index
    %c0_43 = arith.constant 0 : index
    %80 = vector.load %arg9[%c0_42, %c0_43] : memref<128x16xf32, #tpu.memory_space<vmem>>, vector<8x16xf32>
    tpu.vector_store %arg9[%c0_42, %c0_43], %79 {strides = array<i32>} : memref<128x16xf32, #tpu.memory_space<vmem>>, vector<8x16xf32>,
    %cst_44 = arith.constant dense<0.000000e+00> : vector<8x64xf32>
    %81 = tpu.matmul %79, %58, %cst_44 {dimension_numbers = #tpu.dot_dimension_numbers<[1], [0], [0], [1], [0, 0, 1, 1], [], []>} : vector<8x16xf32>, vector<16x64xf32>, vector<8x64xf32> -> vector<8x64xf32>
    %82 = vector.extract_strided_slice %57 {offsets = [8, 0], sizes = [8, 64], strides = [1, 1]} : vector<128x64xf32> to vector<8x64xf32>
    %83 = arith.addf %82, %81 : vector<8x64xf32>
    %84 = vector.extract_strided_slice %83 {offsets = [0, 0], sizes = [8, 48], strides = [1, 1]} : vector<8x64xf32> to vector<8x48xf32>
    %85 = arith.negf %84 : vector<8x48xf32>
    %86 = math.exp %85 : vector<8x48xf32>
    %cst_45 = arith.constant 1.000000e+00 : f32
    %87 = vector.broadcast %cst_45 : f32 to vector<8x48xf32>
    %88 = arith.addf %87, %86 : vector<8x48xf32>
    %89 = arith.divf %87, %88 : vector<8x48xf32>
    %90 = vector.extract_strided_slice %83 {offsets = [0, 48], sizes = [8, 16], strides = [1, 1]} : vector<8x64xf32> to vector<8x16xf32>
    %91 = math.tanh %90 : vector<8x16xf32>
    %92 = vector.extract_strided_slice %89 {offsets = [0, 16], sizes = [8, 16], strides = [1, 1]} : vector<8x48xf32> to vector<8x16xf32>
    %93 = arith.mulf %92, %76 : vector<8x16xf32>
    %94 = vector.extract_strided_slice %89 {offsets = [0, 0], sizes = [8, 16], strides = [1, 1]} : vector<8x48xf32> to vector<8x16xf32>
    %95 = arith.mulf %94, %91 : vector<8x16xf32>
    %96 = arith.addf %93, %95 : vector<8x16xf32>
    %97 = vector.extract_strided_slice %89 {offsets = [0, 32], sizes = [8, 16], strides = [1, 1]} : vector<8x48xf32> to vector<8x16xf32>
    %98 = math.tanh %96 : vector<8x16xf32>
    %99 = arith.mulf %97, %98 : vector<8x16xf32>
    %c8_46 = arith.constant 8 : index
    %c0_47 = arith.constant 0 : index
    %100 = vector.load %arg9[%c8_46, %c0_47] : memref<128x16xf32, #tpu.memory_space<vmem>>, vector<8x16xf32>
    tpu.vector_store %arg9[%c8_46, %c0_47], %99 {strides = array<i32>} : memref<128x16xf32, #tpu.memory_space<vmem>>, vector<8x16xf32>,
    %cst_48 = arith.constant dense<0.000000e+00> : vector<8x64xf32>
    %101 = tpu.matmul %99, %58, %cst_48 {dimension_numbers = #tpu.dot_dimension_numbers<[1], [0], [0], [1], [0, 0, 1, 1], [], []>} : vector<8x16xf32>, vector<16x64xf32>, vector<8x64xf32> -> vector<8x64xf32>
    %102 = vector.extract_strided_slice %57 {offsets = [16, 0], sizes = [8, 64], strides = [1, 1]} : vector<128x64xf32> to vector<8x64xf32>
    %103 = arith.addf %102, %101 : vector<8x64xf32>
    %104 = vector.extract_strided_slice %103 {offsets = [0, 0], sizes = [8, 48], strides = [1, 1]} : vector<8x64xf32> to vector<8x48xf32>
    %105 = arith.negf %104 : vector<8x48xf32>
    %106 = math.exp %105 : vector<8x48xf32>
    %cst_49 = arith.constant 1.000000e+00 : f32
    %107 = vector.broadcast %cst_49 : f32 to vector<8x48xf32>
    %108 = arith.addf %107, %106 : vector<8x48xf32>
    %109 = arith.divf %107, %108 : vector<8x48xf32>
    %110 = vector.extract_strided_slice %103 {offsets = [0, 48], sizes = [8, 16], strides = [1, 1]} : vector<8x64xf32> to vector<8x16xf32>
    %111 = math.tanh %110 : vector<8x16xf32>
    %112 = vector.extract_strided_slice %109 {offsets = [0, 16], sizes = [8, 16], strides = [1, 1]} : vector<8x48xf32> to vector<8x16xf32>
    %113 = arith.mulf %112, %96 : vector<8x16xf32>
    %114 = vector.extract_strided_slice %109 {offsets = [0, 0], sizes = [8, 16], strides = [1, 1]} : vector<8x48xf32> to vector<8x16xf32>
    %115 = arith.mulf %114, %111 : vector<8x16xf32>
    %116 = arith.addf %113, %115 : vector<8x16xf32>
    %117 = vector.extract_strided_slice %109 {offsets = [0, 32], sizes = [8, 16], strides = [1, 1]} : vector<8x48xf32> to vector<8x16xf32>
    %118 = math.tanh %116 : vector<8x16xf32>
    %119 = arith.mulf %117, %118 : vector<8x16xf32>
    %c16 = arith.constant 16 : index
    %c0_50 = arith.constant 0 : index
    %120 = vector.load %arg9[%c16, %c0_50] : memref<128x16xf32, #tpu.memory_space<vmem>>, vector<8x16xf32>
    tpu.vector_store %arg9[%c16, %c0_50], %119 {strides = array<i32>} : memref<128x16xf32, #tpu.memory_space<vmem>>, vector<8x16xf32>,
    %cst_51 = arith.constant dense<0.000000e+00> : vector<8x64xf32>
    %121 = tpu.matmul %119, %58, %cst_51 {dimension_numbers = #tpu.dot_dimension_numbers<[1], [0], [0], [1], [0, 0, 1, 1], [], []>} : vector<8x16xf32>, vector<16x64xf32>, vector<8x64xf32> -> vector<8x64xf32>
    %122 = vector.extract_strided_slice %57 {offsets = [24, 0], sizes = [8, 64], strides = [1, 1]} : vector<128x64xf32> to vector<8x64xf32>
    %123 = arith.addf %122, %121 : vector<8x64xf32>
    %124 = vector.extract_strided_slice %123 {offsets = [0, 0], sizes = [8, 48], strides = [1, 1]} : vector<8x64xf32> to vector<8x48xf32>
    %125 = arith.negf %124 : vector<8x48xf32>
    %126 = math.exp %125 : vector<8x48xf32>
    %cst_52 = arith.constant 1.000000e+00 : f32
    %127 = vector.broadcast %cst_52 : f32 to vector<8x48xf32>
    %128 = arith.addf %127, %126 : vector<8x48xf32>
    %129 = arith.divf %127, %128 : vector<8x48xf32>
    %130 = vector.extract_strided_slice %123 {offsets = [0, 48], sizes = [8, 16], strides = [1, 1]} : vector<8x64xf32> to vector<8x16xf32>
    %131 = math.tanh %130 : vector<8x16xf32>
    %132 = vector.extract_strided_slice %129 {offsets = [0, 16], sizes = [8, 16], strides = [1, 1]} : vector<8x48xf32> to vector<8x16xf32>
    %133 = arith.mulf %132, %116 : vector<8x16xf32>
    %134 = vector.extract_strided_slice %129 {offsets = [0, 0], sizes = [8, 16], strides = [1, 1]} : vector<8x48xf32> to vector<8x16xf32>
    %135 = arith.mulf %134, %131 : vector<8x16xf32>
    %136 = arith.addf %133, %135 : vector<8x16xf32>
    %137 = vector.extract_strided_slice %129 {offsets = [0, 32], sizes = [8, 16], strides = [1, 1]} : vector<8x48xf32> to vector<8x16xf32>
    %138 = math.tanh %136 : vector<8x16xf32>
    %139 = arith.mulf %137, %138 : vector<8x16xf32>
    %c24_53 = arith.constant 24 : index
    %c0_54 = arith.constant 0 : index
    %140 = vector.load %arg9[%c24_53, %c0_54] : memref<128x16xf32, #tpu.memory_space<vmem>>, vector<8x16xf32>
    tpu.vector_store %arg9[%c24_53, %c0_54], %139 {strides = array<i32>} : memref<128x16xf32, #tpu.memory_space<vmem>>, vector<8x16xf32>,
    %cst_55 = arith.constant dense<0.000000e+00> : vector<8x64xf32>
    %141 = tpu.matmul %139, %58, %cst_55 {dimension_numbers = #tpu.dot_dimension_numbers<[1], [0], [0], [1], [0, 0, 1, 1], [], []>} : vector<8x16xf32>, vector<16x64xf32>, vector<8x64xf32> -> vector<8x64xf32>
    %142 = vector.extract_strided_slice %57 {offsets = [32, 0], sizes = [8, 64], strides = [1, 1]} : vector<128x64xf32> to vector<8x64xf32>
    %143 = arith.addf %142, %141 : vector<8x64xf32>
    %144 = vector.extract_strided_slice %143 {offsets = [0, 0], sizes = [8, 48], strides = [1, 1]} : vector<8x64xf32> to vector<8x48xf32>
    %145 = arith.negf %144 : vector<8x48xf32>
    %146 = math.exp %145 : vector<8x48xf32>
    %cst_56 = arith.constant 1.000000e+00 : f32
    %147 = vector.broadcast %cst_56 : f32 to vector<8x48xf32>
    %148 = arith.addf %147, %146 : vector<8x48xf32>
    %149 = arith.divf %147, %148 : vector<8x48xf32>
    %150 = vector.extract_strided_slice %143 {offsets = [0, 48], sizes = [8, 16], strides = [1, 1]} : vector<8x64xf32> to vector<8x16xf32>
    %151 = math.tanh %150 : vector<8x16xf32>
    %152 = vector.extract_strided_slice %149 {offsets = [0, 16], sizes = [8, 16], strides = [1, 1]} : vector<8x48xf32> to vector<8x16xf32>
    %153 = arith.mulf %152, %136 : vector<8x16xf32>
    %154 = vector.extract_strided_slice %149 {offsets = [0, 0], sizes = [8, 16], strides = [1, 1]} : vector<8x48xf32> to vector<8x16xf32>
    %155 = arith.mulf %154, %151 : vector<8x16xf32>
    %156 = arith.addf %153, %155 : vector<8x16xf32>
    %157 = vector.extract_strided_slice %149 {offsets = [0, 32], sizes = [8, 16], strides = [1, 1]} : vector<8x48xf32> to vector<8x16xf32>
    %158 = math.tanh %156 : vector<8x16xf32>
    %159 = arith.mulf %157, %158 : vector<8x16xf32>
    %c32 = arith.constant 32 : index
    %c0_57 = arith.constant 0 : index
    %160 = vector.load %arg9[%c32, %c0_57] : memref<128x16xf32, #tpu.memory_space<vmem>>, vector<8x16xf32>
    tpu.vector_store %arg9[%c32, %c0_57], %159 {strides = array<i32>} : memref<128x16xf32, #tpu.memory_space<vmem>>, vector<8x16xf32>,
    %cst_58 = arith.constant dense<0.000000e+00> : vector<8x64xf32>
    %161 = tpu.matmul %159, %58, %cst_58 {dimension_numbers = #tpu.dot_dimension_numbers<[1], [0], [0], [1], [0, 0, 1, 1], [], []>} : vector<8x16xf32>, vector<16x64xf32>, vector<8x64xf32> -> vector<8x64xf32>
    %162 = vector.extract_strided_slice %57 {offsets = [40, 0], sizes = [8, 64], strides = [1, 1]} : vector<128x64xf32> to vector<8x64xf32>
    %163 = arith.addf %162, %161 : vector<8x64xf32>
    %164 = vector.extract_strided_slice %163 {offsets = [0, 0], sizes = [8, 48], strides = [1, 1]} : vector<8x64xf32> to vector<8x48xf32>
    %165 = arith.negf %164 : vector<8x48xf32>
    %166 = math.exp %165 : vector<8x48xf32>
    %cst_59 = arith.constant 1.000000e+00 : f32
    %167 = vector.broadcast %cst_59 : f32 to vector<8x48xf32>
    %168 = arith.addf %167, %166 : vector<8x48xf32>
    %169 = arith.divf %167, %168 : vector<8x48xf32>
    %170 = vector.extract_strided_slice %163 {offsets = [0, 48], sizes = [8, 16], strides = [1, 1]} : vector<8x64xf32> to vector<8x16xf32>
    %171 = math.tanh %170 : vector<8x16xf32>
    %172 = vector.extract_strided_slice %169 {offsets = [0, 16], sizes = [8, 16], strides = [1, 1]} : vector<8x48xf32> to vector<8x16xf32>
    %173 = arith.mulf %172, %156 : vector<8x16xf32>
    %174 = vector.extract_strided_slice %169 {offsets = [0, 0], sizes = [8, 16], strides = [1, 1]} : vector<8x48xf32> to vector<8x16xf32>
    %175 = arith.mulf %174, %171 : vector<8x16xf32>
    %176 = arith.addf %173, %175 : vector<8x16xf32>
    %177 = vector.extract_strided_slice %169 {offsets = [0, 32], sizes = [8, 16], strides = [1, 1]} : vector<8x48xf32> to vector<8x16xf32>
    %178 = math.tanh %176 : vector<8x16xf32>
    %179 = arith.mulf %177, %178 : vector<8x16xf32>
    %c40 = arith.constant 40 : index
    %c0_60 = arith.constant 0 : index
    %180 = vector.load %arg9[%c40, %c0_60] : memref<128x16xf32, #tpu.memory_space<vmem>>, vector<8x16xf32>
    tpu.vector_store %arg9[%c40, %c0_60], %179 {strides = array<i32>} : memref<128x16xf32, #tpu.memory_space<vmem>>, vector<8x16xf32>,
    %cst_61 = arith.constant dense<0.000000e+00> : vector<8x64xf32>
    %181 = tpu.matmul %179, %58, %cst_61 {dimension_numbers = #tpu.dot_dimension_numbers<[1], [0], [0], [1], [0, 0, 1, 1], [], []>} : vector<8x16xf32>, vector<16x64xf32>, vector<8x64xf32> -> vector<8x64xf32>
    %182 = vector.extract_strided_slice %57 {offsets = [48, 0], sizes = [8, 64], strides = [1, 1]} : vector<128x64xf32> to vector<8x64xf32>
    %183 = arith.addf %182, %181 : vector<8x64xf32>
    %184 = vector.extract_strided_slice %183 {offsets = [0, 0], sizes = [8, 48], strides = [1, 1]} : vector<8x64xf32> to vector<8x48xf32>
    %185 = arith.negf %184 : vector<8x48xf32>
    %186 = math.exp %185 : vector<8x48xf32>
    %cst_62 = arith.constant 1.000000e+00 : f32
    %187 = vector.broadcast %cst_62 : f32 to vector<8x48xf32>
    %188 = arith.addf %187, %186 : vector<8x48xf32>
    %189 = arith.divf %187, %188 : vector<8x48xf32>
    %190 = vector.extract_strided_slice %183 {offsets = [0, 48], sizes = [8, 16], strides = [1, 1]} : vector<8x64xf32> to vector<8x16xf32>
    %191 = math.tanh %190 : vector<8x16xf32>
    %192 = vector.extract_strided_slice %189 {offsets = [0, 16], sizes = [8, 16], strides = [1, 1]} : vector<8x48xf32> to vector<8x16xf32>
    %193 = arith.mulf %192, %176 : vector<8x16xf32>
    %194 = vector.extract_strided_slice %189 {offsets = [0, 0], sizes = [8, 16], strides = [1, 1]} : vector<8x48xf32> to vector<8x16xf32>
    %195 = arith.mulf %194, %191 : vector<8x16xf32>
    %196 = arith.addf %193, %195 : vector<8x16xf32>
    %197 = vector.extract_strided_slice %189 {offsets = [0, 32], sizes = [8, 16], strides = [1, 1]} : vector<8x48xf32> to vector<8x16xf32>
    %198 = math.tanh %196 : vector<8x16xf32>
    %199 = arith.mulf %197, %198 : vector<8x16xf32>
    %c48 = arith.constant 48 : index
    %c0_63 = arith.constant 0 : index
    %200 = vector.load %arg9[%c48, %c0_63] : memref<128x16xf32, #tpu.memory_space<vmem>>, vector<8x16xf32>
    tpu.vector_store %arg9[%c48, %c0_63], %199 {strides = array<i32>} : memref<128x16xf32, #tpu.memory_space<vmem>>, vector<8x16xf32>,
    %cst_64 = arith.constant dense<0.000000e+00> : vector<8x64xf32>
    %201 = tpu.matmul %199, %58, %cst_64 {dimension_numbers = #tpu.dot_dimension_numbers<[1], [0], [0], [1], [0, 0, 1, 1], [], []>} : vector<8x16xf32>, vector<16x64xf32>, vector<8x64xf32> -> vector<8x64xf32>
    %202 = vector.extract_strided_slice %57 {offsets = [56, 0], sizes = [8, 64], strides = [1, 1]} : vector<128x64xf32> to vector<8x64xf32>
    %203 = arith.addf %202, %201 : vector<8x64xf32>
    %204 = vector.extract_strided_slice %203 {offsets = [0, 0], sizes = [8, 48], strides = [1, 1]} : vector<8x64xf32> to vector<8x48xf32>
    %205 = arith.negf %204 : vector<8x48xf32>
    %206 = math.exp %205 : vector<8x48xf32>
    %cst_65 = arith.constant 1.000000e+00 : f32
    %207 = vector.broadcast %cst_65 : f32 to vector<8x48xf32>
    %208 = arith.addf %207, %206 : vector<8x48xf32>
    %209 = arith.divf %207, %208 : vector<8x48xf32>
    %210 = vector.extract_strided_slice %203 {offsets = [0, 48], sizes = [8, 16], strides = [1, 1]} : vector<8x64xf32> to vector<8x16xf32>
    %211 = math.tanh %210 : vector<8x16xf32>
    %212 = vector.extract_strided_slice %209 {offsets = [0, 16], sizes = [8, 16], strides = [1, 1]} : vector<8x48xf32> to vector<8x16xf32>
    %213 = arith.mulf %212, %196 : vector<8x16xf32>
    %214 = vector.extract_strided_slice %209 {offsets = [0, 0], sizes = [8, 16], strides = [1, 1]} : vector<8x48xf32> to vector<8x16xf32>
    %215 = arith.mulf %214, %211 : vector<8x16xf32>
    %216 = arith.addf %213, %215 : vector<8x16xf32>
    %217 = vector.extract_strided_slice %209 {offsets = [0, 32], sizes = [8, 16], strides = [1, 1]} : vector<8x48xf32> to vector<8x16xf32>
    %218 = math.tanh %216 : vector<8x16xf32>
    %219 = arith.mulf %217, %218 : vector<8x16xf32>
    %c56 = arith.constant 56 : index
    %c0_66 = arith.constant 0 : index
    %220 = vector.load %arg9[%c56, %c0_66] : memref<128x16xf32, #tpu.memory_space<vmem>>, vector<8x16xf32>
    tpu.vector_store %arg9[%c56, %c0_66], %219 {strides = array<i32>} : memref<128x16xf32, #tpu.memory_space<vmem>>, vector<8x16xf32>,
    %cst_67 = arith.constant dense<0.000000e+00> : vector<8x64xf32>
    %221 = tpu.matmul %219, %58, %cst_67 {dimension_numbers = #tpu.dot_dimension_numbers<[1], [0], [0], [1], [0, 0, 1, 1], [], []>} : vector<8x16xf32>, vector<16x64xf32>, vector<8x64xf32> -> vector<8x64xf32>
    %222 = vector.extract_strided_slice %57 {offsets = [64, 0], sizes = [8, 64], strides = [1, 1]} : vector<128x64xf32> to vector<8x64xf32>
    %223 = arith.addf %222, %221 : vector<8x64xf32>
    %224 = vector.extract_strided_slice %223 {offsets = [0, 0], sizes = [8, 48], strides = [1, 1]} : vector<8x64xf32> to vector<8x48xf32>
    %225 = arith.negf %224 : vector<8x48xf32>
    %226 = math.exp %225 : vector<8x48xf32>
    %cst_68 = arith.constant 1.000000e+00 : f32
    %227 = vector.broadcast %cst_68 : f32 to vector<8x48xf32>
    %228 = arith.addf %227, %226 : vector<8x48xf32>
    %229 = arith.divf %227, %228 : vector<8x48xf32>
    %230 = vector.extract_strided_slice %223 {offsets = [0, 48], sizes = [8, 16], strides = [1, 1]} : vector<8x64xf32> to vector<8x16xf32>
    %231 = math.tanh %230 : vector<8x16xf32>
    %232 = vector.extract_strided_slice %229 {offsets = [0, 16], sizes = [8, 16], strides = [1, 1]} : vector<8x48xf32> to vector<8x16xf32>
    %233 = arith.mulf %232, %216 : vector<8x16xf32>
    %234 = vector.extract_strided_slice %229 {offsets = [0, 0], sizes = [8, 16], strides = [1, 1]} : vector<8x48xf32> to vector<8x16xf32>
    %235 = arith.mulf %234, %231 : vector<8x16xf32>
    %236 = arith.addf %233, %235 : vector<8x16xf32>
    %237 = vector.extract_strided_slice %229 {offsets = [0, 32], sizes = [8, 16], strides = [1, 1]} : vector<8x48xf32> to vector<8x16xf32>
    %238 = math.tanh %236 : vector<8x16xf32>
    %239 = arith.mulf %237, %238 : vector<8x16xf32>
    %c64 = arith.constant 64 : index
    %c0_69 = arith.constant 0 : index
    %240 = vector.load %arg9[%c64, %c0_69] : memref<128x16xf32, #tpu.memory_space<vmem>>, vector<8x16xf32>
    tpu.vector_store %arg9[%c64, %c0_69], %239 {strides = array<i32>} : memref<128x16xf32, #tpu.memory_space<vmem>>, vector<8x16xf32>,
    %cst_70 = arith.constant dense<0.000000e+00> : vector<8x64xf32>
    %241 = tpu.matmul %239, %58, %cst_70 {dimension_numbers = #tpu.dot_dimension_numbers<[1], [0], [0], [1], [0, 0, 1, 1], [], []>} : vector<8x16xf32>, vector<16x64xf32>, vector<8x64xf32> -> vector<8x64xf32>
    %242 = vector.extract_strided_slice %57 {offsets = [72, 0], sizes = [8, 64], strides = [1, 1]} : vector<128x64xf32> to vector<8x64xf32>
    %243 = arith.addf %242, %241 : vector<8x64xf32>
    %244 = vector.extract_strided_slice %243 {offsets = [0, 0], sizes = [8, 48], strides = [1, 1]} : vector<8x64xf32> to vector<8x48xf32>
    %245 = arith.negf %244 : vector<8x48xf32>
    %246 = math.exp %245 : vector<8x48xf32>
    %cst_71 = arith.constant 1.000000e+00 : f32
    %247 = vector.broadcast %cst_71 : f32 to vector<8x48xf32>
    %248 = arith.addf %247, %246 : vector<8x48xf32>
    %249 = arith.divf %247, %248 : vector<8x48xf32>
    %250 = vector.extract_strided_slice %243 {offsets = [0, 48], sizes = [8, 16], strides = [1, 1]} : vector<8x64xf32> to vector<8x16xf32>
    %251 = math.tanh %250 : vector<8x16xf32>
    %252 = vector.extract_strided_slice %249 {offsets = [0, 16], sizes = [8, 16], strides = [1, 1]} : vector<8x48xf32> to vector<8x16xf32>
    %253 = arith.mulf %252, %236 : vector<8x16xf32>
    %254 = vector.extract_strided_slice %249 {offsets = [0, 0], sizes = [8, 16], strides = [1, 1]} : vector<8x48xf32> to vector<8x16xf32>
    %255 = arith.mulf %254, %251 : vector<8x16xf32>
    %256 = arith.addf %253, %255 : vector<8x16xf32>
    %257 = vector.extract_strided_slice %249 {offsets = [0, 32], sizes = [8, 16], strides = [1, 1]} : vector<8x48xf32> to vector<8x16xf32>
    %258 = math.tanh %256 : vector<8x16xf32>
    %259 = arith.mulf %257, %258 : vector<8x16xf32>
    %c72 = arith.constant 72 : index
    %c0_72 = arith.constant 0 : index
    %260 = vector.load %arg9[%c72, %c0_72] : memref<128x16xf32, #tpu.memory_space<vmem>>, vector<8x16xf32>
    tpu.vector_store %arg9[%c72, %c0_72], %259 {strides = array<i32>} : memref<128x16xf32, #tpu.memory_space<vmem>>, vector<8x16xf32>,
    %cst_73 = arith.constant dense<0.000000e+00> : vector<8x64xf32>
    %261 = tpu.matmul %259, %58, %cst_73 {dimension_numbers = #tpu.dot_dimension_numbers<[1], [0], [0], [1], [0, 0, 1, 1], [], []>} : vector<8x16xf32>, vector<16x64xf32>, vector<8x64xf32> -> vector<8x64xf32>
    %262 = vector.extract_strided_slice %57 {offsets = [80, 0], sizes = [8, 64], strides = [1, 1]} : vector<128x64xf32> to vector<8x64xf32>
    %263 = arith.addf %262, %261 : vector<8x64xf32>
    %264 = vector.extract_strided_slice %263 {offsets = [0, 0], sizes = [8, 48], strides = [1, 1]} : vector<8x64xf32> to vector<8x48xf32>
    %265 = arith.negf %264 : vector<8x48xf32>
    %266 = math.exp %265 : vector<8x48xf32>
    %cst_74 = arith.constant 1.000000e+00 : f32
    %267 = vector.broadcast %cst_74 : f32 to vector<8x48xf32>
    %268 = arith.addf %267, %266 : vector<8x48xf32>
    %269 = arith.divf %267, %268 : vector<8x48xf32>
    %270 = vector.extract_strided_slice %263 {offsets = [0, 48], sizes = [8, 16], strides = [1, 1]} : vector<8x64xf32> to vector<8x16xf32>
    %271 = math.tanh %270 : vector<8x16xf32>
    %272 = vector.extract_strided_slice %269 {offsets = [0, 16], sizes = [8, 16], strides = [1, 1]} : vector<8x48xf32> to vector<8x16xf32>
    %273 = arith.mulf %272, %256 : vector<8x16xf32>
    %274 = vector.extract_strided_slice %269 {offsets = [0, 0], sizes = [8, 16], strides = [1, 1]} : vector<8x48xf32> to vector<8x16xf32>
    %275 = arith.mulf %274, %271 : vector<8x16xf32>
    %276 = arith.addf %273, %275 : vector<8x16xf32>
    %277 = vector.extract_strided_slice %269 {offsets = [0, 32], sizes = [8, 16], strides = [1, 1]} : vector<8x48xf32> to vector<8x16xf32>
    %278 = math.tanh %276 : vector<8x16xf32>
    %279 = arith.mulf %277, %278 : vector<8x16xf32>
    %c80 = arith.constant 80 : index
    %c0_75 = arith.constant 0 : index
    %280 = vector.load %arg9[%c80, %c0_75] : memref<128x16xf32, #tpu.memory_space<vmem>>, vector<8x16xf32>
    tpu.vector_store %arg9[%c80, %c0_75], %279 {strides = array<i32>} : memref<128x16xf32, #tpu.memory_space<vmem>>, vector<8x16xf32>,
    %cst_76 = arith.constant dense<0.000000e+00> : vector<8x64xf32>
    %281 = tpu.matmul %279, %58, %cst_76 {dimension_numbers = #tpu.dot_dimension_numbers<[1], [0], [0], [1], [0, 0, 1, 1], [], []>} : vector<8x16xf32>, vector<16x64xf32>, vector<8x64xf32> -> vector<8x64xf32>
    %282 = vector.extract_strided_slice %57 {offsets = [88, 0], sizes = [8, 64], strides = [1, 1]} : vector<128x64xf32> to vector<8x64xf32>
    %283 = arith.addf %282, %281 : vector<8x64xf32>
    %284 = vector.extract_strided_slice %283 {offsets = [0, 0], sizes = [8, 48], strides = [1, 1]} : vector<8x64xf32> to vector<8x48xf32>
    %285 = arith.negf %284 : vector<8x48xf32>
    %286 = math.exp %285 : vector<8x48xf32>
    %cst_77 = arith.constant 1.000000e+00 : f32
    %287 = vector.broadcast %cst_77 : f32 to vector<8x48xf32>
    %288 = arith.addf %287, %286 : vector<8x48xf32>
    %289 = arith.divf %287, %288 : vector<8x48xf32>
    %290 = vector.extract_strided_slice %283 {offsets = [0, 48], sizes = [8, 16], strides = [1, 1]} : vector<8x64xf32> to vector<8x16xf32>
    %291 = math.tanh %290 : vector<8x16xf32>
    %292 = vector.extract_strided_slice %289 {offsets = [0, 16], sizes = [8, 16], strides = [1, 1]} : vector<8x48xf32> to vector<8x16xf32>
    %293 = arith.mulf %292, %276 : vector<8x16xf32>
    %294 = vector.extract_strided_slice %289 {offsets = [0, 0], sizes = [8, 16], strides = [1, 1]} : vector<8x48xf32> to vector<8x16xf32>
    %295 = arith.mulf %294, %291 : vector<8x16xf32>
    %296 = arith.addf %293, %295 : vector<8x16xf32>
    %297 = vector.extract_strided_slice %289 {offsets = [0, 32], sizes = [8, 16], strides = [1, 1]} : vector<8x48xf32> to vector<8x16xf32>
    %298 = math.tanh %296 : vector<8x16xf32>
    %299 = arith.mulf %297, %298 : vector<8x16xf32>
    %c88 = arith.constant 88 : index
    %c0_78 = arith.constant 0 : index
    %300 = vector.load %arg9[%c88, %c0_78] : memref<128x16xf32, #tpu.memory_space<vmem>>, vector<8x16xf32>
    tpu.vector_store %arg9[%c88, %c0_78], %299 {strides = array<i32>} : memref<128x16xf32, #tpu.memory_space<vmem>>, vector<8x16xf32>,
    %cst_79 = arith.constant dense<0.000000e+00> : vector<8x64xf32>
    %301 = tpu.matmul %299, %58, %cst_79 {dimension_numbers = #tpu.dot_dimension_numbers<[1], [0], [0], [1], [0, 0, 1, 1], [], []>} : vector<8x16xf32>, vector<16x64xf32>, vector<8x64xf32> -> vector<8x64xf32>
    %302 = vector.extract_strided_slice %57 {offsets = [96, 0], sizes = [8, 64], strides = [1, 1]} : vector<128x64xf32> to vector<8x64xf32>
    %303 = arith.addf %302, %301 : vector<8x64xf32>
    %304 = vector.extract_strided_slice %303 {offsets = [0, 0], sizes = [8, 48], strides = [1, 1]} : vector<8x64xf32> to vector<8x48xf32>
    %305 = arith.negf %304 : vector<8x48xf32>
    %306 = math.exp %305 : vector<8x48xf32>
    %cst_80 = arith.constant 1.000000e+00 : f32
    %307 = vector.broadcast %cst_80 : f32 to vector<8x48xf32>
    %308 = arith.addf %307, %306 : vector<8x48xf32>
    %309 = arith.divf %307, %308 : vector<8x48xf32>
    %310 = vector.extract_strided_slice %303 {offsets = [0, 48], sizes = [8, 16], strides = [1, 1]} : vector<8x64xf32> to vector<8x16xf32>
    %311 = math.tanh %310 : vector<8x16xf32>
    %312 = vector.extract_strided_slice %309 {offsets = [0, 16], sizes = [8, 16], strides = [1, 1]} : vector<8x48xf32> to vector<8x16xf32>
    %313 = arith.mulf %312, %296 : vector<8x16xf32>
    %314 = vector.extract_strided_slice %309 {offsets = [0, 0], sizes = [8, 16], strides = [1, 1]} : vector<8x48xf32> to vector<8x16xf32>
    %315 = arith.mulf %314, %311 : vector<8x16xf32>
    %316 = arith.addf %313, %315 : vector<8x16xf32>
    %317 = vector.extract_strided_slice %309 {offsets = [0, 32], sizes = [8, 16], strides = [1, 1]} : vector<8x48xf32> to vector<8x16xf32>
    %318 = math.tanh %316 : vector<8x16xf32>
    %319 = arith.mulf %317, %318 : vector<8x16xf32>
    %c96 = arith.constant 96 : index
    %c0_81 = arith.constant 0 : index
    %320 = vector.load %arg9[%c96, %c0_81] : memref<128x16xf32, #tpu.memory_space<vmem>>, vector<8x16xf32>
    tpu.vector_store %arg9[%c96, %c0_81], %319 {strides = array<i32>} : memref<128x16xf32, #tpu.memory_space<vmem>>, vector<8x16xf32>,
    %cst_82 = arith.constant dense<0.000000e+00> : vector<8x64xf32>
    %321 = tpu.matmul %319, %58, %cst_82 {dimension_numbers = #tpu.dot_dimension_numbers<[1], [0], [0], [1], [0, 0, 1, 1], [], []>} : vector<8x16xf32>, vector<16x64xf32>, vector<8x64xf32> -> vector<8x64xf32>
    %322 = vector.extract_strided_slice %57 {offsets = [104, 0], sizes = [8, 64], strides = [1, 1]} : vector<128x64xf32> to vector<8x64xf32>
    %323 = arith.addf %322, %321 : vector<8x64xf32>
    %324 = vector.extract_strided_slice %323 {offsets = [0, 0], sizes = [8, 48], strides = [1, 1]} : vector<8x64xf32> to vector<8x48xf32>
    %325 = arith.negf %324 : vector<8x48xf32>
    %326 = math.exp %325 : vector<8x48xf32>
    %cst_83 = arith.constant 1.000000e+00 : f32
    %327 = vector.broadcast %cst_83 : f32 to vector<8x48xf32>
    %328 = arith.addf %327, %326 : vector<8x48xf32>
    %329 = arith.divf %327, %328 : vector<8x48xf32>
    %330 = vector.extract_strided_slice %323 {offsets = [0, 48], sizes = [8, 16], strides = [1, 1]} : vector<8x64xf32> to vector<8x16xf32>
    %331 = math.tanh %330 : vector<8x16xf32>
    %332 = vector.extract_strided_slice %329 {offsets = [0, 16], sizes = [8, 16], strides = [1, 1]} : vector<8x48xf32> to vector<8x16xf32>
    %333 = arith.mulf %332, %316 : vector<8x16xf32>
    %334 = vector.extract_strided_slice %329 {offsets = [0, 0], sizes = [8, 16], strides = [1, 1]} : vector<8x48xf32> to vector<8x16xf32>
    %335 = arith.mulf %334, %331 : vector<8x16xf32>
    %336 = arith.addf %333, %335 : vector<8x16xf32>
    %337 = vector.extract_strided_slice %329 {offsets = [0, 32], sizes = [8, 16], strides = [1, 1]} : vector<8x48xf32> to vector<8x16xf32>
    %338 = math.tanh %336 : vector<8x16xf32>
    %339 = arith.mulf %337, %338 : vector<8x16xf32>
    %c104 = arith.constant 104 : index
    %c0_84 = arith.constant 0 : index
    %340 = vector.load %arg9[%c104, %c0_84] : memref<128x16xf32, #tpu.memory_space<vmem>>, vector<8x16xf32>
    tpu.vector_store %arg9[%c104, %c0_84], %339 {strides = array<i32>} : memref<128x16xf32, #tpu.memory_space<vmem>>, vector<8x16xf32>,
    %cst_85 = arith.constant dense<0.000000e+00> : vector<8x64xf32>
    %341 = tpu.matmul %339, %58, %cst_85 {dimension_numbers = #tpu.dot_dimension_numbers<[1], [0], [0], [1], [0, 0, 1, 1], [], []>} : vector<8x16xf32>, vector<16x64xf32>, vector<8x64xf32> -> vector<8x64xf32>
    %342 = vector.extract_strided_slice %57 {offsets = [112, 0], sizes = [8, 64], strides = [1, 1]} : vector<128x64xf32> to vector<8x64xf32>
    %343 = arith.addf %342, %341 : vector<8x64xf32>
    %344 = vector.extract_strided_slice %343 {offsets = [0, 0], sizes = [8, 48], strides = [1, 1]} : vector<8x64xf32> to vector<8x48xf32>
    %345 = arith.negf %344 : vector<8x48xf32>
    %346 = math.exp %345 : vector<8x48xf32>
    %cst_86 = arith.constant 1.000000e+00 : f32
    %347 = vector.broadcast %cst_86 : f32 to vector<8x48xf32>
    %348 = arith.addf %347, %346 : vector<8x48xf32>
    %349 = arith.divf %347, %348 : vector<8x48xf32>
    %350 = vector.extract_strided_slice %343 {offsets = [0, 48], sizes = [8, 16], strides = [1, 1]} : vector<8x64xf32> to vector<8x16xf32>
    %351 = math.tanh %350 : vector<8x16xf32>
    %352 = vector.extract_strided_slice %349 {offsets = [0, 16], sizes = [8, 16], strides = [1, 1]} : vector<8x48xf32> to vector<8x16xf32>
    %353 = arith.mulf %352, %336 : vector<8x16xf32>
    %354 = vector.extract_strided_slice %349 {offsets = [0, 0], sizes = [8, 16], strides = [1, 1]} : vector<8x48xf32> to vector<8x16xf32>
    %355 = arith.mulf %354, %351 : vector<8x16xf32>
    %356 = arith.addf %353, %355 : vector<8x16xf32>
    %357 = vector.extract_strided_slice %349 {offsets = [0, 32], sizes = [8, 16], strides = [1, 1]} : vector<8x48xf32> to vector<8x16xf32>
    %358 = math.tanh %356 : vector<8x16xf32>
    %359 = arith.mulf %357, %358 : vector<8x16xf32>
    %c112 = arith.constant 112 : index
    %c0_87 = arith.constant 0 : index
    %360 = vector.load %arg9[%c112, %c0_87] : memref<128x16xf32, #tpu.memory_space<vmem>>, vector<8x16xf32>
    tpu.vector_store %arg9[%c112, %c0_87], %359 {strides = array<i32>} : memref<128x16xf32, #tpu.memory_space<vmem>>, vector<8x16xf32>,
    %cst_88 = arith.constant dense<0.000000e+00> : vector<8x64xf32>
    %361 = tpu.matmul %359, %58, %cst_88 {dimension_numbers = #tpu.dot_dimension_numbers<[1], [0], [0], [1], [0, 0, 1, 1], [], []>} : vector<8x16xf32>, vector<16x64xf32>, vector<8x64xf32> -> vector<8x64xf32>
    %362 = vector.extract_strided_slice %57 {offsets = [120, 0], sizes = [8, 64], strides = [1, 1]} : vector<128x64xf32> to vector<8x64xf32>
    %363 = arith.addf %362, %361 : vector<8x64xf32>
    %364 = vector.extract_strided_slice %363 {offsets = [0, 0], sizes = [8, 48], strides = [1, 1]} : vector<8x64xf32> to vector<8x48xf32>
    %365 = arith.negf %364 : vector<8x48xf32>
    %366 = math.exp %365 : vector<8x48xf32>
    %cst_89 = arith.constant 1.000000e+00 : f32
    %367 = vector.broadcast %cst_89 : f32 to vector<8x48xf32>
    %368 = arith.addf %367, %366 : vector<8x48xf32>
    %369 = arith.divf %367, %368 : vector<8x48xf32>
    %370 = vector.extract_strided_slice %363 {offsets = [0, 48], sizes = [8, 16], strides = [1, 1]} : vector<8x64xf32> to vector<8x16xf32>
    %371 = math.tanh %370 : vector<8x16xf32>
    %372 = vector.extract_strided_slice %369 {offsets = [0, 16], sizes = [8, 16], strides = [1, 1]} : vector<8x48xf32> to vector<8x16xf32>
    %373 = arith.mulf %372, %356 : vector<8x16xf32>
    %374 = vector.extract_strided_slice %369 {offsets = [0, 0], sizes = [8, 16], strides = [1, 1]} : vector<8x48xf32> to vector<8x16xf32>
    %375 = arith.mulf %374, %371 : vector<8x16xf32>
    %376 = arith.addf %373, %375 : vector<8x16xf32>
    %377 = vector.extract_strided_slice %369 {offsets = [0, 32], sizes = [8, 16], strides = [1, 1]} : vector<8x48xf32> to vector<8x16xf32>
    %378 = math.tanh %376 : vector<8x16xf32>
    %379 = arith.mulf %377, %378 : vector<8x16xf32>
    %c120 = arith.constant 120 : index
    %c0_90 = arith.constant 0 : index
    %380 = vector.load %arg9[%c120, %c0_90] : memref<128x16xf32, #tpu.memory_space<vmem>>, vector<8x16xf32>
    tpu.vector_store %arg9[%c120, %c0_90], %379 {strides = array<i32>} : memref<128x16xf32, #tpu.memory_space<vmem>>, vector<8x16xf32>,
    %c0_91 = arith.constant 0 : index
    %c0_92 = arith.constant 0 : index
    %381 = vector.load %arg9[%c0_91, %c0_92] : memref<128x16xf32, #tpu.memory_space<vmem>>, vector<128x16xf32>
    %c32_93 = arith.constant 32 : index
    %c0_94 = arith.constant 0 : index
    %382 = vector.load %arg6[%c32_93, %c0_94] : memref<208x64xf32, #tpu.memory_space<vmem>>, vector<16x64xf32>
    %c64_95 = arith.constant 64 : index
    %c0_96 = arith.constant 0 : index
    %383 = vector.load %arg6[%c64_95, %c0_96] : memref<208x64xf32, #tpu.memory_space<vmem>>, vector<1x64xf32>
    %cst_97 = arith.constant dense<0.000000e+00> : vector<128x64xf32>
    %384 = tpu.matmul %381, %382, %cst_97 {dimension_numbers = #tpu.dot_dimension_numbers<[1], [0], [0], [1], [0, 0, 1, 1], [], []>} : vector<128x16xf32>, vector<16x64xf32>, vector<128x64xf32> -> vector<128x64xf32>
    %385 = vector.broadcast %383 : vector<1x64xf32> to vector<128x64xf32>
    %386 = arith.addf %384, %385 : vector<128x64xf32>
    %c48_98 = arith.constant 48 : index
    %c0_99 = arith.constant 0 : index
    %387 = vector.load %arg6[%c48_98, %c0_99] : memref<208x64xf32, #tpu.memory_space<vmem>>, vector<16x64xf32>
    %cst_100 = arith.constant 0.000000e+00 : f32
    %388 = vector.broadcast %cst_100 : f32 to vector<8x16xf32>
    %cst_101 = arith.constant 0.000000e+00 : f32
    %389 = vector.broadcast %cst_101 : f32 to vector<8x16xf32>
    %cst_102 = arith.constant dense<0.000000e+00> : vector<8x64xf32>
    %390 = tpu.matmul %388, %387, %cst_102 {dimension_numbers = #tpu.dot_dimension_numbers<[1], [0], [0], [1], [0, 0, 1, 1], [], []>} : vector<8x16xf32>, vector<16x64xf32>, vector<8x64xf32> -> vector<8x64xf32>
    %391 = vector.extract_strided_slice %386 {offsets = [0, 0], sizes = [8, 64], strides = [1, 1]} : vector<128x64xf32> to vector<8x64xf32>
    %392 = arith.addf %391, %390 : vector<8x64xf32>
    %393 = vector.extract_strided_slice %392 {offsets = [0, 0], sizes = [8, 48], strides = [1, 1]} : vector<8x64xf32> to vector<8x48xf32>
    %394 = arith.negf %393 : vector<8x48xf32>
    %395 = math.exp %394 : vector<8x48xf32>
    %cst_103 = arith.constant 1.000000e+00 : f32
    %396 = vector.broadcast %cst_103 : f32 to vector<8x48xf32>
    %397 = arith.addf %396, %395 : vector<8x48xf32>
    %398 = arith.divf %396, %397 : vector<8x48xf32>
    %399 = vector.extract_strided_slice %392 {offsets = [0, 48], sizes = [8, 16], strides = [1, 1]} : vector<8x64xf32> to vector<8x16xf32>
    %400 = math.tanh %399 : vector<8x16xf32>
    %401 = vector.extract_strided_slice %398 {offsets = [0, 16], sizes = [8, 16], strides = [1, 1]} : vector<8x48xf32> to vector<8x16xf32>
    %402 = arith.mulf %401, %389 : vector<8x16xf32>
    %403 = vector.extract_strided_slice %398 {offsets = [0, 0], sizes = [8, 16], strides = [1, 1]} : vector<8x48xf32> to vector<8x16xf32>
    %404 = arith.mulf %403, %400 : vector<8x16xf32>
    %405 = arith.addf %402, %404 : vector<8x16xf32>
    %406 = vector.extract_strided_slice %398 {offsets = [0, 32], sizes = [8, 16], strides = [1, 1]} : vector<8x48xf32> to vector<8x16xf32>
    %407 = math.tanh %405 : vector<8x16xf32>
    %408 = arith.mulf %406, %407 : vector<8x16xf32>
    %c0_104 = arith.constant 0 : index
    %c0_105 = arith.constant 0 : index
    %409 = vector.load %arg9[%c0_104, %c0_105] : memref<128x16xf32, #tpu.memory_space<vmem>>, vector<8x16xf32>
    tpu.vector_store %arg9[%c0_104, %c0_105], %408 {strides = array<i32>} : memref<128x16xf32, #tpu.memory_space<vmem>>, vector<8x16xf32>,
    %cst_106 = arith.constant dense<0.000000e+00> : vector<8x64xf32>
    %410 = tpu.matmul %408, %387, %cst_106 {dimension_numbers = #tpu.dot_dimension_numbers<[1], [0], [0], [1], [0, 0, 1, 1], [], []>} : vector<8x16xf32>, vector<16x64xf32>, vector<8x64xf32> -> vector<8x64xf32>
    %411 = vector.extract_strided_slice %386 {offsets = [8, 0], sizes = [8, 64], strides = [1, 1]} : vector<128x64xf32> to vector<8x64xf32>
    %412 = arith.addf %411, %410 : vector<8x64xf32>
    %413 = vector.extract_strided_slice %412 {offsets = [0, 0], sizes = [8, 48], strides = [1, 1]} : vector<8x64xf32> to vector<8x48xf32>
    %414 = arith.negf %413 : vector<8x48xf32>
    %415 = math.exp %414 : vector<8x48xf32>
    %cst_107 = arith.constant 1.000000e+00 : f32
    %416 = vector.broadcast %cst_107 : f32 to vector<8x48xf32>
    %417 = arith.addf %416, %415 : vector<8x48xf32>
    %418 = arith.divf %416, %417 : vector<8x48xf32>
    %419 = vector.extract_strided_slice %412 {offsets = [0, 48], sizes = [8, 16], strides = [1, 1]} : vector<8x64xf32> to vector<8x16xf32>
    %420 = math.tanh %419 : vector<8x16xf32>
    %421 = vector.extract_strided_slice %418 {offsets = [0, 16], sizes = [8, 16], strides = [1, 1]} : vector<8x48xf32> to vector<8x16xf32>
    %422 = arith.mulf %421, %405 : vector<8x16xf32>
    %423 = vector.extract_strided_slice %418 {offsets = [0, 0], sizes = [8, 16], strides = [1, 1]} : vector<8x48xf32> to vector<8x16xf32>
    %424 = arith.mulf %423, %420 : vector<8x16xf32>
    %425 = arith.addf %422, %424 : vector<8x16xf32>
    %426 = vector.extract_strided_slice %418 {offsets = [0, 32], sizes = [8, 16], strides = [1, 1]} : vector<8x48xf32> to vector<8x16xf32>
    %427 = math.tanh %425 : vector<8x16xf32>
    %428 = arith.mulf %426, %427 : vector<8x16xf32>
    %c8_108 = arith.constant 8 : index
    %c0_109 = arith.constant 0 : index
    %429 = vector.load %arg9[%c8_108, %c0_109] : memref<128x16xf32, #tpu.memory_space<vmem>>, vector<8x16xf32>
    tpu.vector_store %arg9[%c8_108, %c0_109], %428 {strides = array<i32>} : memref<128x16xf32, #tpu.memory_space<vmem>>, vector<8x16xf32>,
    %cst_110 = arith.constant dense<0.000000e+00> : vector<8x64xf32>
    %430 = tpu.matmul %428, %387, %cst_110 {dimension_numbers = #tpu.dot_dimension_numbers<[1], [0], [0], [1], [0, 0, 1, 1], [], []>} : vector<8x16xf32>, vector<16x64xf32>, vector<8x64xf32> -> vector<8x64xf32>
    %431 = vector.extract_strided_slice %386 {offsets = [16, 0], sizes = [8, 64], strides = [1, 1]} : vector<128x64xf32> to vector<8x64xf32>
    %432 = arith.addf %431, %430 : vector<8x64xf32>
    %433 = vector.extract_strided_slice %432 {offsets = [0, 0], sizes = [8, 48], strides = [1, 1]} : vector<8x64xf32> to vector<8x48xf32>
    %434 = arith.negf %433 : vector<8x48xf32>
    %435 = math.exp %434 : vector<8x48xf32>
    %cst_111 = arith.constant 1.000000e+00 : f32
    %436 = vector.broadcast %cst_111 : f32 to vector<8x48xf32>
    %437 = arith.addf %436, %435 : vector<8x48xf32>
    %438 = arith.divf %436, %437 : vector<8x48xf32>
    %439 = vector.extract_strided_slice %432 {offsets = [0, 48], sizes = [8, 16], strides = [1, 1]} : vector<8x64xf32> to vector<8x16xf32>
    %440 = math.tanh %439 : vector<8x16xf32>
    %441 = vector.extract_strided_slice %438 {offsets = [0, 16], sizes = [8, 16], strides = [1, 1]} : vector<8x48xf32> to vector<8x16xf32>
    %442 = arith.mulf %441, %425 : vector<8x16xf32>
    %443 = vector.extract_strided_slice %438 {offsets = [0, 0], sizes = [8, 16], strides = [1, 1]} : vector<8x48xf32> to vector<8x16xf32>
    %444 = arith.mulf %443, %440 : vector<8x16xf32>
    %445 = arith.addf %442, %444 : vector<8x16xf32>
    %446 = vector.extract_strided_slice %438 {offsets = [0, 32], sizes = [8, 16], strides = [1, 1]} : vector<8x48xf32> to vector<8x16xf32>
    %447 = math.tanh %445 : vector<8x16xf32>
    %448 = arith.mulf %446, %447 : vector<8x16xf32>
    %c16_112 = arith.constant 16 : index
    %c0_113 = arith.constant 0 : index
    %449 = vector.load %arg9[%c16_112, %c0_113] : memref<128x16xf32, #tpu.memory_space<vmem>>, vector<8x16xf32>
    tpu.vector_store %arg9[%c16_112, %c0_113], %448 {strides = array<i32>} : memref<128x16xf32, #tpu.memory_space<vmem>>, vector<8x16xf32>,
    %cst_114 = arith.constant dense<0.000000e+00> : vector<8x64xf32>
    %450 = tpu.matmul %448, %387, %cst_114 {dimension_numbers = #tpu.dot_dimension_numbers<[1], [0], [0], [1], [0, 0, 1, 1], [], []>} : vector<8x16xf32>, vector<16x64xf32>, vector<8x64xf32> -> vector<8x64xf32>
    %451 = vector.extract_strided_slice %386 {offsets = [24, 0], sizes = [8, 64], strides = [1, 1]} : vector<128x64xf32> to vector<8x64xf32>
    %452 = arith.addf %451, %450 : vector<8x64xf32>
    %453 = vector.extract_strided_slice %452 {offsets = [0, 0], sizes = [8, 48], strides = [1, 1]} : vector<8x64xf32> to vector<8x48xf32>
    %454 = arith.negf %453 : vector<8x48xf32>
    %455 = math.exp %454 : vector<8x48xf32>
    %cst_115 = arith.constant 1.000000e+00 : f32
    %456 = vector.broadcast %cst_115 : f32 to vector<8x48xf32>
    %457 = arith.addf %456, %455 : vector<8x48xf32>
    %458 = arith.divf %456, %457 : vector<8x48xf32>
    %459 = vector.extract_strided_slice %452 {offsets = [0, 48], sizes = [8, 16], strides = [1, 1]} : vector<8x64xf32> to vector<8x16xf32>
    %460 = math.tanh %459 : vector<8x16xf32>
    %461 = vector.extract_strided_slice %458 {offsets = [0, 16], sizes = [8, 16], strides = [1, 1]} : vector<8x48xf32> to vector<8x16xf32>
    %462 = arith.mulf %461, %445 : vector<8x16xf32>
    %463 = vector.extract_strided_slice %458 {offsets = [0, 0], sizes = [8, 16], strides = [1, 1]} : vector<8x48xf32> to vector<8x16xf32>
    %464 = arith.mulf %463, %460 : vector<8x16xf32>
    %465 = arith.addf %462, %464 : vector<8x16xf32>
    %466 = vector.extract_strided_slice %458 {offsets = [0, 32], sizes = [8, 16], strides = [1, 1]} : vector<8x48xf32> to vector<8x16xf32>
    %467 = math.tanh %465 : vector<8x16xf32>
    %468 = arith.mulf %466, %467 : vector<8x16xf32>
    %c24_116 = arith.constant 24 : index
    %c0_117 = arith.constant 0 : index
    %469 = vector.load %arg9[%c24_116, %c0_117] : memref<128x16xf32, #tpu.memory_space<vmem>>, vector<8x16xf32>
    tpu.vector_store %arg9[%c24_116, %c0_117], %468 {strides = array<i32>} : memref<128x16xf32, #tpu.memory_space<vmem>>, vector<8x16xf32>,
    %cst_118 = arith.constant dense<0.000000e+00> : vector<8x64xf32>
    %470 = tpu.matmul %468, %387, %cst_118 {dimension_numbers = #tpu.dot_dimension_numbers<[1], [0], [0], [1], [0, 0, 1, 1], [], []>} : vector<8x16xf32>, vector<16x64xf32>, vector<8x64xf32> -> vector<8x64xf32>
    %471 = vector.extract_strided_slice %386 {offsets = [32, 0], sizes = [8, 64], strides = [1, 1]} : vector<128x64xf32> to vector<8x64xf32>
    %472 = arith.addf %471, %470 : vector<8x64xf32>
    %473 = vector.extract_strided_slice %472 {offsets = [0, 0], sizes = [8, 48], strides = [1, 1]} : vector<8x64xf32> to vector<8x48xf32>
    %474 = arith.negf %473 : vector<8x48xf32>
    %475 = math.exp %474 : vector<8x48xf32>
    %cst_119 = arith.constant 1.000000e+00 : f32
    %476 = vector.broadcast %cst_119 : f32 to vector<8x48xf32>
    %477 = arith.addf %476, %475 : vector<8x48xf32>
    %478 = arith.divf %476, %477 : vector<8x48xf32>
    %479 = vector.extract_strided_slice %472 {offsets = [0, 48], sizes = [8, 16], strides = [1, 1]} : vector<8x64xf32> to vector<8x16xf32>
    %480 = math.tanh %479 : vector<8x16xf32>
    %481 = vector.extract_strided_slice %478 {offsets = [0, 16], sizes = [8, 16], strides = [1, 1]} : vector<8x48xf32> to vector<8x16xf32>
    %482 = arith.mulf %481, %465 : vector<8x16xf32>
    %483 = vector.extract_strided_slice %478 {offsets = [0, 0], sizes = [8, 16], strides = [1, 1]} : vector<8x48xf32> to vector<8x16xf32>
    %484 = arith.mulf %483, %480 : vector<8x16xf32>
    %485 = arith.addf %482, %484 : vector<8x16xf32>
    %486 = vector.extract_strided_slice %478 {offsets = [0, 32], sizes = [8, 16], strides = [1, 1]} : vector<8x48xf32> to vector<8x16xf32>
    %487 = math.tanh %485 : vector<8x16xf32>
    %488 = arith.mulf %486, %487 : vector<8x16xf32>
    %c32_120 = arith.constant 32 : index
    %c0_121 = arith.constant 0 : index
    %489 = vector.load %arg9[%c32_120, %c0_121] : memref<128x16xf32, #tpu.memory_space<vmem>>, vector<8x16xf32>
    tpu.vector_store %arg9[%c32_120, %c0_121], %488 {strides = array<i32>} : memref<128x16xf32, #tpu.memory_space<vmem>>, vector<8x16xf32>,
    %cst_122 = arith.constant dense<0.000000e+00> : vector<8x64xf32>
    %490 = tpu.matmul %488, %387, %cst_122 {dimension_numbers = #tpu.dot_dimension_numbers<[1], [0], [0], [1], [0, 0, 1, 1], [], []>} : vector<8x16xf32>, vector<16x64xf32>, vector<8x64xf32> -> vector<8x64xf32>
    %491 = vector.extract_strided_slice %386 {offsets = [40, 0], sizes = [8, 64], strides = [1, 1]} : vector<128x64xf32> to vector<8x64xf32>
    %492 = arith.addf %491, %490 : vector<8x64xf32>
    %493 = vector.extract_strided_slice %492 {offsets = [0, 0], sizes = [8, 48], strides = [1, 1]} : vector<8x64xf32> to vector<8x48xf32>
    %494 = arith.negf %493 : vector<8x48xf32>
    %495 = math.exp %494 : vector<8x48xf32>
    %cst_123 = arith.constant 1.000000e+00 : f32
    %496 = vector.broadcast %cst_123 : f32 to vector<8x48xf32>
    %497 = arith.addf %496, %495 : vector<8x48xf32>
    %498 = arith.divf %496, %497 : vector<8x48xf32>
    %499 = vector.extract_strided_slice %492 {offsets = [0, 48], sizes = [8, 16], strides = [1, 1]} : vector<8x64xf32> to vector<8x16xf32>
    %500 = math.tanh %499 : vector<8x16xf32>
    %501 = vector.extract_strided_slice %498 {offsets = [0, 16], sizes = [8, 16], strides = [1, 1]} : vector<8x48xf32> to vector<8x16xf32>
    %502 = arith.mulf %501, %485 : vector<8x16xf32>
    %503 = vector.extract_strided_slice %498 {offsets = [0, 0], sizes = [8, 16], strides = [1, 1]} : vector<8x48xf32> to vector<8x16xf32>
    %504 = arith.mulf %503, %500 : vector<8x16xf32>
    %505 = arith.addf %502, %504 : vector<8x16xf32>
    %506 = vector.extract_strided_slice %498 {offsets = [0, 32], sizes = [8, 16], strides = [1, 1]} : vector<8x48xf32> to vector<8x16xf32>
    %507 = math.tanh %505 : vector<8x16xf32>
    %508 = arith.mulf %506, %507 : vector<8x16xf32>
    %c40_124 = arith.constant 40 : index
    %c0_125 = arith.constant 0 : index
    %509 = vector.load %arg9[%c40_124, %c0_125] : memref<128x16xf32, #tpu.memory_space<vmem>>, vector<8x16xf32>
    tpu.vector_store %arg9[%c40_124, %c0_125], %508 {strides = array<i32>} : memref<128x16xf32, #tpu.memory_space<vmem>>, vector<8x16xf32>,
    %cst_126 = arith.constant dense<0.000000e+00> : vector<8x64xf32>
    %510 = tpu.matmul %508, %387, %cst_126 {dimension_numbers = #tpu.dot_dimension_numbers<[1], [0], [0], [1], [0, 0, 1, 1], [], []>} : vector<8x16xf32>, vector<16x64xf32>, vector<8x64xf32> -> vector<8x64xf32>
    %511 = vector.extract_strided_slice %386 {offsets = [48, 0], sizes = [8, 64], strides = [1, 1]} : vector<128x64xf32> to vector<8x64xf32>
    %512 = arith.addf %511, %510 : vector<8x64xf32>
    %513 = vector.extract_strided_slice %512 {offsets = [0, 0], sizes = [8, 48], strides = [1, 1]} : vector<8x64xf32> to vector<8x48xf32>
    %514 = arith.negf %513 : vector<8x48xf32>
    %515 = math.exp %514 : vector<8x48xf32>
    %cst_127 = arith.constant 1.000000e+00 : f32
    %516 = vector.broadcast %cst_127 : f32 to vector<8x48xf32>
    %517 = arith.addf %516, %515 : vector<8x48xf32>
    %518 = arith.divf %516, %517 : vector<8x48xf32>
    %519 = vector.extract_strided_slice %512 {offsets = [0, 48], sizes = [8, 16], strides = [1, 1]} : vector<8x64xf32> to vector<8x16xf32>
    %520 = math.tanh %519 : vector<8x16xf32>
    %521 = vector.extract_strided_slice %518 {offsets = [0, 16], sizes = [8, 16], strides = [1, 1]} : vector<8x48xf32> to vector<8x16xf32>
    %522 = arith.mulf %521, %505 : vector<8x16xf32>
    %523 = vector.extract_strided_slice %518 {offsets = [0, 0], sizes = [8, 16], strides = [1, 1]} : vector<8x48xf32> to vector<8x16xf32>
    %524 = arith.mulf %523, %520 : vector<8x16xf32>
    %525 = arith.addf %522, %524 : vector<8x16xf32>
    %526 = vector.extract_strided_slice %518 {offsets = [0, 32], sizes = [8, 16], strides = [1, 1]} : vector<8x48xf32> to vector<8x16xf32>
    %527 = math.tanh %525 : vector<8x16xf32>
    %528 = arith.mulf %526, %527 : vector<8x16xf32>
    %c48_128 = arith.constant 48 : index
    %c0_129 = arith.constant 0 : index
    %529 = vector.load %arg9[%c48_128, %c0_129] : memref<128x16xf32, #tpu.memory_space<vmem>>, vector<8x16xf32>
    tpu.vector_store %arg9[%c48_128, %c0_129], %528 {strides = array<i32>} : memref<128x16xf32, #tpu.memory_space<vmem>>, vector<8x16xf32>,
    %cst_130 = arith.constant dense<0.000000e+00> : vector<8x64xf32>
    %530 = tpu.matmul %528, %387, %cst_130 {dimension_numbers = #tpu.dot_dimension_numbers<[1], [0], [0], [1], [0, 0, 1, 1], [], []>} : vector<8x16xf32>, vector<16x64xf32>, vector<8x64xf32> -> vector<8x64xf32>
    %531 = vector.extract_strided_slice %386 {offsets = [56, 0], sizes = [8, 64], strides = [1, 1]} : vector<128x64xf32> to vector<8x64xf32>
    %532 = arith.addf %531, %530 : vector<8x64xf32>
    %533 = vector.extract_strided_slice %532 {offsets = [0, 0], sizes = [8, 48], strides = [1, 1]} : vector<8x64xf32> to vector<8x48xf32>
    %534 = arith.negf %533 : vector<8x48xf32>
    %535 = math.exp %534 : vector<8x48xf32>
    %cst_131 = arith.constant 1.000000e+00 : f32
    %536 = vector.broadcast %cst_131 : f32 to vector<8x48xf32>
    %537 = arith.addf %536, %535 : vector<8x48xf32>
    %538 = arith.divf %536, %537 : vector<8x48xf32>
    %539 = vector.extract_strided_slice %532 {offsets = [0, 48], sizes = [8, 16], strides = [1, 1]} : vector<8x64xf32> to vector<8x16xf32>
    %540 = math.tanh %539 : vector<8x16xf32>
    %541 = vector.extract_strided_slice %538 {offsets = [0, 16], sizes = [8, 16], strides = [1, 1]} : vector<8x48xf32> to vector<8x16xf32>
    %542 = arith.mulf %541, %525 : vector<8x16xf32>
    %543 = vector.extract_strided_slice %538 {offsets = [0, 0], sizes = [8, 16], strides = [1, 1]} : vector<8x48xf32> to vector<8x16xf32>
    %544 = arith.mulf %543, %540 : vector<8x16xf32>
    %545 = arith.addf %542, %544 : vector<8x16xf32>
    %546 = vector.extract_strided_slice %538 {offsets = [0, 32], sizes = [8, 16], strides = [1, 1]} : vector<8x48xf32> to vector<8x16xf32>
    %547 = math.tanh %545 : vector<8x16xf32>
    %548 = arith.mulf %546, %547 : vector<8x16xf32>
    %c56_132 = arith.constant 56 : index
    %c0_133 = arith.constant 0 : index
    %549 = vector.load %arg9[%c56_132, %c0_133] : memref<128x16xf32, #tpu.memory_space<vmem>>, vector<8x16xf32>
    tpu.vector_store %arg9[%c56_132, %c0_133], %548 {strides = array<i32>} : memref<128x16xf32, #tpu.memory_space<vmem>>, vector<8x16xf32>,
    %cst_134 = arith.constant dense<0.000000e+00> : vector<8x64xf32>
    %550 = tpu.matmul %548, %387, %cst_134 {dimension_numbers = #tpu.dot_dimension_numbers<[1], [0], [0], [1], [0, 0, 1, 1], [], []>} : vector<8x16xf32>, vector<16x64xf32>, vector<8x64xf32> -> vector<8x64xf32>
    %551 = vector.extract_strided_slice %386 {offsets = [64, 0], sizes = [8, 64], strides = [1, 1]} : vector<128x64xf32> to vector<8x64xf32>
    %552 = arith.addf %551, %550 : vector<8x64xf32>
    %553 = vector.extract_strided_slice %552 {offsets = [0, 0], sizes = [8, 48], strides = [1, 1]} : vector<8x64xf32> to vector<8x48xf32>
    %554 = arith.negf %553 : vector<8x48xf32>
    %555 = math.exp %554 : vector<8x48xf32>
    %cst_135 = arith.constant 1.000000e+00 : f32
    %556 = vector.broadcast %cst_135 : f32 to vector<8x48xf32>
    %557 = arith.addf %556, %555 : vector<8x48xf32>
    %558 = arith.divf %556, %557 : vector<8x48xf32>
    %559 = vector.extract_strided_slice %552 {offsets = [0, 48], sizes = [8, 16], strides = [1, 1]} : vector<8x64xf32> to vector<8x16xf32>
    %560 = math.tanh %559 : vector<8x16xf32>
    %561 = vector.extract_strided_slice %558 {offsets = [0, 16], sizes = [8, 16], strides = [1, 1]} : vector<8x48xf32> to vector<8x16xf32>
    %562 = arith.mulf %561, %545 : vector<8x16xf32>
    %563 = vector.extract_strided_slice %558 {offsets = [0, 0], sizes = [8, 16], strides = [1, 1]} : vector<8x48xf32> to vector<8x16xf32>
    %564 = arith.mulf %563, %560 : vector<8x16xf32>
    %565 = arith.addf %562, %564 : vector<8x16xf32>
    %566 = vector.extract_strided_slice %558 {offsets = [0, 32], sizes = [8, 16], strides = [1, 1]} : vector<8x48xf32> to vector<8x16xf32>
    %567 = math.tanh %565 : vector<8x16xf32>
    %568 = arith.mulf %566, %567 : vector<8x16xf32>
    %c64_136 = arith.constant 64 : index
    %c0_137 = arith.constant 0 : index
    %569 = vector.load %arg9[%c64_136, %c0_137] : memref<128x16xf32, #tpu.memory_space<vmem>>, vector<8x16xf32>
    tpu.vector_store %arg9[%c64_136, %c0_137], %568 {strides = array<i32>} : memref<128x16xf32, #tpu.memory_space<vmem>>, vector<8x16xf32>,
    %cst_138 = arith.constant dense<0.000000e+00> : vector<8x64xf32>
    %570 = tpu.matmul %568, %387, %cst_138 {dimension_numbers = #tpu.dot_dimension_numbers<[1], [0], [0], [1], [0, 0, 1, 1], [], []>} : vector<8x16xf32>, vector<16x64xf32>, vector<8x64xf32> -> vector<8x64xf32>
    %571 = vector.extract_strided_slice %386 {offsets = [72, 0], sizes = [8, 64], strides = [1, 1]} : vector<128x64xf32> to vector<8x64xf32>
    %572 = arith.addf %571, %570 : vector<8x64xf32>
    %573 = vector.extract_strided_slice %572 {offsets = [0, 0], sizes = [8, 48], strides = [1, 1]} : vector<8x64xf32> to vector<8x48xf32>
    %574 = arith.negf %573 : vector<8x48xf32>
    %575 = math.exp %574 : vector<8x48xf32>
    %cst_139 = arith.constant 1.000000e+00 : f32
    %576 = vector.broadcast %cst_139 : f32 to vector<8x48xf32>
    %577 = arith.addf %576, %575 : vector<8x48xf32>
    %578 = arith.divf %576, %577 : vector<8x48xf32>
    %579 = vector.extract_strided_slice %572 {offsets = [0, 48], sizes = [8, 16], strides = [1, 1]} : vector<8x64xf32> to vector<8x16xf32>
    %580 = math.tanh %579 : vector<8x16xf32>
    %581 = vector.extract_strided_slice %578 {offsets = [0, 16], sizes = [8, 16], strides = [1, 1]} : vector<8x48xf32> to vector<8x16xf32>
    %582 = arith.mulf %581, %565 : vector<8x16xf32>
    %583 = vector.extract_strided_slice %578 {offsets = [0, 0], sizes = [8, 16], strides = [1, 1]} : vector<8x48xf32> to vector<8x16xf32>
    %584 = arith.mulf %583, %580 : vector<8x16xf32>
    %585 = arith.addf %582, %584 : vector<8x16xf32>
    %586 = vector.extract_strided_slice %578 {offsets = [0, 32], sizes = [8, 16], strides = [1, 1]} : vector<8x48xf32> to vector<8x16xf32>
    %587 = math.tanh %585 : vector<8x16xf32>
    %588 = arith.mulf %586, %587 : vector<8x16xf32>
    %c72_140 = arith.constant 72 : index
    %c0_141 = arith.constant 0 : index
    %589 = vector.load %arg9[%c72_140, %c0_141] : memref<128x16xf32, #tpu.memory_space<vmem>>, vector<8x16xf32>
    tpu.vector_store %arg9[%c72_140, %c0_141], %588 {strides = array<i32>} : memref<128x16xf32, #tpu.memory_space<vmem>>, vector<8x16xf32>,
    %cst_142 = arith.constant dense<0.000000e+00> : vector<8x64xf32>
    %590 = tpu.matmul %588, %387, %cst_142 {dimension_numbers = #tpu.dot_dimension_numbers<[1], [0], [0], [1], [0, 0, 1, 1], [], []>} : vector<8x16xf32>, vector<16x64xf32>, vector<8x64xf32> -> vector<8x64xf32>
    %591 = vector.extract_strided_slice %386 {offsets = [80, 0], sizes = [8, 64], strides = [1, 1]} : vector<128x64xf32> to vector<8x64xf32>
    %592 = arith.addf %591, %590 : vector<8x64xf32>
    %593 = vector.extract_strided_slice %592 {offsets = [0, 0], sizes = [8, 48], strides = [1, 1]} : vector<8x64xf32> to vector<8x48xf32>
    %594 = arith.negf %593 : vector<8x48xf32>
    %595 = math.exp %594 : vector<8x48xf32>
    %cst_143 = arith.constant 1.000000e+00 : f32
    %596 = vector.broadcast %cst_143 : f32 to vector<8x48xf32>
    %597 = arith.addf %596, %595 : vector<8x48xf32>
    %598 = arith.divf %596, %597 : vector<8x48xf32>
    %599 = vector.extract_strided_slice %592 {offsets = [0, 48], sizes = [8, 16], strides = [1, 1]} : vector<8x64xf32> to vector<8x16xf32>
    %600 = math.tanh %599 : vector<8x16xf32>
    %601 = vector.extract_strided_slice %598 {offsets = [0, 16], sizes = [8, 16], strides = [1, 1]} : vector<8x48xf32> to vector<8x16xf32>
    %602 = arith.mulf %601, %585 : vector<8x16xf32>
    %603 = vector.extract_strided_slice %598 {offsets = [0, 0], sizes = [8, 16], strides = [1, 1]} : vector<8x48xf32> to vector<8x16xf32>
    %604 = arith.mulf %603, %600 : vector<8x16xf32>
    %605 = arith.addf %602, %604 : vector<8x16xf32>
    %606 = vector.extract_strided_slice %598 {offsets = [0, 32], sizes = [8, 16], strides = [1, 1]} : vector<8x48xf32> to vector<8x16xf32>
    %607 = math.tanh %605 : vector<8x16xf32>
    %608 = arith.mulf %606, %607 : vector<8x16xf32>
    %c80_144 = arith.constant 80 : index
    %c0_145 = arith.constant 0 : index
    %609 = vector.load %arg9[%c80_144, %c0_145] : memref<128x16xf32, #tpu.memory_space<vmem>>, vector<8x16xf32>
    tpu.vector_store %arg9[%c80_144, %c0_145], %608 {strides = array<i32>} : memref<128x16xf32, #tpu.memory_space<vmem>>, vector<8x16xf32>,
    %cst_146 = arith.constant dense<0.000000e+00> : vector<8x64xf32>
    %610 = tpu.matmul %608, %387, %cst_146 {dimension_numbers = #tpu.dot_dimension_numbers<[1], [0], [0], [1], [0, 0, 1, 1], [], []>} : vector<8x16xf32>, vector<16x64xf32>, vector<8x64xf32> -> vector<8x64xf32>
    %611 = vector.extract_strided_slice %386 {offsets = [88, 0], sizes = [8, 64], strides = [1, 1]} : vector<128x64xf32> to vector<8x64xf32>
    %612 = arith.addf %611, %610 : vector<8x64xf32>
    %613 = vector.extract_strided_slice %612 {offsets = [0, 0], sizes = [8, 48], strides = [1, 1]} : vector<8x64xf32> to vector<8x48xf32>
    %614 = arith.negf %613 : vector<8x48xf32>
    %615 = math.exp %614 : vector<8x48xf32>
    %cst_147 = arith.constant 1.000000e+00 : f32
    %616 = vector.broadcast %cst_147 : f32 to vector<8x48xf32>
    %617 = arith.addf %616, %615 : vector<8x48xf32>
    %618 = arith.divf %616, %617 : vector<8x48xf32>
    %619 = vector.extract_strided_slice %612 {offsets = [0, 48], sizes = [8, 16], strides = [1, 1]} : vector<8x64xf32> to vector<8x16xf32>
    %620 = math.tanh %619 : vector<8x16xf32>
    %621 = vector.extract_strided_slice %618 {offsets = [0, 16], sizes = [8, 16], strides = [1, 1]} : vector<8x48xf32> to vector<8x16xf32>
    %622 = arith.mulf %621, %605 : vector<8x16xf32>
    %623 = vector.extract_strided_slice %618 {offsets = [0, 0], sizes = [8, 16], strides = [1, 1]} : vector<8x48xf32> to vector<8x16xf32>
    %624 = arith.mulf %623, %620 : vector<8x16xf32>
    %625 = arith.addf %622, %624 : vector<8x16xf32>
    %626 = vector.extract_strided_slice %618 {offsets = [0, 32], sizes = [8, 16], strides = [1, 1]} : vector<8x48xf32> to vector<8x16xf32>
    %627 = math.tanh %625 : vector<8x16xf32>
    %628 = arith.mulf %626, %627 : vector<8x16xf32>
    %c88_148 = arith.constant 88 : index
    %c0_149 = arith.constant 0 : index
    %629 = vector.load %arg9[%c88_148, %c0_149] : memref<128x16xf32, #tpu.memory_space<vmem>>, vector<8x16xf32>
    tpu.vector_store %arg9[%c88_148, %c0_149], %628 {strides = array<i32>} : memref<128x16xf32, #tpu.memory_space<vmem>>, vector<8x16xf32>,
    %cst_150 = arith.constant dense<0.000000e+00> : vector<8x64xf32>
    %630 = tpu.matmul %628, %387, %cst_150 {dimension_numbers = #tpu.dot_dimension_numbers<[1], [0], [0], [1], [0, 0, 1, 1], [], []>} : vector<8x16xf32>, vector<16x64xf32>, vector<8x64xf32> -> vector<8x64xf32>
    %631 = vector.extract_strided_slice %386 {offsets = [96, 0], sizes = [8, 64], strides = [1, 1]} : vector<128x64xf32> to vector<8x64xf32>
    %632 = arith.addf %631, %630 : vector<8x64xf32>
    %633 = vector.extract_strided_slice %632 {offsets = [0, 0], sizes = [8, 48], strides = [1, 1]} : vector<8x64xf32> to vector<8x48xf32>
    %634 = arith.negf %633 : vector<8x48xf32>
    %635 = math.exp %634 : vector<8x48xf32>
    %cst_151 = arith.constant 1.000000e+00 : f32
    %636 = vector.broadcast %cst_151 : f32 to vector<8x48xf32>
    %637 = arith.addf %636, %635 : vector<8x48xf32>
    %638 = arith.divf %636, %637 : vector<8x48xf32>
    %639 = vector.extract_strided_slice %632 {offsets = [0, 48], sizes = [8, 16], strides = [1, 1]} : vector<8x64xf32> to vector<8x16xf32>
    %640 = math.tanh %639 : vector<8x16xf32>
    %641 = vector.extract_strided_slice %638 {offsets = [0, 16], sizes = [8, 16], strides = [1, 1]} : vector<8x48xf32> to vector<8x16xf32>
    %642 = arith.mulf %641, %625 : vector<8x16xf32>
    %643 = vector.extract_strided_slice %638 {offsets = [0, 0], sizes = [8, 16], strides = [1, 1]} : vector<8x48xf32> to vector<8x16xf32>
    %644 = arith.mulf %643, %640 : vector<8x16xf32>
    %645 = arith.addf %642, %644 : vector<8x16xf32>
    %646 = vector.extract_strided_slice %638 {offsets = [0, 32], sizes = [8, 16], strides = [1, 1]} : vector<8x48xf32> to vector<8x16xf32>
    %647 = math.tanh %645 : vector<8x16xf32>
    %648 = arith.mulf %646, %647 : vector<8x16xf32>
    %c96_152 = arith.constant 96 : index
    %c0_153 = arith.constant 0 : index
    %649 = vector.load %arg9[%c96_152, %c0_153] : memref<128x16xf32, #tpu.memory_space<vmem>>, vector<8x16xf32>
    tpu.vector_store %arg9[%c96_152, %c0_153], %648 {strides = array<i32>} : memref<128x16xf32, #tpu.memory_space<vmem>>, vector<8x16xf32>,
    %cst_154 = arith.constant dense<0.000000e+00> : vector<8x64xf32>
    %650 = tpu.matmul %648, %387, %cst_154 {dimension_numbers = #tpu.dot_dimension_numbers<[1], [0], [0], [1], [0, 0, 1, 1], [], []>} : vector<8x16xf32>, vector<16x64xf32>, vector<8x64xf32> -> vector<8x64xf32>
    %651 = vector.extract_strided_slice %386 {offsets = [104, 0], sizes = [8, 64], strides = [1, 1]} : vector<128x64xf32> to vector<8x64xf32>
    %652 = arith.addf %651, %650 : vector<8x64xf32>
    %653 = vector.extract_strided_slice %652 {offsets = [0, 0], sizes = [8, 48], strides = [1, 1]} : vector<8x64xf32> to vector<8x48xf32>
    %654 = arith.negf %653 : vector<8x48xf32>
    %655 = math.exp %654 : vector<8x48xf32>
    %cst_155 = arith.constant 1.000000e+00 : f32
    %656 = vector.broadcast %cst_155 : f32 to vector<8x48xf32>
    %657 = arith.addf %656, %655 : vector<8x48xf32>
    %658 = arith.divf %656, %657 : vector<8x48xf32>
    %659 = vector.extract_strided_slice %652 {offsets = [0, 48], sizes = [8, 16], strides = [1, 1]} : vector<8x64xf32> to vector<8x16xf32>
    %660 = math.tanh %659 : vector<8x16xf32>
    %661 = vector.extract_strided_slice %658 {offsets = [0, 16], sizes = [8, 16], strides = [1, 1]} : vector<8x48xf32> to vector<8x16xf32>
    %662 = arith.mulf %661, %645 : vector<8x16xf32>
    %663 = vector.extract_strided_slice %658 {offsets = [0, 0], sizes = [8, 16], strides = [1, 1]} : vector<8x48xf32> to vector<8x16xf32>
    %664 = arith.mulf %663, %660 : vector<8x16xf32>
    %665 = arith.addf %662, %664 : vector<8x16xf32>
    %666 = vector.extract_strided_slice %658 {offsets = [0, 32], sizes = [8, 16], strides = [1, 1]} : vector<8x48xf32> to vector<8x16xf32>
    %667 = math.tanh %665 : vector<8x16xf32>
    %668 = arith.mulf %666, %667 : vector<8x16xf32>
    %c104_156 = arith.constant 104 : index
    %c0_157 = arith.constant 0 : index
    %669 = vector.load %arg9[%c104_156, %c0_157] : memref<128x16xf32, #tpu.memory_space<vmem>>, vector<8x16xf32>
    tpu.vector_store %arg9[%c104_156, %c0_157], %668 {strides = array<i32>} : memref<128x16xf32, #tpu.memory_space<vmem>>, vector<8x16xf32>,
    %cst_158 = arith.constant dense<0.000000e+00> : vector<8x64xf32>
    %670 = tpu.matmul %668, %387, %cst_158 {dimension_numbers = #tpu.dot_dimension_numbers<[1], [0], [0], [1], [0, 0, 1, 1], [], []>} : vector<8x16xf32>, vector<16x64xf32>, vector<8x64xf32> -> vector<8x64xf32>
    %671 = vector.extract_strided_slice %386 {offsets = [112, 0], sizes = [8, 64], strides = [1, 1]} : vector<128x64xf32> to vector<8x64xf32>
    %672 = arith.addf %671, %670 : vector<8x64xf32>
    %673 = vector.extract_strided_slice %672 {offsets = [0, 0], sizes = [8, 48], strides = [1, 1]} : vector<8x64xf32> to vector<8x48xf32>
    %674 = arith.negf %673 : vector<8x48xf32>
    %675 = math.exp %674 : vector<8x48xf32>
    %cst_159 = arith.constant 1.000000e+00 : f32
    %676 = vector.broadcast %cst_159 : f32 to vector<8x48xf32>
    %677 = arith.addf %676, %675 : vector<8x48xf32>
    %678 = arith.divf %676, %677 : vector<8x48xf32>
    %679 = vector.extract_strided_slice %672 {offsets = [0, 48], sizes = [8, 16], strides = [1, 1]} : vector<8x64xf32> to vector<8x16xf32>
    %680 = math.tanh %679 : vector<8x16xf32>
    %681 = vector.extract_strided_slice %678 {offsets = [0, 16], sizes = [8, 16], strides = [1, 1]} : vector<8x48xf32> to vector<8x16xf32>
    %682 = arith.mulf %681, %665 : vector<8x16xf32>
    %683 = vector.extract_strided_slice %678 {offsets = [0, 0], sizes = [8, 16], strides = [1, 1]} : vector<8x48xf32> to vector<8x16xf32>
    %684 = arith.mulf %683, %680 : vector<8x16xf32>
    %685 = arith.addf %682, %684 : vector<8x16xf32>
    %686 = vector.extract_strided_slice %678 {offsets = [0, 32], sizes = [8, 16], strides = [1, 1]} : vector<8x48xf32> to vector<8x16xf32>
    %687 = math.tanh %685 : vector<8x16xf32>
    %688 = arith.mulf %686, %687 : vector<8x16xf32>
    %c112_160 = arith.constant 112 : index
    %c0_161 = arith.constant 0 : index
    %689 = vector.load %arg9[%c112_160, %c0_161] : memref<128x16xf32, #tpu.memory_space<vmem>>, vector<8x16xf32>
    tpu.vector_store %arg9[%c112_160, %c0_161], %688 {strides = array<i32>} : memref<128x16xf32, #tpu.memory_space<vmem>>, vector<8x16xf32>,
    %cst_162 = arith.constant dense<0.000000e+00> : vector<8x64xf32>
    %690 = tpu.matmul %688, %387, %cst_162 {dimension_numbers = #tpu.dot_dimension_numbers<[1], [0], [0], [1], [0, 0, 1, 1], [], []>} : vector<8x16xf32>, vector<16x64xf32>, vector<8x64xf32> -> vector<8x64xf32>
    %691 = vector.extract_strided_slice %386 {offsets = [120, 0], sizes = [8, 64], strides = [1, 1]} : vector<128x64xf32> to vector<8x64xf32>
    %692 = arith.addf %691, %690 : vector<8x64xf32>
    %693 = vector.extract_strided_slice %692 {offsets = [0, 0], sizes = [8, 48], strides = [1, 1]} : vector<8x64xf32> to vector<8x48xf32>
    %694 = arith.negf %693 : vector<8x48xf32>
    %695 = math.exp %694 : vector<8x48xf32>
    %cst_163 = arith.constant 1.000000e+00 : f32
    %696 = vector.broadcast %cst_163 : f32 to vector<8x48xf32>
    %697 = arith.addf %696, %695 : vector<8x48xf32>
    %698 = arith.divf %696, %697 : vector<8x48xf32>
    %699 = vector.extract_strided_slice %692 {offsets = [0, 48], sizes = [8, 16], strides = [1, 1]} : vector<8x64xf32> to vector<8x16xf32>
    %700 = math.tanh %699 : vector<8x16xf32>
    %701 = vector.extract_strided_slice %698 {offsets = [0, 16], sizes = [8, 16], strides = [1, 1]} : vector<8x48xf32> to vector<8x16xf32>
    %702 = arith.mulf %701, %685 : vector<8x16xf32>
    %703 = vector.extract_strided_slice %698 {offsets = [0, 0], sizes = [8, 16], strides = [1, 1]} : vector<8x48xf32> to vector<8x16xf32>
    %704 = arith.mulf %703, %700 : vector<8x16xf32>
    %705 = arith.addf %702, %704 : vector<8x16xf32>
    %706 = vector.extract_strided_slice %698 {offsets = [0, 32], sizes = [8, 16], strides = [1, 1]} : vector<8x48xf32> to vector<8x16xf32>
    %707 = math.tanh %705 : vector<8x16xf32>
    %708 = arith.mulf %706, %707 : vector<8x16xf32>
    %c120_164 = arith.constant 120 : index
    %c0_165 = arith.constant 0 : index
    %709 = vector.load %arg9[%c120_164, %c0_165] : memref<128x16xf32, #tpu.memory_space<vmem>>, vector<8x16xf32>
    tpu.vector_store %arg9[%c120_164, %c0_165], %708 {strides = array<i32>} : memref<128x16xf32, #tpu.memory_space<vmem>>, vector<8x16xf32>,
    %c0_166 = arith.constant 0 : index
    %c0_167 = arith.constant 0 : index
    %710 = vector.load %arg9[%c0_166, %c0_167] : memref<128x16xf32, #tpu.memory_space<vmem>>, vector<128x16xf32>
    %c72_168 = arith.constant 72 : index
    %c0_169 = arith.constant 0 : index
    %711 = vector.load %arg6[%c72_168, %c0_169] : memref<208x64xf32, #tpu.memory_space<vmem>>, vector<16x32xf32>
    %c96_170 = arith.constant 96 : index
    %c0_171 = arith.constant 0 : index
    %712 = vector.load %arg6[%c96_170, %c0_171] : memref<208x64xf32, #tpu.memory_space<vmem>>, vector<1x32xf32>
    %cst_172 = arith.constant dense<0.000000e+00> : vector<128x32xf32>
    %713 = tpu.matmul %710, %711, %cst_172 {dimension_numbers = #tpu.dot_dimension_numbers<[1], [0], [0], [1], [0, 0, 1, 1], [], []>} : vector<128x16xf32>, vector<16x32xf32>, vector<128x32xf32> -> vector<128x32xf32>
    %714 = vector.broadcast %712 : vector<1x32xf32> to vector<128x32xf32>
    %715 = arith.addf %713, %714 : vector<128x32xf32>
    %c88_173 = arith.constant 88 : index
    %c0_174 = arith.constant 0 : index
    %716 = vector.load %arg6[%c88_173, %c0_174] : memref<208x64xf32, #tpu.memory_space<vmem>>, vector<8x32xf32>
    %cst_175 = arith.constant 0.000000e+00 : f32
    %717 = vector.broadcast %cst_175 : f32 to vector<8x8xf32>
    %cst_176 = arith.constant 0.000000e+00 : f32
    %718 = vector.broadcast %cst_176 : f32 to vector<8x8xf32>
    %cst_177 = arith.constant dense<0.000000e+00> : vector<8x32xf32>
    %719 = tpu.matmul %717, %716, %cst_177 {dimension_numbers = #tpu.dot_dimension_numbers<[1], [0], [0], [1], [0, 0, 1, 1], [], []>} : vector<8x8xf32>, vector<8x32xf32>, vector<8x32xf32> -> vector<8x32xf32>
    %720 = vector.extract_strided_slice %715 {offsets = [0, 0], sizes = [8, 32], strides = [1, 1]} : vector<128x32xf32> to vector<8x32xf32>
    %721 = arith.addf %720, %719 : vector<8x32xf32>
    %722 = vector.extract_strided_slice %721 {offsets = [0, 0], sizes = [8, 24], strides = [1, 1]} : vector<8x32xf32> to vector<8x24xf32>
    %723 = arith.negf %722 : vector<8x24xf32>
    %724 = math.exp %723 : vector<8x24xf32>
    %cst_178 = arith.constant 1.000000e+00 : f32
    %725 = vector.broadcast %cst_178 : f32 to vector<8x24xf32>
    %726 = arith.addf %725, %724 : vector<8x24xf32>
    %727 = arith.divf %725, %726 : vector<8x24xf32>
    %728 = vector.extract_strided_slice %721 {offsets = [0, 24], sizes = [8, 8], strides = [1, 1]} : vector<8x32xf32> to vector<8x8xf32>
    %729 = math.tanh %728 : vector<8x8xf32>
    %730 = vector.extract_strided_slice %727 {offsets = [0, 8], sizes = [8, 8], strides = [1, 1]} : vector<8x24xf32> to vector<8x8xf32>
    %731 = arith.mulf %730, %718 : vector<8x8xf32>
    %732 = vector.extract_strided_slice %727 {offsets = [0, 0], sizes = [8, 8], strides = [1, 1]} : vector<8x24xf32> to vector<8x8xf32>
    %733 = arith.mulf %732, %729 : vector<8x8xf32>
    %734 = arith.addf %731, %733 : vector<8x8xf32>
    %735 = vector.extract_strided_slice %727 {offsets = [0, 16], sizes = [8, 8], strides = [1, 1]} : vector<8x24xf32> to vector<8x8xf32>
    %736 = math.tanh %734 : vector<8x8xf32>
    %737 = arith.mulf %735, %736 : vector<8x8xf32>
    %cst_179 = arith.constant dense<0.000000e+00> : vector<8x32xf32>
    %738 = tpu.matmul %737, %716, %cst_179 {dimension_numbers = #tpu.dot_dimension_numbers<[1], [0], [0], [1], [0, 0, 1, 1], [], []>} : vector<8x8xf32>, vector<8x32xf32>, vector<8x32xf32> -> vector<8x32xf32>
    %739 = vector.extract_strided_slice %715 {offsets = [8, 0], sizes = [8, 32], strides = [1, 1]} : vector<128x32xf32> to vector<8x32xf32>
    %740 = arith.addf %739, %738 : vector<8x32xf32>
    %741 = vector.extract_strided_slice %740 {offsets = [0, 0], sizes = [8, 24], strides = [1, 1]} : vector<8x32xf32> to vector<8x24xf32>
    %742 = arith.negf %741 : vector<8x24xf32>
    %743 = math.exp %742 : vector<8x24xf32>
    %cst_180 = arith.constant 1.000000e+00 : f32
    %744 = vector.broadcast %cst_180 : f32 to vector<8x24xf32>
    %745 = arith.addf %744, %743 : vector<8x24xf32>
    %746 = arith.divf %744, %745 : vector<8x24xf32>
    %747 = vector.extract_strided_slice %740 {offsets = [0, 24], sizes = [8, 8], strides = [1, 1]} : vector<8x32xf32> to vector<8x8xf32>
    %748 = math.tanh %747 : vector<8x8xf32>
    %749 = vector.extract_strided_slice %746 {offsets = [0, 8], sizes = [8, 8], strides = [1, 1]} : vector<8x24xf32> to vector<8x8xf32>
    %750 = arith.mulf %749, %734 : vector<8x8xf32>
    %751 = vector.extract_strided_slice %746 {offsets = [0, 0], sizes = [8, 8], strides = [1, 1]} : vector<8x24xf32> to vector<8x8xf32>
    %752 = arith.mulf %751, %748 : vector<8x8xf32>
    %753 = arith.addf %750, %752 : vector<8x8xf32>
    %754 = vector.extract_strided_slice %746 {offsets = [0, 16], sizes = [8, 8], strides = [1, 1]} : vector<8x24xf32> to vector<8x8xf32>
    %755 = math.tanh %753 : vector<8x8xf32>
    %756 = arith.mulf %754, %755 : vector<8x8xf32>
    %cst_181 = arith.constant dense<0.000000e+00> : vector<8x32xf32>
    %757 = tpu.matmul %756, %716, %cst_181 {dimension_numbers = #tpu.dot_dimension_numbers<[1], [0], [0], [1], [0, 0, 1, 1], [], []>} : vector<8x8xf32>, vector<8x32xf32>, vector<8x32xf32> -> vector<8x32xf32>
    %758 = vector.extract_strided_slice %715 {offsets = [16, 0], sizes = [8, 32], strides = [1, 1]} : vector<128x32xf32> to vector<8x32xf32>
    %759 = arith.addf %758, %757 : vector<8x32xf32>
    %760 = vector.extract_strided_slice %759 {offsets = [0, 0], sizes = [8, 24], strides = [1, 1]} : vector<8x32xf32> to vector<8x24xf32>
    %761 = arith.negf %760 : vector<8x24xf32>
    %762 = math.exp %761 : vector<8x24xf32>
    %cst_182 = arith.constant 1.000000e+00 : f32
    %763 = vector.broadcast %cst_182 : f32 to vector<8x24xf32>
    %764 = arith.addf %763, %762 : vector<8x24xf32>
    %765 = arith.divf %763, %764 : vector<8x24xf32>
    %766 = vector.extract_strided_slice %759 {offsets = [0, 24], sizes = [8, 8], strides = [1, 1]} : vector<8x32xf32> to vector<8x8xf32>
    %767 = math.tanh %766 : vector<8x8xf32>
    %768 = vector.extract_strided_slice %765 {offsets = [0, 8], sizes = [8, 8], strides = [1, 1]} : vector<8x24xf32> to vector<8x8xf32>
    %769 = arith.mulf %768, %753 : vector<8x8xf32>
    %770 = vector.extract_strided_slice %765 {offsets = [0, 0], sizes = [8, 8], strides = [1, 1]} : vector<8x24xf32> to vector<8x8xf32>
    %771 = arith.mulf %770, %767 : vector<8x8xf32>
    %772 = arith.addf %769, %771 : vector<8x8xf32>
    %773 = vector.extract_strided_slice %765 {offsets = [0, 16], sizes = [8, 8], strides = [1, 1]} : vector<8x24xf32> to vector<8x8xf32>
    %774 = math.tanh %772 : vector<8x8xf32>
    %775 = arith.mulf %773, %774 : vector<8x8xf32>
    %cst_183 = arith.constant dense<0.000000e+00> : vector<8x32xf32>
    %776 = tpu.matmul %775, %716, %cst_183 {dimension_numbers = #tpu.dot_dimension_numbers<[1], [0], [0], [1], [0, 0, 1, 1], [], []>} : vector<8x8xf32>, vector<8x32xf32>, vector<8x32xf32> -> vector<8x32xf32>
    %777 = vector.extract_strided_slice %715 {offsets = [24, 0], sizes = [8, 32], strides = [1, 1]} : vector<128x32xf32> to vector<8x32xf32>
    %778 = arith.addf %777, %776 : vector<8x32xf32>
    %779 = vector.extract_strided_slice %778 {offsets = [0, 0], sizes = [8, 24], strides = [1, 1]} : vector<8x32xf32> to vector<8x24xf32>
    %780 = arith.negf %779 : vector<8x24xf32>
    %781 = math.exp %780 : vector<8x24xf32>
    %cst_184 = arith.constant 1.000000e+00 : f32
    %782 = vector.broadcast %cst_184 : f32 to vector<8x24xf32>
    %783 = arith.addf %782, %781 : vector<8x24xf32>
    %784 = arith.divf %782, %783 : vector<8x24xf32>
    %785 = vector.extract_strided_slice %778 {offsets = [0, 24], sizes = [8, 8], strides = [1, 1]} : vector<8x32xf32> to vector<8x8xf32>
    %786 = math.tanh %785 : vector<8x8xf32>
    %787 = vector.extract_strided_slice %784 {offsets = [0, 8], sizes = [8, 8], strides = [1, 1]} : vector<8x24xf32> to vector<8x8xf32>
    %788 = arith.mulf %787, %772 : vector<8x8xf32>
    %789 = vector.extract_strided_slice %784 {offsets = [0, 0], sizes = [8, 8], strides = [1, 1]} : vector<8x24xf32> to vector<8x8xf32>
    %790 = arith.mulf %789, %786 : vector<8x8xf32>
    %791 = arith.addf %788, %790 : vector<8x8xf32>
    %792 = vector.extract_strided_slice %784 {offsets = [0, 16], sizes = [8, 8], strides = [1, 1]} : vector<8x24xf32> to vector<8x8xf32>
    %793 = math.tanh %791 : vector<8x8xf32>
    %794 = arith.mulf %792, %793 : vector<8x8xf32>
    %cst_185 = arith.constant dense<0.000000e+00> : vector<8x32xf32>
    %795 = tpu.matmul %794, %716, %cst_185 {dimension_numbers = #tpu.dot_dimension_numbers<[1], [0], [0], [1], [0, 0, 1, 1], [], []>} : vector<8x8xf32>, vector<8x32xf32>, vector<8x32xf32> -> vector<8x32xf32>
    %796 = vector.extract_strided_slice %715 {offsets = [32, 0], sizes = [8, 32], strides = [1, 1]} : vector<128x32xf32> to vector<8x32xf32>
    %797 = arith.addf %796, %795 : vector<8x32xf32>
    %798 = vector.extract_strided_slice %797 {offsets = [0, 0], sizes = [8, 24], strides = [1, 1]} : vector<8x32xf32> to vector<8x24xf32>
    %799 = arith.negf %798 : vector<8x24xf32>
    %800 = math.exp %799 : vector<8x24xf32>
    %cst_186 = arith.constant 1.000000e+00 : f32
    %801 = vector.broadcast %cst_186 : f32 to vector<8x24xf32>
    %802 = arith.addf %801, %800 : vector<8x24xf32>
    %803 = arith.divf %801, %802 : vector<8x24xf32>
    %804 = vector.extract_strided_slice %797 {offsets = [0, 24], sizes = [8, 8], strides = [1, 1]} : vector<8x32xf32> to vector<8x8xf32>
    %805 = math.tanh %804 : vector<8x8xf32>
    %806 = vector.extract_strided_slice %803 {offsets = [0, 8], sizes = [8, 8], strides = [1, 1]} : vector<8x24xf32> to vector<8x8xf32>
    %807 = arith.mulf %806, %791 : vector<8x8xf32>
    %808 = vector.extract_strided_slice %803 {offsets = [0, 0], sizes = [8, 8], strides = [1, 1]} : vector<8x24xf32> to vector<8x8xf32>
    %809 = arith.mulf %808, %805 : vector<8x8xf32>
    %810 = arith.addf %807, %809 : vector<8x8xf32>
    %811 = vector.extract_strided_slice %803 {offsets = [0, 16], sizes = [8, 8], strides = [1, 1]} : vector<8x24xf32> to vector<8x8xf32>
    %812 = math.tanh %810 : vector<8x8xf32>
    %813 = arith.mulf %811, %812 : vector<8x8xf32>
    %cst_187 = arith.constant dense<0.000000e+00> : vector<8x32xf32>
    %814 = tpu.matmul %813, %716, %cst_187 {dimension_numbers = #tpu.dot_dimension_numbers<[1], [0], [0], [1], [0, 0, 1, 1], [], []>} : vector<8x8xf32>, vector<8x32xf32>, vector<8x32xf32> -> vector<8x32xf32>
    %815 = vector.extract_strided_slice %715 {offsets = [40, 0], sizes = [8, 32], strides = [1, 1]} : vector<128x32xf32> to vector<8x32xf32>
    %816 = arith.addf %815, %814 : vector<8x32xf32>
    %817 = vector.extract_strided_slice %816 {offsets = [0, 0], sizes = [8, 24], strides = [1, 1]} : vector<8x32xf32> to vector<8x24xf32>
    %818 = arith.negf %817 : vector<8x24xf32>
    %819 = math.exp %818 : vector<8x24xf32>
    %cst_188 = arith.constant 1.000000e+00 : f32
    %820 = vector.broadcast %cst_188 : f32 to vector<8x24xf32>
    %821 = arith.addf %820, %819 : vector<8x24xf32>
    %822 = arith.divf %820, %821 : vector<8x24xf32>
    %823 = vector.extract_strided_slice %816 {offsets = [0, 24], sizes = [8, 8], strides = [1, 1]} : vector<8x32xf32> to vector<8x8xf32>
    %824 = math.tanh %823 : vector<8x8xf32>
    %825 = vector.extract_strided_slice %822 {offsets = [0, 8], sizes = [8, 8], strides = [1, 1]} : vector<8x24xf32> to vector<8x8xf32>
    %826 = arith.mulf %825, %810 : vector<8x8xf32>
    %827 = vector.extract_strided_slice %822 {offsets = [0, 0], sizes = [8, 8], strides = [1, 1]} : vector<8x24xf32> to vector<8x8xf32>
    %828 = arith.mulf %827, %824 : vector<8x8xf32>
    %829 = arith.addf %826, %828 : vector<8x8xf32>
    %830 = vector.extract_strided_slice %822 {offsets = [0, 16], sizes = [8, 8], strides = [1, 1]} : vector<8x24xf32> to vector<8x8xf32>
    %831 = math.tanh %829 : vector<8x8xf32>
    %832 = arith.mulf %830, %831 : vector<8x8xf32>
    %cst_189 = arith.constant dense<0.000000e+00> : vector<8x32xf32>
    %833 = tpu.matmul %832, %716, %cst_189 {dimension_numbers = #tpu.dot_dimension_numbers<[1], [0], [0], [1], [0, 0, 1, 1], [], []>} : vector<8x8xf32>, vector<8x32xf32>, vector<8x32xf32> -> vector<8x32xf32>
    %834 = vector.extract_strided_slice %715 {offsets = [48, 0], sizes = [8, 32], strides = [1, 1]} : vector<128x32xf32> to vector<8x32xf32>
    %835 = arith.addf %834, %833 : vector<8x32xf32>
    %836 = vector.extract_strided_slice %835 {offsets = [0, 0], sizes = [8, 24], strides = [1, 1]} : vector<8x32xf32> to vector<8x24xf32>
    %837 = arith.negf %836 : vector<8x24xf32>
    %838 = math.exp %837 : vector<8x24xf32>
    %cst_190 = arith.constant 1.000000e+00 : f32
    %839 = vector.broadcast %cst_190 : f32 to vector<8x24xf32>
    %840 = arith.addf %839, %838 : vector<8x24xf32>
    %841 = arith.divf %839, %840 : vector<8x24xf32>
    %842 = vector.extract_strided_slice %835 {offsets = [0, 24], sizes = [8, 8], strides = [1, 1]} : vector<8x32xf32> to vector<8x8xf32>
    %843 = math.tanh %842 : vector<8x8xf32>
    %844 = vector.extract_strided_slice %841 {offsets = [0, 8], sizes = [8, 8], strides = [1, 1]} : vector<8x24xf32> to vector<8x8xf32>
    %845 = arith.mulf %844, %829 : vector<8x8xf32>
    %846 = vector.extract_strided_slice %841 {offsets = [0, 0], sizes = [8, 8], strides = [1, 1]} : vector<8x24xf32> to vector<8x8xf32>
    %847 = arith.mulf %846, %843 : vector<8x8xf32>
    %848 = arith.addf %845, %847 : vector<8x8xf32>
    %849 = vector.extract_strided_slice %841 {offsets = [0, 16], sizes = [8, 8], strides = [1, 1]} : vector<8x24xf32> to vector<8x8xf32>
    %850 = math.tanh %848 : vector<8x8xf32>
    %851 = arith.mulf %849, %850 : vector<8x8xf32>
    %cst_191 = arith.constant dense<0.000000e+00> : vector<8x32xf32>
    %852 = tpu.matmul %851, %716, %cst_191 {dimension_numbers = #tpu.dot_dimension_numbers<[1], [0], [0], [1], [0, 0, 1, 1], [], []>} : vector<8x8xf32>, vector<8x32xf32>, vector<8x32xf32> -> vector<8x32xf32>
    %853 = vector.extract_strided_slice %715 {offsets = [56, 0], sizes = [8, 32], strides = [1, 1]} : vector<128x32xf32> to vector<8x32xf32>
    %854 = arith.addf %853, %852 : vector<8x32xf32>
    %855 = vector.extract_strided_slice %854 {offsets = [0, 0], sizes = [8, 24], strides = [1, 1]} : vector<8x32xf32> to vector<8x24xf32>
    %856 = arith.negf %855 : vector<8x24xf32>
    %857 = math.exp %856 : vector<8x24xf32>
    %cst_192 = arith.constant 1.000000e+00 : f32
    %858 = vector.broadcast %cst_192 : f32 to vector<8x24xf32>
    %859 = arith.addf %858, %857 : vector<8x24xf32>
    %860 = arith.divf %858, %859 : vector<8x24xf32>
    %861 = vector.extract_strided_slice %854 {offsets = [0, 24], sizes = [8, 8], strides = [1, 1]} : vector<8x32xf32> to vector<8x8xf32>
    %862 = math.tanh %861 : vector<8x8xf32>
    %863 = vector.extract_strided_slice %860 {offsets = [0, 8], sizes = [8, 8], strides = [1, 1]} : vector<8x24xf32> to vector<8x8xf32>
    %864 = arith.mulf %863, %848 : vector<8x8xf32>
    %865 = vector.extract_strided_slice %860 {offsets = [0, 0], sizes = [8, 8], strides = [1, 1]} : vector<8x24xf32> to vector<8x8xf32>
    %866 = arith.mulf %865, %862 : vector<8x8xf32>
    %867 = arith.addf %864, %866 : vector<8x8xf32>
    %868 = vector.extract_strided_slice %860 {offsets = [0, 16], sizes = [8, 8], strides = [1, 1]} : vector<8x24xf32> to vector<8x8xf32>
    %869 = math.tanh %867 : vector<8x8xf32>
    %870 = arith.mulf %868, %869 : vector<8x8xf32>
    %cst_193 = arith.constant dense<0.000000e+00> : vector<8x32xf32>
    %871 = tpu.matmul %870, %716, %cst_193 {dimension_numbers = #tpu.dot_dimension_numbers<[1], [0], [0], [1], [0, 0, 1, 1], [], []>} : vector<8x8xf32>, vector<8x32xf32>, vector<8x32xf32> -> vector<8x32xf32>
    %872 = vector.extract_strided_slice %715 {offsets = [64, 0], sizes = [8, 32], strides = [1, 1]} : vector<128x32xf32> to vector<8x32xf32>
    %873 = arith.addf %872, %871 : vector<8x32xf32>
    %874 = vector.extract_strided_slice %873 {offsets = [0, 0], sizes = [8, 24], strides = [1, 1]} : vector<8x32xf32> to vector<8x24xf32>
    %875 = arith.negf %874 : vector<8x24xf32>
    %876 = math.exp %875 : vector<8x24xf32>
    %cst_194 = arith.constant 1.000000e+00 : f32
    %877 = vector.broadcast %cst_194 : f32 to vector<8x24xf32>
    %878 = arith.addf %877, %876 : vector<8x24xf32>
    %879 = arith.divf %877, %878 : vector<8x24xf32>
    %880 = vector.extract_strided_slice %873 {offsets = [0, 24], sizes = [8, 8], strides = [1, 1]} : vector<8x32xf32> to vector<8x8xf32>
    %881 = math.tanh %880 : vector<8x8xf32>
    %882 = vector.extract_strided_slice %879 {offsets = [0, 8], sizes = [8, 8], strides = [1, 1]} : vector<8x24xf32> to vector<8x8xf32>
    %883 = arith.mulf %882, %867 : vector<8x8xf32>
    %884 = vector.extract_strided_slice %879 {offsets = [0, 0], sizes = [8, 8], strides = [1, 1]} : vector<8x24xf32> to vector<8x8xf32>
    %885 = arith.mulf %884, %881 : vector<8x8xf32>
    %886 = arith.addf %883, %885 : vector<8x8xf32>
    %887 = vector.extract_strided_slice %879 {offsets = [0, 16], sizes = [8, 8], strides = [1, 1]} : vector<8x24xf32> to vector<8x8xf32>
    %888 = math.tanh %886 : vector<8x8xf32>
    %889 = arith.mulf %887, %888 : vector<8x8xf32>
    %cst_195 = arith.constant dense<0.000000e+00> : vector<8x32xf32>
    %890 = tpu.matmul %889, %716, %cst_195 {dimension_numbers = #tpu.dot_dimension_numbers<[1], [0], [0], [1], [0, 0, 1, 1], [], []>} : vector<8x8xf32>, vector<8x32xf32>, vector<8x32xf32> -> vector<8x32xf32>
    %891 = vector.extract_strided_slice %715 {offsets = [72, 0], sizes = [8, 32], strides = [1, 1]} : vector<128x32xf32> to vector<8x32xf32>
    %892 = arith.addf %891, %890 : vector<8x32xf32>
    %893 = vector.extract_strided_slice %892 {offsets = [0, 0], sizes = [8, 24], strides = [1, 1]} : vector<8x32xf32> to vector<8x24xf32>
    %894 = arith.negf %893 : vector<8x24xf32>
    %895 = math.exp %894 : vector<8x24xf32>
    %cst_196 = arith.constant 1.000000e+00 : f32
    %896 = vector.broadcast %cst_196 : f32 to vector<8x24xf32>
    %897 = arith.addf %896, %895 : vector<8x24xf32>
    %898 = arith.divf %896, %897 : vector<8x24xf32>
    %899 = vector.extract_strided_slice %892 {offsets = [0, 24], sizes = [8, 8], strides = [1, 1]} : vector<8x32xf32> to vector<8x8xf32>
    %900 = math.tanh %899 : vector<8x8xf32>
    %901 = vector.extract_strided_slice %898 {offsets = [0, 8], sizes = [8, 8], strides = [1, 1]} : vector<8x24xf32> to vector<8x8xf32>
    %902 = arith.mulf %901, %886 : vector<8x8xf32>
    %903 = vector.extract_strided_slice %898 {offsets = [0, 0], sizes = [8, 8], strides = [1, 1]} : vector<8x24xf32> to vector<8x8xf32>
    %904 = arith.mulf %903, %900 : vector<8x8xf32>
    %905 = arith.addf %902, %904 : vector<8x8xf32>
    %906 = vector.extract_strided_slice %898 {offsets = [0, 16], sizes = [8, 8], strides = [1, 1]} : vector<8x24xf32> to vector<8x8xf32>
    %907 = math.tanh %905 : vector<8x8xf32>
    %908 = arith.mulf %906, %907 : vector<8x8xf32>
    %cst_197 = arith.constant dense<0.000000e+00> : vector<8x32xf32>
    %909 = tpu.matmul %908, %716, %cst_197 {dimension_numbers = #tpu.dot_dimension_numbers<[1], [0], [0], [1], [0, 0, 1, 1], [], []>} : vector<8x8xf32>, vector<8x32xf32>, vector<8x32xf32> -> vector<8x32xf32>
    %910 = vector.extract_strided_slice %715 {offsets = [80, 0], sizes = [8, 32], strides = [1, 1]} : vector<128x32xf32> to vector<8x32xf32>
    %911 = arith.addf %910, %909 : vector<8x32xf32>
    %912 = vector.extract_strided_slice %911 {offsets = [0, 0], sizes = [8, 24], strides = [1, 1]} : vector<8x32xf32> to vector<8x24xf32>
    %913 = arith.negf %912 : vector<8x24xf32>
    %914 = math.exp %913 : vector<8x24xf32>
    %cst_198 = arith.constant 1.000000e+00 : f32
    %915 = vector.broadcast %cst_198 : f32 to vector<8x24xf32>
    %916 = arith.addf %915, %914 : vector<8x24xf32>
    %917 = arith.divf %915, %916 : vector<8x24xf32>
    %918 = vector.extract_strided_slice %911 {offsets = [0, 24], sizes = [8, 8], strides = [1, 1]} : vector<8x32xf32> to vector<8x8xf32>
    %919 = math.tanh %918 : vector<8x8xf32>
    %920 = vector.extract_strided_slice %917 {offsets = [0, 8], sizes = [8, 8], strides = [1, 1]} : vector<8x24xf32> to vector<8x8xf32>
    %921 = arith.mulf %920, %905 : vector<8x8xf32>
    %922 = vector.extract_strided_slice %917 {offsets = [0, 0], sizes = [8, 8], strides = [1, 1]} : vector<8x24xf32> to vector<8x8xf32>
    %923 = arith.mulf %922, %919 : vector<8x8xf32>
    %924 = arith.addf %921, %923 : vector<8x8xf32>
    %925 = vector.extract_strided_slice %917 {offsets = [0, 16], sizes = [8, 8], strides = [1, 1]} : vector<8x24xf32> to vector<8x8xf32>
    %926 = math.tanh %924 : vector<8x8xf32>
    %927 = arith.mulf %925, %926 : vector<8x8xf32>
    %cst_199 = arith.constant dense<0.000000e+00> : vector<8x32xf32>
    %928 = tpu.matmul %927, %716, %cst_199 {dimension_numbers = #tpu.dot_dimension_numbers<[1], [0], [0], [1], [0, 0, 1, 1], [], []>} : vector<8x8xf32>, vector<8x32xf32>, vector<8x32xf32> -> vector<8x32xf32>
    %929 = vector.extract_strided_slice %715 {offsets = [88, 0], sizes = [8, 32], strides = [1, 1]} : vector<128x32xf32> to vector<8x32xf32>
    %930 = arith.addf %929, %928 : vector<8x32xf32>
    %931 = vector.extract_strided_slice %930 {offsets = [0, 0], sizes = [8, 24], strides = [1, 1]} : vector<8x32xf32> to vector<8x24xf32>
    %932 = arith.negf %931 : vector<8x24xf32>
    %933 = math.exp %932 : vector<8x24xf32>
    %cst_200 = arith.constant 1.000000e+00 : f32
    %934 = vector.broadcast %cst_200 : f32 to vector<8x24xf32>
    %935 = arith.addf %934, %933 : vector<8x24xf32>
    %936 = arith.divf %934, %935 : vector<8x24xf32>
    %937 = vector.extract_strided_slice %930 {offsets = [0, 24], sizes = [8, 8], strides = [1, 1]} : vector<8x32xf32> to vector<8x8xf32>
    %938 = math.tanh %937 : vector<8x8xf32>
    %939 = vector.extract_strided_slice %936 {offsets = [0, 8], sizes = [8, 8], strides = [1, 1]} : vector<8x24xf32> to vector<8x8xf32>
    %940 = arith.mulf %939, %924 : vector<8x8xf32>
    %941 = vector.extract_strided_slice %936 {offsets = [0, 0], sizes = [8, 8], strides = [1, 1]} : vector<8x24xf32> to vector<8x8xf32>
    %942 = arith.mulf %941, %938 : vector<8x8xf32>
    %943 = arith.addf %940, %942 : vector<8x8xf32>
    %944 = vector.extract_strided_slice %936 {offsets = [0, 16], sizes = [8, 8], strides = [1, 1]} : vector<8x24xf32> to vector<8x8xf32>
    %945 = math.tanh %943 : vector<8x8xf32>
    %946 = arith.mulf %944, %945 : vector<8x8xf32>
    %cst_201 = arith.constant dense<0.000000e+00> : vector<8x32xf32>
    %947 = tpu.matmul %946, %716, %cst_201 {dimension_numbers = #tpu.dot_dimension_numbers<[1], [0], [0], [1], [0, 0, 1, 1], [], []>} : vector<8x8xf32>, vector<8x32xf32>, vector<8x32xf32> -> vector<8x32xf32>
    %948 = vector.extract_strided_slice %715 {offsets = [96, 0], sizes = [8, 32], strides = [1, 1]} : vector<128x32xf32> to vector<8x32xf32>
    %949 = arith.addf %948, %947 : vector<8x32xf32>
    %950 = vector.extract_strided_slice %949 {offsets = [0, 0], sizes = [8, 24], strides = [1, 1]} : vector<8x32xf32> to vector<8x24xf32>
    %951 = arith.negf %950 : vector<8x24xf32>
    %952 = math.exp %951 : vector<8x24xf32>
    %cst_202 = arith.constant 1.000000e+00 : f32
    %953 = vector.broadcast %cst_202 : f32 to vector<8x24xf32>
    %954 = arith.addf %953, %952 : vector<8x24xf32>
    %955 = arith.divf %953, %954 : vector<8x24xf32>
    %956 = vector.extract_strided_slice %949 {offsets = [0, 24], sizes = [8, 8], strides = [1, 1]} : vector<8x32xf32> to vector<8x8xf32>
    %957 = math.tanh %956 : vector<8x8xf32>
    %958 = vector.extract_strided_slice %955 {offsets = [0, 8], sizes = [8, 8], strides = [1, 1]} : vector<8x24xf32> to vector<8x8xf32>
    %959 = arith.mulf %958, %943 : vector<8x8xf32>
    %960 = vector.extract_strided_slice %955 {offsets = [0, 0], sizes = [8, 8], strides = [1, 1]} : vector<8x24xf32> to vector<8x8xf32>
    %961 = arith.mulf %960, %957 : vector<8x8xf32>
    %962 = arith.addf %959, %961 : vector<8x8xf32>
    %963 = vector.extract_strided_slice %955 {offsets = [0, 16], sizes = [8, 8], strides = [1, 1]} : vector<8x24xf32> to vector<8x8xf32>
    %964 = math.tanh %962 : vector<8x8xf32>
    %965 = arith.mulf %963, %964 : vector<8x8xf32>
    %cst_203 = arith.constant dense<0.000000e+00> : vector<8x32xf32>
    %966 = tpu.matmul %965, %716, %cst_203 {dimension_numbers = #tpu.dot_dimension_numbers<[1], [0], [0], [1], [0, 0, 1, 1], [], []>} : vector<8x8xf32>, vector<8x32xf32>, vector<8x32xf32> -> vector<8x32xf32>
    %967 = vector.extract_strided_slice %715 {offsets = [104, 0], sizes = [8, 32], strides = [1, 1]} : vector<128x32xf32> to vector<8x32xf32>
    %968 = arith.addf %967, %966 : vector<8x32xf32>
    %969 = vector.extract_strided_slice %968 {offsets = [0, 0], sizes = [8, 24], strides = [1, 1]} : vector<8x32xf32> to vector<8x24xf32>
    %970 = arith.negf %969 : vector<8x24xf32>
    %971 = math.exp %970 : vector<8x24xf32>
    %cst_204 = arith.constant 1.000000e+00 : f32
    %972 = vector.broadcast %cst_204 : f32 to vector<8x24xf32>
    %973 = arith.addf %972, %971 : vector<8x24xf32>
    %974 = arith.divf %972, %973 : vector<8x24xf32>
    %975 = vector.extract_strided_slice %968 {offsets = [0, 24], sizes = [8, 8], strides = [1, 1]} : vector<8x32xf32> to vector<8x8xf32>
    %976 = math.tanh %975 : vector<8x8xf32>
    %977 = vector.extract_strided_slice %974 {offsets = [0, 8], sizes = [8, 8], strides = [1, 1]} : vector<8x24xf32> to vector<8x8xf32>
    %978 = arith.mulf %977, %962 : vector<8x8xf32>
    %979 = vector.extract_strided_slice %974 {offsets = [0, 0], sizes = [8, 8], strides = [1, 1]} : vector<8x24xf32> to vector<8x8xf32>
    %980 = arith.mulf %979, %976 : vector<8x8xf32>
    %981 = arith.addf %978, %980 : vector<8x8xf32>
    %982 = vector.extract_strided_slice %974 {offsets = [0, 16], sizes = [8, 8], strides = [1, 1]} : vector<8x24xf32> to vector<8x8xf32>
    %983 = math.tanh %981 : vector<8x8xf32>
    %984 = arith.mulf %982, %983 : vector<8x8xf32>
    %cst_205 = arith.constant dense<0.000000e+00> : vector<8x32xf32>
    %985 = tpu.matmul %984, %716, %cst_205 {dimension_numbers = #tpu.dot_dimension_numbers<[1], [0], [0], [1], [0, 0, 1, 1], [], []>} : vector<8x8xf32>, vector<8x32xf32>, vector<8x32xf32> -> vector<8x32xf32>
    %986 = vector.extract_strided_slice %715 {offsets = [112, 0], sizes = [8, 32], strides = [1, 1]} : vector<128x32xf32> to vector<8x32xf32>
    %987 = arith.addf %986, %985 : vector<8x32xf32>
    %988 = vector.extract_strided_slice %987 {offsets = [0, 0], sizes = [8, 24], strides = [1, 1]} : vector<8x32xf32> to vector<8x24xf32>
    %989 = arith.negf %988 : vector<8x24xf32>
    %990 = math.exp %989 : vector<8x24xf32>
    %cst_206 = arith.constant 1.000000e+00 : f32
    %991 = vector.broadcast %cst_206 : f32 to vector<8x24xf32>
    %992 = arith.addf %991, %990 : vector<8x24xf32>
    %993 = arith.divf %991, %992 : vector<8x24xf32>
    %994 = vector.extract_strided_slice %987 {offsets = [0, 24], sizes = [8, 8], strides = [1, 1]} : vector<8x32xf32> to vector<8x8xf32>
    %995 = math.tanh %994 : vector<8x8xf32>
    %996 = vector.extract_strided_slice %993 {offsets = [0, 8], sizes = [8, 8], strides = [1, 1]} : vector<8x24xf32> to vector<8x8xf32>
    %997 = arith.mulf %996, %981 : vector<8x8xf32>
    %998 = vector.extract_strided_slice %993 {offsets = [0, 0], sizes = [8, 8], strides = [1, 1]} : vector<8x24xf32> to vector<8x8xf32>
    %999 = arith.mulf %998, %995 : vector<8x8xf32>
    %1000 = arith.addf %997, %999 : vector<8x8xf32>
    %1001 = vector.extract_strided_slice %993 {offsets = [0, 16], sizes = [8, 8], strides = [1, 1]} : vector<8x24xf32> to vector<8x8xf32>
    %1002 = math.tanh %1000 : vector<8x8xf32>
    %1003 = arith.mulf %1001, %1002 : vector<8x8xf32>
    %cst_207 = arith.constant dense<0.000000e+00> : vector<8x32xf32>
    %1004 = tpu.matmul %1003, %716, %cst_207 {dimension_numbers = #tpu.dot_dimension_numbers<[1], [0], [0], [1], [0, 0, 1, 1], [], []>} : vector<8x8xf32>, vector<8x32xf32>, vector<8x32xf32> -> vector<8x32xf32>
    %1005 = vector.extract_strided_slice %715 {offsets = [120, 0], sizes = [8, 32], strides = [1, 1]} : vector<128x32xf32> to vector<8x32xf32>
    %1006 = arith.addf %1005, %1004 : vector<8x32xf32>
    %1007 = vector.extract_strided_slice %1006 {offsets = [0, 0], sizes = [8, 24], strides = [1, 1]} : vector<8x32xf32> to vector<8x24xf32>
    %1008 = arith.negf %1007 : vector<8x24xf32>
    %1009 = math.exp %1008 : vector<8x24xf32>
    %cst_208 = arith.constant 1.000000e+00 : f32
    %1010 = vector.broadcast %cst_208 : f32 to vector<8x24xf32>
    %1011 = arith.addf %1010, %1009 : vector<8x24xf32>
    %1012 = arith.divf %1010, %1011 : vector<8x24xf32>
    %1013 = vector.extract_strided_slice %1006 {offsets = [0, 24], sizes = [8, 8], strides = [1, 1]} : vector<8x32xf32> to vector<8x8xf32>
    %1014 = math.tanh %1013 : vector<8x8xf32>
    %1015 = vector.extract_strided_slice %1012 {offsets = [0, 8], sizes = [8, 8], strides = [1, 1]} : vector<8x24xf32> to vector<8x8xf32>
    %1016 = arith.mulf %1015, %1000 : vector<8x8xf32>
    %1017 = vector.extract_strided_slice %1012 {offsets = [0, 0], sizes = [8, 8], strides = [1, 1]} : vector<8x24xf32> to vector<8x8xf32>
    %1018 = arith.mulf %1017, %1014 : vector<8x8xf32>
    %1019 = arith.addf %1016, %1018 : vector<8x8xf32>
    %1020 = vector.extract_strided_slice %1012 {offsets = [0, 16], sizes = [8, 8], strides = [1, 1]} : vector<8x24xf32> to vector<8x8xf32>
    %1021 = math.tanh %1019 : vector<8x8xf32>
    %1022 = arith.mulf %1020, %1021 : vector<8x8xf32>
    %c0_209 = arith.constant 0 : index
    %c0_210 = arith.constant 0 : index
    %1023 = vector.load %arg7[%c0_209, %c0_210] : memref<8x8xf32, #tpu.memory_space<vmem>>, vector<8x8xf32>
    tpu.vector_store %arg7[%c0_209, %c0_210], %1022 {strides = array<i32>} : memref<8x8xf32, #tpu.memory_space<vmem>>, vector<8x8xf32>,
    %c104_211 = arith.constant 104 : index
    %c0_212 = arith.constant 0 : index
    %1024 = vector.load %arg6[%c104_211, %c0_212] : memref<208x64xf32, #tpu.memory_space<vmem>>, vector<8x64xf32>
    %c128_213 = arith.constant 128 : index
    %c0_214 = arith.constant 0 : index
    %1025 = vector.load %arg6[%c128_213, %c0_214] : memref<208x64xf32, #tpu.memory_space<vmem>>, vector<1x64xf32>
    %cst_215 = arith.constant dense<0.000000e+00> : vector<8x64xf32>
    %1026 = tpu.matmul %1022, %1024, %cst_215 {dimension_numbers = #tpu.dot_dimension_numbers<[1], [0], [0], [1], [0, 0, 1, 1], [], []>} : vector<8x8xf32>, vector<8x64xf32>, vector<8x64xf32> -> vector<8x64xf32>
    %1027 = vector.broadcast %1025 : vector<1x64xf32> to vector<8x64xf32>
    %1028 = arith.addf %1026, %1027 : vector<8x64xf32>
    %c112_216 = arith.constant 112 : index
    %c0_217 = arith.constant 0 : index
    %1029 = vector.load %arg6[%c112_216, %c0_217] : memref<208x64xf32, #tpu.memory_space<vmem>>, vector<16x64xf32>
    %cst_218 = arith.constant 0.000000e+00 : f32
    %1030 = vector.broadcast %cst_218 : f32 to vector<8x16xf32>
    %cst_219 = arith.constant 0.000000e+00 : f32
    %1031 = vector.broadcast %cst_219 : f32 to vector<8x16xf32>
    %cst_220 = arith.constant dense<0.000000e+00> : vector<8x64xf32>
    %1032 = tpu.matmul %1030, %1029, %cst_220 {dimension_numbers = #tpu.dot_dimension_numbers<[1], [0], [0], [1], [0, 0, 1, 1], [], []>} : vector<8x16xf32>, vector<16x64xf32>, vector<8x64xf32> -> vector<8x64xf32>
    %1033 = arith.addf %1028, %1032 : vector<8x64xf32>
    %1034 = vector.extract_strided_slice %1033 {offsets = [0, 0], sizes = [8, 48], strides = [1, 1]} : vector<8x64xf32> to vector<8x48xf32>
    %1035 = arith.negf %1034 : vector<8x48xf32>
    %1036 = math.exp %1035 : vector<8x48xf32>
    %cst_221 = arith.constant 1.000000e+00 : f32
    %1037 = vector.broadcast %cst_221 : f32 to vector<8x48xf32>
    %1038 = arith.addf %1037, %1036 : vector<8x48xf32>
    %1039 = arith.divf %1037, %1038 : vector<8x48xf32>
    %1040 = vector.extract_strided_slice %1033 {offsets = [0, 48], sizes = [8, 16], strides = [1, 1]} : vector<8x64xf32> to vector<8x16xf32>
    %1041 = math.tanh %1040 : vector<8x16xf32>
    %1042 = vector.extract_strided_slice %1039 {offsets = [0, 16], sizes = [8, 16], strides = [1, 1]} : vector<8x48xf32> to vector<8x16xf32>
    %1043 = arith.mulf %1042, %1031 : vector<8x16xf32>
    %1044 = vector.extract_strided_slice %1039 {offsets = [0, 0], sizes = [8, 16], strides = [1, 1]} : vector<8x48xf32> to vector<8x16xf32>
    %1045 = arith.mulf %1044, %1041 : vector<8x16xf32>
    %1046 = arith.addf %1043, %1045 : vector<8x16xf32>
    %1047 = vector.extract_strided_slice %1039 {offsets = [0, 32], sizes = [8, 16], strides = [1, 1]} : vector<8x48xf32> to vector<8x16xf32>
    %1048 = math.tanh %1046 : vector<8x16xf32>
    %1049 = arith.mulf %1047, %1048 : vector<8x16xf32>
    %c0_222 = arith.constant 0 : index
    %c0_223 = arith.constant 0 : index
    %1050 = vector.load %arg9[%c0_222, %c0_223] : memref<128x16xf32, #tpu.memory_space<vmem>>, vector<8x16xf32>
    tpu.vector_store %arg9[%c0_222, %c0_223], %1049 {strides = array<i32>} : memref<128x16xf32, #tpu.memory_space<vmem>>, vector<8x16xf32>,
    %cst_224 = arith.constant dense<0.000000e+00> : vector<8x64xf32>
    %1051 = tpu.matmul %1049, %1029, %cst_224 {dimension_numbers = #tpu.dot_dimension_numbers<[1], [0], [0], [1], [0, 0, 1, 1], [], []>} : vector<8x16xf32>, vector<16x64xf32>, vector<8x64xf32> -> vector<8x64xf32>
    %1052 = arith.addf %1028, %1051 : vector<8x64xf32>
    %1053 = vector.extract_strided_slice %1052 {offsets = [0, 0], sizes = [8, 48], strides = [1, 1]} : vector<8x64xf32> to vector<8x48xf32>
    %1054 = arith.negf %1053 : vector<8x48xf32>
    %1055 = math.exp %1054 : vector<8x48xf32>
    %cst_225 = arith.constant 1.000000e+00 : f32
    %1056 = vector.broadcast %cst_225 : f32 to vector<8x48xf32>
    %1057 = arith.addf %1056, %1055 : vector<8x48xf32>
    %1058 = arith.divf %1056, %1057 : vector<8x48xf32>
    %1059 = vector.extract_strided_slice %1052 {offsets = [0, 48], sizes = [8, 16], strides = [1, 1]} : vector<8x64xf32> to vector<8x16xf32>
    %1060 = math.tanh %1059 : vector<8x16xf32>
    %1061 = vector.extract_strided_slice %1058 {offsets = [0, 16], sizes = [8, 16], strides = [1, 1]} : vector<8x48xf32> to vector<8x16xf32>
    %1062 = arith.mulf %1061, %1046 : vector<8x16xf32>
    %1063 = vector.extract_strided_slice %1058 {offsets = [0, 0], sizes = [8, 16], strides = [1, 1]} : vector<8x48xf32> to vector<8x16xf32>
    %1064 = arith.mulf %1063, %1060 : vector<8x16xf32>
    %1065 = arith.addf %1062, %1064 : vector<8x16xf32>
    %1066 = vector.extract_strided_slice %1058 {offsets = [0, 32], sizes = [8, 16], strides = [1, 1]} : vector<8x48xf32> to vector<8x16xf32>
    %1067 = math.tanh %1065 : vector<8x16xf32>
    %1068 = arith.mulf %1066, %1067 : vector<8x16xf32>
    %c8_226 = arith.constant 8 : index
    %c0_227 = arith.constant 0 : index
    %1069 = vector.load %arg9[%c8_226, %c0_227] : memref<128x16xf32, #tpu.memory_space<vmem>>, vector<8x16xf32>
    tpu.vector_store %arg9[%c8_226, %c0_227], %1068 {strides = array<i32>} : memref<128x16xf32, #tpu.memory_space<vmem>>, vector<8x16xf32>,
    %cst_228 = arith.constant dense<0.000000e+00> : vector<8x64xf32>
    %1070 = tpu.matmul %1068, %1029, %cst_228 {dimension_numbers = #tpu.dot_dimension_numbers<[1], [0], [0], [1], [0, 0, 1, 1], [], []>} : vector<8x16xf32>, vector<16x64xf32>, vector<8x64xf32> -> vector<8x64xf32>
    %1071 = arith.addf %1028, %1070 : vector<8x64xf32>
    %1072 = vector.extract_strided_slice %1071 {offsets = [0, 0], sizes = [8, 48], strides = [1, 1]} : vector<8x64xf32> to vector<8x48xf32>
    %1073 = arith.negf %1072 : vector<8x48xf32>
    %1074 = math.exp %1073 : vector<8x48xf32>
    %cst_229 = arith.constant 1.000000e+00 : f32
    %1075 = vector.broadcast %cst_229 : f32 to vector<8x48xf32>
    %1076 = arith.addf %1075, %1074 : vector<8x48xf32>
    %1077 = arith.divf %1075, %1076 : vector<8x48xf32>
    %1078 = vector.extract_strided_slice %1071 {offsets = [0, 48], sizes = [8, 16], strides = [1, 1]} : vector<8x64xf32> to vector<8x16xf32>
    %1079 = math.tanh %1078 : vector<8x16xf32>
    %1080 = vector.extract_strided_slice %1077 {offsets = [0, 16], sizes = [8, 16], strides = [1, 1]} : vector<8x48xf32> to vector<8x16xf32>
    %1081 = arith.mulf %1080, %1065 : vector<8x16xf32>
    %1082 = vector.extract_strided_slice %1077 {offsets = [0, 0], sizes = [8, 16], strides = [1, 1]} : vector<8x48xf32> to vector<8x16xf32>
    %1083 = arith.mulf %1082, %1079 : vector<8x16xf32>
    %1084 = arith.addf %1081, %1083 : vector<8x16xf32>
    %1085 = vector.extract_strided_slice %1077 {offsets = [0, 32], sizes = [8, 16], strides = [1, 1]} : vector<8x48xf32> to vector<8x16xf32>
    %1086 = math.tanh %1084 : vector<8x16xf32>
    %1087 = arith.mulf %1085, %1086 : vector<8x16xf32>
    %c16_230 = arith.constant 16 : index
    %c0_231 = arith.constant 0 : index
    %1088 = vector.load %arg9[%c16_230, %c0_231] : memref<128x16xf32, #tpu.memory_space<vmem>>, vector<8x16xf32>
    tpu.vector_store %arg9[%c16_230, %c0_231], %1087 {strides = array<i32>} : memref<128x16xf32, #tpu.memory_space<vmem>>, vector<8x16xf32>,
    %cst_232 = arith.constant dense<0.000000e+00> : vector<8x64xf32>
    %1089 = tpu.matmul %1087, %1029, %cst_232 {dimension_numbers = #tpu.dot_dimension_numbers<[1], [0], [0], [1], [0, 0, 1, 1], [], []>} : vector<8x16xf32>, vector<16x64xf32>, vector<8x64xf32> -> vector<8x64xf32>
    %1090 = arith.addf %1028, %1089 : vector<8x64xf32>
    %1091 = vector.extract_strided_slice %1090 {offsets = [0, 0], sizes = [8, 48], strides = [1, 1]} : vector<8x64xf32> to vector<8x48xf32>
    %1092 = arith.negf %1091 : vector<8x48xf32>
    %1093 = math.exp %1092 : vector<8x48xf32>
    %cst_233 = arith.constant 1.000000e+00 : f32
    %1094 = vector.broadcast %cst_233 : f32 to vector<8x48xf32>
    %1095 = arith.addf %1094, %1093 : vector<8x48xf32>
    %1096 = arith.divf %1094, %1095 : vector<8x48xf32>
    %1097 = vector.extract_strided_slice %1090 {offsets = [0, 48], sizes = [8, 16], strides = [1, 1]} : vector<8x64xf32> to vector<8x16xf32>
    %1098 = math.tanh %1097 : vector<8x16xf32>
    %1099 = vector.extract_strided_slice %1096 {offsets = [0, 16], sizes = [8, 16], strides = [1, 1]} : vector<8x48xf32> to vector<8x16xf32>
    %1100 = arith.mulf %1099, %1084 : vector<8x16xf32>
    %1101 = vector.extract_strided_slice %1096 {offsets = [0, 0], sizes = [8, 16], strides = [1, 1]} : vector<8x48xf32> to vector<8x16xf32>
    %1102 = arith.mulf %1101, %1098 : vector<8x16xf32>
    %1103 = arith.addf %1100, %1102 : vector<8x16xf32>
    %1104 = vector.extract_strided_slice %1096 {offsets = [0, 32], sizes = [8, 16], strides = [1, 1]} : vector<8x48xf32> to vector<8x16xf32>
    %1105 = math.tanh %1103 : vector<8x16xf32>
    %1106 = arith.mulf %1104, %1105 : vector<8x16xf32>
    %c24_234 = arith.constant 24 : index
    %c0_235 = arith.constant 0 : index
    %1107 = vector.load %arg9[%c24_234, %c0_235] : memref<128x16xf32, #tpu.memory_space<vmem>>, vector<8x16xf32>
    tpu.vector_store %arg9[%c24_234, %c0_235], %1106 {strides = array<i32>} : memref<128x16xf32, #tpu.memory_space<vmem>>, vector<8x16xf32>,
    %cst_236 = arith.constant dense<0.000000e+00> : vector<8x64xf32>
    %1108 = tpu.matmul %1106, %1029, %cst_236 {dimension_numbers = #tpu.dot_dimension_numbers<[1], [0], [0], [1], [0, 0, 1, 1], [], []>} : vector<8x16xf32>, vector<16x64xf32>, vector<8x64xf32> -> vector<8x64xf32>
    %1109 = arith.addf %1028, %1108 : vector<8x64xf32>
    %1110 = vector.extract_strided_slice %1109 {offsets = [0, 0], sizes = [8, 48], strides = [1, 1]} : vector<8x64xf32> to vector<8x48xf32>
    %1111 = arith.negf %1110 : vector<8x48xf32>
    %1112 = math.exp %1111 : vector<8x48xf32>
    %cst_237 = arith.constant 1.000000e+00 : f32
    %1113 = vector.broadcast %cst_237 : f32 to vector<8x48xf32>
    %1114 = arith.addf %1113, %1112 : vector<8x48xf32>
    %1115 = arith.divf %1113, %1114 : vector<8x48xf32>
    %1116 = vector.extract_strided_slice %1109 {offsets = [0, 48], sizes = [8, 16], strides = [1, 1]} : vector<8x64xf32> to vector<8x16xf32>
    %1117 = math.tanh %1116 : vector<8x16xf32>
    %1118 = vector.extract_strided_slice %1115 {offsets = [0, 16], sizes = [8, 16], strides = [1, 1]} : vector<8x48xf32> to vector<8x16xf32>
    %1119 = arith.mulf %1118, %1103 : vector<8x16xf32>
    %1120 = vector.extract_strided_slice %1115 {offsets = [0, 0], sizes = [8, 16], strides = [1, 1]} : vector<8x48xf32> to vector<8x16xf32>
    %1121 = arith.mulf %1120, %1117 : vector<8x16xf32>
    %1122 = arith.addf %1119, %1121 : vector<8x16xf32>
    %1123 = vector.extract_strided_slice %1115 {offsets = [0, 32], sizes = [8, 16], strides = [1, 1]} : vector<8x48xf32> to vector<8x16xf32>
    %1124 = math.tanh %1122 : vector<8x16xf32>
    %1125 = arith.mulf %1123, %1124 : vector<8x16xf32>
    %c32_238 = arith.constant 32 : index
    %c0_239 = arith.constant 0 : index
    %1126 = vector.load %arg9[%c32_238, %c0_239] : memref<128x16xf32, #tpu.memory_space<vmem>>, vector<8x16xf32>
    tpu.vector_store %arg9[%c32_238, %c0_239], %1125 {strides = array<i32>} : memref<128x16xf32, #tpu.memory_space<vmem>>, vector<8x16xf32>,
    %cst_240 = arith.constant dense<0.000000e+00> : vector<8x64xf32>
    %1127 = tpu.matmul %1125, %1029, %cst_240 {dimension_numbers = #tpu.dot_dimension_numbers<[1], [0], [0], [1], [0, 0, 1, 1], [], []>} : vector<8x16xf32>, vector<16x64xf32>, vector<8x64xf32> -> vector<8x64xf32>
    %1128 = arith.addf %1028, %1127 : vector<8x64xf32>
    %1129 = vector.extract_strided_slice %1128 {offsets = [0, 0], sizes = [8, 48], strides = [1, 1]} : vector<8x64xf32> to vector<8x48xf32>
    %1130 = arith.negf %1129 : vector<8x48xf32>
    %1131 = math.exp %1130 : vector<8x48xf32>
    %cst_241 = arith.constant 1.000000e+00 : f32
    %1132 = vector.broadcast %cst_241 : f32 to vector<8x48xf32>
    %1133 = arith.addf %1132, %1131 : vector<8x48xf32>
    %1134 = arith.divf %1132, %1133 : vector<8x48xf32>
    %1135 = vector.extract_strided_slice %1128 {offsets = [0, 48], sizes = [8, 16], strides = [1, 1]} : vector<8x64xf32> to vector<8x16xf32>
    %1136 = math.tanh %1135 : vector<8x16xf32>
    %1137 = vector.extract_strided_slice %1134 {offsets = [0, 16], sizes = [8, 16], strides = [1, 1]} : vector<8x48xf32> to vector<8x16xf32>
    %1138 = arith.mulf %1137, %1122 : vector<8x16xf32>
    %1139 = vector.extract_strided_slice %1134 {offsets = [0, 0], sizes = [8, 16], strides = [1, 1]} : vector<8x48xf32> to vector<8x16xf32>
    %1140 = arith.mulf %1139, %1136 : vector<8x16xf32>
    %1141 = arith.addf %1138, %1140 : vector<8x16xf32>
    %1142 = vector.extract_strided_slice %1134 {offsets = [0, 32], sizes = [8, 16], strides = [1, 1]} : vector<8x48xf32> to vector<8x16xf32>
    %1143 = math.tanh %1141 : vector<8x16xf32>
    %1144 = arith.mulf %1142, %1143 : vector<8x16xf32>
    %c40_242 = arith.constant 40 : index
    %c0_243 = arith.constant 0 : index
    %1145 = vector.load %arg9[%c40_242, %c0_243] : memref<128x16xf32, #tpu.memory_space<vmem>>, vector<8x16xf32>
    tpu.vector_store %arg9[%c40_242, %c0_243], %1144 {strides = array<i32>} : memref<128x16xf32, #tpu.memory_space<vmem>>, vector<8x16xf32>,
    %cst_244 = arith.constant dense<0.000000e+00> : vector<8x64xf32>
    %1146 = tpu.matmul %1144, %1029, %cst_244 {dimension_numbers = #tpu.dot_dimension_numbers<[1], [0], [0], [1], [0, 0, 1, 1], [], []>} : vector<8x16xf32>, vector<16x64xf32>, vector<8x64xf32> -> vector<8x64xf32>
    %1147 = arith.addf %1028, %1146 : vector<8x64xf32>
    %1148 = vector.extract_strided_slice %1147 {offsets = [0, 0], sizes = [8, 48], strides = [1, 1]} : vector<8x64xf32> to vector<8x48xf32>
    %1149 = arith.negf %1148 : vector<8x48xf32>
    %1150 = math.exp %1149 : vector<8x48xf32>
    %cst_245 = arith.constant 1.000000e+00 : f32
    %1151 = vector.broadcast %cst_245 : f32 to vector<8x48xf32>
    %1152 = arith.addf %1151, %1150 : vector<8x48xf32>
    %1153 = arith.divf %1151, %1152 : vector<8x48xf32>
    %1154 = vector.extract_strided_slice %1147 {offsets = [0, 48], sizes = [8, 16], strides = [1, 1]} : vector<8x64xf32> to vector<8x16xf32>
    %1155 = math.tanh %1154 : vector<8x16xf32>
    %1156 = vector.extract_strided_slice %1153 {offsets = [0, 16], sizes = [8, 16], strides = [1, 1]} : vector<8x48xf32> to vector<8x16xf32>
    %1157 = arith.mulf %1156, %1141 : vector<8x16xf32>
    %1158 = vector.extract_strided_slice %1153 {offsets = [0, 0], sizes = [8, 16], strides = [1, 1]} : vector<8x48xf32> to vector<8x16xf32>
    %1159 = arith.mulf %1158, %1155 : vector<8x16xf32>
    %1160 = arith.addf %1157, %1159 : vector<8x16xf32>
    %1161 = vector.extract_strided_slice %1153 {offsets = [0, 32], sizes = [8, 16], strides = [1, 1]} : vector<8x48xf32> to vector<8x16xf32>
    %1162 = math.tanh %1160 : vector<8x16xf32>
    %1163 = arith.mulf %1161, %1162 : vector<8x16xf32>
    %c48_246 = arith.constant 48 : index
    %c0_247 = arith.constant 0 : index
    %1164 = vector.load %arg9[%c48_246, %c0_247] : memref<128x16xf32, #tpu.memory_space<vmem>>, vector<8x16xf32>
    tpu.vector_store %arg9[%c48_246, %c0_247], %1163 {strides = array<i32>} : memref<128x16xf32, #tpu.memory_space<vmem>>, vector<8x16xf32>,
    %cst_248 = arith.constant dense<0.000000e+00> : vector<8x64xf32>
    %1165 = tpu.matmul %1163, %1029, %cst_248 {dimension_numbers = #tpu.dot_dimension_numbers<[1], [0], [0], [1], [0, 0, 1, 1], [], []>} : vector<8x16xf32>, vector<16x64xf32>, vector<8x64xf32> -> vector<8x64xf32>
    %1166 = arith.addf %1028, %1165 : vector<8x64xf32>
    %1167 = vector.extract_strided_slice %1166 {offsets = [0, 0], sizes = [8, 48], strides = [1, 1]} : vector<8x64xf32> to vector<8x48xf32>
    %1168 = arith.negf %1167 : vector<8x48xf32>
    %1169 = math.exp %1168 : vector<8x48xf32>
    %cst_249 = arith.constant 1.000000e+00 : f32
    %1170 = vector.broadcast %cst_249 : f32 to vector<8x48xf32>
    %1171 = arith.addf %1170, %1169 : vector<8x48xf32>
    %1172 = arith.divf %1170, %1171 : vector<8x48xf32>
    %1173 = vector.extract_strided_slice %1166 {offsets = [0, 48], sizes = [8, 16], strides = [1, 1]} : vector<8x64xf32> to vector<8x16xf32>
    %1174 = math.tanh %1173 : vector<8x16xf32>
    %1175 = vector.extract_strided_slice %1172 {offsets = [0, 16], sizes = [8, 16], strides = [1, 1]} : vector<8x48xf32> to vector<8x16xf32>
    %1176 = arith.mulf %1175, %1160 : vector<8x16xf32>
    %1177 = vector.extract_strided_slice %1172 {offsets = [0, 0], sizes = [8, 16], strides = [1, 1]} : vector<8x48xf32> to vector<8x16xf32>
    %1178 = arith.mulf %1177, %1174 : vector<8x16xf32>
    %1179 = arith.addf %1176, %1178 : vector<8x16xf32>
    %1180 = vector.extract_strided_slice %1172 {offsets = [0, 32], sizes = [8, 16], strides = [1, 1]} : vector<8x48xf32> to vector<8x16xf32>
    %1181 = math.tanh %1179 : vector<8x16xf32>
    %1182 = arith.mulf %1180, %1181 : vector<8x16xf32>
    %c56_250 = arith.constant 56 : index
    %c0_251 = arith.constant 0 : index
    %1183 = vector.load %arg9[%c56_250, %c0_251] : memref<128x16xf32, #tpu.memory_space<vmem>>, vector<8x16xf32>
    tpu.vector_store %arg9[%c56_250, %c0_251], %1182 {strides = array<i32>} : memref<128x16xf32, #tpu.memory_space<vmem>>, vector<8x16xf32>,
    %cst_252 = arith.constant dense<0.000000e+00> : vector<8x64xf32>
    %1184 = tpu.matmul %1182, %1029, %cst_252 {dimension_numbers = #tpu.dot_dimension_numbers<[1], [0], [0], [1], [0, 0, 1, 1], [], []>} : vector<8x16xf32>, vector<16x64xf32>, vector<8x64xf32> -> vector<8x64xf32>
    %1185 = arith.addf %1028, %1184 : vector<8x64xf32>
    %1186 = vector.extract_strided_slice %1185 {offsets = [0, 0], sizes = [8, 48], strides = [1, 1]} : vector<8x64xf32> to vector<8x48xf32>
    %1187 = arith.negf %1186 : vector<8x48xf32>
    %1188 = math.exp %1187 : vector<8x48xf32>
    %cst_253 = arith.constant 1.000000e+00 : f32
    %1189 = vector.broadcast %cst_253 : f32 to vector<8x48xf32>
    %1190 = arith.addf %1189, %1188 : vector<8x48xf32>
    %1191 = arith.divf %1189, %1190 : vector<8x48xf32>
    %1192 = vector.extract_strided_slice %1185 {offsets = [0, 48], sizes = [8, 16], strides = [1, 1]} : vector<8x64xf32> to vector<8x16xf32>
    %1193 = math.tanh %1192 : vector<8x16xf32>
    %1194 = vector.extract_strided_slice %1191 {offsets = [0, 16], sizes = [8, 16], strides = [1, 1]} : vector<8x48xf32> to vector<8x16xf32>
    %1195 = arith.mulf %1194, %1179 : vector<8x16xf32>
    %1196 = vector.extract_strided_slice %1191 {offsets = [0, 0], sizes = [8, 16], strides = [1, 1]} : vector<8x48xf32> to vector<8x16xf32>
    %1197 = arith.mulf %1196, %1193 : vector<8x16xf32>
    %1198 = arith.addf %1195, %1197 : vector<8x16xf32>
    %1199 = vector.extract_strided_slice %1191 {offsets = [0, 32], sizes = [8, 16], strides = [1, 1]} : vector<8x48xf32> to vector<8x16xf32>
    %1200 = math.tanh %1198 : vector<8x16xf32>
    %1201 = arith.mulf %1199, %1200 : vector<8x16xf32>
    %c64_254 = arith.constant 64 : index
    %c0_255 = arith.constant 0 : index
    %1202 = vector.load %arg9[%c64_254, %c0_255] : memref<128x16xf32, #tpu.memory_space<vmem>>, vector<8x16xf32>
    tpu.vector_store %arg9[%c64_254, %c0_255], %1201 {strides = array<i32>} : memref<128x16xf32, #tpu.memory_space<vmem>>, vector<8x16xf32>,
    %cst_256 = arith.constant dense<0.000000e+00> : vector<8x64xf32>
    %1203 = tpu.matmul %1201, %1029, %cst_256 {dimension_numbers = #tpu.dot_dimension_numbers<[1], [0], [0], [1], [0, 0, 1, 1], [], []>} : vector<8x16xf32>, vector<16x64xf32>, vector<8x64xf32> -> vector<8x64xf32>
    %1204 = arith.addf %1028, %1203 : vector<8x64xf32>
    %1205 = vector.extract_strided_slice %1204 {offsets = [0, 0], sizes = [8, 48], strides = [1, 1]} : vector<8x64xf32> to vector<8x48xf32>
    %1206 = arith.negf %1205 : vector<8x48xf32>
    %1207 = math.exp %1206 : vector<8x48xf32>
    %cst_257 = arith.constant 1.000000e+00 : f32
    %1208 = vector.broadcast %cst_257 : f32 to vector<8x48xf32>
    %1209 = arith.addf %1208, %1207 : vector<8x48xf32>
    %1210 = arith.divf %1208, %1209 : vector<8x48xf32>
    %1211 = vector.extract_strided_slice %1204 {offsets = [0, 48], sizes = [8, 16], strides = [1, 1]} : vector<8x64xf32> to vector<8x16xf32>
    %1212 = math.tanh %1211 : vector<8x16xf32>
    %1213 = vector.extract_strided_slice %1210 {offsets = [0, 16], sizes = [8, 16], strides = [1, 1]} : vector<8x48xf32> to vector<8x16xf32>
    %1214 = arith.mulf %1213, %1198 : vector<8x16xf32>
    %1215 = vector.extract_strided_slice %1210 {offsets = [0, 0], sizes = [8, 16], strides = [1, 1]} : vector<8x48xf32> to vector<8x16xf32>
    %1216 = arith.mulf %1215, %1212 : vector<8x16xf32>
    %1217 = arith.addf %1214, %1216 : vector<8x16xf32>
    %1218 = vector.extract_strided_slice %1210 {offsets = [0, 32], sizes = [8, 16], strides = [1, 1]} : vector<8x48xf32> to vector<8x16xf32>
    %1219 = math.tanh %1217 : vector<8x16xf32>
    %1220 = arith.mulf %1218, %1219 : vector<8x16xf32>
    %c72_258 = arith.constant 72 : index
    %c0_259 = arith.constant 0 : index
    %1221 = vector.load %arg9[%c72_258, %c0_259] : memref<128x16xf32, #tpu.memory_space<vmem>>, vector<8x16xf32>
    tpu.vector_store %arg9[%c72_258, %c0_259], %1220 {strides = array<i32>} : memref<128x16xf32, #tpu.memory_space<vmem>>, vector<8x16xf32>,
    %cst_260 = arith.constant dense<0.000000e+00> : vector<8x64xf32>
    %1222 = tpu.matmul %1220, %1029, %cst_260 {dimension_numbers = #tpu.dot_dimension_numbers<[1], [0], [0], [1], [0, 0, 1, 1], [], []>} : vector<8x16xf32>, vector<16x64xf32>, vector<8x64xf32> -> vector<8x64xf32>
    %1223 = arith.addf %1028, %1222 : vector<8x64xf32>
    %1224 = vector.extract_strided_slice %1223 {offsets = [0, 0], sizes = [8, 48], strides = [1, 1]} : vector<8x64xf32> to vector<8x48xf32>
    %1225 = arith.negf %1224 : vector<8x48xf32>
    %1226 = math.exp %1225 : vector<8x48xf32>
    %cst_261 = arith.constant 1.000000e+00 : f32
    %1227 = vector.broadcast %cst_261 : f32 to vector<8x48xf32>
    %1228 = arith.addf %1227, %1226 : vector<8x48xf32>
    %1229 = arith.divf %1227, %1228 : vector<8x48xf32>
    %1230 = vector.extract_strided_slice %1223 {offsets = [0, 48], sizes = [8, 16], strides = [1, 1]} : vector<8x64xf32> to vector<8x16xf32>
    %1231 = math.tanh %1230 : vector<8x16xf32>
    %1232 = vector.extract_strided_slice %1229 {offsets = [0, 16], sizes = [8, 16], strides = [1, 1]} : vector<8x48xf32> to vector<8x16xf32>
    %1233 = arith.mulf %1232, %1217 : vector<8x16xf32>
    %1234 = vector.extract_strided_slice %1229 {offsets = [0, 0], sizes = [8, 16], strides = [1, 1]} : vector<8x48xf32> to vector<8x16xf32>
    %1235 = arith.mulf %1234, %1231 : vector<8x16xf32>
    %1236 = arith.addf %1233, %1235 : vector<8x16xf32>
    %1237 = vector.extract_strided_slice %1229 {offsets = [0, 32], sizes = [8, 16], strides = [1, 1]} : vector<8x48xf32> to vector<8x16xf32>
    %1238 = math.tanh %1236 : vector<8x16xf32>
    %1239 = arith.mulf %1237, %1238 : vector<8x16xf32>
    %c80_262 = arith.constant 80 : index
    %c0_263 = arith.constant 0 : index
    %1240 = vector.load %arg9[%c80_262, %c0_263] : memref<128x16xf32, #tpu.memory_space<vmem>>, vector<8x16xf32>
    tpu.vector_store %arg9[%c80_262, %c0_263], %1239 {strides = array<i32>} : memref<128x16xf32, #tpu.memory_space<vmem>>, vector<8x16xf32>,
    %cst_264 = arith.constant dense<0.000000e+00> : vector<8x64xf32>
    %1241 = tpu.matmul %1239, %1029, %cst_264 {dimension_numbers = #tpu.dot_dimension_numbers<[1], [0], [0], [1], [0, 0, 1, 1], [], []>} : vector<8x16xf32>, vector<16x64xf32>, vector<8x64xf32> -> vector<8x64xf32>
    %1242 = arith.addf %1028, %1241 : vector<8x64xf32>
    %1243 = vector.extract_strided_slice %1242 {offsets = [0, 0], sizes = [8, 48], strides = [1, 1]} : vector<8x64xf32> to vector<8x48xf32>
    %1244 = arith.negf %1243 : vector<8x48xf32>
    %1245 = math.exp %1244 : vector<8x48xf32>
    %cst_265 = arith.constant 1.000000e+00 : f32
    %1246 = vector.broadcast %cst_265 : f32 to vector<8x48xf32>
    %1247 = arith.addf %1246, %1245 : vector<8x48xf32>
    %1248 = arith.divf %1246, %1247 : vector<8x48xf32>
    %1249 = vector.extract_strided_slice %1242 {offsets = [0, 48], sizes = [8, 16], strides = [1, 1]} : vector<8x64xf32> to vector<8x16xf32>
    %1250 = math.tanh %1249 : vector<8x16xf32>
    %1251 = vector.extract_strided_slice %1248 {offsets = [0, 16], sizes = [8, 16], strides = [1, 1]} : vector<8x48xf32> to vector<8x16xf32>
    %1252 = arith.mulf %1251, %1236 : vector<8x16xf32>
    %1253 = vector.extract_strided_slice %1248 {offsets = [0, 0], sizes = [8, 16], strides = [1, 1]} : vector<8x48xf32> to vector<8x16xf32>
    %1254 = arith.mulf %1253, %1250 : vector<8x16xf32>
    %1255 = arith.addf %1252, %1254 : vector<8x16xf32>
    %1256 = vector.extract_strided_slice %1248 {offsets = [0, 32], sizes = [8, 16], strides = [1, 1]} : vector<8x48xf32> to vector<8x16xf32>
    %1257 = math.tanh %1255 : vector<8x16xf32>
    %1258 = arith.mulf %1256, %1257 : vector<8x16xf32>
    %c88_266 = arith.constant 88 : index
    %c0_267 = arith.constant 0 : index
    %1259 = vector.load %arg9[%c88_266, %c0_267] : memref<128x16xf32, #tpu.memory_space<vmem>>, vector<8x16xf32>
    tpu.vector_store %arg9[%c88_266, %c0_267], %1258 {strides = array<i32>} : memref<128x16xf32, #tpu.memory_space<vmem>>, vector<8x16xf32>,
    %cst_268 = arith.constant dense<0.000000e+00> : vector<8x64xf32>
    %1260 = tpu.matmul %1258, %1029, %cst_268 {dimension_numbers = #tpu.dot_dimension_numbers<[1], [0], [0], [1], [0, 0, 1, 1], [], []>} : vector<8x16xf32>, vector<16x64xf32>, vector<8x64xf32> -> vector<8x64xf32>
    %1261 = arith.addf %1028, %1260 : vector<8x64xf32>
    %1262 = vector.extract_strided_slice %1261 {offsets = [0, 0], sizes = [8, 48], strides = [1, 1]} : vector<8x64xf32> to vector<8x48xf32>
    %1263 = arith.negf %1262 : vector<8x48xf32>
    %1264 = math.exp %1263 : vector<8x48xf32>
    %cst_269 = arith.constant 1.000000e+00 : f32
    %1265 = vector.broadcast %cst_269 : f32 to vector<8x48xf32>
    %1266 = arith.addf %1265, %1264 : vector<8x48xf32>
    %1267 = arith.divf %1265, %1266 : vector<8x48xf32>
    %1268 = vector.extract_strided_slice %1261 {offsets = [0, 48], sizes = [8, 16], strides = [1, 1]} : vector<8x64xf32> to vector<8x16xf32>
    %1269 = math.tanh %1268 : vector<8x16xf32>
    %1270 = vector.extract_strided_slice %1267 {offsets = [0, 16], sizes = [8, 16], strides = [1, 1]} : vector<8x48xf32> to vector<8x16xf32>
    %1271 = arith.mulf %1270, %1255 : vector<8x16xf32>
    %1272 = vector.extract_strided_slice %1267 {offsets = [0, 0], sizes = [8, 16], strides = [1, 1]} : vector<8x48xf32> to vector<8x16xf32>
    %1273 = arith.mulf %1272, %1269 : vector<8x16xf32>
    %1274 = arith.addf %1271, %1273 : vector<8x16xf32>
    %1275 = vector.extract_strided_slice %1267 {offsets = [0, 32], sizes = [8, 16], strides = [1, 1]} : vector<8x48xf32> to vector<8x16xf32>
    %1276 = math.tanh %1274 : vector<8x16xf32>
    %1277 = arith.mulf %1275, %1276 : vector<8x16xf32>
    %c96_270 = arith.constant 96 : index
    %c0_271 = arith.constant 0 : index
    %1278 = vector.load %arg9[%c96_270, %c0_271] : memref<128x16xf32, #tpu.memory_space<vmem>>, vector<8x16xf32>
    tpu.vector_store %arg9[%c96_270, %c0_271], %1277 {strides = array<i32>} : memref<128x16xf32, #tpu.memory_space<vmem>>, vector<8x16xf32>,
    %cst_272 = arith.constant dense<0.000000e+00> : vector<8x64xf32>
    %1279 = tpu.matmul %1277, %1029, %cst_272 {dimension_numbers = #tpu.dot_dimension_numbers<[1], [0], [0], [1], [0, 0, 1, 1], [], []>} : vector<8x16xf32>, vector<16x64xf32>, vector<8x64xf32> -> vector<8x64xf32>
    %1280 = arith.addf %1028, %1279 : vector<8x64xf32>
    %1281 = vector.extract_strided_slice %1280 {offsets = [0, 0], sizes = [8, 48], strides = [1, 1]} : vector<8x64xf32> to vector<8x48xf32>
    %1282 = arith.negf %1281 : vector<8x48xf32>
    %1283 = math.exp %1282 : vector<8x48xf32>
    %cst_273 = arith.constant 1.000000e+00 : f32
    %1284 = vector.broadcast %cst_273 : f32 to vector<8x48xf32>
    %1285 = arith.addf %1284, %1283 : vector<8x48xf32>
    %1286 = arith.divf %1284, %1285 : vector<8x48xf32>
    %1287 = vector.extract_strided_slice %1280 {offsets = [0, 48], sizes = [8, 16], strides = [1, 1]} : vector<8x64xf32> to vector<8x16xf32>
    %1288 = math.tanh %1287 : vector<8x16xf32>
    %1289 = vector.extract_strided_slice %1286 {offsets = [0, 16], sizes = [8, 16], strides = [1, 1]} : vector<8x48xf32> to vector<8x16xf32>
    %1290 = arith.mulf %1289, %1274 : vector<8x16xf32>
    %1291 = vector.extract_strided_slice %1286 {offsets = [0, 0], sizes = [8, 16], strides = [1, 1]} : vector<8x48xf32> to vector<8x16xf32>
    %1292 = arith.mulf %1291, %1288 : vector<8x16xf32>
    %1293 = arith.addf %1290, %1292 : vector<8x16xf32>
    %1294 = vector.extract_strided_slice %1286 {offsets = [0, 32], sizes = [8, 16], strides = [1, 1]} : vector<8x48xf32> to vector<8x16xf32>
    %1295 = math.tanh %1293 : vector<8x16xf32>
    %1296 = arith.mulf %1294, %1295 : vector<8x16xf32>
    %c104_274 = arith.constant 104 : index
    %c0_275 = arith.constant 0 : index
    %1297 = vector.load %arg9[%c104_274, %c0_275] : memref<128x16xf32, #tpu.memory_space<vmem>>, vector<8x16xf32>
    tpu.vector_store %arg9[%c104_274, %c0_275], %1296 {strides = array<i32>} : memref<128x16xf32, #tpu.memory_space<vmem>>, vector<8x16xf32>,
    %cst_276 = arith.constant dense<0.000000e+00> : vector<8x64xf32>
    %1298 = tpu.matmul %1296, %1029, %cst_276 {dimension_numbers = #tpu.dot_dimension_numbers<[1], [0], [0], [1], [0, 0, 1, 1], [], []>} : vector<8x16xf32>, vector<16x64xf32>, vector<8x64xf32> -> vector<8x64xf32>
    %1299 = arith.addf %1028, %1298 : vector<8x64xf32>
    %1300 = vector.extract_strided_slice %1299 {offsets = [0, 0], sizes = [8, 48], strides = [1, 1]} : vector<8x64xf32> to vector<8x48xf32>
    %1301 = arith.negf %1300 : vector<8x48xf32>
    %1302 = math.exp %1301 : vector<8x48xf32>
    %cst_277 = arith.constant 1.000000e+00 : f32
    %1303 = vector.broadcast %cst_277 : f32 to vector<8x48xf32>
    %1304 = arith.addf %1303, %1302 : vector<8x48xf32>
    %1305 = arith.divf %1303, %1304 : vector<8x48xf32>
    %1306 = vector.extract_strided_slice %1299 {offsets = [0, 48], sizes = [8, 16], strides = [1, 1]} : vector<8x64xf32> to vector<8x16xf32>
    %1307 = math.tanh %1306 : vector<8x16xf32>
    %1308 = vector.extract_strided_slice %1305 {offsets = [0, 16], sizes = [8, 16], strides = [1, 1]} : vector<8x48xf32> to vector<8x16xf32>
    %1309 = arith.mulf %1308, %1293 : vector<8x16xf32>
    %1310 = vector.extract_strided_slice %1305 {offsets = [0, 0], sizes = [8, 16], strides = [1, 1]} : vector<8x48xf32> to vector<8x16xf32>
    %1311 = arith.mulf %1310, %1307 : vector<8x16xf32>
    %1312 = arith.addf %1309, %1311 : vector<8x16xf32>
    %1313 = vector.extract_strided_slice %1305 {offsets = [0, 32], sizes = [8, 16], strides = [1, 1]} : vector<8x48xf32> to vector<8x16xf32>
    %1314 = math.tanh %1312 : vector<8x16xf32>
    %1315 = arith.mulf %1313, %1314 : vector<8x16xf32>
    %c112_278 = arith.constant 112 : index
    %c0_279 = arith.constant 0 : index
    %1316 = vector.load %arg9[%c112_278, %c0_279] : memref<128x16xf32, #tpu.memory_space<vmem>>, vector<8x16xf32>
    tpu.vector_store %arg9[%c112_278, %c0_279], %1315 {strides = array<i32>} : memref<128x16xf32, #tpu.memory_space<vmem>>, vector<8x16xf32>,
    %cst_280 = arith.constant dense<0.000000e+00> : vector<8x64xf32>
    %1317 = tpu.matmul %1315, %1029, %cst_280 {dimension_numbers = #tpu.dot_dimension_numbers<[1], [0], [0], [1], [0, 0, 1, 1], [], []>} : vector<8x16xf32>, vector<16x64xf32>, vector<8x64xf32> -> vector<8x64xf32>
    %1318 = arith.addf %1028, %1317 : vector<8x64xf32>
    %1319 = vector.extract_strided_slice %1318 {offsets = [0, 0], sizes = [8, 48], strides = [1, 1]} : vector<8x64xf32> to vector<8x48xf32>
    %1320 = arith.negf %1319 : vector<8x48xf32>
    %1321 = math.exp %1320 : vector<8x48xf32>
    %cst_281 = arith.constant 1.000000e+00 : f32
    %1322 = vector.broadcast %cst_281 : f32 to vector<8x48xf32>
    %1323 = arith.addf %1322, %1321 : vector<8x48xf32>
    %1324 = arith.divf %1322, %1323 : vector<8x48xf32>
    %1325 = vector.extract_strided_slice %1318 {offsets = [0, 48], sizes = [8, 16], strides = [1, 1]} : vector<8x64xf32> to vector<8x16xf32>
    %1326 = math.tanh %1325 : vector<8x16xf32>
    %1327 = vector.extract_strided_slice %1324 {offsets = [0, 16], sizes = [8, 16], strides = [1, 1]} : vector<8x48xf32> to vector<8x16xf32>
    %1328 = arith.mulf %1327, %1312 : vector<8x16xf32>
    %1329 = vector.extract_strided_slice %1324 {offsets = [0, 0], sizes = [8, 16], strides = [1, 1]} : vector<8x48xf32> to vector<8x16xf32>
    %1330 = arith.mulf %1329, %1326 : vector<8x16xf32>
    %1331 = arith.addf %1328, %1330 : vector<8x16xf32>
    %1332 = vector.extract_strided_slice %1324 {offsets = [0, 32], sizes = [8, 16], strides = [1, 1]} : vector<8x48xf32> to vector<8x16xf32>
    %1333 = math.tanh %1331 : vector<8x16xf32>
    %1334 = arith.mulf %1332, %1333 : vector<8x16xf32>
    %c120_282 = arith.constant 120 : index
    %c0_283 = arith.constant 0 : index
    %1335 = vector.load %arg9[%c120_282, %c0_283] : memref<128x16xf32, #tpu.memory_space<vmem>>, vector<8x16xf32>
    tpu.vector_store %arg9[%c120_282, %c0_283], %1334 {strides = array<i32>} : memref<128x16xf32, #tpu.memory_space<vmem>>, vector<8x16xf32>,
    %c0_284 = arith.constant 0 : index
    %c0_285 = arith.constant 0 : index
    %1336 = vector.load %arg9[%c0_284, %c0_285] : memref<128x16xf32, #tpu.memory_space<vmem>>, vector<128x16xf32>
    %c136_286 = arith.constant 136 : index
    %c0_287 = arith.constant 0 : index
    %1337 = vector.load %arg6[%c136_286, %c0_287] : memref<208x64xf32, #tpu.memory_space<vmem>>, vector<16x64xf32>
    %c168 = arith.constant 168 : index
    %c0_288 = arith.constant 0 : index
    %1338 = vector.load %arg6[%c168, %c0_288] : memref<208x64xf32, #tpu.memory_space<vmem>>, vector<1x64xf32>
    %cst_289 = arith.constant dense<0.000000e+00> : vector<128x64xf32>
    %1339 = tpu.matmul %1336, %1337, %cst_289 {dimension_numbers = #tpu.dot_dimension_numbers<[1], [0], [0], [1], [0, 0, 1, 1], [], []>} : vector<128x16xf32>, vector<16x64xf32>, vector<128x64xf32> -> vector<128x64xf32>
    %1340 = vector.broadcast %1338 : vector<1x64xf32> to vector<128x64xf32>
    %1341 = arith.addf %1339, %1340 : vector<128x64xf32>
    %c152 = arith.constant 152 : index
    %c0_290 = arith.constant 0 : index
    %1342 = vector.load %arg6[%c152, %c0_290] : memref<208x64xf32, #tpu.memory_space<vmem>>, vector<16x64xf32>
    %cst_291 = arith.constant 0.000000e+00 : f32
    %1343 = vector.broadcast %cst_291 : f32 to vector<8x16xf32>
    %cst_292 = arith.constant 0.000000e+00 : f32
    %1344 = vector.broadcast %cst_292 : f32 to vector<8x16xf32>
    %cst_293 = arith.constant dense<0.000000e+00> : vector<8x64xf32>
    %1345 = tpu.matmul %1343, %1342, %cst_293 {dimension_numbers = #tpu.dot_dimension_numbers<[1], [0], [0], [1], [0, 0, 1, 1], [], []>} : vector<8x16xf32>, vector<16x64xf32>, vector<8x64xf32> -> vector<8x64xf32>
    %1346 = vector.extract_strided_slice %1341 {offsets = [0, 0], sizes = [8, 64], strides = [1, 1]} : vector<128x64xf32> to vector<8x64xf32>
    %1347 = arith.addf %1346, %1345 : vector<8x64xf32>
    %1348 = vector.extract_strided_slice %1347 {offsets = [0, 0], sizes = [8, 48], strides = [1, 1]} : vector<8x64xf32> to vector<8x48xf32>
    %1349 = arith.negf %1348 : vector<8x48xf32>
    %1350 = math.exp %1349 : vector<8x48xf32>
    %cst_294 = arith.constant 1.000000e+00 : f32
    %1351 = vector.broadcast %cst_294 : f32 to vector<8x48xf32>
    %1352 = arith.addf %1351, %1350 : vector<8x48xf32>
    %1353 = arith.divf %1351, %1352 : vector<8x48xf32>
    %1354 = vector.extract_strided_slice %1347 {offsets = [0, 48], sizes = [8, 16], strides = [1, 1]} : vector<8x64xf32> to vector<8x16xf32>
    %1355 = math.tanh %1354 : vector<8x16xf32>
    %1356 = vector.extract_strided_slice %1353 {offsets = [0, 16], sizes = [8, 16], strides = [1, 1]} : vector<8x48xf32> to vector<8x16xf32>
    %1357 = arith.mulf %1356, %1344 : vector<8x16xf32>
    %1358 = vector.extract_strided_slice %1353 {offsets = [0, 0], sizes = [8, 16], strides = [1, 1]} : vector<8x48xf32> to vector<8x16xf32>
    %1359 = arith.mulf %1358, %1355 : vector<8x16xf32>
    %1360 = arith.addf %1357, %1359 : vector<8x16xf32>
    %1361 = vector.extract_strided_slice %1353 {offsets = [0, 32], sizes = [8, 16], strides = [1, 1]} : vector<8x48xf32> to vector<8x16xf32>
    %1362 = math.tanh %1360 : vector<8x16xf32>
    %1363 = arith.mulf %1361, %1362 : vector<8x16xf32>
    %c0_295 = arith.constant 0 : index
    %c0_296 = arith.constant 0 : index
    %1364 = vector.load %arg9[%c0_295, %c0_296] : memref<128x16xf32, #tpu.memory_space<vmem>>, vector<8x16xf32>
    tpu.vector_store %arg9[%c0_295, %c0_296], %1363 {strides = array<i32>} : memref<128x16xf32, #tpu.memory_space<vmem>>, vector<8x16xf32>,
    %cst_297 = arith.constant dense<0.000000e+00> : vector<8x64xf32>
    %1365 = tpu.matmul %1363, %1342, %cst_297 {dimension_numbers = #tpu.dot_dimension_numbers<[1], [0], [0], [1], [0, 0, 1, 1], [], []>} : vector<8x16xf32>, vector<16x64xf32>, vector<8x64xf32> -> vector<8x64xf32>
    %1366 = vector.extract_strided_slice %1341 {offsets = [8, 0], sizes = [8, 64], strides = [1, 1]} : vector<128x64xf32> to vector<8x64xf32>
    %1367 = arith.addf %1366, %1365 : vector<8x64xf32>
    %1368 = vector.extract_strided_slice %1367 {offsets = [0, 0], sizes = [8, 48], strides = [1, 1]} : vector<8x64xf32> to vector<8x48xf32>
    %1369 = arith.negf %1368 : vector<8x48xf32>
    %1370 = math.exp %1369 : vector<8x48xf32>
    %cst_298 = arith.constant 1.000000e+00 : f32
    %1371 = vector.broadcast %cst_298 : f32 to vector<8x48xf32>
    %1372 = arith.addf %1371, %1370 : vector<8x48xf32>
    %1373 = arith.divf %1371, %1372 : vector<8x48xf32>
    %1374 = vector.extract_strided_slice %1367 {offsets = [0, 48], sizes = [8, 16], strides = [1, 1]} : vector<8x64xf32> to vector<8x16xf32>
    %1375 = math.tanh %1374 : vector<8x16xf32>
    %1376 = vector.extract_strided_slice %1373 {offsets = [0, 16], sizes = [8, 16], strides = [1, 1]} : vector<8x48xf32> to vector<8x16xf32>
    %1377 = arith.mulf %1376, %1360 : vector<8x16xf32>
    %1378 = vector.extract_strided_slice %1373 {offsets = [0, 0], sizes = [8, 16], strides = [1, 1]} : vector<8x48xf32> to vector<8x16xf32>
    %1379 = arith.mulf %1378, %1375 : vector<8x16xf32>
    %1380 = arith.addf %1377, %1379 : vector<8x16xf32>
    %1381 = vector.extract_strided_slice %1373 {offsets = [0, 32], sizes = [8, 16], strides = [1, 1]} : vector<8x48xf32> to vector<8x16xf32>
    %1382 = math.tanh %1380 : vector<8x16xf32>
    %1383 = arith.mulf %1381, %1382 : vector<8x16xf32>
    %c8_299 = arith.constant 8 : index
    %c0_300 = arith.constant 0 : index
    %1384 = vector.load %arg9[%c8_299, %c0_300] : memref<128x16xf32, #tpu.memory_space<vmem>>, vector<8x16xf32>
    tpu.vector_store %arg9[%c8_299, %c0_300], %1383 {strides = array<i32>} : memref<128x16xf32, #tpu.memory_space<vmem>>, vector<8x16xf32>,
    %cst_301 = arith.constant dense<0.000000e+00> : vector<8x64xf32>
    %1385 = tpu.matmul %1383, %1342, %cst_301 {dimension_numbers = #tpu.dot_dimension_numbers<[1], [0], [0], [1], [0, 0, 1, 1], [], []>} : vector<8x16xf32>, vector<16x64xf32>, vector<8x64xf32> -> vector<8x64xf32>
    %1386 = vector.extract_strided_slice %1341 {offsets = [16, 0], sizes = [8, 64], strides = [1, 1]} : vector<128x64xf32> to vector<8x64xf32>
    %1387 = arith.addf %1386, %1385 : vector<8x64xf32>
    %1388 = vector.extract_strided_slice %1387 {offsets = [0, 0], sizes = [8, 48], strides = [1, 1]} : vector<8x64xf32> to vector<8x48xf32>
    %1389 = arith.negf %1388 : vector<8x48xf32>
    %1390 = math.exp %1389 : vector<8x48xf32>
    %cst_302 = arith.constant 1.000000e+00 : f32
    %1391 = vector.broadcast %cst_302 : f32 to vector<8x48xf32>
    %1392 = arith.addf %1391, %1390 : vector<8x48xf32>
    %1393 = arith.divf %1391, %1392 : vector<8x48xf32>
    %1394 = vector.extract_strided_slice %1387 {offsets = [0, 48], sizes = [8, 16], strides = [1, 1]} : vector<8x64xf32> to vector<8x16xf32>
    %1395 = math.tanh %1394 : vector<8x16xf32>
    %1396 = vector.extract_strided_slice %1393 {offsets = [0, 16], sizes = [8, 16], strides = [1, 1]} : vector<8x48xf32> to vector<8x16xf32>
    %1397 = arith.mulf %1396, %1380 : vector<8x16xf32>
    %1398 = vector.extract_strided_slice %1393 {offsets = [0, 0], sizes = [8, 16], strides = [1, 1]} : vector<8x48xf32> to vector<8x16xf32>
    %1399 = arith.mulf %1398, %1395 : vector<8x16xf32>
    %1400 = arith.addf %1397, %1399 : vector<8x16xf32>
    %1401 = vector.extract_strided_slice %1393 {offsets = [0, 32], sizes = [8, 16], strides = [1, 1]} : vector<8x48xf32> to vector<8x16xf32>
    %1402 = math.tanh %1400 : vector<8x16xf32>
    %1403 = arith.mulf %1401, %1402 : vector<8x16xf32>
    %c16_303 = arith.constant 16 : index
    %c0_304 = arith.constant 0 : index
    %1404 = vector.load %arg9[%c16_303, %c0_304] : memref<128x16xf32, #tpu.memory_space<vmem>>, vector<8x16xf32>
    tpu.vector_store %arg9[%c16_303, %c0_304], %1403 {strides = array<i32>} : memref<128x16xf32, #tpu.memory_space<vmem>>, vector<8x16xf32>,
    %cst_305 = arith.constant dense<0.000000e+00> : vector<8x64xf32>
    %1405 = tpu.matmul %1403, %1342, %cst_305 {dimension_numbers = #tpu.dot_dimension_numbers<[1], [0], [0], [1], [0, 0, 1, 1], [], []>} : vector<8x16xf32>, vector<16x64xf32>, vector<8x64xf32> -> vector<8x64xf32>
    %1406 = vector.extract_strided_slice %1341 {offsets = [24, 0], sizes = [8, 64], strides = [1, 1]} : vector<128x64xf32> to vector<8x64xf32>
    %1407 = arith.addf %1406, %1405 : vector<8x64xf32>
    %1408 = vector.extract_strided_slice %1407 {offsets = [0, 0], sizes = [8, 48], strides = [1, 1]} : vector<8x64xf32> to vector<8x48xf32>
    %1409 = arith.negf %1408 : vector<8x48xf32>
    %1410 = math.exp %1409 : vector<8x48xf32>
    %cst_306 = arith.constant 1.000000e+00 : f32
    %1411 = vector.broadcast %cst_306 : f32 to vector<8x48xf32>
    %1412 = arith.addf %1411, %1410 : vector<8x48xf32>
    %1413 = arith.divf %1411, %1412 : vector<8x48xf32>
    %1414 = vector.extract_strided_slice %1407 {offsets = [0, 48], sizes = [8, 16], strides = [1, 1]} : vector<8x64xf32> to vector<8x16xf32>
    %1415 = math.tanh %1414 : vector<8x16xf32>
    %1416 = vector.extract_strided_slice %1413 {offsets = [0, 16], sizes = [8, 16], strides = [1, 1]} : vector<8x48xf32> to vector<8x16xf32>
    %1417 = arith.mulf %1416, %1400 : vector<8x16xf32>
    %1418 = vector.extract_strided_slice %1413 {offsets = [0, 0], sizes = [8, 16], strides = [1, 1]} : vector<8x48xf32> to vector<8x16xf32>
    %1419 = arith.mulf %1418, %1415 : vector<8x16xf32>
    %1420 = arith.addf %1417, %1419 : vector<8x16xf32>
    %1421 = vector.extract_strided_slice %1413 {offsets = [0, 32], sizes = [8, 16], strides = [1, 1]} : vector<8x48xf32> to vector<8x16xf32>
    %1422 = math.tanh %1420 : vector<8x16xf32>
    %1423 = arith.mulf %1421, %1422 : vector<8x16xf32>
    %c24_307 = arith.constant 24 : index
    %c0_308 = arith.constant 0 : index
    %1424 = vector.load %arg9[%c24_307, %c0_308] : memref<128x16xf32, #tpu.memory_space<vmem>>, vector<8x16xf32>
    tpu.vector_store %arg9[%c24_307, %c0_308], %1423 {strides = array<i32>} : memref<128x16xf32, #tpu.memory_space<vmem>>, vector<8x16xf32>,
    %cst_309 = arith.constant dense<0.000000e+00> : vector<8x64xf32>
    %1425 = tpu.matmul %1423, %1342, %cst_309 {dimension_numbers = #tpu.dot_dimension_numbers<[1], [0], [0], [1], [0, 0, 1, 1], [], []>} : vector<8x16xf32>, vector<16x64xf32>, vector<8x64xf32> -> vector<8x64xf32>
    %1426 = vector.extract_strided_slice %1341 {offsets = [32, 0], sizes = [8, 64], strides = [1, 1]} : vector<128x64xf32> to vector<8x64xf32>
    %1427 = arith.addf %1426, %1425 : vector<8x64xf32>
    %1428 = vector.extract_strided_slice %1427 {offsets = [0, 0], sizes = [8, 48], strides = [1, 1]} : vector<8x64xf32> to vector<8x48xf32>
    %1429 = arith.negf %1428 : vector<8x48xf32>
    %1430 = math.exp %1429 : vector<8x48xf32>
    %cst_310 = arith.constant 1.000000e+00 : f32
    %1431 = vector.broadcast %cst_310 : f32 to vector<8x48xf32>
    %1432 = arith.addf %1431, %1430 : vector<8x48xf32>
    %1433 = arith.divf %1431, %1432 : vector<8x48xf32>
    %1434 = vector.extract_strided_slice %1427 {offsets = [0, 48], sizes = [8, 16], strides = [1, 1]} : vector<8x64xf32> to vector<8x16xf32>
    %1435 = math.tanh %1434 : vector<8x16xf32>
    %1436 = vector.extract_strided_slice %1433 {offsets = [0, 16], sizes = [8, 16], strides = [1, 1]} : vector<8x48xf32> to vector<8x16xf32>
    %1437 = arith.mulf %1436, %1420 : vector<8x16xf32>
    %1438 = vector.extract_strided_slice %1433 {offsets = [0, 0], sizes = [8, 16], strides = [1, 1]} : vector<8x48xf32> to vector<8x16xf32>
    %1439 = arith.mulf %1438, %1435 : vector<8x16xf32>
    %1440 = arith.addf %1437, %1439 : vector<8x16xf32>
    %1441 = vector.extract_strided_slice %1433 {offsets = [0, 32], sizes = [8, 16], strides = [1, 1]} : vector<8x48xf32> to vector<8x16xf32>
    %1442 = math.tanh %1440 : vector<8x16xf32>
    %1443 = arith.mulf %1441, %1442 : vector<8x16xf32>
    %c32_311 = arith.constant 32 : index
    %c0_312 = arith.constant 0 : index
    %1444 = vector.load %arg9[%c32_311, %c0_312] : memref<128x16xf32, #tpu.memory_space<vmem>>, vector<8x16xf32>
    tpu.vector_store %arg9[%c32_311, %c0_312], %1443 {strides = array<i32>} : memref<128x16xf32, #tpu.memory_space<vmem>>, vector<8x16xf32>,
    %cst_313 = arith.constant dense<0.000000e+00> : vector<8x64xf32>
    %1445 = tpu.matmul %1443, %1342, %cst_313 {dimension_numbers = #tpu.dot_dimension_numbers<[1], [0], [0], [1], [0, 0, 1, 1], [], []>} : vector<8x16xf32>, vector<16x64xf32>, vector<8x64xf32> -> vector<8x64xf32>
    %1446 = vector.extract_strided_slice %1341 {offsets = [40, 0], sizes = [8, 64], strides = [1, 1]} : vector<128x64xf32> to vector<8x64xf32>
    %1447 = arith.addf %1446, %1445 : vector<8x64xf32>
    %1448 = vector.extract_strided_slice %1447 {offsets = [0, 0], sizes = [8, 48], strides = [1, 1]} : vector<8x64xf32> to vector<8x48xf32>
    %1449 = arith.negf %1448 : vector<8x48xf32>
    %1450 = math.exp %1449 : vector<8x48xf32>
    %cst_314 = arith.constant 1.000000e+00 : f32
    %1451 = vector.broadcast %cst_314 : f32 to vector<8x48xf32>
    %1452 = arith.addf %1451, %1450 : vector<8x48xf32>
    %1453 = arith.divf %1451, %1452 : vector<8x48xf32>
    %1454 = vector.extract_strided_slice %1447 {offsets = [0, 48], sizes = [8, 16], strides = [1, 1]} : vector<8x64xf32> to vector<8x16xf32>
    %1455 = math.tanh %1454 : vector<8x16xf32>
    %1456 = vector.extract_strided_slice %1453 {offsets = [0, 16], sizes = [8, 16], strides = [1, 1]} : vector<8x48xf32> to vector<8x16xf32>
    %1457 = arith.mulf %1456, %1440 : vector<8x16xf32>
    %1458 = vector.extract_strided_slice %1453 {offsets = [0, 0], sizes = [8, 16], strides = [1, 1]} : vector<8x48xf32> to vector<8x16xf32>
    %1459 = arith.mulf %1458, %1455 : vector<8x16xf32>
    %1460 = arith.addf %1457, %1459 : vector<8x16xf32>
    %1461 = vector.extract_strided_slice %1453 {offsets = [0, 32], sizes = [8, 16], strides = [1, 1]} : vector<8x48xf32> to vector<8x16xf32>
    %1462 = math.tanh %1460 : vector<8x16xf32>
    %1463 = arith.mulf %1461, %1462 : vector<8x16xf32>
    %c40_315 = arith.constant 40 : index
    %c0_316 = arith.constant 0 : index
    %1464 = vector.load %arg9[%c40_315, %c0_316] : memref<128x16xf32, #tpu.memory_space<vmem>>, vector<8x16xf32>
    tpu.vector_store %arg9[%c40_315, %c0_316], %1463 {strides = array<i32>} : memref<128x16xf32, #tpu.memory_space<vmem>>, vector<8x16xf32>,
    %cst_317 = arith.constant dense<0.000000e+00> : vector<8x64xf32>
    %1465 = tpu.matmul %1463, %1342, %cst_317 {dimension_numbers = #tpu.dot_dimension_numbers<[1], [0], [0], [1], [0, 0, 1, 1], [], []>} : vector<8x16xf32>, vector<16x64xf32>, vector<8x64xf32> -> vector<8x64xf32>
    %1466 = vector.extract_strided_slice %1341 {offsets = [48, 0], sizes = [8, 64], strides = [1, 1]} : vector<128x64xf32> to vector<8x64xf32>
    %1467 = arith.addf %1466, %1465 : vector<8x64xf32>
    %1468 = vector.extract_strided_slice %1467 {offsets = [0, 0], sizes = [8, 48], strides = [1, 1]} : vector<8x64xf32> to vector<8x48xf32>
    %1469 = arith.negf %1468 : vector<8x48xf32>
    %1470 = math.exp %1469 : vector<8x48xf32>
    %cst_318 = arith.constant 1.000000e+00 : f32
    %1471 = vector.broadcast %cst_318 : f32 to vector<8x48xf32>
    %1472 = arith.addf %1471, %1470 : vector<8x48xf32>
    %1473 = arith.divf %1471, %1472 : vector<8x48xf32>
    %1474 = vector.extract_strided_slice %1467 {offsets = [0, 48], sizes = [8, 16], strides = [1, 1]} : vector<8x64xf32> to vector<8x16xf32>
    %1475 = math.tanh %1474 : vector<8x16xf32>
    %1476 = vector.extract_strided_slice %1473 {offsets = [0, 16], sizes = [8, 16], strides = [1, 1]} : vector<8x48xf32> to vector<8x16xf32>
    %1477 = arith.mulf %1476, %1460 : vector<8x16xf32>
    %1478 = vector.extract_strided_slice %1473 {offsets = [0, 0], sizes = [8, 16], strides = [1, 1]} : vector<8x48xf32> to vector<8x16xf32>
    %1479 = arith.mulf %1478, %1475 : vector<8x16xf32>
    %1480 = arith.addf %1477, %1479 : vector<8x16xf32>
    %1481 = vector.extract_strided_slice %1473 {offsets = [0, 32], sizes = [8, 16], strides = [1, 1]} : vector<8x48xf32> to vector<8x16xf32>
    %1482 = math.tanh %1480 : vector<8x16xf32>
    %1483 = arith.mulf %1481, %1482 : vector<8x16xf32>
    %c48_319 = arith.constant 48 : index
    %c0_320 = arith.constant 0 : index
    %1484 = vector.load %arg9[%c48_319, %c0_320] : memref<128x16xf32, #tpu.memory_space<vmem>>, vector<8x16xf32>
    tpu.vector_store %arg9[%c48_319, %c0_320], %1483 {strides = array<i32>} : memref<128x16xf32, #tpu.memory_space<vmem>>, vector<8x16xf32>,
    %cst_321 = arith.constant dense<0.000000e+00> : vector<8x64xf32>
    %1485 = tpu.matmul %1483, %1342, %cst_321 {dimension_numbers = #tpu.dot_dimension_numbers<[1], [0], [0], [1], [0, 0, 1, 1], [], []>} : vector<8x16xf32>, vector<16x64xf32>, vector<8x64xf32> -> vector<8x64xf32>
    %1486 = vector.extract_strided_slice %1341 {offsets = [56, 0], sizes = [8, 64], strides = [1, 1]} : vector<128x64xf32> to vector<8x64xf32>
    %1487 = arith.addf %1486, %1485 : vector<8x64xf32>
    %1488 = vector.extract_strided_slice %1487 {offsets = [0, 0], sizes = [8, 48], strides = [1, 1]} : vector<8x64xf32> to vector<8x48xf32>
    %1489 = arith.negf %1488 : vector<8x48xf32>
    %1490 = math.exp %1489 : vector<8x48xf32>
    %cst_322 = arith.constant 1.000000e+00 : f32
    %1491 = vector.broadcast %cst_322 : f32 to vector<8x48xf32>
    %1492 = arith.addf %1491, %1490 : vector<8x48xf32>
    %1493 = arith.divf %1491, %1492 : vector<8x48xf32>
    %1494 = vector.extract_strided_slice %1487 {offsets = [0, 48], sizes = [8, 16], strides = [1, 1]} : vector<8x64xf32> to vector<8x16xf32>
    %1495 = math.tanh %1494 : vector<8x16xf32>
    %1496 = vector.extract_strided_slice %1493 {offsets = [0, 16], sizes = [8, 16], strides = [1, 1]} : vector<8x48xf32> to vector<8x16xf32>
    %1497 = arith.mulf %1496, %1480 : vector<8x16xf32>
    %1498 = vector.extract_strided_slice %1493 {offsets = [0, 0], sizes = [8, 16], strides = [1, 1]} : vector<8x48xf32> to vector<8x16xf32>
    %1499 = arith.mulf %1498, %1495 : vector<8x16xf32>
    %1500 = arith.addf %1497, %1499 : vector<8x16xf32>
    %1501 = vector.extract_strided_slice %1493 {offsets = [0, 32], sizes = [8, 16], strides = [1, 1]} : vector<8x48xf32> to vector<8x16xf32>
    %1502 = math.tanh %1500 : vector<8x16xf32>
    %1503 = arith.mulf %1501, %1502 : vector<8x16xf32>
    %c56_323 = arith.constant 56 : index
    %c0_324 = arith.constant 0 : index
    %1504 = vector.load %arg9[%c56_323, %c0_324] : memref<128x16xf32, #tpu.memory_space<vmem>>, vector<8x16xf32>
    tpu.vector_store %arg9[%c56_323, %c0_324], %1503 {strides = array<i32>} : memref<128x16xf32, #tpu.memory_space<vmem>>, vector<8x16xf32>,
    %cst_325 = arith.constant dense<0.000000e+00> : vector<8x64xf32>
    %1505 = tpu.matmul %1503, %1342, %cst_325 {dimension_numbers = #tpu.dot_dimension_numbers<[1], [0], [0], [1], [0, 0, 1, 1], [], []>} : vector<8x16xf32>, vector<16x64xf32>, vector<8x64xf32> -> vector<8x64xf32>
    %1506 = vector.extract_strided_slice %1341 {offsets = [64, 0], sizes = [8, 64], strides = [1, 1]} : vector<128x64xf32> to vector<8x64xf32>
    %1507 = arith.addf %1506, %1505 : vector<8x64xf32>
    %1508 = vector.extract_strided_slice %1507 {offsets = [0, 0], sizes = [8, 48], strides = [1, 1]} : vector<8x64xf32> to vector<8x48xf32>
    %1509 = arith.negf %1508 : vector<8x48xf32>
    %1510 = math.exp %1509 : vector<8x48xf32>
    %cst_326 = arith.constant 1.000000e+00 : f32
    %1511 = vector.broadcast %cst_326 : f32 to vector<8x48xf32>
    %1512 = arith.addf %1511, %1510 : vector<8x48xf32>
    %1513 = arith.divf %1511, %1512 : vector<8x48xf32>
    %1514 = vector.extract_strided_slice %1507 {offsets = [0, 48], sizes = [8, 16], strides = [1, 1]} : vector<8x64xf32> to vector<8x16xf32>
    %1515 = math.tanh %1514 : vector<8x16xf32>
    %1516 = vector.extract_strided_slice %1513 {offsets = [0, 16], sizes = [8, 16], strides = [1, 1]} : vector<8x48xf32> to vector<8x16xf32>
    %1517 = arith.mulf %1516, %1500 : vector<8x16xf32>
    %1518 = vector.extract_strided_slice %1513 {offsets = [0, 0], sizes = [8, 16], strides = [1, 1]} : vector<8x48xf32> to vector<8x16xf32>
    %1519 = arith.mulf %1518, %1515 : vector<8x16xf32>
    %1520 = arith.addf %1517, %1519 : vector<8x16xf32>
    %1521 = vector.extract_strided_slice %1513 {offsets = [0, 32], sizes = [8, 16], strides = [1, 1]} : vector<8x48xf32> to vector<8x16xf32>
    %1522 = math.tanh %1520 : vector<8x16xf32>
    %1523 = arith.mulf %1521, %1522 : vector<8x16xf32>
    %c64_327 = arith.constant 64 : index
    %c0_328 = arith.constant 0 : index
    %1524 = vector.load %arg9[%c64_327, %c0_328] : memref<128x16xf32, #tpu.memory_space<vmem>>, vector<8x16xf32>
    tpu.vector_store %arg9[%c64_327, %c0_328], %1523 {strides = array<i32>} : memref<128x16xf32, #tpu.memory_space<vmem>>, vector<8x16xf32>,
    %cst_329 = arith.constant dense<0.000000e+00> : vector<8x64xf32>
    %1525 = tpu.matmul %1523, %1342, %cst_329 {dimension_numbers = #tpu.dot_dimension_numbers<[1], [0], [0], [1], [0, 0, 1, 1], [], []>} : vector<8x16xf32>, vector<16x64xf32>, vector<8x64xf32> -> vector<8x64xf32>
    %1526 = vector.extract_strided_slice %1341 {offsets = [72, 0], sizes = [8, 64], strides = [1, 1]} : vector<128x64xf32> to vector<8x64xf32>
    %1527 = arith.addf %1526, %1525 : vector<8x64xf32>
    %1528 = vector.extract_strided_slice %1527 {offsets = [0, 0], sizes = [8, 48], strides = [1, 1]} : vector<8x64xf32> to vector<8x48xf32>
    %1529 = arith.negf %1528 : vector<8x48xf32>
    %1530 = math.exp %1529 : vector<8x48xf32>
    %cst_330 = arith.constant 1.000000e+00 : f32
    %1531 = vector.broadcast %cst_330 : f32 to vector<8x48xf32>
    %1532 = arith.addf %1531, %1530 : vector<8x48xf32>
    %1533 = arith.divf %1531, %1532 : vector<8x48xf32>
    %1534 = vector.extract_strided_slice %1527 {offsets = [0, 48], sizes = [8, 16], strides = [1, 1]} : vector<8x64xf32> to vector<8x16xf32>
    %1535 = math.tanh %1534 : vector<8x16xf32>
    %1536 = vector.extract_strided_slice %1533 {offsets = [0, 16], sizes = [8, 16], strides = [1, 1]} : vector<8x48xf32> to vector<8x16xf32>
    %1537 = arith.mulf %1536, %1520 : vector<8x16xf32>
    %1538 = vector.extract_strided_slice %1533 {offsets = [0, 0], sizes = [8, 16], strides = [1, 1]} : vector<8x48xf32> to vector<8x16xf32>
    %1539 = arith.mulf %1538, %1535 : vector<8x16xf32>
    %1540 = arith.addf %1537, %1539 : vector<8x16xf32>
    %1541 = vector.extract_strided_slice %1533 {offsets = [0, 32], sizes = [8, 16], strides = [1, 1]} : vector<8x48xf32> to vector<8x16xf32>
    %1542 = math.tanh %1540 : vector<8x16xf32>
    %1543 = arith.mulf %1541, %1542 : vector<8x16xf32>
    %c72_331 = arith.constant 72 : index
    %c0_332 = arith.constant 0 : index
    %1544 = vector.load %arg9[%c72_331, %c0_332] : memref<128x16xf32, #tpu.memory_space<vmem>>, vector<8x16xf32>
    tpu.vector_store %arg9[%c72_331, %c0_332], %1543 {strides = array<i32>} : memref<128x16xf32, #tpu.memory_space<vmem>>, vector<8x16xf32>,
    %cst_333 = arith.constant dense<0.000000e+00> : vector<8x64xf32>
    %1545 = tpu.matmul %1543, %1342, %cst_333 {dimension_numbers = #tpu.dot_dimension_numbers<[1], [0], [0], [1], [0, 0, 1, 1], [], []>} : vector<8x16xf32>, vector<16x64xf32>, vector<8x64xf32> -> vector<8x64xf32>
    %1546 = vector.extract_strided_slice %1341 {offsets = [80, 0], sizes = [8, 64], strides = [1, 1]} : vector<128x64xf32> to vector<8x64xf32>
    %1547 = arith.addf %1546, %1545 : vector<8x64xf32>
    %1548 = vector.extract_strided_slice %1547 {offsets = [0, 0], sizes = [8, 48], strides = [1, 1]} : vector<8x64xf32> to vector<8x48xf32>
    %1549 = arith.negf %1548 : vector<8x48xf32>
    %1550 = math.exp %1549 : vector<8x48xf32>
    %cst_334 = arith.constant 1.000000e+00 : f32
    %1551 = vector.broadcast %cst_334 : f32 to vector<8x48xf32>
    %1552 = arith.addf %1551, %1550 : vector<8x48xf32>
    %1553 = arith.divf %1551, %1552 : vector<8x48xf32>
    %1554 = vector.extract_strided_slice %1547 {offsets = [0, 48], sizes = [8, 16], strides = [1, 1]} : vector<8x64xf32> to vector<8x16xf32>
    %1555 = math.tanh %1554 : vector<8x16xf32>
    %1556 = vector.extract_strided_slice %1553 {offsets = [0, 16], sizes = [8, 16], strides = [1, 1]} : vector<8x48xf32> to vector<8x16xf32>
    %1557 = arith.mulf %1556, %1540 : vector<8x16xf32>
    %1558 = vector.extract_strided_slice %1553 {offsets = [0, 0], sizes = [8, 16], strides = [1, 1]} : vector<8x48xf32> to vector<8x16xf32>
    %1559 = arith.mulf %1558, %1555 : vector<8x16xf32>
    %1560 = arith.addf %1557, %1559 : vector<8x16xf32>
    %1561 = vector.extract_strided_slice %1553 {offsets = [0, 32], sizes = [8, 16], strides = [1, 1]} : vector<8x48xf32> to vector<8x16xf32>
    %1562 = math.tanh %1560 : vector<8x16xf32>
    %1563 = arith.mulf %1561, %1562 : vector<8x16xf32>
    %c80_335 = arith.constant 80 : index
    %c0_336 = arith.constant 0 : index
    %1564 = vector.load %arg9[%c80_335, %c0_336] : memref<128x16xf32, #tpu.memory_space<vmem>>, vector<8x16xf32>
    tpu.vector_store %arg9[%c80_335, %c0_336], %1563 {strides = array<i32>} : memref<128x16xf32, #tpu.memory_space<vmem>>, vector<8x16xf32>,
    %cst_337 = arith.constant dense<0.000000e+00> : vector<8x64xf32>
    %1565 = tpu.matmul %1563, %1342, %cst_337 {dimension_numbers = #tpu.dot_dimension_numbers<[1], [0], [0], [1], [0, 0, 1, 1], [], []>} : vector<8x16xf32>, vector<16x64xf32>, vector<8x64xf32> -> vector<8x64xf32>
    %1566 = vector.extract_strided_slice %1341 {offsets = [88, 0], sizes = [8, 64], strides = [1, 1]} : vector<128x64xf32> to vector<8x64xf32>
    %1567 = arith.addf %1566, %1565 : vector<8x64xf32>
    %1568 = vector.extract_strided_slice %1567 {offsets = [0, 0], sizes = [8, 48], strides = [1, 1]} : vector<8x64xf32> to vector<8x48xf32>
    %1569 = arith.negf %1568 : vector<8x48xf32>
    %1570 = math.exp %1569 : vector<8x48xf32>
    %cst_338 = arith.constant 1.000000e+00 : f32
    %1571 = vector.broadcast %cst_338 : f32 to vector<8x48xf32>
    %1572 = arith.addf %1571, %1570 : vector<8x48xf32>
    %1573 = arith.divf %1571, %1572 : vector<8x48xf32>
    %1574 = vector.extract_strided_slice %1567 {offsets = [0, 48], sizes = [8, 16], strides = [1, 1]} : vector<8x64xf32> to vector<8x16xf32>
    %1575 = math.tanh %1574 : vector<8x16xf32>
    %1576 = vector.extract_strided_slice %1573 {offsets = [0, 16], sizes = [8, 16], strides = [1, 1]} : vector<8x48xf32> to vector<8x16xf32>
    %1577 = arith.mulf %1576, %1560 : vector<8x16xf32>
    %1578 = vector.extract_strided_slice %1573 {offsets = [0, 0], sizes = [8, 16], strides = [1, 1]} : vector<8x48xf32> to vector<8x16xf32>
    %1579 = arith.mulf %1578, %1575 : vector<8x16xf32>
    %1580 = arith.addf %1577, %1579 : vector<8x16xf32>
    %1581 = vector.extract_strided_slice %1573 {offsets = [0, 32], sizes = [8, 16], strides = [1, 1]} : vector<8x48xf32> to vector<8x16xf32>
    %1582 = math.tanh %1580 : vector<8x16xf32>
    %1583 = arith.mulf %1581, %1582 : vector<8x16xf32>
    %c88_339 = arith.constant 88 : index
    %c0_340 = arith.constant 0 : index
    %1584 = vector.load %arg9[%c88_339, %c0_340] : memref<128x16xf32, #tpu.memory_space<vmem>>, vector<8x16xf32>
    tpu.vector_store %arg9[%c88_339, %c0_340], %1583 {strides = array<i32>} : memref<128x16xf32, #tpu.memory_space<vmem>>, vector<8x16xf32>,
    %cst_341 = arith.constant dense<0.000000e+00> : vector<8x64xf32>
    %1585 = tpu.matmul %1583, %1342, %cst_341 {dimension_numbers = #tpu.dot_dimension_numbers<[1], [0], [0], [1], [0, 0, 1, 1], [], []>} : vector<8x16xf32>, vector<16x64xf32>, vector<8x64xf32> -> vector<8x64xf32>
    %1586 = vector.extract_strided_slice %1341 {offsets = [96, 0], sizes = [8, 64], strides = [1, 1]} : vector<128x64xf32> to vector<8x64xf32>
    %1587 = arith.addf %1586, %1585 : vector<8x64xf32>
    %1588 = vector.extract_strided_slice %1587 {offsets = [0, 0], sizes = [8, 48], strides = [1, 1]} : vector<8x64xf32> to vector<8x48xf32>
    %1589 = arith.negf %1588 : vector<8x48xf32>
    %1590 = math.exp %1589 : vector<8x48xf32>
    %cst_342 = arith.constant 1.000000e+00 : f32
    %1591 = vector.broadcast %cst_342 : f32 to vector<8x48xf32>
    %1592 = arith.addf %1591, %1590 : vector<8x48xf32>
    %1593 = arith.divf %1591, %1592 : vector<8x48xf32>
    %1594 = vector.extract_strided_slice %1587 {offsets = [0, 48], sizes = [8, 16], strides = [1, 1]} : vector<8x64xf32> to vector<8x16xf32>
    %1595 = math.tanh %1594 : vector<8x16xf32>
    %1596 = vector.extract_strided_slice %1593 {offsets = [0, 16], sizes = [8, 16], strides = [1, 1]} : vector<8x48xf32> to vector<8x16xf32>
    %1597 = arith.mulf %1596, %1580 : vector<8x16xf32>
    %1598 = vector.extract_strided_slice %1593 {offsets = [0, 0], sizes = [8, 16], strides = [1, 1]} : vector<8x48xf32> to vector<8x16xf32>
    %1599 = arith.mulf %1598, %1595 : vector<8x16xf32>
    %1600 = arith.addf %1597, %1599 : vector<8x16xf32>
    %1601 = vector.extract_strided_slice %1593 {offsets = [0, 32], sizes = [8, 16], strides = [1, 1]} : vector<8x48xf32> to vector<8x16xf32>
    %1602 = math.tanh %1600 : vector<8x16xf32>
    %1603 = arith.mulf %1601, %1602 : vector<8x16xf32>
    %c96_343 = arith.constant 96 : index
    %c0_344 = arith.constant 0 : index
    %1604 = vector.load %arg9[%c96_343, %c0_344] : memref<128x16xf32, #tpu.memory_space<vmem>>, vector<8x16xf32>
    tpu.vector_store %arg9[%c96_343, %c0_344], %1603 {strides = array<i32>} : memref<128x16xf32, #tpu.memory_space<vmem>>, vector<8x16xf32>,
    %cst_345 = arith.constant dense<0.000000e+00> : vector<8x64xf32>
    %1605 = tpu.matmul %1603, %1342, %cst_345 {dimension_numbers = #tpu.dot_dimension_numbers<[1], [0], [0], [1], [0, 0, 1, 1], [], []>} : vector<8x16xf32>, vector<16x64xf32>, vector<8x64xf32> -> vector<8x64xf32>
    %1606 = vector.extract_strided_slice %1341 {offsets = [104, 0], sizes = [8, 64], strides = [1, 1]} : vector<128x64xf32> to vector<8x64xf32>
    %1607 = arith.addf %1606, %1605 : vector<8x64xf32>
    %1608 = vector.extract_strided_slice %1607 {offsets = [0, 0], sizes = [8, 48], strides = [1, 1]} : vector<8x64xf32> to vector<8x48xf32>
    %1609 = arith.negf %1608 : vector<8x48xf32>
    %1610 = math.exp %1609 : vector<8x48xf32>
    %cst_346 = arith.constant 1.000000e+00 : f32
    %1611 = vector.broadcast %cst_346 : f32 to vector<8x48xf32>
    %1612 = arith.addf %1611, %1610 : vector<8x48xf32>
    %1613 = arith.divf %1611, %1612 : vector<8x48xf32>
    %1614 = vector.extract_strided_slice %1607 {offsets = [0, 48], sizes = [8, 16], strides = [1, 1]} : vector<8x64xf32> to vector<8x16xf32>
    %1615 = math.tanh %1614 : vector<8x16xf32>
    %1616 = vector.extract_strided_slice %1613 {offsets = [0, 16], sizes = [8, 16], strides = [1, 1]} : vector<8x48xf32> to vector<8x16xf32>
    %1617 = arith.mulf %1616, %1600 : vector<8x16xf32>
    %1618 = vector.extract_strided_slice %1613 {offsets = [0, 0], sizes = [8, 16], strides = [1, 1]} : vector<8x48xf32> to vector<8x16xf32>
    %1619 = arith.mulf %1618, %1615 : vector<8x16xf32>
    %1620 = arith.addf %1617, %1619 : vector<8x16xf32>
    %1621 = vector.extract_strided_slice %1613 {offsets = [0, 32], sizes = [8, 16], strides = [1, 1]} : vector<8x48xf32> to vector<8x16xf32>
    %1622 = math.tanh %1620 : vector<8x16xf32>
    %1623 = arith.mulf %1621, %1622 : vector<8x16xf32>
    %c104_347 = arith.constant 104 : index
    %c0_348 = arith.constant 0 : index
    %1624 = vector.load %arg9[%c104_347, %c0_348] : memref<128x16xf32, #tpu.memory_space<vmem>>, vector<8x16xf32>
    tpu.vector_store %arg9[%c104_347, %c0_348], %1623 {strides = array<i32>} : memref<128x16xf32, #tpu.memory_space<vmem>>, vector<8x16xf32>,
    %cst_349 = arith.constant dense<0.000000e+00> : vector<8x64xf32>
    %1625 = tpu.matmul %1623, %1342, %cst_349 {dimension_numbers = #tpu.dot_dimension_numbers<[1], [0], [0], [1], [0, 0, 1, 1], [], []>} : vector<8x16xf32>, vector<16x64xf32>, vector<8x64xf32> -> vector<8x64xf32>
    %1626 = vector.extract_strided_slice %1341 {offsets = [112, 0], sizes = [8, 64], strides = [1, 1]} : vector<128x64xf32> to vector<8x64xf32>
    %1627 = arith.addf %1626, %1625 : vector<8x64xf32>
    %1628 = vector.extract_strided_slice %1627 {offsets = [0, 0], sizes = [8, 48], strides = [1, 1]} : vector<8x64xf32> to vector<8x48xf32>
    %1629 = arith.negf %1628 : vector<8x48xf32>
    %1630 = math.exp %1629 : vector<8x48xf32>
    %cst_350 = arith.constant 1.000000e+00 : f32
    %1631 = vector.broadcast %cst_350 : f32 to vector<8x48xf32>
    %1632 = arith.addf %1631, %1630 : vector<8x48xf32>
    %1633 = arith.divf %1631, %1632 : vector<8x48xf32>
    %1634 = vector.extract_strided_slice %1627 {offsets = [0, 48], sizes = [8, 16], strides = [1, 1]} : vector<8x64xf32> to vector<8x16xf32>
    %1635 = math.tanh %1634 : vector<8x16xf32>
    %1636 = vector.extract_strided_slice %1633 {offsets = [0, 16], sizes = [8, 16], strides = [1, 1]} : vector<8x48xf32> to vector<8x16xf32>
    %1637 = arith.mulf %1636, %1620 : vector<8x16xf32>
    %1638 = vector.extract_strided_slice %1633 {offsets = [0, 0], sizes = [8, 16], strides = [1, 1]} : vector<8x48xf32> to vector<8x16xf32>
    %1639 = arith.mulf %1638, %1635 : vector<8x16xf32>
    %1640 = arith.addf %1637, %1639 : vector<8x16xf32>
    %1641 = vector.extract_strided_slice %1633 {offsets = [0, 32], sizes = [8, 16], strides = [1, 1]} : vector<8x48xf32> to vector<8x16xf32>
    %1642 = math.tanh %1640 : vector<8x16xf32>
    %1643 = arith.mulf %1641, %1642 : vector<8x16xf32>
    %c112_351 = arith.constant 112 : index
    %c0_352 = arith.constant 0 : index
    %1644 = vector.load %arg9[%c112_351, %c0_352] : memref<128x16xf32, #tpu.memory_space<vmem>>, vector<8x16xf32>
    tpu.vector_store %arg9[%c112_351, %c0_352], %1643 {strides = array<i32>} : memref<128x16xf32, #tpu.memory_space<vmem>>, vector<8x16xf32>,
    %cst_353 = arith.constant dense<0.000000e+00> : vector<8x64xf32>
    %1645 = tpu.matmul %1643, %1342, %cst_353 {dimension_numbers = #tpu.dot_dimension_numbers<[1], [0], [0], [1], [0, 0, 1, 1], [], []>} : vector<8x16xf32>, vector<16x64xf32>, vector<8x64xf32> -> vector<8x64xf32>
    %1646 = vector.extract_strided_slice %1341 {offsets = [120, 0], sizes = [8, 64], strides = [1, 1]} : vector<128x64xf32> to vector<8x64xf32>
    %1647 = arith.addf %1646, %1645 : vector<8x64xf32>
    %1648 = vector.extract_strided_slice %1647 {offsets = [0, 0], sizes = [8, 48], strides = [1, 1]} : vector<8x64xf32> to vector<8x48xf32>
    %1649 = arith.negf %1648 : vector<8x48xf32>
    %1650 = math.exp %1649 : vector<8x48xf32>
    %cst_354 = arith.constant 1.000000e+00 : f32
    %1651 = vector.broadcast %cst_354 : f32 to vector<8x48xf32>
    %1652 = arith.addf %1651, %1650 : vector<8x48xf32>
    %1653 = arith.divf %1651, %1652 : vector<8x48xf32>
    %1654 = vector.extract_strided_slice %1647 {offsets = [0, 48], sizes = [8, 16], strides = [1, 1]} : vector<8x64xf32> to vector<8x16xf32>
    %1655 = math.tanh %1654 : vector<8x16xf32>
    %1656 = vector.extract_strided_slice %1653 {offsets = [0, 16], sizes = [8, 16], strides = [1, 1]} : vector<8x48xf32> to vector<8x16xf32>
    %1657 = arith.mulf %1656, %1640 : vector<8x16xf32>
    %1658 = vector.extract_strided_slice %1653 {offsets = [0, 0], sizes = [8, 16], strides = [1, 1]} : vector<8x48xf32> to vector<8x16xf32>
    %1659 = arith.mulf %1658, %1655 : vector<8x16xf32>
    %1660 = arith.addf %1657, %1659 : vector<8x16xf32>
    %1661 = vector.extract_strided_slice %1653 {offsets = [0, 32], sizes = [8, 16], strides = [1, 1]} : vector<8x48xf32> to vector<8x16xf32>
    %1662 = math.tanh %1660 : vector<8x16xf32>
    %1663 = arith.mulf %1661, %1662 : vector<8x16xf32>
    %c120_355 = arith.constant 120 : index
    %c0_356 = arith.constant 0 : index
    %1664 = vector.load %arg9[%c120_355, %c0_356] : memref<128x16xf32, #tpu.memory_space<vmem>>, vector<8x16xf32>
    tpu.vector_store %arg9[%c120_355, %c0_356], %1663 {strides = array<i32>} : memref<128x16xf32, #tpu.memory_space<vmem>>, vector<8x16xf32>,
    %c0_357 = arith.constant 0 : index
    %c0_358 = arith.constant 0 : index
    %1665 = vector.load %arg9[%c0_357, %c0_358] : memref<128x16xf32, #tpu.memory_space<vmem>>, vector<128x16xf32>
    %c176 = arith.constant 176 : index
    %c0_359 = arith.constant 0 : index
    %1666 = vector.load %arg6[%c176, %c0_359] : memref<208x64xf32, #tpu.memory_space<vmem>>, vector<16x4xf32>
    %c200 = arith.constant 200 : index
    %c0_360 = arith.constant 0 : index
    %1667 = vector.load %arg6[%c200, %c0_360] : memref<208x64xf32, #tpu.memory_space<vmem>>, vector<1x4xf32>
    %cst_361 = arith.constant dense<0.000000e+00> : vector<128x4xf32>
    %1668 = tpu.matmul %1665, %1666, %cst_361 {dimension_numbers = #tpu.dot_dimension_numbers<[1], [0], [0], [1], [0, 0, 1, 1], [], []>} : vector<128x16xf32>, vector<16x4xf32>, vector<128x4xf32> -> vector<128x4xf32>
    %1669 = vector.broadcast %1667 : vector<1x4xf32> to vector<128x4xf32>
    %1670 = arith.addf %1668, %1669 : vector<128x4xf32>
    %c192 = arith.constant 192 : index
    %c0_362 = arith.constant 0 : index
    %1671 = vector.load %arg6[%c192, %c0_362] : memref<208x64xf32, #tpu.memory_space<vmem>>, vector<1x4xf32>
    %cst_363 = arith.constant 0.000000e+00 : f32
    %1672 = vector.broadcast %cst_363 : f32 to vector<8x1xf32>
    %cst_364 = arith.constant 0.000000e+00 : f32
    %1673 = vector.broadcast %cst_364 : f32 to vector<8x1xf32>
    %1674 = vector.broadcast %1672 : vector<8x1xf32> to vector<8x4xf32>
    %1675 = vector.broadcast %1671 : vector<1x4xf32> to vector<8x4xf32>
    %1676 = arith.mulf %1674, %1675 : vector<8x4xf32>
    %1677 = vector.extract_strided_slice %1670 {offsets = [0, 0], sizes = [8, 4], strides = [1, 1]} : vector<128x4xf32> to vector<8x4xf32>
    %1678 = arith.addf %1677, %1676 : vector<8x4xf32>
    %1679 = vector.extract_strided_slice %1678 {offsets = [0, 0], sizes = [8, 3], strides = [1, 1]} : vector<8x4xf32> to vector<8x3xf32>
    %1680 = arith.negf %1679 : vector<8x3xf32>
    %1681 = math.exp %1680 : vector<8x3xf32>
    %cst_365 = arith.constant 1.000000e+00 : f32
    %1682 = vector.broadcast %cst_365 : f32 to vector<8x3xf32>
    %1683 = arith.addf %1682, %1681 : vector<8x3xf32>
    %1684 = arith.divf %1682, %1683 : vector<8x3xf32>
    %1685 = vector.extract_strided_slice %1678 {offsets = [0, 3], sizes = [8, 1], strides = [1, 1]} : vector<8x4xf32> to vector<8x1xf32>
    %1686 = math.tanh %1685 : vector<8x1xf32>
    %1687 = vector.extract_strided_slice %1684 {offsets = [0, 1], sizes = [8, 1], strides = [1, 1]} : vector<8x3xf32> to vector<8x1xf32>
    %1688 = arith.mulf %1687, %1673 : vector<8x1xf32>
    %1689 = vector.extract_strided_slice %1684 {offsets = [0, 0], sizes = [8, 1], strides = [1, 1]} : vector<8x3xf32> to vector<8x1xf32>
    %1690 = arith.mulf %1689, %1686 : vector<8x1xf32>
    %1691 = arith.addf %1688, %1690 : vector<8x1xf32>
    %1692 = vector.extract_strided_slice %1684 {offsets = [0, 2], sizes = [8, 1], strides = [1, 1]} : vector<8x3xf32> to vector<8x1xf32>
    %1693 = math.tanh %1691 : vector<8x1xf32>
    %1694 = arith.mulf %1692, %1693 : vector<8x1xf32>
    %1695 = vector.broadcast %1694 : vector<8x1xf32> to vector<8x4xf32>
    %1696 = vector.broadcast %1671 : vector<1x4xf32> to vector<8x4xf32>
    %1697 = arith.mulf %1695, %1696 : vector<8x4xf32>
    %1698 = vector.extract_strided_slice %1670 {offsets = [8, 0], sizes = [8, 4], strides = [1, 1]} : vector<128x4xf32> to vector<8x4xf32>
    %1699 = arith.addf %1698, %1697 : vector<8x4xf32>
    %1700 = vector.extract_strided_slice %1699 {offsets = [0, 0], sizes = [8, 3], strides = [1, 1]} : vector<8x4xf32> to vector<8x3xf32>
    %1701 = arith.negf %1700 : vector<8x3xf32>
    %1702 = math.exp %1701 : vector<8x3xf32>
    %cst_366 = arith.constant 1.000000e+00 : f32
    %1703 = vector.broadcast %cst_366 : f32 to vector<8x3xf32>
    %1704 = arith.addf %1703, %1702 : vector<8x3xf32>
    %1705 = arith.divf %1703, %1704 : vector<8x3xf32>
    %1706 = vector.extract_strided_slice %1699 {offsets = [0, 3], sizes = [8, 1], strides = [1, 1]} : vector<8x4xf32> to vector<8x1xf32>
    %1707 = math.tanh %1706 : vector<8x1xf32>
    %1708 = vector.extract_strided_slice %1705 {offsets = [0, 1], sizes = [8, 1], strides = [1, 1]} : vector<8x3xf32> to vector<8x1xf32>
    %1709 = arith.mulf %1708, %1691 : vector<8x1xf32>
    %1710 = vector.extract_strided_slice %1705 {offsets = [0, 0], sizes = [8, 1], strides = [1, 1]} : vector<8x3xf32> to vector<8x1xf32>
    %1711 = arith.mulf %1710, %1707 : vector<8x1xf32>
    %1712 = arith.addf %1709, %1711 : vector<8x1xf32>
    %1713 = vector.extract_strided_slice %1705 {offsets = [0, 2], sizes = [8, 1], strides = [1, 1]} : vector<8x3xf32> to vector<8x1xf32>
    %1714 = math.tanh %1712 : vector<8x1xf32>
    %1715 = arith.mulf %1713, %1714 : vector<8x1xf32>
    %1716 = vector.broadcast %1715 : vector<8x1xf32> to vector<8x4xf32>
    %1717 = vector.broadcast %1671 : vector<1x4xf32> to vector<8x4xf32>
    %1718 = arith.mulf %1716, %1717 : vector<8x4xf32>
    %1719 = vector.extract_strided_slice %1670 {offsets = [16, 0], sizes = [8, 4], strides = [1, 1]} : vector<128x4xf32> to vector<8x4xf32>
    %1720 = arith.addf %1719, %1718 : vector<8x4xf32>
    %1721 = vector.extract_strided_slice %1720 {offsets = [0, 0], sizes = [8, 3], strides = [1, 1]} : vector<8x4xf32> to vector<8x3xf32>
    %1722 = arith.negf %1721 : vector<8x3xf32>
    %1723 = math.exp %1722 : vector<8x3xf32>
    %cst_367 = arith.constant 1.000000e+00 : f32
    %1724 = vector.broadcast %cst_367 : f32 to vector<8x3xf32>
    %1725 = arith.addf %1724, %1723 : vector<8x3xf32>
    %1726 = arith.divf %1724, %1725 : vector<8x3xf32>
    %1727 = vector.extract_strided_slice %1720 {offsets = [0, 3], sizes = [8, 1], strides = [1, 1]} : vector<8x4xf32> to vector<8x1xf32>
    %1728 = math.tanh %1727 : vector<8x1xf32>
    %1729 = vector.extract_strided_slice %1726 {offsets = [0, 1], sizes = [8, 1], strides = [1, 1]} : vector<8x3xf32> to vector<8x1xf32>
    %1730 = arith.mulf %1729, %1712 : vector<8x1xf32>
    %1731 = vector.extract_strided_slice %1726 {offsets = [0, 0], sizes = [8, 1], strides = [1, 1]} : vector<8x3xf32> to vector<8x1xf32>
    %1732 = arith.mulf %1731, %1728 : vector<8x1xf32>
    %1733 = arith.addf %1730, %1732 : vector<8x1xf32>
    %1734 = vector.extract_strided_slice %1726 {offsets = [0, 2], sizes = [8, 1], strides = [1, 1]} : vector<8x3xf32> to vector<8x1xf32>
    %1735 = math.tanh %1733 : vector<8x1xf32>
    %1736 = arith.mulf %1734, %1735 : vector<8x1xf32>
    %1737 = vector.broadcast %1736 : vector<8x1xf32> to vector<8x4xf32>
    %1738 = vector.broadcast %1671 : vector<1x4xf32> to vector<8x4xf32>
    %1739 = arith.mulf %1737, %1738 : vector<8x4xf32>
    %1740 = vector.extract_strided_slice %1670 {offsets = [24, 0], sizes = [8, 4], strides = [1, 1]} : vector<128x4xf32> to vector<8x4xf32>
    %1741 = arith.addf %1740, %1739 : vector<8x4xf32>
    %1742 = vector.extract_strided_slice %1741 {offsets = [0, 0], sizes = [8, 3], strides = [1, 1]} : vector<8x4xf32> to vector<8x3xf32>
    %1743 = arith.negf %1742 : vector<8x3xf32>
    %1744 = math.exp %1743 : vector<8x3xf32>
    %cst_368 = arith.constant 1.000000e+00 : f32
    %1745 = vector.broadcast %cst_368 : f32 to vector<8x3xf32>
    %1746 = arith.addf %1745, %1744 : vector<8x3xf32>
    %1747 = arith.divf %1745, %1746 : vector<8x3xf32>
    %1748 = vector.extract_strided_slice %1741 {offsets = [0, 3], sizes = [8, 1], strides = [1, 1]} : vector<8x4xf32> to vector<8x1xf32>
    %1749 = math.tanh %1748 : vector<8x1xf32>
    %1750 = vector.extract_strided_slice %1747 {offsets = [0, 1], sizes = [8, 1], strides = [1, 1]} : vector<8x3xf32> to vector<8x1xf32>
    %1751 = arith.mulf %1750, %1733 : vector<8x1xf32>
    %1752 = vector.extract_strided_slice %1747 {offsets = [0, 0], sizes = [8, 1], strides = [1, 1]} : vector<8x3xf32> to vector<8x1xf32>
    %1753 = arith.mulf %1752, %1749 : vector<8x1xf32>
    %1754 = arith.addf %1751, %1753 : vector<8x1xf32>
    %1755 = vector.extract_strided_slice %1747 {offsets = [0, 2], sizes = [8, 1], strides = [1, 1]} : vector<8x3xf32> to vector<8x1xf32>
    %1756 = math.tanh %1754 : vector<8x1xf32>
    %1757 = arith.mulf %1755, %1756 : vector<8x1xf32>
    %1758 = vector.broadcast %1757 : vector<8x1xf32> to vector<8x4xf32>
    %1759 = vector.broadcast %1671 : vector<1x4xf32> to vector<8x4xf32>
    %1760 = arith.mulf %1758, %1759 : vector<8x4xf32>
    %1761 = vector.extract_strided_slice %1670 {offsets = [32, 0], sizes = [8, 4], strides = [1, 1]} : vector<128x4xf32> to vector<8x4xf32>
    %1762 = arith.addf %1761, %1760 : vector<8x4xf32>
    %1763 = vector.extract_strided_slice %1762 {offsets = [0, 0], sizes = [8, 3], strides = [1, 1]} : vector<8x4xf32> to vector<8x3xf32>
    %1764 = arith.negf %1763 : vector<8x3xf32>
    %1765 = math.exp %1764 : vector<8x3xf32>
    %cst_369 = arith.constant 1.000000e+00 : f32
    %1766 = vector.broadcast %cst_369 : f32 to vector<8x3xf32>
    %1767 = arith.addf %1766, %1765 : vector<8x3xf32>
    %1768 = arith.divf %1766, %1767 : vector<8x3xf32>
    %1769 = vector.extract_strided_slice %1762 {offsets = [0, 3], sizes = [8, 1], strides = [1, 1]} : vector<8x4xf32> to vector<8x1xf32>
    %1770 = math.tanh %1769 : vector<8x1xf32>
    %1771 = vector.extract_strided_slice %1768 {offsets = [0, 1], sizes = [8, 1], strides = [1, 1]} : vector<8x3xf32> to vector<8x1xf32>
    %1772 = arith.mulf %1771, %1754 : vector<8x1xf32>
    %1773 = vector.extract_strided_slice %1768 {offsets = [0, 0], sizes = [8, 1], strides = [1, 1]} : vector<8x3xf32> to vector<8x1xf32>
    %1774 = arith.mulf %1773, %1770 : vector<8x1xf32>
    %1775 = arith.addf %1772, %1774 : vector<8x1xf32>
    %1776 = vector.extract_strided_slice %1768 {offsets = [0, 2], sizes = [8, 1], strides = [1, 1]} : vector<8x3xf32> to vector<8x1xf32>
    %1777 = math.tanh %1775 : vector<8x1xf32>
    %1778 = arith.mulf %1776, %1777 : vector<8x1xf32>
    %1779 = vector.broadcast %1778 : vector<8x1xf32> to vector<8x4xf32>
    %1780 = vector.broadcast %1671 : vector<1x4xf32> to vector<8x4xf32>
    %1781 = arith.mulf %1779, %1780 : vector<8x4xf32>
    %1782 = vector.extract_strided_slice %1670 {offsets = [40, 0], sizes = [8, 4], strides = [1, 1]} : vector<128x4xf32> to vector<8x4xf32>
    %1783 = arith.addf %1782, %1781 : vector<8x4xf32>
    %1784 = vector.extract_strided_slice %1783 {offsets = [0, 0], sizes = [8, 3], strides = [1, 1]} : vector<8x4xf32> to vector<8x3xf32>
    %1785 = arith.negf %1784 : vector<8x3xf32>
    %1786 = math.exp %1785 : vector<8x3xf32>
    %cst_370 = arith.constant 1.000000e+00 : f32
    %1787 = vector.broadcast %cst_370 : f32 to vector<8x3xf32>
    %1788 = arith.addf %1787, %1786 : vector<8x3xf32>
    %1789 = arith.divf %1787, %1788 : vector<8x3xf32>
    %1790 = vector.extract_strided_slice %1783 {offsets = [0, 3], sizes = [8, 1], strides = [1, 1]} : vector<8x4xf32> to vector<8x1xf32>
    %1791 = math.tanh %1790 : vector<8x1xf32>
    %1792 = vector.extract_strided_slice %1789 {offsets = [0, 1], sizes = [8, 1], strides = [1, 1]} : vector<8x3xf32> to vector<8x1xf32>
    %1793 = arith.mulf %1792, %1775 : vector<8x1xf32>
    %1794 = vector.extract_strided_slice %1789 {offsets = [0, 0], sizes = [8, 1], strides = [1, 1]} : vector<8x3xf32> to vector<8x1xf32>
    %1795 = arith.mulf %1794, %1791 : vector<8x1xf32>
    %1796 = arith.addf %1793, %1795 : vector<8x1xf32>
    %1797 = vector.extract_strided_slice %1789 {offsets = [0, 2], sizes = [8, 1], strides = [1, 1]} : vector<8x3xf32> to vector<8x1xf32>
    %1798 = math.tanh %1796 : vector<8x1xf32>
    %1799 = arith.mulf %1797, %1798 : vector<8x1xf32>
    %1800 = vector.broadcast %1799 : vector<8x1xf32> to vector<8x4xf32>
    %1801 = vector.broadcast %1671 : vector<1x4xf32> to vector<8x4xf32>
    %1802 = arith.mulf %1800, %1801 : vector<8x4xf32>
    %1803 = vector.extract_strided_slice %1670 {offsets = [48, 0], sizes = [8, 4], strides = [1, 1]} : vector<128x4xf32> to vector<8x4xf32>
    %1804 = arith.addf %1803, %1802 : vector<8x4xf32>
    %1805 = vector.extract_strided_slice %1804 {offsets = [0, 0], sizes = [8, 3], strides = [1, 1]} : vector<8x4xf32> to vector<8x3xf32>
    %1806 = arith.negf %1805 : vector<8x3xf32>
    %1807 = math.exp %1806 : vector<8x3xf32>
    %cst_371 = arith.constant 1.000000e+00 : f32
    %1808 = vector.broadcast %cst_371 : f32 to vector<8x3xf32>
    %1809 = arith.addf %1808, %1807 : vector<8x3xf32>
    %1810 = arith.divf %1808, %1809 : vector<8x3xf32>
    %1811 = vector.extract_strided_slice %1804 {offsets = [0, 3], sizes = [8, 1], strides = [1, 1]} : vector<8x4xf32> to vector<8x1xf32>
    %1812 = math.tanh %1811 : vector<8x1xf32>
    %1813 = vector.extract_strided_slice %1810 {offsets = [0, 1], sizes = [8, 1], strides = [1, 1]} : vector<8x3xf32> to vector<8x1xf32>
    %1814 = arith.mulf %1813, %1796 : vector<8x1xf32>
    %1815 = vector.extract_strided_slice %1810 {offsets = [0, 0], sizes = [8, 1], strides = [1, 1]} : vector<8x3xf32> to vector<8x1xf32>
    %1816 = arith.mulf %1815, %1812 : vector<8x1xf32>
    %1817 = arith.addf %1814, %1816 : vector<8x1xf32>
    %1818 = vector.extract_strided_slice %1810 {offsets = [0, 2], sizes = [8, 1], strides = [1, 1]} : vector<8x3xf32> to vector<8x1xf32>
    %1819 = math.tanh %1817 : vector<8x1xf32>
    %1820 = arith.mulf %1818, %1819 : vector<8x1xf32>
    %1821 = vector.broadcast %1820 : vector<8x1xf32> to vector<8x4xf32>
    %1822 = vector.broadcast %1671 : vector<1x4xf32> to vector<8x4xf32>
    %1823 = arith.mulf %1821, %1822 : vector<8x4xf32>
    %1824 = vector.extract_strided_slice %1670 {offsets = [56, 0], sizes = [8, 4], strides = [1, 1]} : vector<128x4xf32> to vector<8x4xf32>
    %1825 = arith.addf %1824, %1823 : vector<8x4xf32>
    %1826 = vector.extract_strided_slice %1825 {offsets = [0, 0], sizes = [8, 3], strides = [1, 1]} : vector<8x4xf32> to vector<8x3xf32>
    %1827 = arith.negf %1826 : vector<8x3xf32>
    %1828 = math.exp %1827 : vector<8x3xf32>
    %cst_372 = arith.constant 1.000000e+00 : f32
    %1829 = vector.broadcast %cst_372 : f32 to vector<8x3xf32>
    %1830 = arith.addf %1829, %1828 : vector<8x3xf32>
    %1831 = arith.divf %1829, %1830 : vector<8x3xf32>
    %1832 = vector.extract_strided_slice %1825 {offsets = [0, 3], sizes = [8, 1], strides = [1, 1]} : vector<8x4xf32> to vector<8x1xf32>
    %1833 = math.tanh %1832 : vector<8x1xf32>
    %1834 = vector.extract_strided_slice %1831 {offsets = [0, 1], sizes = [8, 1], strides = [1, 1]} : vector<8x3xf32> to vector<8x1xf32>
    %1835 = arith.mulf %1834, %1817 : vector<8x1xf32>
    %1836 = vector.extract_strided_slice %1831 {offsets = [0, 0], sizes = [8, 1], strides = [1, 1]} : vector<8x3xf32> to vector<8x1xf32>
    %1837 = arith.mulf %1836, %1833 : vector<8x1xf32>
    %1838 = arith.addf %1835, %1837 : vector<8x1xf32>
    %1839 = vector.extract_strided_slice %1831 {offsets = [0, 2], sizes = [8, 1], strides = [1, 1]} : vector<8x3xf32> to vector<8x1xf32>
    %1840 = math.tanh %1838 : vector<8x1xf32>
    %1841 = arith.mulf %1839, %1840 : vector<8x1xf32>
    %1842 = vector.broadcast %1841 : vector<8x1xf32> to vector<8x4xf32>
    %1843 = vector.broadcast %1671 : vector<1x4xf32> to vector<8x4xf32>
    %1844 = arith.mulf %1842, %1843 : vector<8x4xf32>
    %1845 = vector.extract_strided_slice %1670 {offsets = [64, 0], sizes = [8, 4], strides = [1, 1]} : vector<128x4xf32> to vector<8x4xf32>
    %1846 = arith.addf %1845, %1844 : vector<8x4xf32>
    %1847 = vector.extract_strided_slice %1846 {offsets = [0, 0], sizes = [8, 3], strides = [1, 1]} : vector<8x4xf32> to vector<8x3xf32>
    %1848 = arith.negf %1847 : vector<8x3xf32>
    %1849 = math.exp %1848 : vector<8x3xf32>
    %cst_373 = arith.constant 1.000000e+00 : f32
    %1850 = vector.broadcast %cst_373 : f32 to vector<8x3xf32>
    %1851 = arith.addf %1850, %1849 : vector<8x3xf32>
    %1852 = arith.divf %1850, %1851 : vector<8x3xf32>
    %1853 = vector.extract_strided_slice %1846 {offsets = [0, 3], sizes = [8, 1], strides = [1, 1]} : vector<8x4xf32> to vector<8x1xf32>
    %1854 = math.tanh %1853 : vector<8x1xf32>
    %1855 = vector.extract_strided_slice %1852 {offsets = [0, 1], sizes = [8, 1], strides = [1, 1]} : vector<8x3xf32> to vector<8x1xf32>
    %1856 = arith.mulf %1855, %1838 : vector<8x1xf32>
    %1857 = vector.extract_strided_slice %1852 {offsets = [0, 0], sizes = [8, 1], strides = [1, 1]} : vector<8x3xf32> to vector<8x1xf32>
    %1858 = arith.mulf %1857, %1854 : vector<8x1xf32>
    %1859 = arith.addf %1856, %1858 : vector<8x1xf32>
    %1860 = vector.extract_strided_slice %1852 {offsets = [0, 2], sizes = [8, 1], strides = [1, 1]} : vector<8x3xf32> to vector<8x1xf32>
    %1861 = math.tanh %1859 : vector<8x1xf32>
    %1862 = arith.mulf %1860, %1861 : vector<8x1xf32>
    %1863 = vector.broadcast %1862 : vector<8x1xf32> to vector<8x4xf32>
    %1864 = vector.broadcast %1671 : vector<1x4xf32> to vector<8x4xf32>
    %1865 = arith.mulf %1863, %1864 : vector<8x4xf32>
    %1866 = vector.extract_strided_slice %1670 {offsets = [72, 0], sizes = [8, 4], strides = [1, 1]} : vector<128x4xf32> to vector<8x4xf32>
    %1867 = arith.addf %1866, %1865 : vector<8x4xf32>
    %1868 = vector.extract_strided_slice %1867 {offsets = [0, 0], sizes = [8, 3], strides = [1, 1]} : vector<8x4xf32> to vector<8x3xf32>
    %1869 = arith.negf %1868 : vector<8x3xf32>
    %1870 = math.exp %1869 : vector<8x3xf32>
    %cst_374 = arith.constant 1.000000e+00 : f32
    %1871 = vector.broadcast %cst_374 : f32 to vector<8x3xf32>
    %1872 = arith.addf %1871, %1870 : vector<8x3xf32>
    %1873 = arith.divf %1871, %1872 : vector<8x3xf32>
    %1874 = vector.extract_strided_slice %1867 {offsets = [0, 3], sizes = [8, 1], strides = [1, 1]} : vector<8x4xf32> to vector<8x1xf32>
    %1875 = math.tanh %1874 : vector<8x1xf32>
    %1876 = vector.extract_strided_slice %1873 {offsets = [0, 1], sizes = [8, 1], strides = [1, 1]} : vector<8x3xf32> to vector<8x1xf32>
    %1877 = arith.mulf %1876, %1859 : vector<8x1xf32>
    %1878 = vector.extract_strided_slice %1873 {offsets = [0, 0], sizes = [8, 1], strides = [1, 1]} : vector<8x3xf32> to vector<8x1xf32>
    %1879 = arith.mulf %1878, %1875 : vector<8x1xf32>
    %1880 = arith.addf %1877, %1879 : vector<8x1xf32>
    %1881 = vector.extract_strided_slice %1873 {offsets = [0, 2], sizes = [8, 1], strides = [1, 1]} : vector<8x3xf32> to vector<8x1xf32>
    %1882 = math.tanh %1880 : vector<8x1xf32>
    %1883 = arith.mulf %1881, %1882 : vector<8x1xf32>
    %1884 = vector.broadcast %1883 : vector<8x1xf32> to vector<8x4xf32>
    %1885 = vector.broadcast %1671 : vector<1x4xf32> to vector<8x4xf32>
    %1886 = arith.mulf %1884, %1885 : vector<8x4xf32>
    %1887 = vector.extract_strided_slice %1670 {offsets = [80, 0], sizes = [8, 4], strides = [1, 1]} : vector<128x4xf32> to vector<8x4xf32>
    %1888 = arith.addf %1887, %1886 : vector<8x4xf32>
    %1889 = vector.extract_strided_slice %1888 {offsets = [0, 0], sizes = [8, 3], strides = [1, 1]} : vector<8x4xf32> to vector<8x3xf32>
    %1890 = arith.negf %1889 : vector<8x3xf32>
    %1891 = math.exp %1890 : vector<8x3xf32>
    %cst_375 = arith.constant 1.000000e+00 : f32
    %1892 = vector.broadcast %cst_375 : f32 to vector<8x3xf32>
    %1893 = arith.addf %1892, %1891 : vector<8x3xf32>
    %1894 = arith.divf %1892, %1893 : vector<8x3xf32>
    %1895 = vector.extract_strided_slice %1888 {offsets = [0, 3], sizes = [8, 1], strides = [1, 1]} : vector<8x4xf32> to vector<8x1xf32>
    %1896 = math.tanh %1895 : vector<8x1xf32>
    %1897 = vector.extract_strided_slice %1894 {offsets = [0, 1], sizes = [8, 1], strides = [1, 1]} : vector<8x3xf32> to vector<8x1xf32>
    %1898 = arith.mulf %1897, %1880 : vector<8x1xf32>
    %1899 = vector.extract_strided_slice %1894 {offsets = [0, 0], sizes = [8, 1], strides = [1, 1]} : vector<8x3xf32> to vector<8x1xf32>
    %1900 = arith.mulf %1899, %1896 : vector<8x1xf32>
    %1901 = arith.addf %1898, %1900 : vector<8x1xf32>
    %1902 = vector.extract_strided_slice %1894 {offsets = [0, 2], sizes = [8, 1], strides = [1, 1]} : vector<8x3xf32> to vector<8x1xf32>
    %1903 = math.tanh %1901 : vector<8x1xf32>
    %1904 = arith.mulf %1902, %1903 : vector<8x1xf32>
    %1905 = vector.broadcast %1904 : vector<8x1xf32> to vector<8x4xf32>
    %1906 = vector.broadcast %1671 : vector<1x4xf32> to vector<8x4xf32>
    %1907 = arith.mulf %1905, %1906 : vector<8x4xf32>
    %1908 = vector.extract_strided_slice %1670 {offsets = [88, 0], sizes = [8, 4], strides = [1, 1]} : vector<128x4xf32> to vector<8x4xf32>
    %1909 = arith.addf %1908, %1907 : vector<8x4xf32>
    %1910 = vector.extract_strided_slice %1909 {offsets = [0, 0], sizes = [8, 3], strides = [1, 1]} : vector<8x4xf32> to vector<8x3xf32>
    %1911 = arith.negf %1910 : vector<8x3xf32>
    %1912 = math.exp %1911 : vector<8x3xf32>
    %cst_376 = arith.constant 1.000000e+00 : f32
    %1913 = vector.broadcast %cst_376 : f32 to vector<8x3xf32>
    %1914 = arith.addf %1913, %1912 : vector<8x3xf32>
    %1915 = arith.divf %1913, %1914 : vector<8x3xf32>
    %1916 = vector.extract_strided_slice %1909 {offsets = [0, 3], sizes = [8, 1], strides = [1, 1]} : vector<8x4xf32> to vector<8x1xf32>
    %1917 = math.tanh %1916 : vector<8x1xf32>
    %1918 = vector.extract_strided_slice %1915 {offsets = [0, 1], sizes = [8, 1], strides = [1, 1]} : vector<8x3xf32> to vector<8x1xf32>
    %1919 = arith.mulf %1918, %1901 : vector<8x1xf32>
    %1920 = vector.extract_strided_slice %1915 {offsets = [0, 0], sizes = [8, 1], strides = [1, 1]} : vector<8x3xf32> to vector<8x1xf32>
    %1921 = arith.mulf %1920, %1917 : vector<8x1xf32>
    %1922 = arith.addf %1919, %1921 : vector<8x1xf32>
    %1923 = vector.extract_strided_slice %1915 {offsets = [0, 2], sizes = [8, 1], strides = [1, 1]} : vector<8x3xf32> to vector<8x1xf32>
    %1924 = math.tanh %1922 : vector<8x1xf32>
    %1925 = arith.mulf %1923, %1924 : vector<8x1xf32>
    %1926 = vector.broadcast %1925 : vector<8x1xf32> to vector<8x4xf32>
    %1927 = vector.broadcast %1671 : vector<1x4xf32> to vector<8x4xf32>
    %1928 = arith.mulf %1926, %1927 : vector<8x4xf32>
    %1929 = vector.extract_strided_slice %1670 {offsets = [96, 0], sizes = [8, 4], strides = [1, 1]} : vector<128x4xf32> to vector<8x4xf32>
    %1930 = arith.addf %1929, %1928 : vector<8x4xf32>
    %1931 = vector.extract_strided_slice %1930 {offsets = [0, 0], sizes = [8, 3], strides = [1, 1]} : vector<8x4xf32> to vector<8x3xf32>
    %1932 = arith.negf %1931 : vector<8x3xf32>
    %1933 = math.exp %1932 : vector<8x3xf32>
    %cst_377 = arith.constant 1.000000e+00 : f32
    %1934 = vector.broadcast %cst_377 : f32 to vector<8x3xf32>
    %1935 = arith.addf %1934, %1933 : vector<8x3xf32>
    %1936 = arith.divf %1934, %1935 : vector<8x3xf32>
    %1937 = vector.extract_strided_slice %1930 {offsets = [0, 3], sizes = [8, 1], strides = [1, 1]} : vector<8x4xf32> to vector<8x1xf32>
    %1938 = math.tanh %1937 : vector<8x1xf32>
    %1939 = vector.extract_strided_slice %1936 {offsets = [0, 1], sizes = [8, 1], strides = [1, 1]} : vector<8x3xf32> to vector<8x1xf32>
    %1940 = arith.mulf %1939, %1922 : vector<8x1xf32>
    %1941 = vector.extract_strided_slice %1936 {offsets = [0, 0], sizes = [8, 1], strides = [1, 1]} : vector<8x3xf32> to vector<8x1xf32>
    %1942 = arith.mulf %1941, %1938 : vector<8x1xf32>
    %1943 = arith.addf %1940, %1942 : vector<8x1xf32>
    %1944 = vector.extract_strided_slice %1936 {offsets = [0, 2], sizes = [8, 1], strides = [1, 1]} : vector<8x3xf32> to vector<8x1xf32>
    %1945 = math.tanh %1943 : vector<8x1xf32>
    %1946 = arith.mulf %1944, %1945 : vector<8x1xf32>
    %1947 = vector.broadcast %1946 : vector<8x1xf32> to vector<8x4xf32>
    %1948 = vector.broadcast %1671 : vector<1x4xf32> to vector<8x4xf32>
    %1949 = arith.mulf %1947, %1948 : vector<8x4xf32>
    %1950 = vector.extract_strided_slice %1670 {offsets = [104, 0], sizes = [8, 4], strides = [1, 1]} : vector<128x4xf32> to vector<8x4xf32>
    %1951 = arith.addf %1950, %1949 : vector<8x4xf32>
    %1952 = vector.extract_strided_slice %1951 {offsets = [0, 0], sizes = [8, 3], strides = [1, 1]} : vector<8x4xf32> to vector<8x3xf32>
    %1953 = arith.negf %1952 : vector<8x3xf32>
    %1954 = math.exp %1953 : vector<8x3xf32>
    %cst_378 = arith.constant 1.000000e+00 : f32
    %1955 = vector.broadcast %cst_378 : f32 to vector<8x3xf32>
    %1956 = arith.addf %1955, %1954 : vector<8x3xf32>
    %1957 = arith.divf %1955, %1956 : vector<8x3xf32>
    %1958 = vector.extract_strided_slice %1951 {offsets = [0, 3], sizes = [8, 1], strides = [1, 1]} : vector<8x4xf32> to vector<8x1xf32>
    %1959 = math.tanh %1958 : vector<8x1xf32>
    %1960 = vector.extract_strided_slice %1957 {offsets = [0, 1], sizes = [8, 1], strides = [1, 1]} : vector<8x3xf32> to vector<8x1xf32>
    %1961 = arith.mulf %1960, %1943 : vector<8x1xf32>
    %1962 = vector.extract_strided_slice %1957 {offsets = [0, 0], sizes = [8, 1], strides = [1, 1]} : vector<8x3xf32> to vector<8x1xf32>
    %1963 = arith.mulf %1962, %1959 : vector<8x1xf32>
    %1964 = arith.addf %1961, %1963 : vector<8x1xf32>
    %1965 = vector.extract_strided_slice %1957 {offsets = [0, 2], sizes = [8, 1], strides = [1, 1]} : vector<8x3xf32> to vector<8x1xf32>
    %1966 = math.tanh %1964 : vector<8x1xf32>
    %1967 = arith.mulf %1965, %1966 : vector<8x1xf32>
    %1968 = vector.broadcast %1967 : vector<8x1xf32> to vector<8x4xf32>
    %1969 = vector.broadcast %1671 : vector<1x4xf32> to vector<8x4xf32>
    %1970 = arith.mulf %1968, %1969 : vector<8x4xf32>
    %1971 = vector.extract_strided_slice %1670 {offsets = [112, 0], sizes = [8, 4], strides = [1, 1]} : vector<128x4xf32> to vector<8x4xf32>
    %1972 = arith.addf %1971, %1970 : vector<8x4xf32>
    %1973 = vector.extract_strided_slice %1972 {offsets = [0, 0], sizes = [8, 3], strides = [1, 1]} : vector<8x4xf32> to vector<8x3xf32>
    %1974 = arith.negf %1973 : vector<8x3xf32>
    %1975 = math.exp %1974 : vector<8x3xf32>
    %cst_379 = arith.constant 1.000000e+00 : f32
    %1976 = vector.broadcast %cst_379 : f32 to vector<8x3xf32>
    %1977 = arith.addf %1976, %1975 : vector<8x3xf32>
    %1978 = arith.divf %1976, %1977 : vector<8x3xf32>
    %1979 = vector.extract_strided_slice %1972 {offsets = [0, 3], sizes = [8, 1], strides = [1, 1]} : vector<8x4xf32> to vector<8x1xf32>
    %1980 = math.tanh %1979 : vector<8x1xf32>
    %1981 = vector.extract_strided_slice %1978 {offsets = [0, 1], sizes = [8, 1], strides = [1, 1]} : vector<8x3xf32> to vector<8x1xf32>
    %1982 = arith.mulf %1981, %1964 : vector<8x1xf32>
    %1983 = vector.extract_strided_slice %1978 {offsets = [0, 0], sizes = [8, 1], strides = [1, 1]} : vector<8x3xf32> to vector<8x1xf32>
    %1984 = arith.mulf %1983, %1980 : vector<8x1xf32>
    %1985 = arith.addf %1982, %1984 : vector<8x1xf32>
    %1986 = vector.extract_strided_slice %1978 {offsets = [0, 2], sizes = [8, 1], strides = [1, 1]} : vector<8x3xf32> to vector<8x1xf32>
    %1987 = math.tanh %1985 : vector<8x1xf32>
    %1988 = arith.mulf %1986, %1987 : vector<8x1xf32>
    %1989 = vector.broadcast %1988 : vector<8x1xf32> to vector<8x4xf32>
    %1990 = vector.broadcast %1671 : vector<1x4xf32> to vector<8x4xf32>
    %1991 = arith.mulf %1989, %1990 : vector<8x4xf32>
    %1992 = vector.extract_strided_slice %1670 {offsets = [120, 0], sizes = [8, 4], strides = [1, 1]} : vector<128x4xf32> to vector<8x4xf32>
    %1993 = arith.addf %1992, %1991 : vector<8x4xf32>
    %1994 = vector.extract_strided_slice %1993 {offsets = [0, 0], sizes = [8, 3], strides = [1, 1]} : vector<8x4xf32> to vector<8x3xf32>
    %1995 = arith.negf %1994 : vector<8x3xf32>
    %1996 = math.exp %1995 : vector<8x3xf32>
    %cst_380 = arith.constant 1.000000e+00 : f32
    %1997 = vector.broadcast %cst_380 : f32 to vector<8x3xf32>
    %1998 = arith.addf %1997, %1996 : vector<8x3xf32>
    %1999 = arith.divf %1997, %1998 : vector<8x3xf32>
    %2000 = vector.extract_strided_slice %1993 {offsets = [0, 3], sizes = [8, 1], strides = [1, 1]} : vector<8x4xf32> to vector<8x1xf32>
    %2001 = math.tanh %2000 : vector<8x1xf32>
    %2002 = vector.extract_strided_slice %1999 {offsets = [0, 1], sizes = [8, 1], strides = [1, 1]} : vector<8x3xf32> to vector<8x1xf32>
    %2003 = arith.mulf %2002, %1985 : vector<8x1xf32>
    %2004 = vector.extract_strided_slice %1999 {offsets = [0, 0], sizes = [8, 1], strides = [1, 1]} : vector<8x3xf32> to vector<8x1xf32>
    %2005 = arith.mulf %2004, %2001 : vector<8x1xf32>
    %2006 = arith.addf %2003, %2005 : vector<8x1xf32>
    %2007 = vector.extract_strided_slice %1999 {offsets = [0, 2], sizes = [8, 1], strides = [1, 1]} : vector<8x3xf32> to vector<8x1xf32>
    %2008 = math.tanh %2006 : vector<8x1xf32>
    %2009 = arith.mulf %2007, %2008 : vector<8x1xf32>
    %2010 = tpu.concatenate %1694, %1715, %1736, %1757, %1778, %1799, %1820, %1841, %1862, %1883, %1904, %1925, %1946, %1967, %1988, %2009 in 1 : vector<8x1xf32>, vector<8x1xf32>, vector<8x1xf32>, vector<8x1xf32>, vector<8x1xf32>, vector<8x1xf32>, vector<8x1xf32>, vector<8x1xf32>, vector<8x1xf32>, vector<8x1xf32>, vector<8x1xf32>, vector<8x1xf32>, vector<8x1xf32>, vector<8x1xf32>, vector<8x1xf32>, vector<8x1xf32> -> vector<8x16xf32>
    %2011 = vector.extract_strided_slice %48 {offsets = [0, 0], sizes = [8, 48], strides = [1, 1]} : vector<8x64xf32> to vector<8x48xf32>
    %2012 = vector.extract_strided_slice %48 {offsets = [0, 48], sizes = [8, 16], strides = [1, 1]} : vector<8x64xf32> to vector<8x16xf32>
    %2013 = arith.addf %2012, %2010 : vector<8x16xf32>
    %2014 = tpu.concatenate %2011, %2013 in 1 : vector<8x48xf32>, vector<8x16xf32> -> vector<8x64xf32>
    %c0_381 = arith.constant 0 : index
    %c0_382 = arith.constant 0 : index
    %2015 = vector.load %arg8[%c0_381, %c0_382] : memref<8x64xf32, #tpu.memory_space<vmem>>, vector<8x64xf32>
    tpu.vector_store %arg8[%c0_381, %c0_382], %2014 {strides = array<i32>} : memref<8x64xf32, #tpu.memory_space<vmem>>, vector<8x64xf32>,
    return
  }
  func.func @transform_0(%arg0: i32) -> (i32, i32) {
    %c0_i32 = arith.constant 0 : i32
    %c0_i32_0 = arith.constant 0 : i32
    return %arg0, %c0_i32 : i32, i32
  }
  func.func @transform_1(%arg0: i32) -> (i32, i32, i32) {
    %c0_i32 = arith.constant 0 : i32
    %c0_i32_0 = arith.constant 0 : i32
    %c0_i32_1 = arith.constant 0 : i32
    return %c0_i32, %arg0, %c0_i32_0 : i32, i32, i32
  }
  func.func @transform_2(%arg0: i32) -> (i32, i32) {
    %c0_i32 = arith.constant 0 : i32
    %c0_i32_0 = arith.constant 0 : i32
    %c0_i32_1 = arith.constant 0 : i32
    return %c0_i32, %c0_i32_0 : i32, i32
  }
  func.func @transform_3(%arg0: i32) -> (i32, i32) {
    %c0_i32 = arith.constant 0 : i32
    %c0_i32_0 = arith.constant 0 : i32
    %c0_i32_1 = arith.constant 0 : i32
    return %c0_i32, %c0_i32_0 : i32, i32
  }
  func.func @transform_4(%arg0: i32) -> (i32, i32) {
    %c0_i32 = arith.constant 0 : i32
    %c0_i32_0 = arith.constant 0 : i32
    %c0_i32_1 = arith.constant 0 : i32
    return %c0_i32, %c0_i32_0 : i32, i32
  }
  func.func @transform_5(%arg0: i32) -> (i32, i32) {
    %c0_i32 = arith.constant 0 : i32
    %c0_i32_0 = arith.constant 0 : i32
    %c0_i32_1 = arith.constant 0 : i32
    return %c0_i32, %c0_i32_0 : i32, i32
  }
  func.func @transform_6(%arg0: i32) -> (i32, i32) {
    %c0_i32 = arith.constant 0 : i32
    %c0_i32_0 = arith.constant 0 : i32
    return %arg0, %c0_i32 : i32, i32
  }
  func.func @transform_7(%arg0: i32) -> (i32, i32) {
    %c0_i32 = arith.constant 0 : i32
    %c0_i32_0 = arith.constant 0 : i32
    return %arg0, %c0_i32 : i32, i32
  }
}

</mosaic_0001>

<bundles_post_ra>
// kernel: tpu_custom_call.1
= control target key start
LH: loop header
LB: loop body
LE: loop exit
PB: predicated region body
PF: predicated region fallthrough
CT: control target
= control target key end

     0   :  { %13 = vsyncpa [#allocation5], 0  ;;  %s15716_s0 = inlined_call_operand.vmem [shape: f32[16,64], index: 0, kind: input, shape index: {}]   ;;  %s15717_s1 = inlined_call_operand.vmem [shape: f32[16,16,1], index: 1, kind: input, shape index: {}]   ;;  %s15718_s2 = inlined_call_operand.vmem [shape: bf16[64,128], index: 2, kind: input, shape index: {}]   ;;  %s15719_s3 = inlined_call_operand.vmem [shape: bf16[128,64], index: 3, kind: input, shape index: {}]   ;;  %s15720_s4 = inlined_call_operand.vmem [shape: f32[576,128], index: 4, kind: input, shape index: {}]   ;;  %s15721_s5 = inlined_call_operand.vmem [shape: f32[208,64], index: 5, kind: input, shape index: {}]   ;;  %s15722_s6 = inlined_call_operand.vmem [shape: f32[16,8], index: 6, kind: output, shape index: {0}]   ;;  %s15723_s7 = inlined_call_operand.hbm [shape: f32[16,64], index: 7, kind: output, shape index: {1}]  }
   0x1   :  { %15 = vsyncpa [#allocation5 + $0x1], 0  ;;  %s13815_s24 = smov 0   ;;  %s13817_s25 = smov 0  }
   0x2   :  { %s13819_s26 = smov 0   ;;  %s13821_s27 = smov 0  }
   0x3 LB: > { %s13836_s28 = sadd.s32 4294967295, %s13745_s27   ;;  %s11031_s29 = sadd.s32 4294967294, %s13745_s27   ;;  %s13745_s27 = sphi %s13821_s27, %s15729_s27   ;;  %s13741_s26 = sphi %s13819_s26, %s15728_s26   ;;  %s13737_s25 = sphi %s13817_s25, %s15727_s25   ;;  %s13733_s24 = sphi %s13815_s24, %s15726_s24  }
   0x4   : > { %s13840_s30 = sadd.s32 1, %s13745_s27   ;;  %s54_s8 = sadd.s32 1, %s13741_s26 }
   0x5   : > { %s51_s9 = ssub.s32 %s13745_s27, %s13840_s30  ;;  %p61_p0 = scmp.ne.s32.totalorder %s13741_s26, %s13737_s25 }
   0x6   : > { %p52_p1 = scmp.eq.s32.totalorder %s51_s9, 0  ;;  %p62_p2 = scmp.eq.s32.totalorder %s13745_s27, 0 }
   0x7   : > { %p201_p3 = scmp.eq.s32.totalorder %s13836_s28, 1  ;;  %p206_p4 = scmp.ne.s32.totalorder %s13737_s25, %s13733_s24 }
   0x8   : > { %s13852_s10 = scalar_select %p52_p1, %s13741_s26, %s54_s8  }
   0x9   : > { %p63_p5 = por %p62_p2, %p61_p0  ;;  %p13854_p6 = por %p201_p3, %p61_p0 }
   0xa   : > { %p207_p7 = scmp.eq.s32.totalorder %s11031_s29, 1  ;;  %p11033_p9 = scmp.ge.s32.totalorder %s13745_s27, 2 }
   0xc   : > { %p13858_p8 = por %p207_p7, %p206_p4  ;;  %235 = sbr.rel (%p11033_p9) target bundleno = 31 (0x1f), region = 32 }
  0x13   : > { %245 = sbr.rel (!%p63_p5) target bundleno = 31 (0x1f), region = 40  ;;  %s247_s13 = sand.u32 (%p63_p5), 1, %s13741_s26  }
  0x14   : > { %s11035_s14 = sshll.u32 (%p63_p5), %s13745_s27, 3  ;;  %s11034_s15 = sshll.u32 (%p63_p5), %s247_s13, 7 }
  0x15   : > { %s13870_s18 = scalar_lea.vmem (%p63_p5), %s15717_s1, %s11035_s14  ;;  %s249_s19 = scalar_lea.vmem (%p63_p5), [#allocation3], %s11034_s15 }
  0x16   : > { %v309_v0 = vld [vmem:[%s13870_s18] sm:$0xff] (%p63_p5)  ;;  %v311_v1 = vld [vmem:[%s13870_s18 + $0x10] sm:$0xff] (%p63_p5) }
  0x17   : > { %v313_v2 = vld [vmem:[%s13870_s18 + $0x20] sm:$0xff] (%p63_p5)  ;;  %310 = vst [vmem:[%s249_s19] sm:$0xff] (%p63_p5), %v309_v0  ;;  %312 = vst [vmem:[%s249_s19 + $0x8] sm:$0xff] (%p63_p5), %v311_v1  ;;  %v315_v3 = vld [vmem:[%s13870_s18 + $0x30] sm:$0xff] (%p63_p5) }
  0x18   : > { %314 = vst [vmem:[%s249_s19 + $0x10] sm:$0xff] (%p63_p5), %v313_v2  ;;  %v317_v4 = vld [vmem:[%s13870_s18 + $0x40] sm:$0xff] (%p63_p5)  ;;  %v319_v5 = vld [vmem:[%s13870_s18 + $0x50] sm:$0xff] (%p63_p5)  ;;  %316 = vst [vmem:[%s249_s19 + $0x18] sm:$0xff] (%p63_p5), %v315_v3 }
  0x19   : > { %318 = vst [vmem:[%s249_s19 + $0x20] sm:$0xff] (%p63_p5), %v317_v4  ;;  %320 = vst [vmem:[%s249_s19 + $0x28] sm:$0xff] (%p63_p5), %v319_v5  ;;  %v321_v6 = vld [vmem:[%s13870_s18 + $0x60] sm:$0xff] (%p63_p5)  ;;  %v323_v7 = vld [vmem:[%s13870_s18 + $0x70] sm:$0xff] (%p63_p5) }
  0x1a   : > { %v325_v8 = vld [vmem:[%s13870_s18 + $0x80] sm:$0xff]  ;;  %322 = vst [vmem:[%s249_s19 + $0x30] sm:$0xff] %v321_v6  ;;  %324 = vst [vmem:[%s249_s19 + $0x38] sm:$0xff] %v323_v7  ;;  %v327_v9 = vld [vmem:[%s13870_s18 + $0x90] sm:$0xff] }
  0x1b   : > { %326 = vst [vmem:[%s249_s19 + $0x40] sm:$0xff] %v325_v8  ;;  %v329_v10 = vld [vmem:[%s13870_s18 + $0xa0] sm:$0xff]  ;;  %v331_v11 = vld [vmem:[%s13870_s18 + $0xb0] sm:$0xff]  ;;  %328 = vst [vmem:[%s249_s19 + $0x48] sm:$0xff] %v327_v9 }
  0x1c   : > { %330 = vst [vmem:[%s249_s19 + $0x50] sm:$0xff] %v329_v10  ;;  %332 = vst [vmem:[%s249_s19 + $0x58] sm:$0xff] %v331_v11  ;;  %v333_v12 = vld [vmem:[%s13870_s18 + $0xc0] sm:$0xff]  ;;  %v335_v13 = vld [vmem:[%s13870_s18 + $0xd0] sm:$0xff] }
  0x1d   : > { %v337_v14 = vld [vmem:[%s13870_s18 + $0xe0] sm:$0xff]  ;;  %334 = vst [vmem:[%s249_s19 + $0x60] sm:$0xff] %v333_v12  ;;  %336 = vst [vmem:[%s249_s19 + $0x68] sm:$0xff] %v335_v13  ;;  %v339_v15 = vld [vmem:[%s13870_s18 + $0xf0] sm:$0xff] }
  0x1e   : > { %338 = vst [vmem:[%s249_s19 + $0x70] sm:$0xff] %v337_v14  ;;  %340 = vst [vmem:[%s249_s19 + $0x78] sm:$0xff] %v339_v15 }
  0x1f PF: > { %p11036_p10 = scmp.ge.s32.totalorder %s13745_s27, 1  ;;  %p345_p11 = scmp.lt.s32.totalorder %s13745_s27, 3 }
  0x21   : > { %p346_p12 = pnand %p11036_p10, %p345_p11 }
  0x22   : > { %v12899_v16 = vld [vmem:[%s15718_s2] sm:$0xff] (!%p346_p12)   ;;  %v13747_v17 = vmov (!%p346_p12), 0.0   ;;  %v12900_v18 = vld [vmem:[%s15718_s2 + $0x8] sm:$0xff] (!%p346_p12)   ;;  %vm13748_vm0 = vmmov (!%p346_p12), 0   ;;  %p391_p13 = scmp.lt.s32.totalorder (!%p346_p12), %s13836_s28, 1  ;;  %v480_v21 = vld [vmem:[%s15720_s4 + $0x10] sm:$0xff] (!%p346_p12) }
  0x23   : > { %349 = sbr.rel (%p346_p12) target bundleno = 62428 (0xf3dc), region = 78  ;;  %11695 = vmatprep.subr.bf16.mxu0 (!%p346_p12), %v13747_v17  ;;  %11703 = vmatprep.mubr.msk.bf16.mxu0 (!%p346_p12), %vm13748_vm0, %v13747_v17  ;;  %v478_v19 = vld [vmem:[%s15720_s4] sm:$0xff] (!%p346_p12)  ;;  %v479_v20 = vld [vmem:[%s15720_s4 + $0x8] sm:$0xff] (!%p346_p12)  ;;  %v13749_v22 = vmov (!%p346_p12), 0.0|0.0   ;;  %v481_v24 = vld [vmem:[%s15720_s4 + $0x18] sm:$0xff] (!%p346_p12)  ;;  %vm434_vm1 = vcmask (!%p346_p12), 523264  }
  0x24   : > { %11696 = vmatpush3.bf16.msra.mxu0 (!%p346_p12), %v12899_v16  ;;  %11739 = vmatprep.mubr.msk.f32.mxu1 (!%p346_p12), %vm13748_vm0, %v13747_v17  ;;  %v12523_v23 = vpack.c.bf16 (!%p346_p12), %v479_v20, %v478_v19  ;;  %v12901_v25 = vld [vmem:[%s15718_s2 + $0x10] sm:$0xff] (!%p346_p12)   ;;  %v12526_v26 = vpack.c.bf16 (!%p346_p12), %v481_v24, %v480_v21  ;;  %v482_v27 = vld [vmem:[%s15720_s4 + $0x20] sm:$0xff] (!%p346_p12)  ;;  %v483_v28 = vld [vmem:[%s15720_s4 + $0x28] sm:$0xff] (!%p346_p12)  ;;  %vm756_vm2 = vcmask (!%p346_p12), 130048   ;;  %s14182_s14 = sand.u32 (!%p346_p12), 1, %s13737_s25   ;;  %s13751_s13 = smov (!%p346_p12), 80  }
  0x25   : > { %11697 = vmatprep.subr.bf16.mxu0 (!%p346_p12), %v13747_v17  ;;  %12522 = vmatprep.subr.bf16.mxu1 (!%p346_p12), %v13749_v22  ;;  %v12902_v29 = vld [vmem:[%s15718_s2 + $0x18] sm:$0xff] (!%p346_p12)   ;;  %v484_v31 = vld [vmem:[%s15720_s4 + $0x30] sm:$0xff] (!%p346_p12)  ;;  %v12529_v33 = vpack.c.bf16 (!%p346_p12), %v483_v28, %v482_v27  ;;  %v486_v36 = vld [vmem:[%s15720_s4 + $0x40] sm:$0xff] (!%p346_p12)  ;;  %s11037_s17 = sshll.u32 (!%p346_p12), %s14182_s14, 7  ;;  %s13752_s15 = smov (!%p346_p12), 16   ;;  %vm4953_vm3 = vcmask (!%p346_p12), 64512  }
  0x26   : > { %12524 = vmatpush3.bf16.msra.mxu1 (!%p346_p12), %v12523_v23  ;;  %v485_v32 = vld [vmem:[%s15720_s4 + $0x38] sm:$0xff] (!%p346_p12)  ;;  %v487_v37 = vld [vmem:[%s15720_s4 + $0x48] sm:$0xff] (!%p346_p12)  ;;  %v488_v39 = vld [vmem:[%s15720_s4 + $0x50] sm:$0xff] (!%p346_p12)  ;;  %s14191_s20 = scalar_lea.vmem (!%p346_p12), [#allocation3], %s11037_s17  ;;  %s13753_s16 = smov (!%p346_p12), 96   ;;  %vm10872_vm4 = vcmask (!%p346_p12), 7168  }
  0x27   : > { %12525 = vmatprep.subr.bf16.mxu1 (!%p346_p12), %v13749_v22  ;;  %v12532_v35 = vpack.c.bf16 (!%p346_p12), %v485_v32, %v484_v31  ;;  %v12535_v38 = vpack.c.bf16 (!%p346_p12), %v487_v37, %v486_v36  ;;  %v489_v40 = vld [vmem:[%s15720_s4 + $0x58] sm:$0xff] (!%p346_p12)  ;;  %v490_v42 = vld [vmem:[%s15720_s4 + $0x60] sm:$0xff] (!%p346_p12)  ;;  %v491_v43 = vld [vmem:[%s15720_s4 + $0x68] sm:$0xff] (!%p346_p12)  ;;  %s13754_s18 = smov (!%p346_p12), 104   ;;  %s13755_s19 = smov (!%p346_p12), 8   ;;  %vm10874_vm5 = vcmask (!%p346_p12), 15360  }
  0x28   : > { %11698 = vmatpush3.bf16.msra.mxu0 (!%p346_p12), %v12900_v18  ;;  %v12538_v41 = vpack.c.bf16 (!%p346_p12), %v489_v40, %v488_v39  ;;  %v12541_v44 = vpack.c.bf16 (!%p346_p12), %v491_v43, %v490_v42  ;;  %v492_v45 = vld [vmem:[%s15720_s4 + $0x70] sm:$0xff] (!%p346_p12)  ;;  %v493_v46 = vld [vmem:[%s15720_s4 + $0x78] sm:$0xff] (!%p346_p12)  ;;  %v570_v48 = vld [vmem:[%s15720_s4 + $0x88] sm:$0xff] (!%p346_p12)  ;;  %s13756_s22 = smov (!%p346_p12), 112   ;;  %s13763_s23 = smov (!%p346_p12), 7   ;;  %vm10876_vm6 = vcmask (!%p346_p12), 23552  }
  0x29   : > { %11699 = vmatprep.subr.bf16.mxu0 (!%p346_p12), %v13747_v17  ;;  %v12544_v47 = vpack.c.bf16 (!%p346_p12), %v493_v46, %v492_v45  ;;  %v571_v49 = vld [vmem:[%s15720_s4 + $0x90] sm:$0xff] (!%p346_p12)  ;;  %v572_v50 = vld [vmem:[%s15720_s4 + $0x98] sm:$0xff] (!%p346_p12)  ;;  %v573_v52 = vld [vmem:[%s15720_s4 + $0xa0] sm:$0xff] (!%p346_p12)  ;;  %s13769_s17 = smov (!%p346_p12), 6   ;;  %vm10878_vm7 = vcmask (!%p346_p12), 31744   ;;  %vm10880_vm8 = vcmask (!%p346_p12), 39936  }
  0x2a   : > { %s13904_s29 = scalar_select %p391_p13, %s13836_s28, 1  ;;  %12527 = vmatpush3.bf16.msra.mxu1 %v12526_v26  ;;  %v12547_v51 = vpack.c.bf16 %v571_v49, %v570_v48  ;;  %v12550_v53 = vpack.c.bf16 %v573_v52, %v572_v50  ;;  %v574_v54 = vld [vmem:[%s15720_s4 + $0xa8] sm:$0xff]  ;;  %v575_v55 = vld [vmem:[%s15720_s4 + $0xb0] sm:$0xff]  ;;  %v576_v57 = vld [vmem:[%s15720_s4 + $0xb8] sm:$0xff]  ;;  %vm10882_vm9 = vcmask 48128   ;;  %vm10884_vm10 = vcmask 56320  }
  0x2b   : > { %12528 = vmatprep.subr.bf16.mxu1 %v13749_v22  ;;  %v12553_v56 = vpack.c.bf16 %v575_v55, %v574_v54  ;;  %v577_v58 = vld [vmem:[%s15720_s4 + $0xc0] sm:$0xff]  ;;  %v578_v60 = vld [vmem:[%s15720_s4 + $0xc8] sm:$0xff]  ;;  %v579_v61 = vld [vmem:[%s15720_s4 + $0xd0] sm:$0xff]  ;;  %vm10887_vm11 = vcmask 72704   ;;  %vm10889_vm12 = vcmask 80896   ;;  %vm10891_vm13 = vcmask 89088  }
  0x2c   : > { %s11039_s21 = sshll.u32 %s13904_s29, 3  ;;  %11700 = vmatpush3.bf16.msra.mxu0 %v12901_v25  ;;  %v12556_v59 = vpack.c.bf16 %v577_v58, %v576_v57  ;;  %v12559_v62 = vpack.c.bf16 %v579_v61, %v578_v60  ;;  %v580_v63 = vld [vmem:[%s15720_s4 + $0xd8] sm:$0xff]  ;;  %v581_v0 = vld [vmem:[%s15720_s4 + $0xe0] sm:$0xff]  ;;  %v582_v2 = vld [vmem:[%s15720_s4 + $0xe8] sm:$0xff]  ;;  %s13767_s29 = smov 2   ;;  %vm10893_vm14 = vcmask 97280  }
  0x2d   : > { %s394_s8 = scalar_lea.vmem %s15716_s0, %s11039_s21  ;;  %11701 = vmatprep.subr.bf16.mxu0 %v13747_v17  ;;  %v12562_v1 = vpack.c.bf16 %v581_v0, %v580_v63  ;;  %v583_v3 = vld [vmem:[%s15720_s4 + $0xf0] sm:$0xff]  ;;  %v584_v9 = vld [vmem:[%s15720_s4 + $0xf8] sm:$0xff]  ;;  %v585_v10 = vld [vmem:[%s15720_s4 + $0x100] sm:$0xff]  ;;  %s398_s9 = scalar_lea.vmem %s15722_s6, %s11039_s21  ;;  %vm10895_vm15 = vcmask 105472  }
  0x2e   : > { %v400_v30 = vld [vmem:[%s394_s8] sm:$0xff]  ;;  %12530 = vmatpush3.bf16.msra.mxu1 %v12529_v33  ;;  %v12565_v4 = vpack.c.bf16 %v583_v3, %v582_v2  ;;  %v12568_v11 = vpack.c.bf16 %v585_v10, %v584_v9  ;;  %v662_v13 = vld [vmem:[%s15720_s4 + $0x110] sm:$0xff]  ;;  %v663_v14 = vld [vmem:[%s15720_s4 + $0x118] sm:$0xff]  ;;  %s13757_s21 = smov 125   ;;  %s13764_s8 = smov 9  }
  0x2f   : > { %v401_v34 = vpack.c.bf16 %v400_v30, %v400_v30  ;;  %12531 = vmatprep.subr.bf16.mxu1 %v13749_v22  ;;  %v11046_v12 = vld [vmem:[%s15720_s4 + $0x80] ss:$0 sm:$0xff]  ;;  %v12571_v19 = vpack.c.bf16 %v663_v14, %v662_v13  ;;  %v665_v23 = vld [vmem:[%s15720_s4 + $0x128] sm:$0xff]  ;;  %v666_v25 = vld [vmem:[%s15720_s4 + $0x130] sm:$0xff] }
  0x30   : > { %11702 = vmatpush3.bf16.msra.mxu0 %v12902_v29  ;;  %v664_v21 = vld [vmem:[%s15720_s4 + $0x120] sm:$0xff]  ;;  %v667_v26 = vld [vmem:[%s15720_s4 + $0x138] sm:$0xff]  ;;  %v669_v29 = vld [vmem:[%s15720_s4 + $0x148] sm:$0xff] }
  0x31   : > { %12546 = vmatprep.subr.bf16.mxu0 %v13749_v22  ;;  %v12574_v24 = vpack.c.bf16 %v665_v23, %v664_v21  ;;  %v12577_v27 = vpack.c.bf16 %v667_v26, %v666_v25  ;;  %v668_v28 = vld [vmem:[%s15720_s4 + $0x140] sm:$0xff]  ;;  %v11047_v31 = vld [vmem:[%s15720_s4 + $0x108] ss:$0 sm:$0xff]  ;;  %v749_v36 = vld [vmem:[%s15720_s4 + $0x158] sm:$0xff] }
  0x32   : > { %12533 = vmatpush3.bf16.msra.mxu1 %v12532_v35  ;;  %v12580_v30 = vpack.c.bf16 %v669_v29, %v668_v28  ;;  %v750_v37 = vld [vmem:[%s15720_s4 + $0x160] sm:$0xff]  ;;  %v831_v39 = vld [vmem:[%s15720_s4 + $0x170] sm:$0xff]  ;;  %v832_v40 = vld [vmem:[%s15720_s4 + $0x178] sm:$0xff] }
  0x33   : > { %11704 = vmatmul.mubr.msk.bf16.vlgmr.msra.gmra.mrb[0].mxu0 %vm434_vm1, %v401_v34  ;;  %12534 = vmatprep.subr.bf16.mxu1 %v13749_v22  ;;  %v12586_v42 = vpack.c.bf16 %v832_v40, %v831_v39  ;;  %v834_v43 = vld [vmem:[%s15720_s4 + $0x188] sm:$0xff]  ;;  %v835_v45 = vld [vmem:[%s15720_s4 + $0x190] sm:$0xff]  ;;  %v836_v46 = vld [vmem:[%s15720_s4 + $0x198] sm:$0xff] }
  0x34   : > { %11774 = vmatprep.mubr.msk.f32.mxu0 %vm13748_vm0, %v13747_v17  ;;  %12548 = vmatpush3.bf16.msra.mxu0 %v12547_v51  ;;  %v11048_v48 = vld [vmem:[%s15720_s4 + $0x150] ss:$0 sm:$0xff]  ;;  %v838_v54 = vld [vmem:[%s15720_s4 + $0x1a8] sm:$0xff]  ;;  %v919_v57 = vld [vmem:[%s15720_s4 + $0x1c0] sm:$0xff] }
  0x35   : > { %12549 = vmatprep.subr.bf16.mxu0 %v13749_v22  ;;  %v920_v58 = vld [vmem:[%s15720_s4 + $0x1c8] sm:$0xff]  ;;  %v921_v60 = vld [vmem:[%s15720_s4 + $0x1d0] sm:$0xff]  ;;  %v923_v63 = vld [vmem:[%s15720_s4 + $0x1e0] sm:$0xff] }
  0x36   : > { %12536 = vmatpush3.bf16.msra.mxu1 %v12535_v38  ;;  %v12583_v38 = vpack.c.bf16 %v750_v37, %v749_v36  ;;  %v12601_v61 = vpack.c.bf16 %v921_v60, %v920_v58  ;;  %v925_v2 = vld [vmem:[%s15720_s4 + $0x1f0] sm:$0xff]  ;;  %v930_v10 = vld [vmem:[%s15720_s4 + $0x218] sm:$0xff]  ;;  %v11050_v13 = vld [vmem:[%s15720_s4 + $0x168] ss:$0 sm:$0xff] }
  0x37   : > { %12537 = vmatprep.subr.bf16.mxu1 %v13749_v22  ;;  %v12903_v23 = vld [vmem:[%s15719_s3] sm:$0xff]   ;;  %v12904_v25 = vld [vmem:[%s15719_s3 + $0x8] sm:$0xff]   ;;  %v12906_v28 = vld [vmem:[%s15719_s3 + $0x18] sm:$0xff]  }
  0x38   : > { %12551 = vmatpush3.bf16.msra.mxu0 %v12550_v53  ;;  %v837_v53 = vld [vmem:[%s15720_s4 + $0x1a0] sm:$0xff]  ;;  %v12910_v40 = vld [vmem:[%s15719_s3 + $0x38] sm:$0xff]  }
  0x39   : > { %12552 = vmatprep.subr.bf16.mxu0 %v13749_v22  ;;  %v12595_v55 = vpack.c.bf16 %v838_v54, %v837_v53  ;;  %v1115_v26 = vld [vmem:[%s14191_s20] sm:$0xff] }
  0x3a   : > { %12539 = vmatpush3.bf16.msra.mxu1 %v12538_v41  ;;  %v833_v41 = vld [vmem:[%s15720_s4 + $0x180] sm:$0xff] }
  0x3b   : > { %12540 = vmatprep.subr.bf16.mxu1 %v13749_v22  ;;  %v12907_v29 = vld [vmem:[%s15719_s3 + $0x20] sm:$0xff]  }
  0x3c   : > { %12554 = vmatpush3.bf16.msra.mxu0 %v12553_v56  ;;  %v918_v56 = vld [vmem:[%s15720_s4 + $0x1b8] sm:$0xff] }
  0x3d   : > { %12555 = vmatprep.subr.bf16.mxu0 %v13749_v22 }
  0x3e   : > { %12542 = vmatpush3.bf16.msra.mxu1 %v12541_v44  ;;  %v12589_v44 = vpack.c.bf16 %v834_v43, %v833_v41  ;;  %v14243_v41 = vld [vmem:[%s15721_s5] ss:$0 sm:$0xff] }
  0x3f   : > { %12543 = vmatprep.subr.bf16.mxu1 %v13749_v22 }
  0x40   : > { %12557 = vmatpush3.bf16.msra.mxu0 %v12556_v59  ;;  %v12598_v59 = vpack.c.bf16 %v919_v57, %v918_v56 }
  0x41   : > { %12558 = vmatprep.subr.bf16.mxu0 %v13749_v22 }
  0x42   : > { %12545 = vmatpush3.bf16.msra.mxu1 %v12544_v47  ;;  %v12592_v47 = vpack.c.bf16 %v836_v46, %v835_v45  ;;  %v14252_v45 = vld [vmem:[%s15721_s5 + $0x18] ss:$0 sm:$0xff] }
  0x43   : > { %12585 = vmatprep.subr.bf16.mxu1 %v13749_v22 }
  0x44   : > { %12560 = vmatpush3.bf16.msra.mxu0 %v12559_v62  ;;  %v922_v62 = vld [vmem:[%s15720_s4 + $0x1d8] sm:$0xff] }
  0x45   : > { %12561 = vmatprep.subr.bf16.mxu0 %v13749_v22  ;;  %v12604_v0 = vpack.c.bf16 %v923_v63, %v922_v62 }
  0x48   : > { %12563 = vmatpush3.bf16.msra.mxu0 %v12562_v1  ;;  %v924_v1 = vld [vmem:[%s15720_s4 + $0x1e8] sm:$0xff] }
  0x49   : > { %12564 = vmatprep.subr.bf16.mxu0 %v13749_v22  ;;  %v12607_v3 = vpack.c.bf16 %v925_v2, %v924_v1 }
  0x4c   : > { %12566 = vmatpush3.bf16.msra.mxu0 %v12565_v4  ;;  %v926_v4 = vld [vmem:[%s15720_s4 + $0x1f8] sm:$0xff] }
  0x4d   : > { %12567 = vmatprep.subr.bf16.mxu0 %v13749_v22 }
  0x50   : > { %12569 = vmatpush3.bf16.msra.mxu0 %v12568_v11  ;;  %v931_v11 = vld [vmem:[%s15720_s4 + $0x220] sm:$0xff] }
  0x51   : > { %12570 = vmatprep.subr.bf16.mxu0 %v13749_v22 }
 0x106   : > { %v472_v5 = vpop.f32.mrb[0].mxu0 }
 0x107   : > { %v11705_v6 = vpop.f32.mrb[1].mxu0  ;;  %11740 = vmatmul.mubr.f32.vlgmr.msra.gmra.mrb[0].mxu1 %v472_v5  ;;  %v927_v5 = vld [vmem:[%s15720_s4 + $0x200] sm:$0xff] }
 0x108   : > { %v475_v7 = vpop.f32.mrb[2].mxu0  ;;  %11819 = vmatprep.mubr.msk.f32.mxu1 %vm13748_vm0, %v13747_v17  ;;  %12587 = vmatpush3.bf16.msra.mxu1 %v12586_v42  ;;  %v12610_v6 = vpack.c.bf16 %v927_v5, %v926_v4  ;;  %v1116_v5 = vld [vmem:[%s14191_s20 + $0x8] sm:$0xff] }
 0x109   : > { %v11706_v8 = vpop.f32.mrb[3].mxu0  ;;  %12588 = vmatprep.subr.bf16.mxu1 %v13749_v22  ;;  %v928_v7 = vld [vmem:[%s15720_s4 + $0x208] sm:$0xff] }
 0x10a   : > { %v929_v8 = vld [vmem:[%s15720_s4 + $0x210] sm:$0xff] }
 0x10b   : > { %v12613_v9 = vpack.c.bf16 %v929_v8, %v928_v7 }
 0x10c   : > { %12590 = vmatpush3.bf16.msra.mxu1 %v12589_v44  ;;  %v11054_v44 = vld [vmem:[%s15720_s4 + $0x238] ss:$0 sm:$0xff] }
 0x10d   : > { %12591 = vmatprep.subr.bf16.mxu1 %v13749_v22 }
 0x110   : > { %12593 = vmatpush3.bf16.msra.mxu1 %v12592_v47 }
 0x111   : > { %12594 = vmatprep.subr.bf16.mxu1 %v13749_v22 }
 0x114   : > { %12596 = vmatpush3.bf16.msra.mxu1 %v12595_v55 }
 0x115   : > { %11857 = vmatprep.subr.bf16.mxu1 %v13747_v17 }
 0x1da   : > { %v565_v15 = vpop.f32.mrb[0].mxu1 }
 0x1db   : > { %v566_v16 = vadd.f32 %v11046_v12, %v565_v15  ;;  %v11741_v18 = vpop.f32.mrb[1].mxu1  ;;  %v12616_v12 = vpack.c.bf16 %v931_v11, %v930_v10 }
 0x1dd   : > { %v569_v20 = vmax.f32 %v566_v16, 0.0 }
 0x1df   : > { %11775 = vmatmul.mubr.f32.vlgmr.msra.gmra.mrb[4].mxu0 %v569_v20  ;;  %v933_v20 = vld [vmem:[%s15720_s4 + $0x230] sm:$0xff] }
 0x1e0   : > { %12572 = vmatpush3.bf16.msra.mxu0 %v12571_v19  ;;  %11793 = vmatprep.mubr.msk.f32.mxu0 %vm13748_vm0, %v13747_v17  ;;  %v932_v19 = vld [vmem:[%s15720_s4 + $0x228] sm:$0xff] }
 0x1e1   : > { %12573 = vmatprep.subr.bf16.mxu0 %v13749_v22  ;;  %v12619_v21 = vpack.c.bf16 %v933_v20, %v932_v19 }
 0x1e4   : > { %12575 = vmatpush3.bf16.msra.mxu0 %v12574_v24  ;;  %v13750_v24 = vmov 0  }
 0x1e5   : > { %12576 = vmatprep.subr.bf16.mxu0 %v13749_v22  ;;  %12895 = vset.pattern.permute.xlu0 %v13750_v24 }
 0x1e6   : > { %12896 = vset.pattern.permute.xlu1 %v13750_v24  ;;  %1135 = vperm.xlu0 %12895, %v1115_v26  }
 0x1e8   : > { %12578 = vmatpush3.bf16.msra.mxu0 %v12577_v27  ;;  %v12905_v27 = vld [vmem:[%s15719_s3 + $0x10] sm:$0xff]  }
 0x1e9   : > { %12579 = vmatprep.subr.bf16.mxu0 %v13749_v22 }
 0x1ec   : > { %12581 = vmatpush3.bf16.msra.mxu0 %v12580_v30  ;;  %v12908_v30 = vld [vmem:[%s15719_s3 + $0x28] sm:$0xff]  }
 0x1ed   : > { %12582 = vmatprep.subr.bf16.mxu0 %v13749_v22 }
 0x265   : > { %v1136_v42 = vpop.permute.xlu0 %1135 }
 0x266   : > { %v1217_v43 = vmul.f32 %v14243_v41, %v1136_v42 }
 0x2b2   : > { %v657_v32 = vpop.f32.mrb[4].mxu0 }
 0x2b3   : > { %v658_v33 = vadd.f32 %v11047_v31, %v657_v32  ;;  %v11776_v34 = vpop.f32.mrb[5].mxu0  ;;  %v12909_v31 = vld [vmem:[%s15719_s3 + $0x30] sm:$0xff]  }
 0x2b4   : > { %v11052_v32 = vld [vmem:[%s15720_s4 + $0x1b0] ss:$0 sm:$0xff] }
 0x2b5   : > { %v661_v35 = vmax.f32 %v658_v33, 0.0  ;;  %v1253_v33 = vld [vmem:[%s15721_s5 + $0x8] sm:$0xff]  ;;  %v1254_v34 = vld [vmem:[%s15721_s5 + $0x10] sm:$0xff] }
 0x2b7   : > { %11794 = vmatmul.mubr.msk.f32.vlgmr.msra.gmra.mrb[6].mxu0 %vm434_vm1, %v661_v35 }
 0x2b8   : > { %11800 = vmatprep.mubr.msk.f32.mxu0 %vm13748_vm0, %v13747_v17  ;;  %12584 = vmatpush3.bf16.msra.mxu0 %v12583_v38  ;;  %v14225_v38 = vpack.c.bf16 %v1254_v34, %v1253_v33 }
 0x2b9   : > { %12597 = vmatprep.subr.bf16.mxu0 %v13749_v22 }
 0x38a   : > { %v744_v49 = vpop.f32.mrb[6].mxu0 }
 0x38b   : > { %v745_v50 = vadd.f32 %v11048_v48, %v744_v49  ;;  %v11795_v51 = vpop.f32.mrb[7].mxu0  ;;  %v1237_v49 = vadd.f32 %v14252_v45, %v1217_v43 }
 0x38d   : > { %v748_v52 = vmax.f32 %v745_v50, 0.0 }
 0x38f   : > { %11801 = vmatmul.mubr.msk.f32.vlgmr.msra.gmra.mrb[8].mxu0 %vm756_vm2, %v748_v52 }
 0x390   : > { %11854 = vmatprep.mubr.msk.f32.mxu0 %vm13748_vm0, %v13747_v17  ;;  %12599 = vmatpush3.bf16.msra.mxu0 %v12598_v59 }
 0x391   : > { %12600 = vmatprep.subr.bf16.mxu0 %v13749_v22 }
 0x394   : > { %12602 = vmatpush3.bf16.msra.mxu0 %v12601_v61 }
 0x395   : > { %12603 = vmatprep.subr.bf16.mxu0 %v13749_v22 }
 0x398   : > { %12605 = vmatpush3.bf16.msra.mxu0 %v12604_v0 }
 0x399   : > { %12606 = vmatprep.subr.bf16.mxu0 %v13749_v22 }
 0x39c   : > { %12608 = vmatpush3.bf16.msra.mxu0 %v12607_v3 }
 0x39d   : > { %12609 = vmatprep.subr.bf16.mxu0 %v13749_v22 }
 0x3a0   : > { %12611 = vmatpush3.bf16.msra.mxu0 %v12610_v6 }
 0x3a1   : > { %12612 = vmatprep.subr.bf16.mxu0 %v13749_v22 }
 0x3a4   : > { %12614 = vmatpush3.bf16.msra.mxu0 %v12613_v9 }
 0x3a5   : > { %12615 = vmatprep.subr.bf16.mxu0 %v13749_v22 }
 0x3a8   : > { %12617 = vmatpush3.bf16.msra.mxu0 %v12616_v12 }
 0x3a9   : > { %12618 = vmatprep.subr.bf16.mxu0 %v13749_v22 }
 0x3ac   : > { %12620 = vmatpush3.bf16.msra.mxu0 %v12619_v21 }
 0x3ad   : > { %12621 = vmatprep.subr.bf16.mxu0 %v13749_v22 }
 0x462   : > { %v826_v14 = vpop.f32.mrb[8].mxu0 }
 0x463   : > { %v827_v15 = vadd.f32 %v11050_v13, %v826_v14  ;;  %v11802_v16 = vpop.f32.mrb[9].mxu0 }
 0x465   : > { %v830_v18 = vmax.f32 %v827_v15, 0.0 }
 0x467   : > { %11820 = vmatmul.mubr.msk.f32.vlgmr.msra.gmra.mrb[2].mxu1 %vm434_vm1, %v830_v18 }
 0x468   : > { %11873 = vmatprep.mubr.msk.bf16.mxu1 %vm13748_vm0, %v13747_v17  ;;  %11858 = vmatpush3.bf16.msra.mxu1 %v12903_v23 }
 0x469   : > { %11859 = vmatprep.subr.bf16.mxu1 %v13747_v17 }
 0x46c   : > { %11860 = vmatpush3.bf16.msra.mxu1 %v12904_v25 }
 0x46d   : > { %11861 = vmatprep.subr.bf16.mxu1 %v13747_v17 }
 0x470   : > { %11862 = vmatpush3.bf16.msra.mxu1 %v12905_v27 }
 0x471   : > { %11863 = vmatprep.subr.bf16.mxu1 %v13747_v17 }
 0x474   : > { %11864 = vmatpush3.bf16.msra.mxu1 %v12906_v28  ;;  %v1117_v28 = vld [vmem:[%s14191_s20 + $0x10] sm:$0xff] }
 0x475   : > { %11865 = vmatprep.subr.bf16.mxu1 %v13747_v17 }
 0x478   : > { %11866 = vmatpush3.bf16.msra.mxu1 %v12907_v29 }
 0x479   : > { %11867 = vmatprep.subr.bf16.mxu1 %v13747_v17 }
 0x47c   : > { %11868 = vmatpush3.bf16.msra.mxu1 %v12908_v30 }
 0x47d   : > { %11869 = vmatprep.subr.bf16.mxu1 %v13747_v17 }
 0x480   : > { %11870 = vmatpush3.bf16.msra.mxu1 %v12909_v31 }
 0x481   : > { %11871 = vmatprep.subr.bf16.mxu1 %v13747_v17 }
 0x484   : > { %11872 = vmatpush3.bf16.msra.mxu1 %v12910_v40 }
 0x485   : > { %12636 = vmatprep.subr.bf16.mxu1 %v13749_v22 }
 0x53a   : > { %v913_v35 = vpop.f32.mrb[2].mxu1 }
 0x53b   : > { %v914_v36 = vadd.f32 %v11052_v32, %v913_v35  ;;  %v11821_v37 = vpop.f32.mrb[3].mxu1 }
 0x53d   : > { %v917_v39 = vmax.f32 %v914_v36, 0.0 }
 0x53f   : > { %11855 = vmatmul.mubr.f32.vlgmr.msra.gmra.mrb[10].mxu0 %v917_v39 }
 0x540   : > { %12623 = vmatpush3.bf16.msra.mxu0 %v14225_v38  ;;  %11881 = vmatprep.mubr.msk.f32.mxu0 %vm13748_vm0, %v13747_v17 }
 0x541   : > { %12624 = vmatprep.subr.bf16.mxu0 %v13749_v22 }
 0x543   : > { %11882 = vmatmul.mubr.f32.vlgmr.msra.gmra.mrb[12].mxu0 %v13747_v17 }
 0x544   : > { %12626 = vmatpush3.bf16.msra.mxu0 %v14225_v38  ;;  %11888 = vmatprep.mubr.msk.f32.mxu0 %vm13748_vm0, %v13747_v17 }
 0x545   : > { %12627 = vmatprep.subr.bf16.mxu0 %v13749_v22 }
 0x612   : > { %v1005_v46 = vpop.f32.mrb[10].mxu0 }
 0x613   : > { %v1006_v47 = vadd.f32 %v11054_v44, %v1005_v46  ;;  %v11856_v48 = vpop.f32.mrb[11].mxu0 }
 0x615   : > { %v1009_v50 = vpack.c.bf16 %v1006_v47, %v1006_v47 }
 0x616   : > { %v1324_v51 = vpop.f32.mrb[12].mxu0 }
 0x617   : > { %v1328_v52 = vadd.f32 %v1324_v51, %v1237_v49  ;;  %11874 = vmatmul.mubr.bf16.vlgmr.msra.gmra.mrb[4].mxu1 %v1009_v50  ;;  %v11883_v53 = vpop.f32.mrb[13].mxu0 }
 0x618   : > { %12638 = vmatpush3.bf16.msra.mxu1 %v14225_v38  ;;  %11916 = vmatprep.mubr.msk.f32.mxu1 %vm13748_vm0, %v13747_v17 }
 0x619   : > { %12911 = vtanh.f32 %v1328_v52  ;;  %12642 = vmatprep.subr.bf16.mxu1 %v13749_v22  ;;  %v11065_v55 = vmul.f32 -1.442695, %v1328_v52  ;;  %v1118_v52 = vld [vmem:[%s14191_s20 + $0x18] sm:$0xff] }
 0x61b   : > { %12913 = vpow2.f32 %v11065_v55 }
 0x623   : > { %v12912_v54 = vpop.eup %12911 }
 0x624   : > { %1338 = vrot.lane.b32.xlu0 %v12912_v54, %s13751_s13 }
 0x625   : > { %v12914_v56 = vpop.eup %12913 }
 0x626   : > { %v1332_v57 = vadd.f32 1.0, %v12914_v56 }
 0x628   : > { %12915 = vrcp.f32 %v1332_v57 }
 0x632   : > { %v12916_v58 = vpop.eup %12915 }
 0x633   : > { %v1336_v1 = vmul.f32 0.0, %v12916_v58 }
 0x696   : > { %v1339_v59 = vpop.permute.xlu0 %1338 }
 0x697   : > { %v1341_v60 = vmul.f32 %v12916_v58, %v1339_v59 }
 0x699   : > { %1343 = vrot.lane.b32.xlu1 %v1341_v60, %s13752_s15 }
 0x6ea   : > { %v14261_v61 = vpop.f32.mrb[4].mxu1 }
 0x6eb   : > { %v11875_v62 = vpop.f32.mrb[5].mxu1 }
 0x6ec   : > { %v1111_v63 = vpop.f32.mrb[6].mxu1 }
 0x6ed   : > { %v11876_v0 = vpop.f32.mrb[7].mxu1 }
 0x70b   : > { %v1344_v2 = vpop.permute.xlu1 %1343 }
 0x70c   : > { %v1346_v3 = vadd.f32 %v1344_v2, %v1336_v1 }
 0x70e   : > { %12917 = vtanh.f32 %v1346_v3 }
 0x718   : > { %v12918_v4 = vpop.eup %12917 }
 0x719   : > { %1349 = vrot.lane.b32.xlu1 %v12918_v4, %s13752_s15 }
 0x71d   : > { %1140 = vperm.xlu1 %12896, %v1116_v5  }
 0x78b   : > { %v1350_v6 = vpop.permute.xlu1 %1349 }
 0x78c   : > { %v1352_v7 = vmul.f32 %v12916_v58, %v1350_v6 }
 0x78e   : > { %1354 = vrot.lane.b32.xlu0 %v1352_v7, %s13753_s16 }
 0x79c   : > { %v1141_v9 = vpop.permute.xlu1 %1140 }
 0x79d   : > { %v1218_v10 = vmul.f32 %v14243_v41, %v1141_v9 }
 0x79f   : > { %v1238_v11 = vadd.f32 %v14252_v45, %v1218_v10  ;;  %v1119_v10 = vld [vmem:[%s14191_s20 + $0x20] sm:$0xff] }
 0x800   : > { %v1355_v8 = vpop.permute.xlu0 %1354 }
 0x801   : > { %1357 = vst.msk [vmem:[#allocation2] sm:$0xff] %vm756_vm2, %v1355_v8  ;;  %11889 = vmatmul.mubr.msk.f32.vlgmr.msra.gmra.mrb[14].mxu0 %vm756_vm2, %v1355_v8 }
 0x802   : > { %12629 = vmatpush3.bf16.msra.mxu0 %v14225_v38  ;;  %11895 = vmatprep.mubr.msk.f32.mxu0 %vm13748_vm0, %v13747_v17 }
 0x803   : > { %12630 = vmatprep.subr.bf16.mxu0 %v13749_v22 }
 0x8d4   : > { %v1426_v12 = vpop.f32.mrb[14].mxu0 }
 0x8d5   : > { %v1430_v13 = vadd.f32 %v1426_v12, %v1238_v11  ;;  %v11890_v14 = vpop.f32.mrb[15].mxu0 }
 0x8d7   : > { %12919 = vtanh.f32 %v1430_v13  ;;  %v11067_v16 = vmul.f32 -1.442695, %v1430_v13 }
 0x8d9   : > { %12921 = vpow2.f32 %v11067_v16 }
 0x8e1   : > { %v12920_v15 = vpop.eup %12919 }
 0x8e2   : > { %1440 = vrot.lane.b32.xlu0 %v12920_v15, %s13751_s13 }
 0x8e3   : > { %v12922_v18 = vpop.eup %12921 }
 0x8e4   : > { %v1434_v19 = vadd.f32 1.0, %v12922_v18 }
 0x8e6   : > { %12923 = vrcp.f32 %v1434_v19 }
 0x8f0   : > { %v12924_v20 = vpop.eup %12923 }
 0x8f1   : > { %v1438_v24 = vmul.f32 %v12924_v20, %v1346_v3 }
 0x954   : > { %v1441_v21 = vpop.permute.xlu0 %1440 }
 0x955   : > { %v1443_v23 = vmul.f32 %v12924_v20, %v1441_v21 }
 0x957   : > { %1445 = vrot.lane.b32.xlu1 %v1443_v23, %s13752_s15 }
 0x9c9   : > { %v1446_v25 = vpop.permute.xlu1 %1445 }
 0x9ca   : > { %v1448_v26 = vadd.f32 %v1446_v25, %v1438_v24 }
 0x9cc   : > { %12925 = vtanh.f32 %v1448_v26 }
 0x9d6   : > { %v12926_v27 = vpop.eup %12925 }
 0x9d7   : > { %1451 = vrot.lane.b32.xlu0 %v12926_v27, %s13752_s15 }
 0x9db   : > { %1145 = vperm.xlu0 %12895, %v1117_v28  }
 0xa49   : > { %v1452_v29 = vpop.permute.xlu0 %1451 }
 0xa4a   : > { %v1454_v30 = vmul.f32 %v12924_v20, %v1452_v29 }
 0xa4c   : > { %1456 = vrot.lane.b32.xlu1 %v1454_v30, %s13753_s16 }
 0xa5a   : > { %v1146_v32 = vpop.permute.xlu0 %1145 }
 0xa5b   : > { %v1219_v33 = vmul.f32 %v14243_v41, %v1146_v32 }
 0xa5d   : > { %v1239_v34 = vadd.f32 %v14252_v45, %v1219_v33  ;;  %v1120_v33 = vld [vmem:[%s14191_s20 + $0x28] sm:$0xff] }
 0xabe   : > { %v1457_v31 = vpop.permute.xlu1 %1456 }
 0xabf   : > { %1459 = vst.msk [vmem:[#allocation2 + $0x8] sm:$0xff] %vm756_vm2, %v1457_v31  ;;  %11896 = vmatmul.mubr.msk.f32.vlgmr.msra.gmra.mrb[16].mxu0 %vm756_vm2, %v1457_v31 }
 0xac0   : > { %12632 = vmatpush3.bf16.msra.mxu0 %v14225_v38  ;;  %11902 = vmatprep.mubr.msk.f32.mxu0 %vm13748_vm0, %v13747_v17 }
 0xac1   : > { %12633 = vmatprep.subr.bf16.mxu0 %v13749_v22 }
 0xb92   : > { %v1528_v35 = vpop.f32.mrb[16].mxu0 }
 0xb93   : > { %v1532_v36 = vadd.f32 %v1528_v35, %v1239_v34  ;;  %v11897_v37 = vpop.f32.mrb[17].mxu0 }
 0xb95   : > { %12927 = vtanh.f32 %v1532_v36  ;;  %v11069_v40 = vmul.f32 -1.442695, %v1532_v36 }
 0xb97   : > { %12929 = vpow2.f32 %v11069_v40 }
 0xb9f   : > { %v12928_v39 = vpop.eup %12927 }
 0xba0   : > { %1542 = vrot.lane.b32.xlu1 %v12928_v39, %s13751_s13 }
 0xba1   : > { %v12930_v42 = vpop.eup %12929 }
 0xba2   : > { %v1536_v43 = vadd.f32 1.0, %v12930_v42 }
 0xba4   : > { %12931 = vrcp.f32 %v1536_v43 }
 0xbae   : > { %v12932_v44 = vpop.eup %12931 }
 0xbaf   : > { %v1540_v48 = vmul.f32 %v12932_v44, %v1448_v26 }
 0xc12   : > { %v1543_v46 = vpop.permute.xlu1 %1542 }
 0xc13   : > { %v1545_v47 = vmul.f32 %v12932_v44, %v1543_v46 }
 0xc15   : > { %1547 = vrot.lane.b32.xlu0 %v1545_v47, %s13752_s15 }
 0xc87   : > { %v1548_v49 = vpop.permute.xlu0 %1547 }
 0xc88   : > { %v1550_v50 = vadd.f32 %v1548_v49, %v1540_v48 }
 0xc8a   : > { %12933 = vtanh.f32 %v1550_v50 }
 0xc94   : > { %v12934_v51 = vpop.eup %12933 }
 0xc95   : > { %1553 = vrot.lane.b32.xlu1 %v12934_v51, %s13752_s15 }
 0xc99   : > { %1150 = vperm.xlu1 %12896, %v1118_v52  }
 0xd07   : > { %v1554_v53 = vpop.permute.xlu1 %1553 }
 0xd08   : > { %v1556_v54 = vmul.f32 %v12932_v44, %v1554_v53 }
 0xd0a   : > { %1558 = vrot.lane.b32.xlu0 %v1556_v54, %s13753_s16 }
 0xd18   : > { %v1151_v56 = vpop.permute.xlu1 %1150 }
 0xd19   : > { %v1220_v57 = vmul.f32 %v14243_v41, %v1151_v56 }
 0xd1b   : > { %v1240_v58 = vadd.f32 %v14252_v45, %v1220_v57  ;;  %v1121_v57 = vld [vmem:[%s14191_s20 + $0x30] sm:$0xff] }
 0xd7c   : > { %v1559_v55 = vpop.permute.xlu0 %1558 }
 0xd7d   : > { %1561 = vst.msk [vmem:[#allocation2 + $0x10] sm:$0xff] %vm756_vm2, %v1559_v55  ;;  %11903 = vmatmul.mubr.msk.f32.vlgmr.msra.gmra.mrb[18].mxu0 %vm756_vm2, %v1559_v55 }
 0xd7e   : > { %12635 = vmatpush3.bf16.msra.mxu0 %v14225_v38  ;;  %11909 = vmatprep.mubr.msk.f32.mxu0 %vm13748_vm0, %v13747_v17 }
 0xd7f   : > { %12639 = vmatprep.subr.bf16.mxu0 %v13749_v22 }
 0xe50   : > { %v1630_v59 = vpop.f32.mrb[18].mxu0 }
 0xe51   : > { %v1634_v60 = vadd.f32 %v1630_v59, %v1240_v58  ;;  %v11904_v62 = vpop.f32.mrb[19].mxu0 }
 0xe53   : > { %12935 = vtanh.f32 %v1634_v60  ;;  %v11071_v0 = vmul.f32 -1.442695, %v1634_v60 }
 0xe55   : > { %12937 = vpow2.f32 %v11071_v0 }
 0xe5d   : > { %v12936_v63 = vpop.eup %12935 }
 0xe5e   : > { %1644 = vrot.lane.b32.xlu0 %v12936_v63, %s13751_s13 }
 0xe5f   : > { %v12938_v1 = vpop.eup %12937 }
 0xe60   : > { %v1638_v2 = vadd.f32 1.0, %v12938_v1 }
 0xe62   : > { %12939 = vrcp.f32 %v1638_v2 }
 0xe6c   : > { %v12940_v3 = vpop.eup %12939 }
 0xe6d   : > { %v1642_v6 = vmul.f32 %v12940_v3, %v1550_v50 }
 0xed0   : > { %v1645_v4 = vpop.permute.xlu0 %1644 }
 0xed1   : > { %v1647_v5 = vmul.f32 %v12940_v3, %v1645_v4 }
 0xed3   : > { %1649 = vrot.lane.b32.xlu1 %v1647_v5, %s13752_s15 }
 0xf45   : > { %v1650_v7 = vpop.permute.xlu1 %1649 }
 0xf46   : > { %v1652_v8 = vadd.f32 %v1650_v7, %v1642_v6 }
 0xf48   : > { %12941 = vtanh.f32 %v1652_v8 }
 0xf52   : > { %v12942_v9 = vpop.eup %12941 }
 0xf53   : > { %1655 = vrot.lane.b32.xlu0 %v12942_v9, %s13752_s15 }
 0xf57   : > { %1155 = vperm.xlu0 %12895, %v1119_v10  }
 0xfc5   : > { %v1656_v11 = vpop.permute.xlu0 %1655 }
 0xfc6   : > { %v1658_v12 = vmul.f32 %v12940_v3, %v1656_v11 }
 0xfc8   : > { %1660 = vrot.lane.b32.xlu1 %v1658_v12, %s13753_s16 }
 0xfd6   : > { %v1156_v14 = vpop.permute.xlu0 %1155 }
 0xfd7   : > { %v1221_v15 = vmul.f32 %v14243_v41, %v1156_v14 }
 0xfd9   : > { %v1241_v16 = vadd.f32 %v14252_v45, %v1221_v15  ;;  %v1122_v15 = vld [vmem:[%s14191_s20 + $0x38] sm:$0xff] }
0x103a   : > { %v1661_v13 = vpop.permute.xlu1 %1660 }
0x103b   : > { %1663 = vst.msk [vmem:[#allocation2 + $0x18] sm:$0xff] %vm756_vm2, %v1661_v13  ;;  %11910 = vmatmul.mubr.msk.f32.vlgmr.msra.gmra.mrb[20].mxu0 %vm756_vm2, %v1661_v13 }
0x103c   : > { %12641 = vmatpush3.bf16.msra.mxu0 %v14225_v38  ;;  %11923 = vmatprep.mubr.msk.f32.mxu0 %vm13748_vm0, %v13747_v17 }
0x103d   : > { %12645 = vmatprep.subr.bf16.mxu0 %v13749_v22 }
0x110e   : > { %v1732_v18 = vpop.f32.mrb[20].mxu0 }
0x110f   : > { %v1736_v19 = vadd.f32 %v1732_v18, %v1241_v16  ;;  %v11911_v20 = vpop.f32.mrb[21].mxu0 }
0x1111   : > { %12943 = vtanh.f32 %v1736_v19  ;;  %v11073_v23 = vmul.f32 -1.442695, %v1736_v19 }
0x1113   : > { %12945 = vpow2.f32 %v11073_v23 }
0x111b   : > { %v12944_v21 = vpop.eup %12943 }
0x111c   : > { %1746 = vrot.lane.b32.xlu1 %v12944_v21, %s13751_s13 }
0x111d   : > { %v12946_v24 = vpop.eup %12945 }
0x111e   : > { %v1740_v25 = vadd.f32 1.0, %v12946_v24 }
0x1120   : > { %12947 = vrcp.f32 %v1740_v25 }
0x112a   : > { %v12948_v26 = vpop.eup %12947 }
0x112b   : > { %v1744_v29 = vmul.f32 %v12948_v26, %v1652_v8 }
0x118e   : > { %v1747_v27 = vpop.permute.xlu1 %1746 }
0x118f   : > { %v1749_v28 = vmul.f32 %v12948_v26, %v1747_v27 }
0x1191   : > { %1751 = vrot.lane.b32.xlu0 %v1749_v28, %s13752_s15 }
0x1203   : > { %v1752_v30 = vpop.permute.xlu0 %1751 }
0x1204   : > { %v1754_v31 = vadd.f32 %v1752_v30, %v1744_v29 }
0x1206   : > { %12949 = vtanh.f32 %v1754_v31 }
0x1210   : > { %v12950_v32 = vpop.eup %12949 }
0x1211   : > { %1757 = vrot.lane.b32.xlu1 %v12950_v32, %s13752_s15 }
0x1215   : > { %1160 = vperm.xlu1 %12896, %v1120_v33  }
0x1283   : > { %v1758_v34 = vpop.permute.xlu1 %1757 }
0x1284   : > { %v1760_v35 = vmul.f32 %v12948_v26, %v1758_v34 }
0x1286   : > { %1762 = vrot.lane.b32.xlu0 %v1760_v35, %s13753_s16 }
0x1294   : > { %v1161_v37 = vpop.permute.xlu1 %1160 }
0x1295   : > { %v1222_v39 = vmul.f32 %v14243_v41, %v1161_v37 }
0x1297   : > { %v1242_v40 = vadd.f32 %v14252_v45, %v1222_v39  ;;  %v1123_v39 = vld [vmem:[%s14191_s20 + $0x40] sm:$0xff] }
0x12f8   : > { %v1763_v36 = vpop.permute.xlu0 %1762 }
0x12f9   : > { %1765 = vst.msk [vmem:[#allocation2 + $0x20] sm:$0xff] %vm756_vm2, %v1763_v36  ;;  %11917 = vmatmul.mubr.msk.f32.vlgmr.msra.gmra.mrb[8].mxu1 %vm756_vm2, %v1763_v36 }
0x12fa   : > { %12644 = vmatpush3.bf16.msra.mxu1 %v14225_v38  ;;  %11930 = vmatprep.mubr.msk.f32.mxu1 %vm13748_vm0, %v13747_v17 }
0x12fb   : > { %12648 = vmatprep.subr.bf16.mxu1 %v13749_v22 }
0x13cc   : > { %v1834_v42 = vpop.f32.mrb[8].mxu1 }
0x13cd   : > { %v1838_v43 = vadd.f32 %v1834_v42, %v1242_v40  ;;  %v11918_v44 = vpop.f32.mrb[9].mxu1 }
0x13cf   : > { %12951 = vtanh.f32 %v1838_v43  ;;  %v11075_v47 = vmul.f32 -1.442695, %v1838_v43 }
0x13d1   : > { %12953 = vpow2.f32 %v11075_v47 }
0x13d9   : > { %v12952_v46 = vpop.eup %12951 }
0x13da   : > { %1848 = vrot.lane.b32.xlu0 %v12952_v46, %s13751_s13 }
0x13db   : > { %v12954_v48 = vpop.eup %12953 }
0x13dc   : > { %v1842_v49 = vadd.f32 1.0, %v12954_v48 }
0x13de   : > { %12955 = vrcp.f32 %v1842_v49 }
0x13e8   : > { %v12956_v50 = vpop.eup %12955 }
0x13e9   : > { %v1846_v53 = vmul.f32 %v12956_v50, %v1754_v31 }
0x144c   : > { %v1849_v51 = vpop.permute.xlu0 %1848 }
0x144d   : > { %v1851_v52 = vmul.f32 %v12956_v50, %v1849_v51 }
0x144f   : > { %1853 = vrot.lane.b32.xlu1 %v1851_v52, %s13752_s15 }
0x14c1   : > { %v1854_v54 = vpop.permute.xlu1 %1853 }
0x14c2   : > { %v1856_v55 = vadd.f32 %v1854_v54, %v1846_v53 }
0x14c4   : > { %12957 = vtanh.f32 %v1856_v55 }
0x14ce   : > { %v12958_v56 = vpop.eup %12957 }
0x14cf   : > { %1859 = vrot.lane.b32.xlu0 %v12958_v56, %s13752_s15 }
0x14d3   : > { %1165 = vperm.xlu0 %12895, %v1121_v57  }
0x1541   : > { %v1860_v58 = vpop.permute.xlu0 %1859 }
0x1542   : > { %v1862_v59 = vmul.f32 %v12956_v50, %v1860_v58 }
0x1544   : > { %1864 = vrot.lane.b32.xlu1 %v1862_v59, %s13753_s16 }
0x1552   : > { %v1166_v62 = vpop.permute.xlu0 %1165 }
0x1553   : > { %v1223_v63 = vmul.f32 %v14243_v41, %v1166_v62 }
0x1555   : > { %v1243_v0 = vadd.f32 %v14252_v45, %v1223_v63  ;;  %v1124_v63 = vld [vmem:[%s14191_s20 + $0x48] sm:$0xff] }
0x15b6   : > { %v1865_v60 = vpop.permute.xlu1 %1864 }
0x15b7   : > { %1867 = vst.msk [vmem:[#allocation2 + $0x28] sm:$0xff] %vm756_vm2, %v1865_v60  ;;  %11924 = vmatmul.mubr.msk.f32.vlgmr.msra.gmra.mrb[22].mxu0 %vm756_vm2, %v1865_v60 }
0x15b8   : > { %12647 = vmatpush3.bf16.msra.mxu0 %v14225_v38  ;;  %11937 = vmatprep.mubr.msk.f32.mxu0 %vm13748_vm0, %v13747_v17 }
0x15b9   : > { %12651 = vmatprep.subr.bf16.mxu0 %v13749_v22 }
0x168a   : > { %v1936_v1 = vpop.f32.mrb[22].mxu0 }
0x168b   : > { %v1940_v2 = vadd.f32 %v1936_v1, %v1243_v0  ;;  %v11925_v3 = vpop.f32.mrb[23].mxu0 }
0x168d   : > { %12959 = vtanh.f32 %v1940_v2  ;;  %v11077_v5 = vmul.f32 -1.442695, %v1940_v2 }
0x168f   : > { %12961 = vpow2.f32 %v11077_v5 }
0x1697   : > { %v12960_v4 = vpop.eup %12959 }
0x1698   : > { %1950 = vrot.lane.b32.xlu1 %v12960_v4, %s13751_s13 }
0x1699   : > { %v12962_v6 = vpop.eup %12961 }
0x169a   : > { %v1944_v7 = vadd.f32 1.0, %v12962_v6 }
0x169c   : > { %12963 = vrcp.f32 %v1944_v7 }
0x16a6   : > { %v12964_v8 = vpop.eup %12963 }
0x16a7   : > { %v1948_v11 = vmul.f32 %v12964_v8, %v1856_v55 }
0x170a   : > { %v1951_v9 = vpop.permute.xlu1 %1950 }
0x170b   : > { %v1953_v10 = vmul.f32 %v12964_v8, %v1951_v9 }
0x170d   : > { %1955 = vrot.lane.b32.xlu0 %v1953_v10, %s13752_s15 }
0x177f   : > { %v1956_v12 = vpop.permute.xlu0 %1955 }
0x1780   : > { %v1958_v13 = vadd.f32 %v1956_v12, %v1948_v11 }
0x1782   : > { %12965 = vtanh.f32 %v1958_v13 }
0x178c   : > { %v12966_v14 = vpop.eup %12965 }
0x178d   : > { %1961 = vrot.lane.b32.xlu1 %v12966_v14, %s13752_s15 }
0x1791   : > { %1170 = vperm.xlu1 %12896, %v1122_v15  }
0x17ff   : > { %v1962_v16 = vpop.permute.xlu1 %1961 }
0x1800   : > { %v1964_v18 = vmul.f32 %v12964_v8, %v1962_v16 }
0x1802   : > { %1966 = vrot.lane.b32.xlu0 %v1964_v18, %s13753_s16 }
0x1810   : > { %v1171_v20 = vpop.permute.xlu1 %1170 }
0x1811   : > { %v1224_v21 = vmul.f32 %v14243_v41, %v1171_v20 }
0x1813   : > { %v1244_v23 = vadd.f32 %v14252_v45, %v1224_v21  ;;  %v1125_v21 = vld [vmem:[%s14191_s20 + $0x50] sm:$0xff] }
0x1874   : > { %v1967_v19 = vpop.permute.xlu0 %1966 }
0x1875   : > { %1969 = vst.msk [vmem:[#allocation2 + $0x30] sm:$0xff] %vm756_vm2, %v1967_v19  ;;  %11931 = vmatmul.mubr.msk.f32.vlgmr.msra.gmra.mrb[10].mxu1 %vm756_vm2, %v1967_v19 }
0x1876   : > { %12650 = vmatpush3.bf16.msra.mxu1 %v14225_v38  ;;  %11944 = vmatprep.mubr.msk.f32.mxu1 %vm13748_vm0, %v13747_v17 }
0x1877   : > { %12654 = vmatprep.subr.bf16.mxu1 %v13749_v22 }
0x1948   : > { %v2038_v24 = vpop.f32.mrb[10].mxu1 }
0x1949   : > { %v2042_v25 = vadd.f32 %v2038_v24, %v1244_v23  ;;  %v11932_v26 = vpop.f32.mrb[11].mxu1 }
0x194b   : > { %12967 = vtanh.f32 %v2042_v25  ;;  %v11079_v28 = vmul.f32 -1.442695, %v2042_v25 }
0x194d   : > { %12969 = vpow2.f32 %v11079_v28 }
0x1955   : > { %v12968_v27 = vpop.eup %12967 }
0x1956   : > { %2052 = vrot.lane.b32.xlu0 %v12968_v27, %s13751_s13 }
0x1957   : > { %v12970_v29 = vpop.eup %12969 }
0x1958   : > { %v2046_v30 = vadd.f32 1.0, %v12970_v29 }
0x195a   : > { %12971 = vrcp.f32 %v2046_v30 }
0x1964   : > { %v12972_v31 = vpop.eup %12971 }
0x1965   : > { %v2050_v34 = vmul.f32 %v12972_v31, %v1958_v13 }
0x19c8   : > { %v2053_v32 = vpop.permute.xlu0 %2052 }
0x19c9   : > { %v2055_v33 = vmul.f32 %v12972_v31, %v2053_v32 }
0x19cb   : > { %2057 = vrot.lane.b32.xlu1 %v2055_v33, %s13752_s15 }
0x1a3d   : > { %v2058_v35 = vpop.permute.xlu1 %2057 }
0x1a3e   : > { %v2060_v36 = vadd.f32 %v2058_v35, %v2050_v34 }
0x1a40   : > { %12973 = vtanh.f32 %v2060_v36 }
0x1a4a   : > { %v12974_v37 = vpop.eup %12973 }
0x1a4b   : > { %2063 = vrot.lane.b32.xlu0 %v12974_v37, %s13752_s15 }
0x1a4f   : > { %1175 = vperm.xlu0 %12895, %v1123_v39  }
0x1abd   : > { %v2064_v40 = vpop.permute.xlu0 %2063 }
0x1abe   : > { %v2066_v42 = vmul.f32 %v12972_v31, %v2064_v40 }
0x1ac0   : > { %2068 = vrot.lane.b32.xlu1 %v2066_v42, %s13753_s16 }
0x1ace   : > { %v1176_v44 = vpop.permute.xlu0 %1175 }
0x1acf   : > { %v1225_v46 = vmul.f32 %v14243_v41, %v1176_v44 }
0x1ad1   : > { %v1245_v47 = vadd.f32 %v14252_v45, %v1225_v46  ;;  %v1126_v46 = vld [vmem:[%s14191_s20 + $0x58] sm:$0xff] }
0x1b32   : > { %v2069_v43 = vpop.permute.xlu1 %2068 }
0x1b33   : > { %2071 = vst.msk [vmem:[#allocation2 + $0x38] sm:$0xff] %vm756_vm2, %v2069_v43  ;;  %11938 = vmatmul.mubr.msk.f32.vlgmr.msra.gmra.mrb[24].mxu0 %vm756_vm2, %v2069_v43 }
0x1b34   : > { %12653 = vmatpush3.bf16.msra.mxu0 %v14225_v38  ;;  %11951 = vmatprep.mubr.msk.f32.mxu0 %vm13748_vm0, %v13747_v17 }
0x1b35   : > { %12657 = vmatprep.subr.bf16.mxu0 %v13749_v22 }
0x1c06   : > { %v2140_v48 = vpop.f32.mrb[24].mxu0 }
0x1c07   : > { %v2144_v49 = vadd.f32 %v2140_v48, %v1245_v47  ;;  %v11939_v50 = vpop.f32.mrb[25].mxu0 }
0x1c09   : > { %12975 = vtanh.f32 %v2144_v49  ;;  %v11081_v52 = vmul.f32 -1.442695, %v2144_v49 }
0x1c0b   : > { %12977 = vpow2.f32 %v11081_v52 }
0x1c13   : > { %v12976_v51 = vpop.eup %12975 }
0x1c14   : > { %2154 = vrot.lane.b32.xlu1 %v12976_v51, %s13751_s13 }
0x1c15   : > { %v12978_v53 = vpop.eup %12977 }
0x1c16   : > { %v2148_v54 = vadd.f32 1.0, %v12978_v53 }
0x1c18   : > { %12979 = vrcp.f32 %v2148_v54 }
0x1c22   : > { %v12980_v55 = vpop.eup %12979 }
0x1c23   : > { %v2152_v58 = vmul.f32 %v12980_v55, %v2060_v36 }
0x1c86   : > { %v2155_v56 = vpop.permute.xlu1 %2154 }
0x1c87   : > { %v2157_v57 = vmul.f32 %v12980_v55, %v2155_v56 }
0x1c89   : > { %2159 = vrot.lane.b32.xlu0 %v2157_v57, %s13752_s15 }
0x1cfb   : > { %v2160_v59 = vpop.permute.xlu0 %2159 }
0x1cfc   : > { %v2162_v60 = vadd.f32 %v2160_v59, %v2152_v58 }
0x1cfe   : > { %12981 = vtanh.f32 %v2162_v60 }
0x1d08   : > { %v12982_v62 = vpop.eup %12981 }
0x1d09   : > { %2165 = vrot.lane.b32.xlu1 %v12982_v62, %s13752_s15 }
0x1d0d   : > { %1180 = vperm.xlu1 %12896, %v1124_v63  }
0x1d7b   : > { %v2166_v0 = vpop.permute.xlu1 %2165 }
0x1d7c   : > { %v2168_v1 = vmul.f32 %v12980_v55, %v2166_v0 }
0x1d7e   : > { %2170 = vrot.lane.b32.xlu0 %v2168_v1, %s13753_s16 }
0x1d8c   : > { %v1181_v3 = vpop.permute.xlu1 %1180 }
0x1d8d   : > { %v1226_v4 = vmul.f32 %v14243_v41, %v1181_v3 }
0x1d8f   : > { %v1246_v5 = vadd.f32 %v14252_v45, %v1226_v4  ;;  %v1127_v4 = vld [vmem:[%s14191_s20 + $0x60] sm:$0xff] }
0x1df0   : > { %v2171_v2 = vpop.permute.xlu0 %2170 }
0x1df1   : > { %2173 = vst.msk [vmem:[#allocation2 + $0x40] sm:$0xff] %vm756_vm2, %v2171_v2  ;;  %11945 = vmatmul.mubr.msk.f32.vlgmr.msra.gmra.mrb[12].mxu1 %vm756_vm2, %v2171_v2 }
0x1df2   : > { %12656 = vmatpush3.bf16.msra.mxu1 %v14225_v38  ;;  %11958 = vmatprep.mubr.msk.f32.mxu1 %vm13748_vm0, %v13747_v17 }
0x1df3   : > { %12660 = vmatprep.subr.bf16.mxu1 %v13749_v22 }
0x1ec4   : > { %v2242_v6 = vpop.f32.mrb[12].mxu1 }
0x1ec5   : > { %v2246_v7 = vadd.f32 %v2242_v6, %v1246_v5  ;;  %v11946_v8 = vpop.f32.mrb[13].mxu1 }
0x1ec7   : > { %12983 = vtanh.f32 %v2246_v7  ;;  %v11083_v10 = vmul.f32 -1.442695, %v2246_v7 }
0x1ec9   : > { %12985 = vpow2.f32 %v11083_v10 }
0x1ed1   : > { %v12984_v9 = vpop.eup %12983 }
0x1ed2   : > { %2256 = vrot.lane.b32.xlu0 %v12984_v9, %s13751_s13 }
0x1ed3   : > { %v12986_v11 = vpop.eup %12985 }
0x1ed4   : > { %v2250_v12 = vadd.f32 1.0, %v12986_v11 }
0x1ed6   : > { %12987 = vrcp.f32 %v2250_v12 }
0x1ee0   : > { %v12988_v13 = vpop.eup %12987 }
0x1ee1   : > { %v2254_v16 = vmul.f32 %v12988_v13, %v2162_v60 }
0x1f44   : > { %v2257_v14 = vpop.permute.xlu0 %2256 }
0x1f45   : > { %v2259_v15 = vmul.f32 %v12988_v13, %v2257_v14 }
0x1f47   : > { %2261 = vrot.lane.b32.xlu1 %v2259_v15, %s13752_s15 }
0x1fb9   : > { %v2262_v18 = vpop.permute.xlu1 %2261 }
0x1fba   : > { %v2264_v19 = vadd.f32 %v2262_v18, %v2254_v16 }
0x1fbc   : > { %12989 = vtanh.f32 %v2264_v19 }
0x1fc6   : > { %v12990_v20 = vpop.eup %12989 }
0x1fc7   : > { %2267 = vrot.lane.b32.xlu0 %v12990_v20, %s13752_s15 }
0x1fcb   : > { %1185 = vperm.xlu0 %12895, %v1125_v21  }
0x2039   : > { %v2268_v23 = vpop.permute.xlu0 %2267 }
0x203a   : > { %v2270_v24 = vmul.f32 %v12988_v13, %v2268_v23 }
0x203c   : > { %2272 = vrot.lane.b32.xlu1 %v2270_v24, %s13753_s16 }
0x204a   : > { %v1186_v26 = vpop.permute.xlu0 %1185 }
0x204b   : > { %v1227_v27 = vmul.f32 %v14243_v41, %v1186_v26 }
0x204d   : > { %v1247_v28 = vadd.f32 %v14252_v45, %v1227_v27  ;;  %v1128_v27 = vld [vmem:[%s14191_s20 + $0x68] sm:$0xff] }
0x20ae   : > { %v2273_v25 = vpop.permute.xlu1 %2272 }
0x20af   : > { %2275 = vst.msk [vmem:[#allocation2 + $0x48] sm:$0xff] %vm756_vm2, %v2273_v25  ;;  %11952 = vmatmul.mubr.msk.f32.vlgmr.msra.gmra.mrb[26].mxu0 %vm756_vm2, %v2273_v25 }
0x20b0   : > { %12659 = vmatpush3.bf16.msra.mxu0 %v14225_v38  ;;  %11965 = vmatprep.mubr.msk.f32.mxu0 %vm13748_vm0, %v13747_v17 }
0x20b1   : > { %12663 = vmatprep.subr.bf16.mxu0 %v13749_v22 }
0x2182   : > { %v2344_v29 = vpop.f32.mrb[26].mxu0 }
0x2183   : > { %v2348_v30 = vadd.f32 %v2344_v29, %v1247_v28  ;;  %v11953_v31 = vpop.f32.mrb[27].mxu0 }
0x2185   : > { %12991 = vtanh.f32 %v2348_v30  ;;  %v11085_v33 = vmul.f32 -1.442695, %v2348_v30 }
0x2187   : > { %12993 = vpow2.f32 %v11085_v33 }
0x218f   : > { %v12992_v32 = vpop.eup %12991 }
0x2190   : > { %2358 = vrot.lane.b32.xlu1 %v12992_v32, %s13751_s13 }
0x2191   : > { %v12994_v34 = vpop.eup %12993 }
0x2192   : > { %v2352_v35 = vadd.f32 1.0, %v12994_v34 }
0x2194   : > { %12995 = vrcp.f32 %v2352_v35 }
0x219e   : > { %v12996_v36 = vpop.eup %12995 }
0x219f   : > { %v2356_v40 = vmul.f32 %v12996_v36, %v2264_v19 }
0x2202   : > { %v2359_v37 = vpop.permute.xlu1 %2358 }
0x2203   : > { %v2361_v39 = vmul.f32 %v12996_v36, %v2359_v37 }
0x2205   : > { %2363 = vrot.lane.b32.xlu0 %v2361_v39, %s13752_s15 }
0x2277   : > { %v2364_v42 = vpop.permute.xlu0 %2363 }
0x2278   : > { %v2366_v43 = vadd.f32 %v2364_v42, %v2356_v40 }
0x227a   : > { %12997 = vtanh.f32 %v2366_v43 }
0x2284   : > { %v12998_v44 = vpop.eup %12997 }
0x2285   : > { %2369 = vrot.lane.b32.xlu1 %v12998_v44, %s13752_s15 }
0x2289   : > { %1190 = vperm.xlu1 %12896, %v1126_v46  }
0x22f7   : > { %v2370_v47 = vpop.permute.xlu1 %2369 }
0x22f8   : > { %v2372_v48 = vmul.f32 %v12996_v36, %v2370_v47 }
0x22fa   : > { %2374 = vrot.lane.b32.xlu0 %v2372_v48, %s13753_s16  ;;  %v1129_v48 = vld [vmem:[%s14191_s20 + $0x70] sm:$0xff] }
0x2308   : > { %v1191_v50 = vpop.permute.xlu1 %1190 }
0x2309   : > { %v1228_v51 = vmul.f32 %v14243_v41, %v1191_v50  ;;  %v2905_v50 = vld [vmem:[%s15721_s5 + $0x28] sm:$0xff] }
0x230b   : > { %v1248_v52 = vadd.f32 %v14252_v45, %v1228_v51 }
0x236c   : > { %v2375_v49 = vpop.permute.xlu0 %2374 }
0x236d   : > { %2377 = vst.msk [vmem:[#allocation2 + $0x50] sm:$0xff] %vm756_vm2, %v2375_v49  ;;  %11959 = vmatmul.mubr.msk.f32.vlgmr.msra.gmra.mrb[14].mxu1 %vm756_vm2, %v2375_v49  ;;  %v2904_v49 = vld [vmem:[%s15721_s5 + $0x20] sm:$0xff] }
0x236e   : > { %12662 = vmatpush3.bf16.msra.mxu1 %v14225_v38  ;;  %11972 = vmatprep.mubr.msk.f32.mxu1 %vm13748_vm0, %v13747_v17  ;;  %v12669_v51 = vpack.c.bf16 %v2905_v50, %v2904_v49 }
0x236f   : > { %12666 = vmatprep.subr.bf16.mxu1 %v13749_v22 }
0x2440   : > { %v2446_v53 = vpop.f32.mrb[14].mxu1 }
0x2441   : > { %v2450_v54 = vadd.f32 %v2446_v53, %v1248_v52  ;;  %v11960_v55 = vpop.f32.mrb[15].mxu1 }
0x2442   : > { %v2888_v55 = vld [vmem:[#allocation2] sm:$0xff] }
0x2443   : > { %12999 = vtanh.f32 %v2450_v54  ;;  %v11087_v57 = vmul.f32 -1.442695, %v2450_v54 }
0x2445   : > { %13001 = vpow2.f32 %v11087_v57  ;;  %v2890_v57 = vld [vmem:[#allocation2 + $0x10] sm:$0xff] }
0x244d   : > { %v13000_v56 = vpop.eup %12999 }
0x244e   : > { %2460 = vrot.lane.b32.xlu0 %v13000_v56, %s13751_s13  ;;  %v2889_v56 = vld [vmem:[#allocation2 + $0x8] sm:$0xff] }
0x244f   : > { %v13002_v58 = vpop.eup %13001 }
0x2450   : > { %v2454_v59 = vadd.f32 1.0, %v13002_v58  ;;  %v2891_v58 = vld [vmem:[#allocation2 + $0x18] sm:$0xff] }
0x2452   : > { %13003 = vrcp.f32 %v2454_v59  ;;  %v2892_v59 = vld [vmem:[#allocation2 + $0x20] sm:$0xff] }
0x245c   : > { %v13004_v60 = vpop.eup %13003 }
0x245d   : > { %v2458_v0 = vmul.f32 %v13004_v60, %v2366_v43 }
0x24c0   : > { %v2461_v62 = vpop.permute.xlu0 %2460 }
0x24c1   : > { %v2463_v63 = vmul.f32 %v13004_v60, %v2461_v62  ;;  %v2894_v62 = vld [vmem:[#allocation2 + $0x30] sm:$0xff] }
0x24c3   : > { %2465 = vrot.lane.b32.xlu1 %v2463_v63, %s13752_s15  ;;  %v2895_v63 = vld [vmem:[#allocation2 + $0x38] sm:$0xff] }
0x2535   : > { %v2466_v1 = vpop.permute.xlu1 %2465 }
0x2536   : > { %v2468_v2 = vadd.f32 %v2466_v1, %v2458_v0  ;;  %v2896_v0 = vld [vmem:[#allocation2 + $0x40] sm:$0xff]  ;;  %v2897_v1 = vld [vmem:[#allocation2 + $0x48] sm:$0xff] }
0x2538   : > { %13005 = vtanh.f32 %v2468_v2 }
0x2542   : > { %v13006_v3 = vpop.eup %13005 }
0x2543   : > { %2471 = vrot.lane.b32.xlu0 %v13006_v3, %s13752_s15 }
0x2547   : > { %1195 = vperm.xlu0 %12895, %v1127_v4  }
0x25b5   : > { %v2472_v5 = vpop.permute.xlu0 %2471 }
0x25b6   : > { %v2474_v6 = vmul.f32 %v13004_v60, %v2472_v5  ;;  %v2893_v60 = vld [vmem:[#allocation2 + $0x28] sm:$0xff] }
0x25b8   : > { %2476 = vrot.lane.b32.xlu1 %v2474_v6, %s13753_s16 }
0x25c6   : > { %v1196_v8 = vpop.permute.xlu0 %1195 }
0x25c7   : > { %v1229_v9 = vmul.f32 %v14243_v41, %v1196_v8 }
0x25c9   : > { %v1249_v10 = vadd.f32 %v14252_v45, %v1229_v9  ;;  %v14469_v9 = vld [vmem:[%s15721_s5 + $0x18] ss:$0 sm:$0xff] }
0x262a   : > { %v2477_v7 = vpop.permute.xlu1 %2476 }
0x262b   : > { %2479 = vst.msk [vmem:[#allocation2 + $0x58] sm:$0xff] %vm756_vm2, %v2477_v7  ;;  %11966 = vmatmul.mubr.msk.f32.vlgmr.msra.gmra.mrb[28].mxu0 %vm756_vm2, %v2477_v7  ;;  %v14463_v7 = vld [vmem:[%s15721_s5] ss:$0 sm:$0xff] }
0x262c   : > { %12665 = vmatpush3.bf16.msra.mxu0 %v14225_v38  ;;  %11979 = vmatprep.mubr.msk.f32.mxu0 %vm13748_vm0, %v13747_v17 }
0x262d   : > { %12670 = vmatprep.subr.bf16.mxu0 %v12669_v51 }
0x2632   : > { %v2899_v3 = vld [vmem:[#allocation2 + $0x58] sm:$0xff] }
0x26fe   : > { %v2548_v11 = vpop.f32.mrb[28].mxu0 }
0x26ff   : > { %v2552_v12 = vadd.f32 %v2548_v11, %v1249_v10  ;;  %v11967_v13 = vpop.f32.mrb[29].mxu0 }
0x2701   : > { %13007 = vtanh.f32 %v2552_v12  ;;  %v11089_v15 = vmul.f32 -1.442695, %v2552_v12 }
0x2703   : > { %13009 = vpow2.f32 %v11089_v15 }
0x270b   : > { %v13008_v14 = vpop.eup %13007 }
0x270c   : > { %2562 = vrot.lane.b32.xlu1 %v13008_v14, %s13751_s13 }
0x270d   : > { %v13010_v16 = vpop.eup %13009 }
0x270e   : > { %v2556_v18 = vadd.f32 1.0, %v13010_v16 }
0x2710   : > { %13011 = vrcp.f32 %v2556_v18 }
0x271a   : > { %v13012_v19 = vpop.eup %13011 }
0x271b   : > { %v2560_v23 = vmul.f32 %v13012_v19, %v2468_v2  ;;  %v2898_v2 = vld [vmem:[#allocation2 + $0x50] sm:$0xff] }
0x277e   : > { %v2563_v20 = vpop.permute.xlu1 %2562 }
0x277f   : > { %v2565_v21 = vmul.f32 %v13012_v19, %v2563_v20 }
0x2781   : > { %2567 = vrot.lane.b32.xlu0 %v2565_v21, %s13752_s15 }
0x27f3   : > { %v2568_v24 = vpop.permute.xlu0 %2567 }
0x27f4   : > { %v2570_v25 = vadd.f32 %v2568_v24, %v2560_v23 }
0x27f6   : > { %13013 = vtanh.f32 %v2570_v25 }
0x2800   : > { %v13014_v26 = vpop.eup %13013 }
0x2801   : > { %2573 = vrot.lane.b32.xlu1 %v13014_v26, %s13752_s15 }
0x2805   : > { %1200 = vperm.xlu1 %12896, %v1128_v27  }
0x2873   : > { %v2574_v28 = vpop.permute.xlu1 %2573 }
0x2874   : > { %v2576_v29 = vmul.f32 %v13012_v19, %v2574_v28 }
0x2876   : > { %2578 = vrot.lane.b32.xlu0 %v2576_v29, %s13753_s16 }
0x2884   : > { %v1201_v31 = vpop.permute.xlu1 %1200 }
0x2885   : > { %v1230_v32 = vmul.f32 %v14243_v41, %v1201_v31 }
0x2887   : > { %v1250_v33 = vadd.f32 %v14252_v45, %v1230_v32 }
0x28e8   : > { %v2579_v30 = vpop.permute.xlu0 %2578 }
0x28e9   : > { %2581 = vst.msk [vmem:[#allocation2 + $0x60] sm:$0xff] %vm756_vm2, %v2579_v30  ;;  %11973 = vmatmul.mubr.msk.f32.vlgmr.msra.gmra.mrb[16].mxu1 %vm756_vm2, %v2579_v30 }
0x28ea   : > { %12668 = vmatpush3.bf16.msra.mxu1 %v14225_v38  ;;  %11986 = vmatprep.mubr.msk.f32.mxu1 %vm13748_vm0, %v13747_v17 }
0x28eb   : > { %12673 = vmatprep.subr.bf16.mxu1 %v13749_v22 }
0x28f0   : > { %v2900_v4 = vld [vmem:[#allocation2 + $0x60] sm:$0xff] }
0x29bc   : > { %v2650_v34 = vpop.f32.mrb[16].mxu1 }
0x29bd   : > { %v2654_v35 = vadd.f32 %v2650_v34, %v1250_v33  ;;  %v11974_v36 = vpop.f32.mrb[17].mxu1 }
0x29bf   : > { %13015 = vtanh.f32 %v2654_v35  ;;  %v11091_v39 = vmul.f32 -1.442695, %v2654_v35 }
0x29c1   : > { %13017 = vpow2.f32 %v11091_v39 }
0x29c9   : > { %v13016_v37 = vpop.eup %13015 }
0x29ca   : > { %2664 = vrot.lane.b32.xlu0 %v13016_v37, %s13751_s13 }
0x29cb   : > { %v13018_v38 = vpop.eup %13017 }
0x29cc   : > { %v2658_v40 = vadd.f32 1.0, %v13018_v38 }
0x29ce   : > { %13019 = vrcp.f32 %v2658_v40 }
0x29d8   : > { %v13020_v42 = vpop.eup %13019 }
0x29d9   : > { %v2662_v41 = vmul.f32 %v13020_v42, %v2570_v25 }
0x2a3c   : > { %v2665_v43 = vpop.permute.xlu0 %2664 }
0x2a3d   : > { %v2667_v44 = vmul.f32 %v13020_v42, %v2665_v43  ;;  %v3105_v43 = vld [vmem:[%s15721_s5 + $0x38] sm:$0xff] }
0x2a3f   : > { %2669 = vrot.lane.b32.xlu1 %v2667_v44, %s13752_s15 }
0x2ab1   : > { %v2670_v45 = vpop.permute.xlu1 %2669 }
0x2ab2   : > { %v14431_v46 = vadd.f32 %v2670_v45, %v2662_v41 }
0x2ab4   : > { %13021 = vtanh.f32 %v14431_v46 }
0x2abe   : > { %v13022_v47 = vpop.eup %13021 }
0x2abf   : > { %2675 = vrot.lane.b32.xlu0 %v13022_v47, %s13752_s15 }
0x2ac3   : > { %1205 = vperm.xlu0 %12895, %v1129_v48   ;;  %v14531_v48 = vld [vmem:[%s15721_s5 + $0x40] ss:$0 sm:$0xff] }
0x2b31   : > { %v2676_v52 = vpop.permute.xlu0 %2675 }
0x2b32   : > { %v2678_v53 = vmul.f32 %v13020_v42, %v2676_v52  ;;  %v3104_v42 = vld [vmem:[%s15721_s5 + $0x30] sm:$0xff] }
0x2b33   : > { %v14511_v44 = vpack.c.bf16 %v3105_v43, %v3104_v42 }
0x2b34   : > { %2680 = vrot.lane.b32.xlu1 %v2678_v53, %s13753_s16 }
0x2b42   : > { %v1206_v6 = vpop.permute.xlu0 %1205 }
0x2b43   : > { %v1231_v8 = vmul.f32 %v14463_v7, %v1206_v6 }
0x2b45   : > { %v1251_v10 = vadd.f32 %v14469_v9, %v1231_v8 }
0x2ba6   : > { %v2681_v54 = vpop.permute.xlu1 %2680 }
0x2ba7   : > { %2683 = vst.msk [vmem:[#allocation2 + $0x68] sm:$0xff] %vm756_vm2, %v2681_v54  ;;  %11980 = vmatmul.mubr.msk.f32.vlgmr.msra.gmra.mrb[30].mxu0 %vm756_vm2, %v2681_v54 }
0x2ba8   : > { %12672 = vmatpush3.bf16.msra.mxu0 %v12669_v51  ;;  %11993 = vmatprep.mubr.msk.f32.mxu0 %vm756_vm2, %v2888_v55 }
0x2ba9   : > { %12697 = vmatprep.subr.bf16.mxu0 %v13749_v22 }
0x2bab   : > { %11994 = vmatmul.mubr.msk.f32.vlgmr.msra.gmra.mrb[32].mxu0 %vm756_vm2, %v2889_v56 }
0x2bac   : > { %11996 = vmatprep.mubr.msk.f32.mxu0 %vm756_vm2, %v2890_v57  ;;  %12699 = vmatpush3.bf16.msra.mxu0 %v14511_v44 }
0x2bad   : > { %12703 = vmatprep.subr.bf16.mxu0 %v13749_v22 }
0x2bae   : > { %v2901_v5 = vld [vmem:[#allocation2 + $0x68] sm:$0xff] }
0x2baf   : > { %11997 = vmatmul.mubr.msk.f32.gmra.mrb[34].mxu0 %vm756_vm2, %v2891_v58 }
0x2bb0   : > { %11999 = vmatprep.mubr.msk.f32.mxu0 %vm756_vm2, %v2892_v59 }
0x2bb3   : > { %12000 = vmatmul.mubr.msk.f32.gmra.mrb[36].mxu0 %vm756_vm2, %v2893_v60 }
0x2bb4   : > { %12002 = vmatprep.mubr.msk.f32.mxu0 %vm756_vm2, %v2894_v62 }
0x2bb7   : > { %12003 = vmatmul.mubr.msk.f32.gmra.mrb[38].mxu0 %vm756_vm2, %v2895_v63 }
0x2bb8   : > { %12005 = vmatprep.mubr.msk.f32.mxu0 %vm756_vm2, %v2896_v0 }
0x2bbb   : > { %12006 = vmatmul.mubr.msk.f32.gmra.mrb[40].mxu0 %vm756_vm2, %v2897_v1 }
0x2bbc   : > { %12008 = vmatprep.mubr.msk.f32.mxu0 %vm756_vm2, %v2898_v2 }
0x2bbf   : > { %12009 = vmatmul.mubr.msk.f32.gmra.mrb[42].mxu0 %vm756_vm2, %v2899_v3 }
0x2bc0   : > { %12011 = vmatprep.mubr.msk.f32.mxu0 %vm756_vm2, %v2900_v4 }
0x2bc3   : > { %12012 = vmatmul.mubr.msk.f32.gmra.mrb[44].mxu0 %vm756_vm2, %v2901_v5 }
0x2c7a   : > { %v2752_v11 = vpop.f32.mrb[30].mxu0 }
0x2c7b   : > { %v2756_v12 = vadd.f32 %v2752_v11, %v1251_v10  ;;  %v11981_v13 = vpop.f32.mrb[31].mxu0 }
0x2c7d   : > { %13023 = vtanh.f32 %v2756_v12  ;;  %v11093_v31 = vmul.f32 -1.442695, %v2756_v12 }
0x2c7e   : > { %v14472_v14 = vpop.f32.mrb[32].mxu0 }
0x2c7f   : > { %v3025_v15 = vpop.f32.mrb[33].mxu0  ;;  %13025 = vpow2.f32 %v11093_v31  ;;  %v3031_v6 = vadd.f32 %v14472_v14, %v14531_v48 }
0x2c80   : > { %v3026_v51 = vadd.f32 %v14531_v48, %v3025_v15 }
0x2c82   : > { %v14474_v16 = vpop.f32.mrb[34].mxu0 }
0x2c83   : > { %v14476_v18 = vpop.f32.mrb[35].mxu0 }
0x2c84   : > { %v3036_v42 = vadd.f32 %v14531_v48, %v14476_v18 }
0x2c86   : > { %v14478_v19 = vpop.f32.mrb[36].mxu0 }
0x2c87   : > { %v13024_v20 = vpop.eup %13023  ;;  %v14480_v21 = vpop.f32.mrb[37].mxu0 }
0x2c88   : > { %2766 = vrot.lane.b32.xlu1 %v13024_v20, %s13751_s13 }
0x2c89   : > { %v13026_v32 = vpop.eup %13025 }
0x2c8a   : > { %v14483_v23 = vpop.f32.mrb[38].mxu0  ;;  %v2760_v33 = vadd.f32 1.0, %v13026_v32 }
0x2c8b   : > { %v14485_v24 = vpop.f32.mrb[39].mxu0 }
0x2c8c   : > { %13027 = vrcp.f32 %v2760_v33 }
0x2c8e   : > { %v14487_v25 = vpop.f32.mrb[40].mxu0 }
0x2c8f   : > { %v14489_v26 = vpop.f32.mrb[41].mxu0 }
0x2c92   : > { %v14491_v27 = vpop.f32.mrb[42].mxu0 }
0x2c93   : > { %v14493_v28 = vpop.f32.mrb[43].mxu0 }
0x2c96   : > { %v14495_v29 = vpop.f32.mrb[44].mxu0  ;;  %v13028_v34 = vpop.eup %13027 }
0x2c97   : > { %v14497_v30 = vpop.f32.mrb[45].mxu0  ;;  %v2764_v37 = vmul.f32 %v13028_v34, %v14431_v46 }
0x2cfa   : > { %v2767_v35 = vpop.permute.xlu1 %2766 }
0x2cfb   : > { %v2769_v36 = vmul.f32 %v13028_v34, %v2767_v35 }
0x2cfd   : > { %2771 = vrot.lane.b32.xlu0 %v2769_v36, %s13752_s15 }
0x2d6f   : > { %v2772_v39 = vpop.permute.xlu0 %2771 }
0x2d70   : > { %v14501_v38 = vadd.f32 %v2772_v39, %v2764_v37 }
0x2d72   : > { %13029 = vtanh.f32 %v14501_v38 }
0x2d7c   : > { %v13030_v40 = vpop.eup %13029 }
0x2d7d   : > { %2777 = vrot.lane.b32.xlu1 %v13030_v40, %s13752_s15 }
0x2def   : > { %v2778_v41 = vpop.permute.xlu1 %2777 }
0x2df0   : > { %v2780_v45 = vmul.f32 %v13028_v34, %v2778_v41 }
0x2df2   : > { %2782 = vrot.lane.b32.xlu0 %v2780_v45, %s13753_s16 }
0x2e64   : > { %v2783_v46 = vpop.permute.xlu0 %2782 }
0x2e65   : > { %2785 = vst.msk [vmem:[#allocation2 + $0x70] sm:$0xff] %vm756_vm2, %v2783_v46  ;;  %11987 = vmatmul.mubr.msk.f32.vlgmr.msra.gmra.mrb[18].mxu1 %vm756_vm2, %v2783_v46 }
0x2e66   : > { %12675 = vmatpush3.bf16.msra.mxu1 %v14511_v44  ;;  %12021 = vmatprep.mubr.msk.f32.mxu1 %vm13748_vm0, %v13747_v17 }
0x2e67   : > { %12676 = vmatprep.subr.bf16.mxu1 %v13749_v22 }
0x2e69   : > { %12022 = vmatmul.mubr.f32.vlgmr.msra.gmra.mrb[20].mxu1 %v13747_v17 }
0x2e6a   : > { %12678 = vmatpush3.bf16.msra.mxu1 %v14511_v44  ;;  %12028 = vmatprep.mubr.msk.f32.mxu1 %vm13748_vm0, %v13747_v17 }
0x2e6b   : > { %12679 = vmatprep.subr.bf16.mxu1 %v13749_v22 }
0x2e6c   : > { %v2902_v47 = vld [vmem:[#allocation2 + $0x70] sm:$0xff] }
0x2e6d   : > { %12014 = vmatprep.mubr.msk.f32.mxu0 %vm756_vm2, %v2902_v47 }
0x2f38   : > { %v14533_v49 = vpop.f32.mrb[18].mxu1 }
0x2f39   : > { %v11988_v50 = vpop.f32.mrb[19].mxu1 }
0x2f3c   : > { %v3172_v52 = vpop.f32.mrb[20].mxu1 }
0x2f3d   : > { %v3176_v53 = vadd.f32 %v3172_v52, %v3026_v51  ;;  %v12023_v54 = vpop.f32.mrb[21].mxu1 }
0x2f3f   : > { %13031 = vtanh.f32 %v3176_v53  ;;  %v11113_v56 = vmul.f32 -1.442695, %v3176_v53 }
0x2f41   : > { %13033 = vpow2.f32 %v11113_v56 }
0x2f49   : > { %v13032_v55 = vpop.eup %13031 }
0x2f4a   : > { %3186 = vrot.lane.b32.xlu1 %v13032_v55, %s13751_s13 }
0x2f4b   : > { %v13034_v57 = vpop.eup %13033 }
0x2f4c   : > { %v3180_v58 = vadd.f32 1.0, %v13034_v57 }
0x2f4e   : > { %13035 = vrcp.f32 %v3180_v58 }
0x2f58   : > { %v13036_v59 = vpop.eup %13035 }
0x2f59   : > { %v3184_v63 = vmul.f32 0.0, %v13036_v59 }
0x2fbc   : > { %v3187_v60 = vpop.permute.xlu1 %3186 }
0x2fbd   : > { %v3189_v62 = vmul.f32 %v13036_v59, %v3187_v60 }
0x2fbf   : > { %3191 = vrot.lane.b32.xlu0 %v3189_v62, %s13752_s15  ;;  %v3041_v62 = vadd.f32 %v14474_v16, %v14531_v48 }
0x3031   : > { %v3192_v0 = vpop.permute.xlu0 %3191 }
0x3032   : > { %v3194_v1 = vadd.f32 %v3192_v0, %v3184_v63 }
0x3034   : > { %13037 = vtanh.f32 %v3194_v1 }
0x303e   : > { %v13038_v2 = vpop.eup %13037 }
0x303f   : > { %3197 = vrot.lane.b32.xlu1 %v13038_v2, %s13752_s15 }
0x30b1   : > { %v3198_v3 = vpop.permute.xlu1 %3197 }
0x30b2   : > { %v3200_v4 = vmul.f32 %v13036_v59, %v3198_v3 }
0x30b4   : > { %3202 = vrot.lane.b32.xlu0 %v3200_v4, %s13753_s16 }
0x3126   : > { %v3203_v5 = vpop.permute.xlu0 %3202 }
0x3127   : > { %3205 = vst.msk [vmem:[#allocation2] sm:$0xff] %vm756_vm2, %v3203_v5  ;;  %12029 = vmatmul.mubr.msk.f32.vlgmr.msra.gmra.mrb[22].mxu1 %vm756_vm2, %v3203_v5 }
0x3128   : > { %12681 = vmatpush3.bf16.msra.mxu1 %v14511_v44  ;;  %12035 = vmatprep.mubr.msk.f32.mxu1 %vm13748_vm0, %v13747_v17 }
0x3129   : > { %12682 = vmatprep.subr.bf16.mxu1 %v13749_v22 }
0x31fa   : > { %v3274_v8 = vpop.f32.mrb[22].mxu1 }
0x31fb   : > { %v3278_v10 = vadd.f32 %v3274_v8, %v3031_v6  ;;  %v12030_v11 = vpop.f32.mrb[23].mxu1 }
0x31fd   : > { %13039 = vtanh.f32 %v3278_v10  ;;  %v11115_v13 = vmul.f32 -1.442695, %v3278_v10 }
0x31ff   : > { %13041 = vpow2.f32 %v11115_v13 }
0x3207   : > { %v13040_v12 = vpop.eup %13039 }
0x3208   : > { %3288 = vrot.lane.b32.xlu1 %v13040_v12, %s13751_s13 }
0x3209   : > { %v13042_v15 = vpop.eup %13041 }
0x320a   : > { %v3282_v20 = vadd.f32 1.0, %v13042_v15 }
0x320c   : > { %13043 = vrcp.f32 %v3282_v20 }
0x3216   : > { %v13044_v31 = vpop.eup %13043 }
0x3217   : > { %v3286_v34 = vmul.f32 %v13044_v31, %v3194_v1 }
0x327a   : > { %v3289_v32 = vpop.permute.xlu1 %3288 }
0x327b   : > { %v3291_v33 = vmul.f32 %v13044_v31, %v3289_v32  ;;  %v3046_v32 = vadd.f32 %v14531_v48, %v14480_v21 }
0x327d   : > { %3293 = vrot.lane.b32.xlu0 %v3291_v33, %s13752_s15 }
0x32ef   : > { %v3294_v35 = vpop.permute.xlu0 %3293 }
0x32f0   : > { %v3296_v14 = vadd.f32 %v3294_v35, %v3286_v34 }
0x32f2   : > { %13045 = vtanh.f32 %v3296_v14 }
0x32fc   : > { %v13046_v36 = vpop.eup %13045 }
0x32fd   : > { %3299 = vrot.lane.b32.xlu1 %v13046_v36, %s13752_s15 }
0x336f   : > { %v3300_v37 = vpop.permute.xlu1 %3299 }
0x3370   : > { %v3302_v39 = vmul.f32 %v13044_v31, %v3300_v37 }
0x3372   : > { %3304 = vrot.lane.b32.xlu0 %v3302_v39, %s13753_s16 }
0x33e4   : > { %v3305_v40 = vpop.permute.xlu0 %3304 }
0x33e5   : > { %3307 = vst.msk [vmem:[#allocation2 + $0x8] sm:$0xff] %vm756_vm2, %v3305_v40  ;;  %12036 = vmatmul.mubr.msk.f32.vlgmr.msra.gmra.mrb[24].mxu1 %vm756_vm2, %v3305_v40 }
0x33e6   : > { %12684 = vmatpush3.bf16.msra.mxu1 %v14511_v44  ;;  %12042 = vmatprep.mubr.msk.f32.mxu1 %vm13748_vm0, %v13747_v17 }
0x33e7   : > { %12685 = vmatprep.subr.bf16.mxu1 %v13749_v22 }
0x34b8   : > { %v3376_v43 = vpop.f32.mrb[24].mxu1 }
0x34b9   : > { %v3380_v41 = vadd.f32 %v3376_v43, %v3036_v42  ;;  %v12037_v45 = vpop.f32.mrb[25].mxu1 }
0x34bb   : > { %13047 = vtanh.f32 %v3380_v41  ;;  %v11117_v47 = vmul.f32 -1.442695, %v3380_v41 }
0x34bd   : > { %13049 = vpow2.f32 %v11117_v47 }
0x34c5   : > { %v13048_v46 = vpop.eup %13047 }
0x34c6   : > { %3390 = vrot.lane.b32.xlu1 %v13048_v46, %s13751_s13 }
0x34c7   : > { %v13050_v50 = vpop.eup %13049 }
0x34c8   : > { %v3384_v51 = vadd.f32 1.0, %v13050_v50 }
0x34ca   : > { %13051 = vrcp.f32 %v3384_v51 }
0x34d4   : > { %v13052_v52 = vpop.eup %13051 }
0x34d5   : > { %v3388_v55 = vmul.f32 %v13052_v52, %v3296_v14 }
0x3538   : > { %v3391_v53 = vpop.permute.xlu1 %3390 }
0x3539   : > { %v3393_v54 = vmul.f32 %v13052_v52, %v3391_v53 }
0x353b   : > { %3395 = vrot.lane.b32.xlu0 %v3393_v54, %s13752_s15 }
0x35ad   : > { %v3396_v56 = vpop.permute.xlu0 %3395 }
0x35ae   : > { %v3398_v18 = vadd.f32 %v3396_v56, %v3388_v55 }
0x35b0   : > { %13053 = vtanh.f32 %v3398_v18 }
0x35ba   : > { %v13054_v57 = vpop.eup %13053 }
0x35bb   : > { %3401 = vrot.lane.b32.xlu1 %v13054_v57, %s13752_s15 }
0x362d   : > { %v3402_v58 = vpop.permute.xlu1 %3401 }
0x362e   : > { %v3404_v59 = vmul.f32 %v13052_v52, %v3402_v58  ;;  %v3051_v52 = vadd.f32 %v14478_v19, %v14531_v48 }
0x3630   : > { %3406 = vrot.lane.b32.xlu0 %v3404_v59, %s13753_s16 }
0x36a2   : > { %v3407_v60 = vpop.permute.xlu0 %3406 }
0x36a3   : > { %3409 = vst.msk [vmem:[#allocation2 + $0x10] sm:$0xff] %vm756_vm2, %v3407_v60  ;;  %12043 = vmatmul.mubr.msk.f32.vlgmr.msra.gmra.mrb[26].mxu1 %vm756_vm2, %v3407_v60 }
0x36a4   : > { %12687 = vmatpush3.bf16.msra.mxu1 %v14511_v44  ;;  %12049 = vmatprep.mubr.msk.f32.mxu1 %vm13748_vm0, %v13747_v17 }
0x36a5   : > { %12688 = vmatprep.subr.bf16.mxu1 %v13749_v22 }
0x3776   : > { %v3478_v63 = vpop.f32.mrb[26].mxu1 }
0x3777   : > { %v3482_v0 = vadd.f32 %v3478_v63, %v3041_v62  ;;  %v12044_v1 = vpop.f32.mrb[27].mxu1 }
0x3779   : > { %13055 = vtanh.f32 %v3482_v0  ;;  %v11119_v3 = vmul.f32 -1.442695, %v3482_v0 }
0x377b   : > { %13057 = vpow2.f32 %v11119_v3 }
0x3783   : > { %v13056_v2 = vpop.eup %13055 }
0x3784   : > { %3492 = vrot.lane.b32.xlu1 %v13056_v2, %s13751_s13 }
0x3785   : > { %v13058_v4 = vpop.eup %13057 }
0x3786   : > { %v3486_v5 = vadd.f32 1.0, %v13058_v4 }
0x3788   : > { %13059 = vrcp.f32 %v3486_v5  ;;  %v3056_v5 = vadd.f32 %v14531_v48, %v14485_v24 }
0x3792   : > { %v13060_v6 = vpop.eup %13059 }
0x3793   : > { %v3490_v11 = vmul.f32 %v13060_v6, %v3398_v18 }
0x37f6   : > { %v3493_v8 = vpop.permute.xlu1 %3492 }
0x37f7   : > { %v3495_v10 = vmul.f32 %v13060_v6, %v3493_v8 }
0x37f9   : > { %3497 = vrot.lane.b32.xlu0 %v3495_v10, %s13752_s15 }
0x386b   : > { %v3498_v12 = vpop.permute.xlu0 %3497 }
0x386c   : > { %v3500_v16 = vadd.f32 %v3498_v12, %v3490_v11 }
0x386e   : > { %13061 = vtanh.f32 %v3500_v16 }
0x3878   : > { %v13062_v13 = vpop.eup %13061 }
0x3879   : > { %3503 = vrot.lane.b32.xlu1 %v13062_v13, %s13752_s15 }
0x38eb   : > { %v3504_v15 = vpop.permute.xlu1 %3503 }
0x38ec   : > { %v3506_v20 = vmul.f32 %v13060_v6, %v3504_v15 }
0x38ee   : > { %3508 = vrot.lane.b32.xlu0 %v3506_v20, %s13753_s16 }
0x3960   : > { %v3509_v31 = vpop.permute.xlu0 %3508 }
0x3961   : > { %3511 = vst.msk [vmem:[#allocation2 + $0x18] sm:$0xff] %vm756_vm2, %v3509_v31  ;;  %12050 = vmatmul.mubr.msk.f32.vlgmr.msra.gmra.mrb[28].mxu1 %vm756_vm2, %v3509_v31 }
0x3962   : > { %12690 = vmatpush3.bf16.msra.mxu1 %v14511_v44  ;;  %12056 = vmatprep.mubr.msk.f32.mxu1 %vm13748_vm0, %v13747_v17 }
0x3963   : > { %12691 = vmatprep.subr.bf16.mxu1 %v13749_v22 }
0x3a34   : > { %v3580_v33 = vpop.f32.mrb[28].mxu1 }
0x3a35   : > { %v3584_v34 = vadd.f32 %v3580_v33, %v3046_v32  ;;  %v12051_v35 = vpop.f32.mrb[29].mxu1 }
0x3a36   : > { %v1130_v35 = vld [vmem:[%s14191_s20 + $0x78] sm:$0xff]  ;;  %s13758_s20 = smov 1  }
0x3a37   : > { %13063 = vtanh.f32 %v3584_v34  ;;  %v11121_v36 = vmul.f32 -1.442695, %v3584_v34 }
0x3a39   : > { %13065 = vpow2.f32 %v11121_v36 }
0x3a41   : > { %v13064_v14 = vpop.eup %13063 }
0x3a42   : > { %3594 = vrot.lane.b32.xlu1 %v13064_v14, %s13751_s13 }
0x3a43   : > { %v13066_v37 = vpop.eup %13065 }
0x3a44   : > { %v3588_v39 = vadd.f32 1.0, %v13066_v37 }
0x3a46   : > { %13067 = vrcp.f32 %v3588_v39 }
0x3a50   : > { %v13068_v40 = vpop.eup %13067 }
0x3a51   : > { %v3592_v41 = vmul.f32 %v13068_v40, %v3500_v16 }
0x3ab4   : > { %v3595_v42 = vpop.permute.xlu1 %3594 }
0x3ab5   : > { %v3597_v43 = vmul.f32 %v13068_v40, %v3595_v42 }
0x3ab7   : > { %3599 = vrot.lane.b32.xlu0 %v3597_v43, %s13752_s15 }
0x3b29   : > { %v3600_v45 = vpop.permute.xlu0 %3599 }
0x3b2a   : > { %v3602_v21 = vadd.f32 %v3600_v45, %v3592_v41 }
0x3b2c   : > { %13069 = vtanh.f32 %v3602_v21 }
0x3b36   : > { %v13070_v46 = vpop.eup %13069 }
0x3b37   : > { %3605 = vrot.lane.b32.xlu1 %v13070_v46, %s13752_s15 }
0x3ba9   : > { %v3606_v47 = vpop.permute.xlu1 %3605 }
0x3baa   : > { %v3608_v50 = vmul.f32 %v13068_v40, %v3606_v47 }
0x3bac   : > { %3610 = vrot.lane.b32.xlu0 %v3608_v50, %s13753_s16 }
0x3c1e   : > { %v3611_v51 = vpop.permute.xlu0 %3610 }
0x3c1f   : > { %3613 = vst.msk [vmem:[#allocation2 + $0x20] sm:$0xff] %vm756_vm2, %v3611_v51  ;;  %12057 = vmatmul.mubr.msk.f32.vlgmr.msra.gmra.mrb[30].mxu1 %vm756_vm2, %v3611_v51 }
0x3c20   : > { %12693 = vmatpush3.bf16.msra.mxu1 %v14511_v44  ;;  %12063 = vmatprep.mubr.msk.f32.mxu1 %vm13748_vm0, %v13747_v17 }
0x3c21   : > { %12694 = vmatprep.subr.bf16.mxu1 %v13749_v22 }
0x3cf2   : > { %v3682_v53 = vpop.f32.mrb[30].mxu1 }
0x3cf3   : > { %v3686_v54 = vadd.f32 %v3682_v53, %v3051_v52  ;;  %v12058_v55 = vpop.f32.mrb[31].mxu1  ;;  %v3061_v53 = vadd.f32 %v14483_v23, %v14531_v48 }
0x3cf5   : > { %13071 = vtanh.f32 %v3686_v54  ;;  %v11123_v18 = vmul.f32 -1.442695, %v3686_v54 }
0x3cf7   : > { %13073 = vpow2.f32 %v11123_v18 }
0x3cff   : > { %v13072_v56 = vpop.eup %13071 }
0x3d00   : > { %3696 = vrot.lane.b32.xlu1 %v13072_v56, %s13751_s13 }
0x3d01   : > { %v13074_v57 = vpop.eup %13073 }
0x3d02   : > { %v3690_v58 = vadd.f32 1.0, %v13074_v57 }
0x3d04   : > { %13075 = vrcp.f32 %v3690_v58 }
0x3d0e   : > { %v13076_v59 = vpop.eup %13075 }
0x3d0f   : > { %v3694_v63 = vmul.f32 %v13076_v59, %v3602_v21 }
0x3d72   : > { %v3697_v60 = vpop.permute.xlu1 %3696 }
0x3d73   : > { %v3699_v62 = vmul.f32 %v13076_v59, %v3697_v60 }
0x3d75   : > { %3701 = vrot.lane.b32.xlu0 %v3699_v62, %s13752_s15 }
0x3de7   : > { %v3702_v0 = vpop.permute.xlu0 %3701 }
0x3de8   : > { %v3704_v19 = vadd.f32 %v3702_v0, %v3694_v63 }
0x3dea   : > { %13077 = vtanh.f32 %v3704_v19 }
0x3df4   : > { %v13078_v1 = vpop.eup %13077 }
0x3df5   : > { %3707 = vrot.lane.b32.xlu1 %v13078_v1, %s13752_s15 }
0x3e67   : > { %v3708_v2 = vpop.permute.xlu1 %3707 }
0x3e68   : > { %v3710_v3 = vmul.f32 %v13076_v59, %v3708_v2 }
0x3e6a   : > { %3712 = vrot.lane.b32.xlu0 %v3710_v3, %s13753_s16 }
0x3edc   : > { %v3713_v4 = vpop.permute.xlu0 %3712 }
0x3edd   : > { %3715 = vst.msk [vmem:[#allocation2 + $0x28] sm:$0xff] %vm756_vm2, %v3713_v4  ;;  %12064 = vmatmul.mubr.msk.f32.vlgmr.msra.gmra.mrb[32].mxu1 %vm756_vm2, %v3713_v4 }
0x3ede   : > { %12696 = vmatpush3.bf16.msra.mxu1 %v14511_v44  ;;  %12070 = vmatprep.mubr.msk.f32.mxu1 %vm13748_vm0, %v13747_v17 }
0x3edf   : > { %12700 = vmatprep.subr.bf16.mxu1 %v13749_v22 }
0x3fb0   : > { %v3784_v6 = vpop.f32.mrb[32].mxu1 }
0x3fb1   : > { %v3788_v8 = vadd.f32 %v3784_v6, %v3056_v5  ;;  %v12065_v10 = vpop.f32.mrb[33].mxu1 }
0x3fb3   : > { %13079 = vtanh.f32 %v3788_v8  ;;  %v11125_v12 = vmul.f32 -1.442695, %v3788_v8 }
0x3fb5   : > { %13081 = vpow2.f32 %v11125_v12  ;;  %v3066_v12 = vadd.f32 %v14531_v48, %v14489_v26 }
0x3fbd   : > { %v13080_v11 = vpop.eup %13079 }
0x3fbe   : > { %3798 = vrot.lane.b32.xlu1 %v13080_v11, %s13751_s13 }
0x3fbf   : > { %v13082_v16 = vpop.eup %13081 }
0x3fc0   : > { %v3792_v13 = vadd.f32 1.0, %v13082_v16 }
0x3fc2   : > { %13083 = vrcp.f32 %v3792_v13 }
0x3fcc   : > { %v13084_v15 = vpop.eup %13083 }
0x3fcd   : > { %v3796_v32 = vmul.f32 %v13084_v15, %v3704_v19 }
0x4030   : > { %v3799_v20 = vpop.permute.xlu1 %3798 }
0x4031   : > { %v3801_v31 = vmul.f32 %v13084_v15, %v3799_v20 }
0x4033   : > { %3803 = vrot.lane.b32.xlu0 %v3801_v31, %s13752_s15 }
0x40a5   : > { %v3804_v24 = vpop.permute.xlu0 %3803 }
0x40a6   : > { %v3806_v33 = vadd.f32 %v3804_v24, %v3796_v32 }
0x40a8   : > { %13085 = vtanh.f32 %v3806_v33 }
0x40b2   : > { %v13086_v34 = vpop.eup %13085 }
0x40b3   : > { %3809 = vrot.lane.b32.xlu1 %v13086_v34, %s13752_s15 }
0x40b7   : > { %1210 = vperm.xlu1 %12896, %v1130_v35  }
0x4125   : > { %v3810_v14 = vpop.permute.xlu1 %3809 }
0x4126   : > { %v3812_v36 = vmul.f32 %v13084_v15, %v3810_v14 }
0x4128   : > { %3814 = vrot.lane.b32.xlu0 %v3812_v36, %s13753_s16 }
0x4136   : > { %v1211_v37 = vpop.permute.xlu1 %1210 }
0x4137   : > { %v1232_v39 = vmul.f32 %v14463_v7, %v1211_v37 }
0x4139   : > { %v1252_v40 = vadd.f32 %v14469_v9, %v1232_v39 }
0x413b   : > { %v2858_v42 = vadd.f32 %v14533_v49, %v1252_v40 }
0x413d   : > { %13087 = vtanh.f32 %v2858_v42  ;;  %v11095_v45 = vmul.f32 -1.442695, %v2858_v42 }
0x413f   : > { %13089 = vpow2.f32 %v11095_v45 }
0x4147   : > { %v13088_v43 = vpop.eup %13087 }
0x4148   : > { %2868 = vrot.lane.b32.xlu0 %v13088_v43, %s13751_s13  ;;  %v3071_v43 = vadd.f32 %v14487_v25, %v14531_v48 }
0x4149   : > { %v13090_v7 = vpop.eup %13089 }
0x414a   : > { %v2862_v9 = vadd.f32 1.0, %v13090_v7 }
0x414c   : > { %13091 = vrcp.f32 %v2862_v9 }
0x4156   : > { %v13092_v49 = vpop.eup %13091 }
0x4157   : > { %v2866_v47 = vmul.f32 %v13092_v49, %v14501_v38 }
0x419a   : > { %v3815_v41 = vpop.permute.xlu0 %3814 }
0x419b   : > { %3817 = vst.msk [vmem:[#allocation2 + $0x30] sm:$0xff] %vm756_vm2, %v3815_v41  ;;  %12071 = vmatmul.mubr.msk.f32.vlgmr.msra.gmra.mrb[34].mxu1 %vm756_vm2, %v3815_v41 }
0x419c   : > { %12702 = vmatpush3.bf16.msra.mxu1 %v14511_v44  ;;  %12084 = vmatprep.mubr.msk.f32.mxu1 %vm13748_vm0, %v13747_v17 }
0x419d   : > { %12706 = vmatprep.subr.bf16.mxu1 %v13749_v22 }
0x41ba   : > { %v2869_v21 = vpop.permute.xlu0 %2868 }
0x41bb   : > { %v2871_v46 = vmul.f32 %v13092_v49, %v2869_v21 }
0x41bd   : > { %2873 = vrot.lane.b32.xlu0 %v2871_v46, %s13752_s15 }
0x422f   : > { %v2874_v50 = vpop.permute.xlu0 %2873 }
0x4230   : > { %v2876_v51 = vadd.f32 %v2874_v50, %v2866_v47 }
0x4232   : > { %13093 = vtanh.f32 %v2876_v51 }
0x423c   : > { %v13094_v52 = vpop.eup %13093 }
0x423d   : > { %2879 = vrot.lane.b32.xlu0 %v13094_v52, %s13752_s15 }
0x426e   : > { %v3886_v54 = vpop.f32.mrb[34].mxu1 }
0x426f   : > { %v3890_v55 = vadd.f32 %v3886_v54, %v3061_v53  ;;  %v12072_v56 = vpop.f32.mrb[35].mxu1 }
0x4271   : > { %13095 = vtanh.f32 %v3890_v55  ;;  %v11127_v38 = vmul.f32 -1.442695, %v3890_v55 }
0x4273   : > { %13097 = vpow2.f32 %v11127_v38 }
0x427b   : > { %v13096_v18 = vpop.eup %13095 }
0x427c   : > { %3900 = vrot.lane.b32.xlu1 %v13096_v18, %s13751_s13 }
0x427d   : > { %v13098_v59 = vpop.eup %13097 }
0x427e   : > { %v3894_v60 = vadd.f32 1.0, %v13098_v59 }
0x4280   : > { %13099 = vrcp.f32 %v3894_v60 }
0x428a   : > { %v13100_v62 = vpop.eup %13099 }
0x428b   : > { %v3898_v1 = vmul.f32 %v13100_v62, %v3806_v33 }
0x42af   : > { %v2880_v57 = vpop.permute.xlu0 %2879 }
0x42b0   : > { %v2882_v58 = vmul.f32 %v13092_v49, %v2880_v57  ;;  %v3076_v57 = vadd.f32 %v14531_v48, %v14493_v28 }
0x42b2   : > { %2884 = vrot.lane.b32.xlu0 %v2882_v58, %s13753_s16 }
0x42ee   : > { %v3901_v63 = vpop.permute.xlu1 %3900 }
0x42ef   : > { %v3903_v0 = vmul.f32 %v13100_v62, %v3901_v63 }
0x42f1   : > { %3905 = vrot.lane.b32.xlu1 %v3903_v0, %s13752_s15 }
0x4324   : > { %v2885_v23 = vpop.permute.xlu0 %2884 }
0x4325   : > { %2887 = vst.msk [vmem:[#allocation2 + $0x78] sm:$0xff] %vm756_vm2, %v2885_v23 }
0x432c   : > { %v2903_v19 = vld [vmem:[#allocation2 + $0x78] sm:$0xff] }
0x432d   : > { %12015 = vmatmul.mubr.msk.f32.gmra.mrb[46].mxu0 %vm756_vm2, %v2903_v19 }
0x432e   : > { %12077 = vmatprep.mubr.msk.f32.mxu0 %vm13748_vm0, %v13747_v17 }
0x4363   : > { %v3906_v2 = vpop.permute.xlu1 %3905 }
0x4364   : > { %v3908_v3 = vadd.f32 %v3906_v2, %v3898_v1 }
0x4366   : > { %13101 = vtanh.f32 %v3908_v3 }
0x4370   : > { %v13102_v4 = vpop.eup %13101 }
0x4371   : > { %3911 = vrot.lane.b32.xlu1 %v13102_v4, %s13752_s15 }
0x43e3   : > { %v3912_v5 = vpop.permute.xlu1 %3911 }
0x43e4   : > { %v3914_v6 = vmul.f32 %v13100_v62, %v3912_v5 }
0x43e6   : > { %3916 = vrot.lane.b32.xlu1 %v3914_v6, %s13753_s16 }
0x4400   : > { %v14637_v8 = vpop.f32.mrb[46].mxu0 }
0x4401   : > { %v14639_v10 = vpop.f32.mrb[47].mxu0 }
0x4458   : > { %v3917_v11 = vpop.permute.xlu1 %3916 }
0x4459   : > { %3919 = vst.msk [vmem:[#allocation2 + $0x38] sm:$0xff] %vm756_vm2, %v3917_v11  ;;  %12078 = vmatmul.mubr.msk.f32.vlgmr.msra.gmra.mrb[48].mxu0 %vm756_vm2, %v3917_v11 }
0x445a   : > { %12705 = vmatpush3.bf16.msra.mxu0 %v14511_v44  ;;  %12091 = vmatprep.mubr.msk.f32.mxu0 %vm13748_vm0, %v13747_v17 }
0x445b   : > { %12709 = vmatprep.subr.bf16.mxu0 %v13749_v22 }
0x452c   : > { %v3988_v16 = vpop.f32.mrb[48].mxu0 }
0x452d   : > { %v3992_v13 = vadd.f32 %v3988_v16, %v3066_v12  ;;  %v12079_v15 = vpop.f32.mrb[49].mxu0  ;;  %v3081_v12 = vadd.f32 %v14491_v27, %v14531_v48 }
0x452f   : > { %13103 = vtanh.f32 %v3992_v13  ;;  %v11129_v31 = vmul.f32 -1.442695, %v3992_v13 }
0x4531   : > { %13105 = vpow2.f32 %v11129_v31 }
0x4539   : > { %v13104_v20 = vpop.eup %13103 }
0x453a   : > { %4002 = vrot.lane.b32.xlu0 %v13104_v20, %s13751_s13 }
0x453b   : > { %v13106_v32 = vpop.eup %13105 }
0x453c   : > { %v3996_v24 = vadd.f32 1.0, %v13106_v32 }
0x453e   : > { %13107 = vrcp.f32 %v3996_v24 }
0x4548   : > { %v13108_v33 = vpop.eup %13107 }
0x4549   : > { %v4000_v14 = vmul.f32 %v13108_v33, %v3908_v3 }
0x45ac   : > { %v4003_v34 = vpop.permute.xlu0 %4002 }
0x45ad   : > { %v4005_v35 = vmul.f32 %v13108_v33, %v4003_v34 }
0x45af   : > { %4007 = vrot.lane.b32.xlu1 %v4005_v35, %s13752_s15 }
0x4621   : > { %v4008_v36 = vpop.permute.xlu1 %4007 }
0x4622   : > { %v4010_v26 = vadd.f32 %v4008_v36, %v4000_v14 }
0x4624   : > { %13109 = vtanh.f32 %v4010_v26 }
0x462e   : > { %v13110_v37 = vpop.eup %13109 }
0x462f   : > { %4013 = vrot.lane.b32.xlu0 %v13110_v37, %s13752_s15 }
0x46a1   : > { %v4014_v39 = vpop.permute.xlu0 %4013 }
0x46a2   : > { %v4016_v40 = vmul.f32 %v13108_v33, %v4014_v39 }
0x46a4   : > { %4018 = vrot.lane.b32.xlu1 %v4016_v40, %s13753_s16 }
0x4716   : > { %v4019_v42 = vpop.permute.xlu1 %4018 }
0x4717   : > { %4021 = vst.msk [vmem:[#allocation2 + $0x40] sm:$0xff] %vm756_vm2, %v4019_v42  ;;  %12085 = vmatmul.mubr.msk.f32.vlgmr.msra.gmra.mrb[36].mxu1 %vm756_vm2, %v4019_v42  ;;  %v3086_v42 = vadd.f32 %v14531_v48, %v14497_v30 }
0x4718   : > { %12708 = vmatpush3.bf16.msra.mxu1 %v14511_v44  ;;  %12098 = vmatprep.mubr.msk.f32.mxu1 %vm13748_vm0, %v13747_v17 }
0x4719   : > { %12712 = vmatprep.subr.bf16.mxu1 %v13749_v22 }
0x47ea   : > { %v4090_v41 = vpop.f32.mrb[36].mxu1 }
0x47eb   : > { %v4094_v45 = vadd.f32 %v4090_v41, %v3071_v43  ;;  %v12086_v7 = vpop.f32.mrb[37].mxu1 }
0x47ed   : > { %13111 = vtanh.f32 %v4094_v45  ;;  %v11131_v49 = vmul.f32 -1.442695, %v4094_v45 }
0x47ef   : > { %13113 = vpow2.f32 %v11131_v49 }
0x47f7   : > { %v13112_v9 = vpop.eup %13111 }
0x47f8   : > { %4104 = vrot.lane.b32.xlu0 %v13112_v9, %s13751_s13 }
0x47f9   : > { %v13114_v21 = vpop.eup %13113 }
0x47fa   : > { %v4098_v46 = vadd.f32 1.0, %v13114_v21 }
0x47fc   : > { %13115 = vrcp.f32 %v4098_v46 }
0x4806   : > { %v13116_v47 = vpop.eup %13115 }
0x4807   : > { %v4102_v52 = vmul.f32 %v13116_v47, %v4010_v26 }
0x486a   : > { %v4105_v50 = vpop.permute.xlu0 %4104 }
0x486b   : > { %v4107_v51 = vmul.f32 %v13116_v47, %v4105_v50 }
0x486d   : > { %4109 = vrot.lane.b32.xlu1 %v4107_v51, %s13752_s15 }
0x48df   : > { %v4110_v53 = vpop.permute.xlu1 %4109 }
0x48e0   : > { %v4112_v25 = vadd.f32 %v4110_v53, %v4102_v52 }
0x48e2   : > { %13117 = vtanh.f32 %v4112_v25 }
0x48ec   : > { %v13118_v54 = vpop.eup %13117 }
0x48ed   : > { %4115 = vrot.lane.b32.xlu0 %v13118_v54, %s13752_s15 }
0x495f   : > { %v4116_v55 = vpop.permute.xlu0 %4115 }
0x4960   : > { %v4118_v56 = vmul.f32 %v13116_v47, %v4116_v55 }
0x4962   : > { %4120 = vrot.lane.b32.xlu1 %v4118_v56, %s13753_s16  ;;  %v3091_v56 = vadd.f32 %v14495_v29, %v14531_v48 }
0x49d4   : > { %v4121_v18 = vpop.permute.xlu1 %4120 }
0x49d5   : > { %4123 = vst.msk [vmem:[#allocation2 + $0x48] sm:$0xff] %vm756_vm2, %v4121_v18  ;;  %12092 = vmatmul.mubr.msk.f32.vlgmr.msra.gmra.mrb[50].mxu0 %vm756_vm2, %v4121_v18 }
0x49d6   : > { %12711 = vmatpush3.bf16.msra.mxu0 %v14511_v44  ;;  %12105 = vmatprep.mubr.msk.f32.mxu0 %vm13748_vm0, %v13747_v17 }
0x49d7   : > { %12715 = vmatprep.subr.bf16.mxu0 %v13749_v22 }
0x4aa8   : > { %v4192_v58 = vpop.f32.mrb[50].mxu0 }
0x4aa9   : > { %v4196_v38 = vadd.f32 %v4192_v58, %v3076_v57  ;;  %v12093_v59 = vpop.f32.mrb[51].mxu0 }
0x4aab   : > { %13119 = vtanh.f32 %v4196_v38  ;;  %v11133_v62 = vmul.f32 -1.442695, %v4196_v38 }
0x4aad   : > { %13121 = vpow2.f32 %v11133_v62 }
0x4ab5   : > { %v13120_v60 = vpop.eup %13119 }
0x4ab6   : > { %4206 = vrot.lane.b32.xlu0 %v13120_v60, %s13751_s13 }
0x4ab7   : > { %v13122_v63 = vpop.eup %13121 }
0x4ab8   : > { %v4200_v0 = vadd.f32 1.0, %v13122_v63 }
0x4aba   : > { %13123 = vrcp.f32 %v4200_v0 }
0x4ac4   : > { %v13124_v23 = vpop.eup %13123 }
0x4ac5   : > { %v4204_v2 = vmul.f32 %v13124_v23, %v4112_v25 }
0x4b28   : > { %v4207_v19 = vpop.permute.xlu0 %4206 }
0x4b29   : > { %v4209_v1 = vmul.f32 %v13124_v23, %v4207_v19 }
0x4b2b   : > { %4211 = vrot.lane.b32.xlu1 %v4209_v1, %s13752_s15 }
0x4b9d   : > { %v4212_v3 = vpop.permute.xlu1 %4211 }
0x4b9e   : > { %v4214_v28 = vadd.f32 %v4212_v3, %v4204_v2  ;;  %v4752_v2 = vld [vmem:[%s15721_s5 + $0x48] sm:$0xff]  ;;  %v4753_v3 = vld [vmem:[%s15721_s5 + $0x50] sm:$0xff] }
0x4ba0   : > { %13125 = vtanh.f32 %v4214_v28 }
0x4baa   : > { %v13126_v4 = vpop.eup %13125 }
0x4bab   : > { %4217 = vrot.lane.b32.xlu0 %v13126_v4, %s13752_s15 }
0x4c1d   : > { %v4218_v5 = vpop.permute.xlu0 %4217 }
0x4c1e   : > { %v4220_v6 = vmul.f32 %v13124_v23, %v4218_v5 }
0x4c20   : > { %4222 = vrot.lane.b32.xlu1 %v4220_v6, %s13753_s16 }
0x4c92   : > { %v4223_v11 = vpop.permute.xlu1 %4222 }
0x4c93   : > { %4225 = vst.msk [vmem:[#allocation2 + $0x50] sm:$0xff] %vm756_vm2, %v4223_v11  ;;  %12099 = vmatmul.mubr.msk.f32.vlgmr.msra.gmra.mrb[38].mxu1 %vm756_vm2, %v4223_v11  ;;  %v4736_v11 = vld [vmem:[#allocation2] sm:$0xff] }
0x4c94   : > { %12714 = vmatpush3.bf16.msra.mxu1 %v14511_v44  ;;  %12112 = vmatprep.mubr.msk.f32.mxu1 %vm13748_vm0, %v13747_v17 }
0x4c95   : > { %12718 = vmatprep.subr.bf16.mxu1 %v13749_v22 }
0x4d66   : > { %v4294_v16 = vpop.f32.mrb[38].mxu1 }
0x4d67   : > { %v4298_v13 = vadd.f32 %v4294_v16, %v3081_v12  ;;  %v12100_v15 = vpop.f32.mrb[39].mxu1  ;;  %v4737_v12 = vld [vmem:[#allocation2 + $0x8] sm:$0xff]  ;;  %v4738_v16 = vld [vmem:[#allocation2 + $0x10] sm:$0xff] }
0x4d68   : > { %v4740_v15 = vld [vmem:[#allocation2 + $0x20] sm:$0xff] }
0x4d69   : > { %13127 = vtanh.f32 %v4298_v13  ;;  %v11135_v31 = vmul.f32 -1.442695, %v4298_v13  ;;  %v4739_v13 = vld [vmem:[#allocation2 + $0x18] sm:$0xff] }
0x4d6b   : > { %13129 = vpow2.f32 %v11135_v31  ;;  %v4742_v31 = vld [vmem:[#allocation2 + $0x30] sm:$0xff] }
0x4d73   : > { %v13128_v20 = vpop.eup %13127 }
0x4d74   : > { %4308 = vrot.lane.b32.xlu0 %v13128_v20, %s13751_s13  ;;  %v4741_v20 = vld [vmem:[#allocation2 + $0x28] sm:$0xff] }
0x4d75   : > { %v13130_v32 = vpop.eup %13129 }
0x4d76   : > { %v4302_v24 = vadd.f32 1.0, %v13130_v32  ;;  %v4743_v32 = vld [vmem:[#allocation2 + $0x38] sm:$0xff] }
0x4d78   : > { %13131 = vrcp.f32 %v4302_v24  ;;  %v4744_v24 = vld [vmem:[#allocation2 + $0x40] sm:$0xff] }
0x4d82   : > { %v13132_v33 = vpop.eup %13131 }
0x4d83   : > { %v4306_v14 = vmul.f32 %v13132_v33, %v4214_v28  ;;  %v12721_v28 = vpack.c.bf16 %v4753_v3, %v4752_v2 }
0x4de6   : > { %v4309_v34 = vpop.permute.xlu0 %4308 }
0x4de7   : > { %v4311_v35 = vmul.f32 %v13132_v33, %v4309_v34  ;;  %v4746_v34 = vld [vmem:[#allocation2 + $0x50] sm:$0xff] }
0x4de9   : > { %4313 = vrot.lane.b32.xlu1 %v4311_v35, %s13752_s15 }
0x4e5b   : > { %v4314_v36 = vpop.permute.xlu1 %4313 }
0x4e5c   : > { %v4316_v27 = vadd.f32 %v4314_v36, %v4306_v14 }
0x4e5e   : > { %13133 = vtanh.f32 %v4316_v27 }
0x4e68   : > { %v13134_v26 = vpop.eup %13133 }
0x4e69   : > { %4319 = vrot.lane.b32.xlu0 %v13134_v26, %s13752_s15 }
0x4edb   : > { %v4320_v37 = vpop.permute.xlu0 %4319 }
0x4edc   : > { %v4322_v39 = vmul.f32 %v13132_v33, %v4320_v37  ;;  %v4745_v33 = vld [vmem:[#allocation2 + $0x48] sm:$0xff] }
0x4ede   : > { %4324 = vrot.lane.b32.xlu1 %v4322_v39, %s13753_s16 }
0x4f50   : > { %v4325_v40 = vpop.permute.xlu1 %4324 }
0x4f51   : > { %4327 = vst.msk [vmem:[#allocation2 + $0x58] sm:$0xff] %vm756_vm2, %v4325_v40  ;;  %12106 = vmatmul.mubr.msk.f32.vlgmr.msra.gmra.mrb[52].mxu0 %vm756_vm2, %v4325_v40 }
0x4f52   : > { %12717 = vmatpush3.bf16.msra.mxu0 %v14511_v44  ;;  %12119 = vmatprep.mubr.msk.f32.mxu0 %vm13748_vm0, %v13747_v17 }
0x4f53   : > { %12722 = vmatprep.subr.bf16.mxu0 %v12721_v28 }
0x4f58   : > { %v4747_v35 = vld [vmem:[#allocation2 + $0x58] sm:$0xff] }
0x5024   : > { %v4396_v43 = vpop.f32.mrb[52].mxu0 }
0x5025   : > { %v4400_v41 = vadd.f32 %v4396_v43, %v3086_v42  ;;  %v12107_v45 = vpop.f32.mrb[53].mxu0 }
0x5027   : > { %13135 = vtanh.f32 %v4400_v41  ;;  %v11137_v9 = vmul.f32 -1.442695, %v4400_v41 }
0x5029   : > { %13137 = vpow2.f32 %v11137_v9 }
0x5031   : > { %v13136_v7 = vpop.eup %13135 }
0x5032   : > { %4410 = vrot.lane.b32.xlu0 %v13136_v7, %s13751_s13 }
0x5033   : > { %v13138_v49 = vpop.eup %13137 }
0x5034   : > { %v4404_v21 = vadd.f32 1.0, %v13138_v49 }
0x5036   : > { %13139 = vrcp.f32 %v4404_v21 }
0x5040   : > { %v13140_v46 = vpop.eup %13139 }
0x5041   : > { %v4408_v51 = vmul.f32 %v13140_v46, %v4316_v27  ;;  %v3096_v27 = vadd.f32 %v14531_v48, %v14639_v10 }
0x50a4   : > { %v4411_v47 = vpop.permute.xlu0 %4410 }
0x50a5   : > { %v4413_v50 = vmul.f32 %v13140_v46, %v4411_v47 }
0x50a7   : > { %4415 = vrot.lane.b32.xlu1 %v4413_v50, %s13752_s15 }
0x5119   : > { %v4416_v52 = vpop.permute.xlu1 %4415 }
0x511a   : > { %v4418_v30 = vadd.f32 %v4416_v52, %v4408_v51 }
0x511c   : > { %13141 = vtanh.f32 %v4418_v30 }
0x5126   : > { %v13142_v53 = vpop.eup %13141 }
0x5127   : > { %4421 = vrot.lane.b32.xlu0 %v13142_v53, %s13752_s15 }
0x5199   : > { %v4422_v25 = vpop.permute.xlu0 %4421 }
0x519a   : > { %v4424_v54 = vmul.f32 %v13140_v46, %v4422_v25 }
0x519c   : > { %4426 = vrot.lane.b32.xlu1 %v4424_v54, %s13753_s16 }
0x520e   : > { %v4427_v55 = vpop.permute.xlu1 %4426 }
0x520f   : > { %4429 = vst.msk [vmem:[#allocation2 + $0x60] sm:$0xff] %vm756_vm2, %v4427_v55  ;;  %12113 = vmatmul.mubr.msk.f32.vlgmr.msra.gmra.mrb[40].mxu1 %vm756_vm2, %v4427_v55 }
0x5210   : > { %12720 = vmatpush3.bf16.msra.mxu1 %v14511_v44  ;;  %12126 = vmatprep.mubr.msk.f32.mxu1 %vm13748_vm0, %v13747_v17 }
0x5211   : > { %12157 = vmatprep.subr.mxu1 %v13747_v17 }
0x5216   : > { %v4748_v14 = vld [vmem:[#allocation2 + $0x60] sm:$0xff] }
0x52e2   : > { %v4498_v18 = vpop.f32.mrb[40].mxu1 }
0x52e3   : > { %v4502_v57 = vadd.f32 %v4498_v18, %v3091_v56  ;;  %v12114_v58 = vpop.f32.mrb[41].mxu1 }
0x52e5   : > { %13143 = vtanh.f32 %v4502_v57  ;;  %v11139_v59 = vmul.f32 -1.442695, %v4502_v57 }
0x52e7   : > { %13145 = vpow2.f32 %v11139_v59 }
0x52ef   : > { %v13144_v38 = vpop.eup %13143 }
0x52f0   : > { %4512 = vrot.lane.b32.xlu0 %v13144_v38, %s13751_s13  ;;  %v14776_v38 = vld [vmem:[%s15721_s5 + $0x58] sm:$0xff] }
0x52f1   : > { %v13146_v60 = vpop.eup %13145 }
0x52f2   : > { %v4506_v62 = vadd.f32 1.0, %v13146_v60 }
0x52f4   : > { %13147 = vrcp.f32 %v4506_v62 }
0x52fe   : > { %v13148_v44 = vpop.eup %13147 }
0x52ff   : > { %v4510_v23 = vmul.f32 %v13148_v44, %v4418_v30 }
0x5362   : > { %v4513_v63 = vpop.permute.xlu0 %4512 }
0x5363   : > { %v4515_v0 = vmul.f32 %v13148_v44, %v4513_v63  ;;  %v13681_v63 = vld [vmem:[%s15721_s5 + $0x40] ss:$0 sm:$0xff] }
0x5365   : > { %4517 = vrot.lane.b32.xlu1 %v4515_v0, %s13752_s15  ;;  %v3101_v0 = vadd.f32 %v13681_v63, %v14637_v8 }
0x53d7   : > { %v4518_v19 = vpop.permute.xlu1 %4517 }
0x53d8   : > { %v14710_v29 = vadd.f32 %v4518_v19, %v4510_v23  ;;  %v14800_v23 = vld [vmem:[%s15721_s5 + $0x60] ss:$0 sm:$0xff] }
0x53da   : > { %13149 = vtanh.f32 %v14710_v29 }
0x53e4   : > { %v13150_v1 = vpop.eup %13149 }
0x53e5   : > { %4523 = vrot.lane.b32.xlu0 %v13150_v1, %s13752_s15 }
0x5457   : > { %v4524_v4 = vpop.permute.xlu0 %4523 }
0x5458   : > { %v4526_v5 = vmul.f32 %v13148_v44, %v4524_v4 }
0x545a   : > { %4528 = vrot.lane.b32.xlu1 %v4526_v5, %s13753_s16 }
0x54cc   : > { %v4529_v6 = vpop.permute.xlu1 %4528 }
0x54cd   : > { %4531 = vst.msk [vmem:[#allocation2 + $0x68] sm:$0xff] %vm756_vm2, %v4529_v6  ;;  %12120 = vmatmul.mubr.msk.f32.vlgmr.msra.gmra.mrb[54].mxu0 %vm756_vm2, %v4529_v6 }
0x54ce   : > { %12724 = vmatpush3.bf16.msra.mxu0 %v12721_v28  ;;  %12133 = vmatprep.mubr.msk.f32.mxu0 %vm756_vm2, %v4736_v11 }
0x54cf   : > { %12197 = vmatprep.subr.mxu0 %v13747_v17 }
0x54d1   : > { %12134 = vmatmul.mubr.msk.f32.vlgmr.msra.gmra.mrb[56].mxu0 %vm756_vm2, %v4737_v12 }
0x54d2   : > { %12136 = vmatprep.mubr.msk.f32.mxu0 %vm756_vm2, %v4738_v16  ;;  %12198 = vmatpush3.msra.mxu0 %v14776_v38 }
0x54d3   : > { %12207 = vmatprep.subr.mxu0 %v13747_v17 }
0x54d4   : > { %v4749_v36 = vld [vmem:[#allocation2 + $0x68] sm:$0xff] }
0x54d5   : > { %12137 = vmatmul.mubr.msk.f32.gmra.mrb[58].mxu0 %vm756_vm2, %v4739_v13 }
0x54d6   : > { %12139 = vmatprep.mubr.msk.f32.mxu0 %vm756_vm2, %v4740_v15 }
0x54d9   : > { %12140 = vmatmul.mubr.msk.f32.gmra.mrb[60].mxu0 %vm756_vm2, %v4741_v20 }
0x54da   : > { %12142 = vmatprep.mubr.msk.f32.mxu0 %vm756_vm2, %v4742_v31 }
0x54dd   : > { %12143 = vmatmul.mubr.msk.f32.gmra.mrb[62].mxu0 %vm756_vm2, %v4743_v32 }
0x54de   : > { %12145 = vmatprep.mubr.msk.f32.mxu0 %vm756_vm2, %v4744_v24 }
0x54e1   : > { %12146 = vmatmul.mubr.msk.f32.gmra.mrb[64].mxu0 %vm756_vm2, %v4745_v33 }
0x54e2   : > { %12148 = vmatprep.mubr.msk.f32.mxu0 %vm756_vm2, %v4746_v34 }
0x54e5   : > { %12149 = vmatmul.mubr.msk.f32.gmra.mrb[66].mxu0 %vm756_vm2, %v4747_v35 }
0x54e6   : > { %12151 = vmatprep.mubr.msk.f32.mxu0 %vm756_vm2, %v4748_v14 }
0x54e9   : > { %12152 = vmatmul.mubr.msk.f32.gmra.mrb[68].mxu0 %vm756_vm2, %v4749_v36 }
0x55a0   : > { %v4600_v26 = vpop.f32.mrb[54].mxu0 }
0x55a1   : > { %v4604_v37 = vadd.f32 %v4600_v26, %v3096_v27  ;;  %v12121_v39 = vpop.f32.mrb[55].mxu0 }
0x55a3   : > { %13151 = vtanh.f32 %v4604_v37  ;;  %v11141_v52 = vmul.f32 -1.442695, %v4604_v37 }
0x55a4   : > { %v14740_v40 = vpop.f32.mrb[56].mxu0 }
0x55a5   : > { %v4873_v42 = vpop.f32.mrb[57].mxu0  ;;  %13153 = vpow2.f32 %v11141_v52  ;;  %v4879_v35 = vadd.f32 %v14740_v40, %v14800_v23 }
0x55a6   : > { %v4874_v2 = vadd.f32 %v14800_v23, %v4873_v42 }
0x55a8   : > { %v14742_v43 = vpop.f32.mrb[58].mxu0 }
0x55a9   : > { %v14744_v41 = vpop.f32.mrb[59].mxu0 }
0x55ac   : > { %v14746_v45 = vpop.f32.mrb[60].mxu0 }
0x55ad   : > { %v13152_v7 = vpop.eup %13151  ;;  %v14748_v9 = vpop.f32.mrb[61].mxu0 }
0x55ae   : > { %4614 = vrot.lane.b32.xlu0 %v13152_v7, %s13751_s13 }
0x55af   : > { %v13154_v30 = vpop.eup %13153 }
0x55b0   : > { %v14751_v49 = vpop.f32.mrb[62].mxu0  ;;  %v4608_v53 = vadd.f32 1.0, %v13154_v30 }
0x55b1   : > { %v14753_v48 = vpop.f32.mrb[63].mxu0 }
0x55b2   : > { %13155 = vrcp.f32 %v4608_v53 }
0x55b4   : > { %v14755_v10 = vpop.f32.mrb[64].mxu0 }
0x55b5   : > { %v14757_v21 = vpop.f32.mrb[65].mxu0 }
0x55b8   : > { %v14759_v46 = vpop.f32.mrb[66].mxu0 }
0x55b9   : > { %v14761_v47 = vpop.f32.mrb[67].mxu0 }
0x55bc   : > { %v14763_v50 = vpop.f32.mrb[68].mxu0  ;;  %v13156_v25 = vpop.eup %13155 }
0x55bd   : > { %v14765_v51 = vpop.f32.mrb[69].mxu0  ;;  %v4612_v56 = vmul.f32 %v13156_v25, %v14710_v29 }
0x5620   : > { %v4615_v54 = vpop.permute.xlu0 %4614 }
0x5621   : > { %v4617_v55 = vmul.f32 %v13156_v25, %v4615_v54 }
0x5623   : > { %4619 = vrot.lane.b32.xlu1 %v4617_v55, %s13752_s15 }
0x5695   : > { %v4620_v18 = vpop.permute.xlu1 %4619 }
0x5696   : > { %v14769_v57 = vadd.f32 %v4620_v18, %v4612_v56 }
0x5698   : > { %13157 = vtanh.f32 %v14769_v57 }
0x56a2   : > { %v13158_v58 = vpop.eup %13157 }
0x56a3   : > { %4625 = vrot.lane.b32.xlu0 %v13158_v58, %s13752_s15  ;;  %v4884_v58 = vadd.f32 %v14800_v23, %v14744_v41 }
0x5715   : > { %v4626_v59 = vpop.permute.xlu0 %4625 }
0x5716   : > { %v4628_v60 = vmul.f32 %v13156_v25, %v4626_v59 }
0x5718   : > { %4630 = vrot.lane.b32.xlu1 %v4628_v60, %s13753_s16 }
0x578a   : > { %v4631_v62 = vpop.permute.xlu1 %4630 }
0x578b   : > { %4633 = vst.msk [vmem:[#allocation2 + $0x70] sm:$0xff] %vm756_vm2, %v4631_v62  ;;  %12127 = vmatmul.mubr.msk.f32.vlgmr.msra.gmra.mrb[42].mxu1 %vm756_vm2, %v4631_v62 }
0x578c   : > { %12158 = vmatpush3.msra.mxu1 %v14776_v38  ;;  %12159 = vmatprep.mubr.msk.f32.mxu1 %vm13748_vm0, %v13747_v17 }
0x578d   : > { %12162 = vmatprep.subr.mxu1 %v13747_v17 }
0x578f   : > { %12160 = vmatmul.mubr.f32.vlgmr.msra.gmra.mrb[44].mxu1 %v13747_v17 }
0x5790   : > { %12163 = vmatpush3.msra.mxu1 %v14776_v38  ;;  %12164 = vmatprep.mubr.msk.f32.mxu1 %vm13748_vm0, %v13747_v17 }
0x5791   : > { %12167 = vmatprep.subr.mxu1 %v13747_v17 }
0x5792   : > { %v4750_v44 = vld [vmem:[#allocation2 + $0x70] sm:$0xff] }
0x5793   : > { %12154 = vmatprep.mubr.msk.f32.mxu0 %vm756_vm2, %v4750_v44 }
0x585e   : > { %v4702_v19 = vpop.f32.mrb[42].mxu1 }
0x585f   : > { %v14802_v29 = vadd.f32 %v4702_v19, %v3101_v0  ;;  %v12128_v1 = vpop.f32.mrb[43].mxu1 }
0x5862   : > { %v5022_v3 = vpop.f32.mrb[44].mxu1 }
0x5863   : > { %v5026_v28 = vadd.f32 %v5022_v3, %v4874_v2  ;;  %v12161_v4 = vpop.f32.mrb[45].mxu1 }
0x5865   : > { %13159 = vtanh.f32 %v5026_v28  ;;  %v11161_v8 = vmul.f32 -1.442695, %v5026_v28 }
0x5867   : > { %13161 = vpow2.f32 %v11161_v8 }
0x586f   : > { %v13160_v5 = vpop.eup %13159 }
0x5870   : > { %5036 = vrot.lane.b32.xlu0 %v13160_v5, %s13754_s18 }
0x5871   : > { %v13162_v6 = vpop.eup %13161 }
0x5872   : > { %v5030_v11 = vadd.f32 1.0, %v13162_v6 }
0x5874   : > { %13163 = vrcp.f32 %v5030_v11 }
0x587e   : > { %v13164_v12 = vpop.eup %13163 }
0x587f   : > { %v5034_v15 = vmul.f32 0.0, %v13164_v12 }
0x58e2   : > { %v5037_v16 = vpop.permute.xlu0 %5036 }
0x58e3   : > { %v5039_v13 = vmul.f32 %v13164_v12, %v5037_v16 }
0x58e5   : > { %5041 = vrot.lane.b32.xlu1 %v5039_v13, %s13755_s19 }
0x5957   : > { %v5042_v20 = vpop.permute.xlu1 %5041 }
0x5958   : > { %v5044_v31 = vadd.f32 %v5042_v20, %v5034_v15 }
0x595a   : > { %13165 = vtanh.f32 %v5044_v31 }
0x5964   : > { %v13166_v32 = vpop.eup %13165 }
0x5965   : > { %5047 = vrot.lane.b32.xlu0 %v13166_v32, %s13755_s19 }
0x59d7   : > { %v5048_v24 = vpop.permute.xlu0 %5047 }
0x59d8   : > { %v5050_v33 = vmul.f32 %v13164_v12, %v5048_v24  ;;  %v4889_v12 = vadd.f32 %v14742_v43, %v14800_v23 }
0x59da   : > { %5052 = vrot.lane.b32.xlu1 %v5050_v33, %s13756_s22 }
0x5a4c   : > { %v5053_v34 = vpop.permute.xlu1 %5052 }
0x5a4d   : > { %12165 = vmatmul.mubr.msk.f32.vlgmr.msra.gmra.mrb[46].mxu1 %vm4953_vm3, %v5053_v34 }
0x5a4e   : > { %12168 = vmatpush3.msra.mxu1 %v14776_v38  ;;  %12169 = vmatprep.mubr.msk.f32.mxu1 %vm13748_vm0, %v13747_v17 }
0x5a4f   : > { %12172 = vmatprep.subr.mxu1 %v13747_v17 }
0x5b20   : > { %v5122_v14 = vpop.f32.mrb[46].mxu1 }
0x5b21   : > { %v5126_v36 = vadd.f32 %v5122_v14, %v4879_v35  ;;  %v12166_v27 = vpop.f32.mrb[47].mxu1 }
0x5b23   : > { %13167 = vtanh.f32 %v5126_v36  ;;  %v11163_v37 = vmul.f32 -1.442695, %v5126_v36 }
0x5b25   : > { %13169 = vpow2.f32 %v11163_v37 }
0x5b2d   : > { %v13168_v26 = vpop.eup %13167 }
0x5b2e   : > { %5136 = vrot.lane.b32.xlu0 %v13168_v26, %s13754_s18 }
0x5b2f   : > { %v13170_v39 = vpop.eup %13169 }
0x5b30   : > { %v5130_v42 = vadd.f32 1.0, %v13170_v39 }
0x5b32   : > { %13171 = vrcp.f32 %v5130_v42  ;;  %v4894_v42 = vadd.f32 %v14800_v23, %v14748_v9 }
0x5b3c   : > { %v13172_v7 = vpop.eup %13171 }
0x5b3d   : > { %v5134_v53 = vmul.f32 %v13172_v7, %v5044_v31 }
0x5ba0   : > { %v5137_v52 = vpop.permute.xlu0 %5136 }
0x5ba1   : > { %v5139_v30 = vmul.f32 %v13172_v7, %v5137_v52 }
0x5ba3   : > { %5141 = vrot.lane.b32.xlu1 %v5139_v30, %s13755_s19 }
0x5c15   : > { %v5142_v25 = vpop.permute.xlu1 %5141 }
0x5c16   : > { %v5144_v40 = vadd.f32 %v5142_v25, %v5134_v53 }
0x5c18   : > { %13173 = vtanh.f32 %v5144_v40 }
0x5c22   : > { %v13174_v54 = vpop.eup %13173 }
0x5c23   : > { %5147 = vrot.lane.b32.xlu0 %v13174_v54, %s13755_s19 }
0x5c95   : > { %v5148_v55 = vpop.permute.xlu0 %5147 }
0x5c96   : > { %v5150_v56 = vmul.f32 %v13172_v7, %v5148_v55 }
0x5c98   : > { %5152 = vrot.lane.b32.xlu1 %v5150_v56, %s13756_s22 }
0x5d0a   : > { %v5153_v18 = vpop.permute.xlu1 %5152 }
0x5d0b   : > { %12170 = vmatmul.mubr.msk.f32.vlgmr.msra.gmra.mrb[48].mxu1 %vm4953_vm3, %v5153_v18 }
0x5d0c   : > { %12173 = vmatpush3.msra.mxu1 %v14776_v38  ;;  %12174 = vmatprep.mubr.msk.f32.mxu1 %vm13748_vm0, %v13747_v17 }
0x5d0d   : > { %12177 = vmatprep.subr.mxu1 %v13747_v17 }
0x5dde   : > { %v5222_v59 = vpop.f32.mrb[48].mxu1 }
0x5ddf   : > { %v5226_v60 = vadd.f32 %v5222_v59, %v4884_v58  ;;  %v12171_v62 = vpop.f32.mrb[49].mxu1 }
0x5de1   : > { %13175 = vtanh.f32 %v5226_v60  ;;  %v11165_v63 = vmul.f32 -1.442695, %v5226_v60 }
0x5de3   : > { %13177 = vpow2.f32 %v11165_v63 }
0x5deb   : > { %v13176_v44 = vpop.eup %13175 }
0x5dec   : > { %5236 = vrot.lane.b32.xlu0 %v13176_v44, %s13754_s18 }
0x5ded   : > { %v13178_v0 = vpop.eup %13177 }
0x5dee   : > { %v5230_v19 = vadd.f32 1.0, %v13178_v0  ;;  %v4899_v0 = vadd.f32 %v14746_v45, %v14800_v23 }
0x5df0   : > { %13179 = vrcp.f32 %v5230_v19 }
0x5dfa   : > { %v13180_v1 = vpop.eup %13179 }
0x5dfb   : > { %v5234_v28 = vmul.f32 %v13180_v1, %v5144_v40 }
0x5e5e   : > { %v5237_v2 = vpop.permute.xlu0 %5236 }
0x5e5f   : > { %v5239_v3 = vmul.f32 %v13180_v1, %v5237_v2 }
0x5e61   : > { %5241 = vrot.lane.b32.xlu1 %v5239_v3, %s13755_s19 }
0x5ed3   : > { %v5242_v4 = vpop.permute.xlu1 %5241 }
0x5ed4   : > { %v5244_v41 = vadd.f32 %v5242_v4, %v5234_v28 }
0x5ed6   : > { %13181 = vtanh.f32 %v5244_v41 }
0x5ee0   : > { %v13182_v5 = vpop.eup %13181 }
0x5ee1   : > { %5247 = vrot.lane.b32.xlu0 %v13182_v5, %s13755_s19 }
0x5f53   : > { %v5248_v8 = vpop.permute.xlu0 %5247 }
0x5f54   : > { %v5250_v6 = vmul.f32 %v13180_v1, %v5248_v8 }
0x5f56   : > { %5252 = vrot.lane.b32.xlu1 %v5250_v6, %s13756_s22 }
0x5fc8   : > { %v5253_v11 = vpop.permute.xlu1 %5252 }
0x5fc9   : > { %12175 = vmatmul.mubr.msk.f32.vlgmr.msra.gmra.mrb[50].mxu1 %vm4953_vm3, %v5253_v11 }
0x5fca   : > { %12178 = vmatpush3.msra.mxu1 %v14776_v38  ;;  %12179 = vmatprep.mubr.msk.f32.mxu1 %vm13748_vm0, %v13747_v17 }
0x5fcb   : > { %12182 = vmatprep.subr.mxu1 %v13747_v17 }
0x609c   : > { %v5322_v16 = vpop.f32.mrb[50].mxu1 }
0x609d   : > { %v5326_v13 = vadd.f32 %v5322_v16, %v4889_v12  ;;  %v12176_v15 = vpop.f32.mrb[51].mxu1 }
0x609f   : > { %13183 = vtanh.f32 %v5326_v13  ;;  %v11167_v31 = vmul.f32 -1.442695, %v5326_v13 }
0x60a1   : > { %13185 = vpow2.f32 %v11167_v31  ;;  %v4904_v31 = vadd.f32 %v14800_v23, %v14753_v48 }
0x60a9   : > { %v13184_v20 = vpop.eup %13183 }
0x60aa   : > { %5336 = vrot.lane.b32.xlu0 %v13184_v20, %s13754_s18 }
0x60ab   : > { %v13186_v32 = vpop.eup %13185 }
0x60ac   : > { %v5330_v24 = vadd.f32 1.0, %v13186_v32 }
0x60ae   : > { %13187 = vrcp.f32 %v5330_v24 }
0x60b8   : > { %v13188_v33 = vpop.eup %13187 }
0x60b9   : > { %v5334_v14 = vmul.f32 %v13188_v33, %v5244_v41 }
0x611c   : > { %v5337_v34 = vpop.permute.xlu0 %5336 }
0x611d   : > { %v5339_v35 = vmul.f32 %v13188_v33, %v5337_v34 }
0x611f   : > { %5341 = vrot.lane.b32.xlu1 %v5339_v35, %s13755_s19 }
0x6191   : > { %v5342_v36 = vpop.permute.xlu1 %5341 }
0x6192   : > { %v5344_v43 = vadd.f32 %v5342_v36, %v5334_v14 }
0x6194   : > { %13189 = vtanh.f32 %v5344_v43 }
0x619e   : > { %v13190_v27 = vpop.eup %13189 }
0x619f   : > { %5347 = vrot.lane.b32.xlu0 %v13190_v27, %s13755_s19 }
0x6211   : > { %v5348_v26 = vpop.permute.xlu0 %5347 }
0x6212   : > { %v5350_v37 = vmul.f32 %v13188_v33, %v5348_v26 }
0x6214   : > { %5352 = vrot.lane.b32.xlu1 %v5350_v37, %s13756_s22 }
0x6286   : > { %v5353_v39 = vpop.permute.xlu1 %5352 }
0x6287   : > { %12180 = vmatmul.mubr.msk.f32.vlgmr.msra.gmra.mrb[52].mxu1 %vm4953_vm3, %v5353_v39 }
0x6288   : > { %12183 = vmatpush3.msra.mxu1 %v14776_v38  ;;  %12184 = vmatprep.mubr.msk.f32.mxu1 %vm13748_vm0, %v13747_v17 }
0x6289   : > { %12187 = vmatprep.subr.mxu1 %v13747_v17 }
0x635a   : > { %v5422_v7 = vpop.f32.mrb[52].mxu1 }
0x635b   : > { %v5426_v52 = vadd.f32 %v5422_v7, %v4894_v42  ;;  %v12181_v30 = vpop.f32.mrb[53].mxu1 }
0x635d   : > { %13191 = vtanh.f32 %v5426_v52  ;;  %v11169_v25 = vmul.f32 -1.442695, %v5426_v52  ;;  %v11143_v52 = vmul.f32 -1.442695, %v14802_v29 }
0x635f   : > { %13193 = vpow2.f32 %v11169_v25 }
0x6367   : > { %v13192_v53 = vpop.eup %13191 }
0x6368   : > { %5436 = vrot.lane.b32.xlu0 %v13192_v53, %s13754_s18 }
0x6369   : > { %v13194_v40 = vpop.eup %13193 }
0x636a   : > { %v5430_v54 = vadd.f32 1.0, %v13194_v40 }
0x636c   : > { %13195 = vrcp.f32 %v5430_v54 }
0x6376   : > { %v13196_v55 = vpop.eup %13195 }
0x6377   : > { %v5434_v58 = vmul.f32 %v13196_v55, %v5344_v43 }
0x63da   : > { %v5437_v56 = vpop.permute.xlu0 %5436 }
0x63db   : > { %v5439_v18 = vmul.f32 %v13196_v55, %v5437_v56 }
0x63dd   : > { %5441 = vrot.lane.b32.xlu1 %v5439_v18, %s13755_s19 }
0x644f   : > { %v5442_v59 = vpop.permute.xlu1 %5441 }
0x6450   : > { %v5444_v9 = vadd.f32 %v5442_v59, %v5434_v58 }
0x6452   : > { %13197 = vtanh.f32 %v5444_v9 }
0x645c   : > { %v13198_v60 = vpop.eup %13197 }
0x645d   : > { %5447 = vrot.lane.b32.xlu0 %v13198_v60, %s13755_s19 }
0x64cf   : > { %v5448_v62 = vpop.permute.xlu0 %5447 }
0x64d0   : > { %v5450_v44 = vmul.f32 %v13196_v55, %v5448_v62 }
0x64d2   : > { %5452 = vrot.lane.b32.xlu1 %v5450_v44, %s13756_s22  ;;  %v4909_v44 = vadd.f32 %v14751_v49, %v14800_v23 }
0x6544   : > { %v5453_v63 = vpop.permute.xlu1 %5452 }
0x6545   : > { %12185 = vmatmul.mubr.msk.f32.vlgmr.msra.gmra.mrb[54].mxu1 %vm4953_vm3, %v5453_v63 }
0x6546   : > { %12188 = vmatpush3.msra.mxu1 %v14776_v38  ;;  %12189 = vmatprep.mubr.msk.f32.mxu1 %vm13748_vm0, %v13747_v17 }
0x6547   : > { %12192 = vmatprep.subr.mxu1 %v13747_v17 }
0x6618   : > { %v5522_v19 = vpop.f32.mrb[54].mxu1 }
0x6619   : > { %v5526_v1 = vadd.f32 %v5522_v19, %v4899_v0  ;;  %v12186_v2 = vpop.f32.mrb[55].mxu1 }
0x661b   : > { %13199 = vtanh.f32 %v5526_v1  ;;  %v11171_v28 = vmul.f32 -1.442695, %v5526_v1 }
0x661d   : > { %13201 = vpow2.f32 %v11171_v28 }
0x6625   : > { %v13200_v3 = vpop.eup %13199 }
0x6626   : > { %5536 = vrot.lane.b32.xlu0 %v13200_v3, %s13754_s18 }
0x6627   : > { %v13202_v4 = vpop.eup %13201 }
0x6628   : > { %v5530_v41 = vadd.f32 1.0, %v13202_v4 }
0x662a   : > { %13203 = vrcp.f32 %v5530_v41 }
0x6634   : > { %v13204_v5 = vpop.eup %13203 }
0x6635   : > { %v5534_v11 = vmul.f32 %v13204_v5, %v5444_v9 }
0x6698   : > { %v5537_v8 = vpop.permute.xlu0 %5536 }
0x6699   : > { %v5539_v6 = vmul.f32 %v13204_v5, %v5537_v8 }
0x669b   : > { %5541 = vrot.lane.b32.xlu1 %v5539_v6, %s13755_s19 }
0x670d   : > { %v5542_v12 = vpop.permute.xlu1 %5541 }
0x670e   : > { %v5544_v45 = vadd.f32 %v5542_v12, %v5534_v11 }
0x6710   : > { %13205 = vtanh.f32 %v5544_v45 }
0x671a   : > { %v13206_v16 = vpop.eup %13205 }
0x671b   : > { %5547 = vrot.lane.b32.xlu0 %v13206_v16, %s13755_s19 }
0x678d   : > { %v5548_v13 = vpop.permute.xlu0 %5547 }
0x678e   : > { %v5550_v15 = vmul.f32 %v13204_v5, %v5548_v13 }
0x6790   : > { %5552 = vrot.lane.b32.xlu1 %v5550_v15, %s13756_s22 }
0x6802   : > { %v5553_v20 = vpop.permute.xlu1 %5552 }
0x6803   : > { %12190 = vmatmul.mubr.msk.f32.vlgmr.msra.gmra.mrb[56].mxu1 %vm4953_vm3, %v5553_v20 }
0x6804   : > { %12193 = vmatpush3.msra.mxu1 %v14776_v38  ;;  %12194 = vmatprep.mubr.msk.f32.mxu1 %vm13748_vm0, %v13747_v17 }
0x6805   : > { %12202 = vmatprep.subr.mxu1 %v13747_v17 }
0x68d6   : > { %v5622_v32 = vpop.f32.mrb[56].mxu1 }
0x68d7   : > { %v5626_v24 = vadd.f32 %v5622_v32, %v4904_v31  ;;  %v12191_v33 = vpop.f32.mrb[57].mxu1  ;;  %v4914_v31 = vadd.f32 %v14800_v23, %v14757_v21 }
0x68d9   : > { %13207 = vtanh.f32 %v5626_v24  ;;  %v11173_v35 = vmul.f32 -1.442695, %v5626_v24 }
0x68db   : > { %13209 = vpow2.f32 %v11173_v35 }
0x68e3   : > { %v13208_v34 = vpop.eup %13207 }
0x68e4   : > { %5636 = vrot.lane.b32.xlu0 %v13208_v34, %s13754_s18 }
0x68e5   : > { %v13210_v14 = vpop.eup %13209 }
0x68e6   : > { %v5630_v36 = vadd.f32 1.0, %v13210_v14 }
0x68e8   : > { %13211 = vrcp.f32 %v5630_v36 }
0x68f2   : > { %v13212_v43 = vpop.eup %13211 }
0x68f3   : > { %v5634_v37 = vmul.f32 %v13212_v43, %v5544_v45 }
0x6956   : > { %v5637_v27 = vpop.permute.xlu0 %5636 }
0x6957   : > { %v5639_v26 = vmul.f32 %v13212_v43, %v5637_v27 }
0x6959   : > { %5641 = vrot.lane.b32.xlu1 %v5639_v26, %s13755_s19 }
0x69cb   : > { %v5642_v39 = vpop.permute.xlu1 %5641 }
0x69cc   : > { %v5644_v48 = vadd.f32 %v5642_v39, %v5634_v37 }
0x69ce   : > { %13213 = vtanh.f32 %v5644_v48 }
0x69cf   : > { %13215 = vtanh.f32 %v14802_v29 }
0x69d0   : > { %13217 = vpow2.f32 %v11143_v52 }
0x69d8   : > { %v13214_v42 = vpop.eup %13213 }
0x69d9   : > { %5647 = vrot.lane.b32.xlu0 %v13214_v42, %s13755_s19  ;;  %v13216_v7 = vpop.eup %13215 }
0x69da   : > { %v13218_v30 = vpop.eup %13217 }
0x69db   : > { %v4710_v53 = vadd.f32 1.0, %v13218_v30  ;;  %v4919_v30 = vadd.f32 %v14755_v10, %v14800_v23 }
0x69dd   : > { %4716 = vrot.lane.b32.xlu0 %v13216_v7, %s13751_s13  ;;  %13219 = vrcp.f32 %v4710_v53 }
0x69e7   : > { %v13220_v54 = vpop.eup %13219 }
0x69e8   : > { %v4714_v29 = vmul.f32 %v13220_v54, %v14769_v57 }
0x6a4b   : > { %v5648_v25 = vpop.permute.xlu0 %5647 }
0x6a4c   : > { %v5650_v40 = vmul.f32 %v13212_v43, %v5648_v25 }
0x6a4e   : > { %5652 = vrot.lane.b32.xlu1 %v5650_v40, %s13756_s22 }
0x6a4f   : > { %v4717_v55 = vpop.permute.xlu0 %4716 }
0x6a50   : > { %v4719_v56 = vmul.f32 %v13220_v54, %v4717_v55 }
0x6a52   : > { %4721 = vrot.lane.b32.xlu0 %v4719_v56, %s13752_s15 }
0x6ac0   : > { %v5653_v18 = vpop.permute.xlu1 %5652 }
0x6ac1   : > { %12195 = vmatmul.mubr.msk.f32.vlgmr.msra.gmra.mrb[58].mxu1 %vm4953_vm3, %v5653_v18 }
0x6ac2   : > { %12203 = vmatpush3.msra.mxu1 %v14776_v38  ;;  %12204 = vmatprep.mubr.msk.f32.mxu1 %vm13748_vm0, %v13747_v17 }
0x6ac3   : > { %12212 = vmatprep.subr.mxu1 %v13747_v17 }
0x6ac4   : > { %v4722_v58 = vpop.permute.xlu0 %4721 }
0x6ac5   : > { %v4724_v59 = vadd.f32 %v4722_v58, %v4714_v29 }
0x6ac7   : > { %13221 = vtanh.f32 %v4724_v59 }
0x6ad1   : > { %v13222_v9 = vpop.eup %13221 }
0x6ad2   : > { %4727 = vrot.lane.b32.xlu0 %v13222_v9, %s13752_s15 }
0x6b44   : > { %v4728_v60 = vpop.permute.xlu0 %4727 }
0x6b45   : > { %v4730_v62 = vmul.f32 %v13220_v54, %v4728_v60 }
0x6b47   : > { %4732 = vrot.lane.b32.xlu0 %v4730_v62, %s13753_s16 }
0x6b94   : > { %v5722_v63 = vpop.f32.mrb[58].mxu1 }
0x6b95   : > { %v5726_v0 = vadd.f32 %v5722_v63, %v4909_v44  ;;  %v12196_v19 = vpop.f32.mrb[59].mxu1 }
0x6b96   : > { %v4924_v19 = vadd.f32 %v14800_v23, %v14761_v47 }
0x6b97   : > { %13223 = vtanh.f32 %v5726_v0  ;;  %v11175_v3 = vmul.f32 -1.442695, %v5726_v0 }
0x6b99   : > { %13225 = vpow2.f32 %v11175_v3 }
0x6ba1   : > { %v13224_v57 = vpop.eup %13223 }
0x6ba2   : > { %5736 = vrot.lane.b32.xlu1 %v13224_v57, %s13754_s18 }
0x6ba3   : > { %v13226_v28 = vpop.eup %13225 }
0x6ba4   : > { %v5730_v49 = vadd.f32 1.0, %v13226_v28 }
0x6ba6   : > { %13227 = vrcp.f32 %v5730_v49 }
0x6bb0   : > { %v13228_v4 = vpop.eup %13227 }
0x6bb1   : > { %v5734_v8 = vmul.f32 %v13228_v4, %v5644_v48 }
0x6bb9   : > { %v4733_v1 = vpop.permute.xlu0 %4732 }
0x6bba   : > { %4735 = vst.msk [vmem:[#allocation2 + $0x78] sm:$0xff] %vm756_vm2, %v4733_v1 }
0x6bc1   : > { %v4751_v2 = vld [vmem:[#allocation2 + $0x78] sm:$0xff] }
0x6bc2   : > { %12155 = vmatmul.mubr.msk.f32.gmra.mrb[70].mxu0 %vm756_vm2, %v4751_v2 }
0x6bc3   : > { %12199 = vmatprep.mubr.msk.f32.mxu0 %vm13748_vm0, %v13747_v17 }
0x6c14   : > { %v5737_v41 = vpop.permute.xlu1 %5736 }
0x6c15   : > { %v5739_v5 = vmul.f32 %v13228_v4, %v5737_v41 }
0x6c17   : > { %5741 = vrot.lane.b32.xlu1 %v5739_v5, %s13755_s19 }
0x6c89   : > { %v5742_v6 = vpop.permute.xlu1 %5741 }
0x6c8a   : > { %v5744_v11 = vadd.f32 %v5742_v6, %v5734_v8 }
0x6c8c   : > { %13229 = vtanh.f32 %v5744_v11 }
0x6c95   : > { %v14895_v12 = vpop.f32.mrb[70].mxu0 }
0x6c96   : > { %v13230_v45 = vpop.eup %13229  ;;  %v14897_v16 = vpop.f32.mrb[71].mxu0 }
0x6c97   : > { %5747 = vrot.lane.b32.xlu1 %v13230_v45, %s13755_s19 }
0x6d09   : > { %v5748_v13 = vpop.permute.xlu1 %5747 }
0x6d0a   : > { %v5750_v15 = vmul.f32 %v13228_v4, %v5748_v13 }
0x6d0c   : > { %5752 = vrot.lane.b32.xlu1 %v5750_v15, %s13756_s22 }
0x6d7e   : > { %v5753_v20 = vpop.permute.xlu1 %5752 }
0x6d7f   : > { %12200 = vmatmul.mubr.msk.f32.vlgmr.msra.gmra.mrb[72].mxu0 %vm4953_vm3, %v5753_v20 }
0x6d80   : > { %12208 = vmatpush3.msra.mxu0 %v14776_v38  ;;  %12209 = vmatprep.mubr.msk.f32.mxu0 %vm13748_vm0, %v13747_v17 }
0x6d81   : > { %12217 = vmatprep.subr.mxu0 %v13747_v17 }
0x6e52   : > { %v5822_v32 = vpop.f32.mrb[72].mxu0 }
0x6e53   : > { %v5826_v24 = vadd.f32 %v5822_v32, %v4914_v31  ;;  %v12201_v33 = vpop.f32.mrb[73].mxu0  ;;  %v4929_v31 = vadd.f32 %v14759_v46, %v14800_v23 }
0x6e55   : > { %13231 = vtanh.f32 %v5826_v24  ;;  %v11177_v35 = vmul.f32 -1.442695, %v5826_v24 }
0x6e57   : > { %13233 = vpow2.f32 %v11177_v35 }
0x6e5f   : > { %v13232_v34 = vpop.eup %13231 }
0x6e60   : > { %5836 = vrot.lane.b32.xlu0 %v13232_v34, %s13754_s18 }
0x6e61   : > { %v13234_v14 = vpop.eup %13233 }
0x6e62   : > { %v5830_v36 = vadd.f32 1.0, %v13234_v14 }
0x6e64   : > { %13235 = vrcp.f32 %v5830_v36 }
0x6e6e   : > { %v13236_v43 = vpop.eup %13235 }
0x6e6f   : > { %v5834_v37 = vmul.f32 %v13236_v43, %v5744_v11 }
0x6ed2   : > { %v5837_v27 = vpop.permute.xlu0 %5836 }
0x6ed3   : > { %v5839_v26 = vmul.f32 %v13236_v43, %v5837_v27 }
0x6ed5   : > { %5841 = vrot.lane.b32.xlu1 %v5839_v26, %s13755_s19 }
0x6f47   : > { %v5842_v39 = vpop.permute.xlu1 %5841 }
0x6f48   : > { %v5844_v21 = vadd.f32 %v5842_v39, %v5834_v37 }
0x6f4a   : > { %13237 = vtanh.f32 %v5844_v21 }
0x6f54   : > { %v13238_v48 = vpop.eup %13237 }
0x6f55   : > { %5847 = vrot.lane.b32.xlu0 %v13238_v48, %s13755_s19 }
0x6fc7   : > { %v5848_v42 = vpop.permute.xlu0 %5847 }
0x6fc8   : > { %v5850_v7 = vmul.f32 %v13236_v43, %v5848_v42 }
0x6fca   : > { %5852 = vrot.lane.b32.xlu1 %v5850_v7, %s13756_s22 }
0x703c   : > { %v5853_v52 = vpop.permute.xlu1 %5852 }
0x703d   : > { %12205 = vmatmul.mubr.msk.f32.vlgmr.msra.gmra.mrb[60].mxu1 %vm4953_vm3, %v5853_v52  ;;  %v4934_v52 = vadd.f32 %v14800_v23, %v14765_v51 }
0x703e   : > { %12213 = vmatpush3.msra.mxu1 %v14776_v38  ;;  %12214 = vmatprep.mubr.msk.f32.mxu1 %vm13748_vm0, %v13747_v17 }
0x703f   : > { %12222 = vmatprep.subr.mxu1 %v13747_v17 }
0x7110   : > { %v5922_v53 = vpop.f32.mrb[60].mxu1 }
0x7111   : > { %v5926_v25 = vadd.f32 %v5922_v53, %v4919_v30  ;;  %v12206_v40 = vpop.f32.mrb[61].mxu1 }
0x7113   : > { %13239 = vtanh.f32 %v5926_v25  ;;  %v11179_v55 = vmul.f32 -1.442695, %v5926_v25 }
0x7115   : > { %13241 = vpow2.f32 %v11179_v55 }
0x711d   : > { %v13240_v54 = vpop.eup %13239 }
0x711e   : > { %5936 = vrot.lane.b32.xlu0 %v13240_v54, %s13754_s18 }
0x711f   : > { %v13242_v56 = vpop.eup %13241 }
0x7120   : > { %v5930_v18 = vadd.f32 1.0, %v13242_v56 }
0x7122   : > { %13243 = vrcp.f32 %v5930_v18 }
0x712c   : > { %v13244_v29 = vpop.eup %13243 }
0x712d   : > { %v5934_v9 = vmul.f32 %v13244_v29, %v5844_v21 }
0x7190   : > { %v5937_v58 = vpop.permute.xlu0 %5936 }
0x7191   : > { %v5939_v59 = vmul.f32 %v13244_v29, %v5937_v58 }
0x7193   : > { %5941 = vrot.lane.b32.xlu1 %v5939_v59, %s13755_s19 }
0x7205   : > { %v5942_v60 = vpop.permute.xlu1 %5941 }
0x7206   : > { %v5944_v10 = vadd.f32 %v5942_v60, %v5934_v9 }
0x7208   : > { %13245 = vtanh.f32 %v5944_v10 }
0x7212   : > { %v13246_v62 = vpop.eup %13245 }
0x7213   : > { %5947 = vrot.lane.b32.xlu0 %v13246_v62, %s13755_s19 }
0x7285   : > { %v5948_v44 = vpop.permute.xlu0 %5947 }
0x7286   : > { %v5950_v63 = vmul.f32 %v13244_v29, %v5948_v44 }
0x7288   : > { %5952 = vrot.lane.b32.xlu1 %v5950_v63, %s13756_s22  ;;  %v4939_v63 = vadd.f32 %v14763_v50, %v14800_v23 }
0x72fa   : > { %v5953_v0 = vpop.permute.xlu1 %5952 }
0x72fb   : > { %12210 = vmatmul.mubr.msk.f32.vlgmr.msra.gmra.mrb[74].mxu0 %vm4953_vm3, %v5953_v0 }
0x72fc   : > { %12218 = vmatpush3.msra.mxu0 %v14776_v38  ;;  %12219 = vmatprep.mubr.msk.f32.mxu0 %vm13748_vm0, %v13747_v17 }
0x72fd   : > { %12227 = vmatprep.subr.mxu0 %v13747_v17 }
0x73ce   : > { %v6022_v57 = vpop.f32.mrb[74].mxu0 }
0x73cf   : > { %v6026_v1 = vadd.f32 %v6022_v57, %v4924_v19  ;;  %v12211_v2 = vpop.f32.mrb[75].mxu0 }
0x73d1   : > { %13247 = vtanh.f32 %v6026_v1  ;;  %v11181_v28 = vmul.f32 -1.442695, %v6026_v1 }
0x73d3   : > { %13249 = vpow2.f32 %v11181_v28 }
0x73db   : > { %v13248_v3 = vpop.eup %13247 }
0x73dc   : > { %6036 = vrot.lane.b32.xlu0 %v13248_v3, %s13754_s18 }
0x73dd   : > { %v13250_v49 = vpop.eup %13249 }
0x73de   : > { %v6030_v4 = vadd.f32 1.0, %v13250_v49 }
0x73e0   : > { %13251 = vrcp.f32 %v6030_v4 }
0x73ea   : > { %v13252_v41 = vpop.eup %13251 }
0x73eb   : > { %v6034_v6 = vmul.f32 %v13252_v41, %v5944_v10 }
0x744e   : > { %v6037_v5 = vpop.permute.xlu0 %6036 }
0x744f   : > { %v6039_v8 = vmul.f32 %v13252_v41, %v6037_v5 }
0x7451   : > { %6041 = vrot.lane.b32.xlu1 %v6039_v8, %s13755_s19 }
0x74c3   : > { %v6042_v11 = vpop.permute.xlu1 %6041 }
0x74c4   : > { %v6044_v47 = vadd.f32 %v6042_v11, %v6034_v6 }
0x74c6   : > { %13253 = vtanh.f32 %v6044_v47 }
0x74d0   : > { %v13254_v45 = vpop.eup %13253 }
0x74d1   : > { %6047 = vrot.lane.b32.xlu0 %v13254_v45, %s13755_s19  ;;  %v4944_v45 = vadd.f32 %v14800_v23, %v14897_v16 }
0x7543   : > { %v6048_v13 = vpop.permute.xlu0 %6047 }
0x7544   : > { %v6050_v15 = vmul.f32 %v13252_v41, %v6048_v13 }
0x7546   : > { %6052 = vrot.lane.b32.xlu1 %v6050_v15, %s13756_s22 }
0x75b8   : > { %v6053_v20 = vpop.permute.xlu1 %6052 }
0x75b9   : > { %12215 = vmatmul.mubr.msk.f32.vlgmr.msra.gmra.mrb[62].mxu1 %vm4953_vm3, %v6053_v20 }
0x75ba   : > { %12223 = vmatpush3.msra.mxu1 %v14776_v38  ;;  %12224 = vmatprep.mubr.msk.f32.mxu1 %vm13748_vm0, %v13747_v17 }
0x75bb   : > { %12232 = vmatprep.subr.mxu1 %v13747_v17 }
0x768c   : > { %v6122_v32 = vpop.f32.mrb[62].mxu1 }
0x768d   : > { %v6126_v24 = vadd.f32 %v6122_v32, %v4929_v31  ;;  %v12216_v33 = vpop.f32.mrb[63].mxu1 }
0x768f   : > { %13255 = vtanh.f32 %v6126_v24  ;;  %v11183_v35 = vmul.f32 -1.442695, %v6126_v24 }
0x7691   : > { %13257 = vpow2.f32 %v11183_v35 }
0x7699   : > { %v13256_v34 = vpop.eup %13255 }
0x769a   : > { %6136 = vrot.lane.b32.xlu0 %v13256_v34, %s13754_s18 }
0x769b   : > { %v13258_v14 = vpop.eup %13257 }
0x769c   : > { %v6130_v36 = vadd.f32 1.0, %v13258_v14 }
0x769e   : > { %13259 = vrcp.f32 %v6130_v36 }
0x76a8   : > { %v13260_v43 = vpop.eup %13259 }
0x76a9   : > { %v6134_v37 = vmul.f32 %v13260_v43, %v6044_v47 }
0x770c   : > { %v6137_v27 = vpop.permute.xlu0 %6136 }
0x770d   : > { %v6139_v26 = vmul.f32 %v13260_v43, %v6137_v27 }
0x770f   : > { %6141 = vrot.lane.b32.xlu1 %v6139_v26, %s13755_s19 }
0x7781   : > { %v6142_v39 = vpop.permute.xlu1 %6141 }
0x7782   : > { %v6144_v46 = vadd.f32 %v6142_v39, %v6134_v37 }
0x7784   : > { %13261 = vtanh.f32 %v6144_v46 }
0x778e   : > { %v13262_v21 = vpop.eup %13261 }
0x778f   : > { %6147 = vrot.lane.b32.xlu0 %v13262_v21, %s13755_s19 }
0x7801   : > { %v6148_v48 = vpop.permute.xlu0 %6147 }
0x7802   : > { %v6150_v42 = vmul.f32 %v13260_v43, %v6148_v48 }
0x7804   : > { %6152 = vrot.lane.b32.xlu1 %v6150_v42, %s13756_s22 }
0x7876   : > { %v6153_v7 = vpop.permute.xlu1 %6152 }
0x7877   : > { %12220 = vmatmul.mubr.msk.f32.vlgmr.msra.gmra.mrb[76].mxu0 %vm4953_vm3, %v6153_v7 }
0x7878   : > { %12228 = vmatpush3.msra.mxu0 %v14776_v38  ;;  %12229 = vmatprep.mubr.msk.f32.mxu0 %vm13748_vm0, %v13747_v17 }
0x7879   : > { %12237 = vmatprep.subr.mxu0 %v13747_v17 }
0x794a   : > { %v6222_v30 = vpop.f32.mrb[76].mxu0 }
0x794b   : > { %v6226_v53 = vadd.f32 %v6222_v30, %v4934_v52  ;;  %v12221_v25 = vpop.f32.mrb[77].mxu0 }
0x794d   : > { %13263 = vtanh.f32 %v6226_v53  ;;  %v11185_v54 = vmul.f32 -1.442695, %v6226_v53 }
0x794f   : > { %13265 = vpow2.f32 %v11185_v54 }
0x7957   : > { %v13264_v40 = vpop.eup %13263 }
0x7958   : > { %6236 = vrot.lane.b32.xlu0 %v13264_v40, %s13754_s18 }
0x7959   : > { %v13266_v55 = vpop.eup %13265 }
0x795a   : > { %v6230_v56 = vadd.f32 1.0, %v13266_v55 }
0x795c   : > { %13267 = vrcp.f32 %v6230_v56 }
0x7966   : > { %v13268_v18 = vpop.eup %13267 }
0x7967   : > { %v6234_v59 = vmul.f32 %v13268_v18, %v6144_v46  ;;  %v4949_v46 = vadd.f32 %v14895_v12, %v14800_v23  ;;  %v6556_v12 = vld [vmem:[%s15721_s5 + $0x68] sm:$0xff] }
0x79ca   : > { %v6237_v29 = vpop.permute.xlu0 %6236 }
0x79cb   : > { %v6239_v58 = vmul.f32 %v13268_v18, %v6237_v29  ;;  %v6635_v29 = vld [vmem:[%s15721_s5 + $0x78] sm:$0xff] }
0x79cd   : > { %6241 = vrot.lane.b32.xlu1 %v6239_v58, %s13755_s19 }
0x7a3f   : > { %v6242_v9 = vpop.permute.xlu1 %6241 }
0x7a40   : > { %v6244_v51 = vadd.f32 %v6242_v9, %v6234_v59 }
0x7a42   : > { %13269 = vtanh.f32 %v6244_v51 }
0x7a4c   : > { %v13270_v60 = vpop.eup %13269 }
0x7a4d   : > { %6247 = vrot.lane.b32.xlu0 %v13270_v60, %s13755_s19 }
0x7abf   : > { %v6248_v10 = vpop.permute.xlu0 %6247 }
0x7ac0   : > { %v6250_v62 = vmul.f32 %v13268_v18, %v6248_v10  ;;  %v6634_v18 = vld [vmem:[%s15721_s5 + $0x70] sm:$0xff] }
0x7ac1   : > { %v14992_v58 = vpack.c.bf16 %v6635_v29, %v6634_v18 }
0x7ac2   : > { %6252 = vrot.lane.b32.xlu1 %v6250_v62, %s13756_s22 }
0x7b34   : > { %v6253_v44 = vpop.permute.xlu1 %6252 }
0x7b35   : > { %12225 = vmatmul.mubr.msk.f32.vlgmr.msra.gmra.mrb[64].mxu1 %vm4953_vm3, %v6253_v44  ;;  %v11192_v44 = vld [vmem:[%s15721_s5 + $0x80] ss:$0 sm:$0xff] }
0x7b36   : > { %12233 = vmatpush3.msra.mxu1 %v14776_v38  ;;  %12234 = vmatprep.mubr.msk.f32.mxu1 %vm13748_vm0, %v13747_v17 }
0x7b37   : > { %12725 = vmatprep.subr.bf16.mxu1 %v13749_v22 }
0x7c08   : > { %v6322_v0 = vpop.f32.mrb[64].mxu1 }
0x7c09   : > { %v6326_v19 = vadd.f32 %v6322_v0, %v4939_v63  ;;  %v12226_v57 = vpop.f32.mrb[65].mxu1 }
0x7c0b   : > { %13271 = vtanh.f32 %v6326_v19  ;;  %v11187_v2 = vmul.f32 -1.442695, %v6326_v19 }
0x7c0d   : > { %13273 = vpow2.f32 %v11187_v2 }
0x7c15   : > { %v13272_v1 = vpop.eup %13271 }
0x7c16   : > { %6336 = vrot.lane.b32.xlu0 %v13272_v1, %s13754_s18 }
0x7c17   : > { %v13274_v3 = vpop.eup %13273 }
0x7c18   : > { %v6330_v28 = vadd.f32 1.0, %v13274_v3 }
0x7c1a   : > { %13275 = vrcp.f32 %v6330_v28 }
0x7c24   : > { %v13276_v38 = vpop.eup %13275 }
0x7c25   : > { %v6334_v41 = vmul.f32 %v13276_v38, %v6244_v51 }
0x7c88   : > { %v6337_v49 = vpop.permute.xlu0 %6336 }
0x7c89   : > { %v6339_v4 = vmul.f32 %v13276_v38, %v6337_v49 }
0x7c8b   : > { %6341 = vrot.lane.b32.xlu1 %v6339_v4, %s13755_s19 }
0x7cfd   : > { %v6342_v5 = vpop.permute.xlu1 %6341 }
0x7cfe   : > { %v6344_v50 = vadd.f32 %v6342_v5, %v6334_v41 }
0x7d00   : > { %13277 = vtanh.f32 %v6344_v50 }
0x7d0a   : > { %v13278_v8 = vpop.eup %13277 }
0x7d0b   : > { %6347 = vrot.lane.b32.xlu0 %v13278_v8, %s13755_s19 }
0x7d7d   : > { %v6348_v6 = vpop.permute.xlu0 %6347 }
0x7d7e   : > { %v6350_v11 = vmul.f32 %v13276_v38, %v6348_v6 }
0x7d80   : > { %6352 = vrot.lane.b32.xlu1 %v6350_v11, %s13756_s22 }
0x7df2   : > { %v6353_v47 = vpop.permute.xlu1 %6352 }
0x7df3   : > { %12230 = vmatmul.mubr.msk.f32.vlgmr.msra.gmra.mrb[78].mxu0 %vm4953_vm3, %v6353_v47 }
0x7df4   : > { %12239 = vmatprep.mubr.msk.f32.mxu0 %vm13748_vm0, %v13747_v17  ;;  %12238 = vmatpush3.msra.mxu0 %v6556_v12 }
0x7df5   : > { %12728 = vmatprep.subr.bf16.mxu0 %v13749_v22 }
0x7ec6   : > { %v6422_v13 = vpop.f32.mrb[78].mxu0 }
0x7ec7   : > { %v6426_v15 = vadd.f32 %v6422_v13, %v4944_v45  ;;  %v12231_v20 = vpop.f32.mrb[79].mxu0 }
0x7ec9   : > { %13279 = vtanh.f32 %v6426_v15  ;;  %v11189_v32 = vmul.f32 -1.442695, %v6426_v15 }
0x7ecb   : > { %13281 = vpow2.f32 %v11189_v32 }
0x7ed3   : > { %v13280_v31 = vpop.eup %13279 }
0x7ed4   : > { %6436 = vrot.lane.b32.xlu0 %v13280_v31, %s13754_s18 }
0x7ed5   : > { %v13282_v24 = vpop.eup %13281 }
0x7ed6   : > { %v6430_v33 = vadd.f32 1.0, %v13282_v24 }
0x7ed8   : > { %13283 = vrcp.f32 %v6430_v33 }
0x7ee2   : > { %v13284_v34 = vpop.eup %13283 }
0x7ee3   : > { %v6434_v36 = vmul.f32 %v13284_v34, %v6344_v50 }
0x7f46   : > { %v6437_v35 = vpop.permute.xlu0 %6436 }
0x7f47   : > { %v6439_v14 = vmul.f32 %v13284_v34, %v6437_v35 }
0x7f49   : > { %6441 = vrot.lane.b32.xlu1 %v6439_v14, %s13755_s19 }
0x7fbb   : > { %v6442_v43 = vpop.permute.xlu1 %6441 }
0x7fbc   : > { %v6444_v16 = vadd.f32 %v6442_v43, %v6434_v36 }
0x7fbe   : > { %13285 = vtanh.f32 %v6444_v16 }
0x7fc8   : > { %v13286_v27 = vpop.eup %13285 }
0x7fc9   : > { %6447 = vrot.lane.b32.xlu0 %v13286_v27, %s13755_s19 }
0x803b   : > { %v6448_v26 = vpop.permute.xlu0 %6447 }
0x803c   : > { %v6450_v37 = vmul.f32 %v13284_v34, %v6448_v26 }
0x803e   : > { %6452 = vrot.lane.b32.xlu1 %v6450_v37, %s13756_s22 }
0x80b0   : > { %v6453_v39 = vpop.permute.xlu1 %6452 }
0x80b1   : > { %12235 = vmatmul.mubr.msk.f32.vlgmr.msra.gmra.mrb[66].mxu1 %vm4953_vm3, %v6453_v39 }
0x80b2   : > { %12246 = vmatprep.mubr.msk.f32.mxu1 %vm13748_vm0, %v13747_v17  ;;  %12727 = vmatpush3.bf16.msra.mxu1 %v14992_v58 }
0x80b3   : > { %12731 = vmatprep.subr.bf16.mxu1 %v13749_v22 }
0x80b5   : > { %12247 = vmatmul.mubr.f32.vlgmr.msra.gmra.mrb[68].mxu1 %v13747_v17 }
0x80b6   : > { %12733 = vmatpush3.bf16.msra.mxu1 %v14992_v58  ;;  %12260 = vmatprep.mubr.msk.f32.mxu1 %vm13748_vm0, %v13747_v17 }
0x80b7   : > { %12737 = vmatprep.subr.bf16.mxu1 %v13749_v22 }
0x8184   : > { %v6522_v21 = vpop.f32.mrb[66].mxu1 }
0x8185   : > { %v6526_v48 = vadd.f32 %v6522_v21, %v4949_v46  ;;  %v12236_v42 = vpop.f32.mrb[67].mxu1 }
0x8187   : > { %13287 = vtanh.f32 %v6526_v48  ;;  %v11191_v52 = vmul.f32 -1.442695, %v6526_v48 }
0x8188   : > { %v6702_v10 = vpop.f32.mrb[68].mxu1 }
0x8189   : > { %13289 = vpow2.f32 %v11191_v52  ;;  %v12248_v62 = vpop.f32.mrb[69].mxu1 }
0x8191   : > { %v13288_v7 = vpop.eup %13287 }
0x8192   : > { %6536 = vrot.lane.b32.xlu0 %v13288_v7, %s13754_s18  ;;  %s13770_s18 = smov 10  }
0x8193   : > { %v13290_v30 = vpop.eup %13289 }
0x8194   : > { %v6530_v53 = vadd.f32 1.0, %v13290_v30 }
0x8196   : > { %13291 = vrcp.f32 %v6530_v53 }
0x81a0   : > { %v13292_v25 = vpop.eup %13291 }
0x81a1   : > { %v6534_v55 = vmul.f32 %v13292_v25, %v6444_v16 }
0x8204   : > { %v6537_v40 = vpop.permute.xlu0 %6536 }
0x8205   : > { %v6539_v54 = vmul.f32 %v13292_v25, %v6537_v40 }
0x8207   : > { %6541 = vrot.lane.b32.xlu1 %v6539_v54, %s13755_s19 }
0x8279   : > { %v6542_v56 = vpop.permute.xlu1 %6541 }
0x827a   : > { %v6544_v23 = vadd.f32 %v6542_v56, %v6534_v55 }
0x827c   : > { %13293 = vtanh.f32 %v6544_v23 }
0x8286   : > { %v13294_v59 = vpop.eup %13293 }
0x8287   : > { %6547 = vrot.lane.b32.xlu0 %v13294_v59, %s13755_s19 }
0x82f9   : > { %v6548_v9 = vpop.permute.xlu0 %6547 }
0x82fa   : > { %v6550_v51 = vmul.f32 %v13292_v25, %v6548_v9 }
0x82fc   : > { %6552 = vrot.lane.b32.xlu1 %v6550_v51, %s13756_s22  ;;  %s13766_s22 = smov 127  }
0x836e   : > { %v6553_v60 = vpop.permute.xlu1 %6552 }
0x836f   : > { %6555 = vst.msk [vmem:[%s398_s9] sm:$0xff] %vm4953_vm3, %v6553_v60  ;;  %12240 = vmatmul.mubr.msk.f32.vlgmr.msra.gmra.mrb[80].mxu0 %vm4953_vm3, %v6553_v60  ;;  %s13765_s9 = smov 11  }
0x8370   : > { %12730 = vmatpush3.bf16.msra.mxu0 %v14992_v58  ;;  %12253 = vmatprep.mubr.msk.f32.mxu0 %vm13748_vm0, %v13747_v17 }
0x8371   : > { %12734 = vmatprep.subr.bf16.mxu0 %v13749_v22 }
0x8442   : > { %v6630_v63 = vpop.f32.mrb[80].mxu0 }
0x8443   : > { %v15018_v0 = vadd.f32 %v11192_v44, %v6630_v63  ;;  %v12241_v19 = vpop.f32.mrb[81].mxu0 }
0x8445   : > { %v6706_v57 = vadd.f32 %v6702_v10, %v15018_v0 }
0x8447   : > { %13295 = vtanh.f32 %v6706_v57  ;;  %v11194_v2 = vmul.f32 -1.442695, %v6706_v57 }
0x8449   : > { %13297 = vpow2.f32 %v11194_v2 }
0x8451   : > { %v13296_v1 = vpop.eup %13295 }
0x8452   : > { %6716 = vrot.lane.b32.xlu0 %v13296_v1, %s13751_s13 }
0x8453   : > { %v13298_v3 = vpop.eup %13297 }
0x8454   : > { %v6710_v28 = vadd.f32 1.0, %v13298_v3 }
0x8456   : > { %13299 = vrcp.f32 %v6710_v28 }
0x8460   : > { %v13300_v38 = vpop.eup %13299 }
0x8461   : > { %v6714_v41 = vmul.f32 0.0, %v13300_v38 }
0x84c4   : > { %v6717_v49 = vpop.permute.xlu0 %6716 }
0x84c5   : > { %v6719_v4 = vmul.f32 %v13300_v38, %v6717_v49 }
0x84c7   : > { %6721 = vrot.lane.b32.xlu1 %v6719_v4, %s13752_s15 }
0x8539   : > { %v6722_v5 = vpop.permute.xlu1 %6721 }
0x853a   : > { %v6724_v50 = vadd.f32 %v6722_v5, %v6714_v41 }
0x853c   : > { %13301 = vtanh.f32 %v6724_v50 }
0x8546   : > { %v13302_v8 = vpop.eup %13301 }
0x8547   : > { %6727 = vrot.lane.b32.xlu0 %v13302_v8, %s13752_s15 }
0x85b9   : > { %v6728_v6 = vpop.permute.xlu0 %6727 }
0x85ba   : > { %v6730_v11 = vmul.f32 %v13300_v38, %v6728_v6 }
0x85bc   : > { %6732 = vrot.lane.b32.xlu1 %v6730_v11, %s13753_s16 }
0x862e   : > { %v6733_v47 = vpop.permute.xlu1 %6732 }
0x862f   : > { %6735 = vst.msk [vmem:[#allocation2] sm:$0xff] %vm756_vm2, %v6733_v47  ;;  %12254 = vmatmul.mubr.msk.f32.vlgmr.msra.gmra.mrb[82].mxu0 %vm756_vm2, %v6733_v47 }
0x8630   : > { %12736 = vmatpush3.bf16.msra.mxu0 %v14992_v58  ;;  %12267 = vmatprep.mubr.msk.f32.mxu0 %vm13748_vm0, %v13747_v17 }
0x8631   : > { %12740 = vmatprep.subr.bf16.mxu0 %v13749_v22 }
0x8702   : > { %v6804_v45 = vpop.f32.mrb[82].mxu0 }
0x8703   : > { %v6808_v13 = vadd.f32 %v6804_v45, %v15018_v0  ;;  %v12255_v15 = vpop.f32.mrb[83].mxu0 }
0x8705   : > { %13303 = vtanh.f32 %v6808_v13  ;;  %v11196_v31 = vmul.f32 -1.442695, %v6808_v13 }
0x8707   : > { %13305 = vpow2.f32 %v11196_v31 }
0x870f   : > { %v13304_v20 = vpop.eup %13303 }
0x8710   : > { %6818 = vrot.lane.b32.xlu0 %v13304_v20, %s13751_s13 }
0x8711   : > { %v13306_v32 = vpop.eup %13305 }
0x8712   : > { %v6812_v24 = vadd.f32 1.0, %v13306_v32 }
0x8714   : > { %13307 = vrcp.f32 %v6812_v24 }
0x871e   : > { %v13308_v33 = vpop.eup %13307 }
0x871f   : > { %v6816_v14 = vmul.f32 %v13308_v33, %v6724_v50 }
0x8782   : > { %v6819_v34 = vpop.permute.xlu0 %6818 }
0x8783   : > { %v6821_v35 = vmul.f32 %v13308_v33, %v6819_v34 }
0x8785   : > { %6823 = vrot.lane.b32.xlu1 %v6821_v35, %s13752_s15 }
0x87f7   : > { %v6824_v36 = vpop.permute.xlu1 %6823 }
0x87f8   : > { %v6826_v43 = vadd.f32 %v6824_v36, %v6816_v14 }
0x87fa   : > { %13309 = vtanh.f32 %v6826_v43 }
0x8804   : > { %v13310_v16 = vpop.eup %13309 }
0x8805   : > { %6829 = vrot.lane.b32.xlu0 %v13310_v16, %s13752_s15 }
0x8877   : > { %v6830_v27 = vpop.permute.xlu0 %6829 }
0x8878   : > { %v6832_v26 = vmul.f32 %v13308_v33, %v6830_v27 }
0x887a   : > { %6834 = vrot.lane.b32.xlu1 %v6832_v26, %s13753_s16 }
0x88ec   : > { %v6835_v37 = vpop.permute.xlu1 %6834 }
0x88ed   : > { %6837 = vst.msk [vmem:[#allocation2 + $0x8] sm:$0xff] %vm756_vm2, %v6835_v37  ;;  %12261 = vmatmul.mubr.msk.f32.vlgmr.msra.gmra.mrb[70].mxu1 %vm756_vm2, %v6835_v37 }
0x88ee   : > { %12739 = vmatpush3.bf16.msra.mxu1 %v14992_v58  ;;  %12274 = vmatprep.mubr.msk.f32.mxu1 %vm13748_vm0, %v13747_v17 }
0x88ef   : > { %12743 = vmatprep.subr.bf16.mxu1 %v13749_v22 }
0x89c0   : > { %v6906_v39 = vpop.f32.mrb[70].mxu1 }
0x89c1   : > { %v6910_v46 = vadd.f32 %v6906_v39, %v15018_v0  ;;  %v12262_v21 = vpop.f32.mrb[71].mxu1 }
0x89c3   : > { %13311 = vtanh.f32 %v6910_v46  ;;  %v11198_v42 = vmul.f32 -1.442695, %v6910_v46 }
0x89c5   : > { %13313 = vpow2.f32 %v11198_v42 }
0x89cd   : > { %v13312_v48 = vpop.eup %13311 }
0x89ce   : > { %6920 = vrot.lane.b32.xlu0 %v13312_v48, %s13751_s13 }
0x89cf   : > { %v13314_v7 = vpop.eup %13313 }
0x89d0   : > { %v6914_v52 = vadd.f32 1.0, %v13314_v7 }
0x89d2   : > { %13315 = vrcp.f32 %v6914_v52 }
0x89dc   : > { %v13316_v30 = vpop.eup %13315 }
0x89dd   : > { %v6918_v40 = vmul.f32 %v13316_v30, %v6826_v43 }
0x8a40   : > { %v6921_v53 = vpop.permute.xlu0 %6920 }
0x8a41   : > { %v6923_v25 = vmul.f32 %v13316_v30, %v6921_v53 }
0x8a43   : > { %6925 = vrot.lane.b32.xlu1 %v6923_v25, %s13752_s15 }
0x8ab5   : > { %v6926_v54 = vpop.permute.xlu1 %6925 }
0x8ab6   : > { %v6928_v55 = vadd.f32 %v6926_v54, %v6918_v40 }
0x8ab8   : > { %13317 = vtanh.f32 %v6928_v55 }
0x8ac2   : > { %v13318_v56 = vpop.eup %13317 }
0x8ac3   : > { %6931 = vrot.lane.b32.xlu0 %v13318_v56, %s13752_s15 }
0x8b35   : > { %v6932_v23 = vpop.permute.xlu0 %6931 }
0x8b36   : > { %v6934_v12 = vmul.f32 %v13316_v30, %v6932_v23 }
0x8b38   : > { %6936 = vrot.lane.b32.xlu1 %v6934_v12, %s13753_s16 }
0x8baa   : > { %v6937_v18 = vpop.permute.xlu1 %6936 }
0x8bab   : > { %6939 = vst.msk [vmem:[#allocation2 + $0x10] sm:$0xff] %vm756_vm2, %v6937_v18  ;;  %12268 = vmatmul.mubr.msk.f32.vlgmr.msra.gmra.mrb[84].mxu0 %vm756_vm2, %v6937_v18 }
0x8bac   : > { %12742 = vmatpush3.bf16.msra.mxu0 %v14992_v58  ;;  %12281 = vmatprep.mubr.msk.f32.mxu0 %vm13748_vm0, %v13747_v17 }
0x8bad   : > { %12746 = vmatprep.subr.bf16.mxu0 %v13749_v22 }
0x8c7e   : > { %v7008_v29 = vpop.f32.mrb[84].mxu0 }
0x8c7f   : > { %v7012_v59 = vadd.f32 %v7008_v29, %v15018_v0  ;;  %v12269_v9 = vpop.f32.mrb[85].mxu0 }
0x8c81   : > { %13319 = vtanh.f32 %v7012_v59  ;;  %v11200_v60 = vmul.f32 -1.442695, %v7012_v59 }
0x8c83   : > { %13321 = vpow2.f32 %v11200_v60 }
0x8c8b   : > { %v13320_v51 = vpop.eup %13319 }
0x8c8c   : > { %7022 = vrot.lane.b32.xlu0 %v13320_v51, %s13751_s13 }
0x8c8d   : > { %v13322_v10 = vpop.eup %13321 }
0x8c8e   : > { %v7016_v62 = vadd.f32 1.0, %v13322_v10 }
0x8c90   : > { %13323 = vrcp.f32 %v7016_v62 }
0x8c9a   : > { %v13324_v44 = vpop.eup %13323 }
0x8c9b   : > { %v7020_v57 = vmul.f32 %v13324_v44, %v6928_v55 }
0x8cfe   : > { %v7023_v63 = vpop.permute.xlu0 %7022 }
0x8cff   : > { %v7025_v19 = vmul.f32 %v13324_v44, %v7023_v63 }
0x8d01   : > { %7027 = vrot.lane.b32.xlu1 %v7025_v19, %s13752_s15 }
0x8d73   : > { %v7028_v1 = vpop.permute.xlu1 %7027 }
0x8d74   : > { %v7030_v2 = vadd.f32 %v7028_v1, %v7020_v57 }
0x8d76   : > { %13325 = vtanh.f32 %v7030_v2 }
0x8d80   : > { %v13326_v3 = vpop.eup %13325 }
0x8d81   : > { %7033 = vrot.lane.b32.xlu0 %v13326_v3, %s13752_s15 }
0x8df3   : > { %v7034_v28 = vpop.permute.xlu0 %7033 }
0x8df4   : > { %v7036_v38 = vmul.f32 %v13324_v44, %v7034_v28 }
0x8df6   : > { %7038 = vrot.lane.b32.xlu1 %v7036_v38, %s13753_s16 }
0x8e68   : > { %v7039_v49 = vpop.permute.xlu1 %7038 }
0x8e69   : > { %7041 = vst.msk [vmem:[#allocation2 + $0x18] sm:$0xff] %vm756_vm2, %v7039_v49  ;;  %12275 = vmatmul.mubr.msk.f32.vlgmr.msra.gmra.mrb[72].mxu1 %vm756_vm2, %v7039_v49 }
0x8e6a   : > { %12745 = vmatpush3.bf16.msra.mxu1 %v14992_v58  ;;  %12288 = vmatprep.mubr.msk.f32.mxu1 %vm13748_vm0, %v13747_v17 }
0x8e6b   : > { %12749 = vmatprep.subr.bf16.mxu1 %v13749_v22 }
0x8f3c   : > { %v7110_v4 = vpop.f32.mrb[72].mxu1 }
0x8f3d   : > { %v7114_v41 = vadd.f32 %v7110_v4, %v15018_v0  ;;  %v12276_v5 = vpop.f32.mrb[73].mxu1 }
0x8f3f   : > { %13327 = vtanh.f32 %v7114_v41  ;;  %v11202_v8 = vmul.f32 -1.442695, %v7114_v41 }
0x8f41   : > { %13329 = vpow2.f32 %v11202_v8 }
0x8f49   : > { %v13328_v50 = vpop.eup %13327 }
0x8f4a   : > { %7124 = vrot.lane.b32.xlu0 %v13328_v50, %s13751_s13 }
0x8f4b   : > { %v13330_v6 = vpop.eup %13329 }
0x8f4c   : > { %v7118_v11 = vadd.f32 1.0, %v13330_v6 }
0x8f4e   : > { %13331 = vrcp.f32 %v7118_v11 }
0x8f58   : > { %v13332_v47 = vpop.eup %13331 }
0x8f59   : > { %v7122_v15 = vmul.f32 %v13332_v47, %v7030_v2 }
0x8fbc   : > { %v7125_v45 = vpop.permute.xlu0 %7124 }
0x8fbd   : > { %v7127_v13 = vmul.f32 %v13332_v47, %v7125_v45 }
0x8fbf   : > { %7129 = vrot.lane.b32.xlu1 %v7127_v13, %s13752_s15 }
0x9031   : > { %v7130_v20 = vpop.permute.xlu1 %7129 }
0x9032   : > { %v7132_v31 = vadd.f32 %v7130_v20, %v7122_v15 }
0x9034   : > { %13333 = vtanh.f32 %v7132_v31 }
0x903e   : > { %v13334_v32 = vpop.eup %13333 }
0x903f   : > { %7135 = vrot.lane.b32.xlu0 %v13334_v32, %s13752_s15 }
0x90b1   : > { %v7136_v24 = vpop.permute.xlu0 %7135 }
0x90b2   : > { %v7138_v33 = vmul.f32 %v13332_v47, %v7136_v24 }
0x90b4   : > { %7140 = vrot.lane.b32.xlu1 %v7138_v33, %s13753_s16 }
0x9126   : > { %v7141_v34 = vpop.permute.xlu1 %7140 }
0x9127   : > { %7143 = vst.msk [vmem:[#allocation2 + $0x20] sm:$0xff] %vm756_vm2, %v7141_v34  ;;  %12282 = vmatmul.mubr.msk.f32.vlgmr.msra.gmra.mrb[86].mxu0 %vm756_vm2, %v7141_v34 }
0x9128   : > { %12748 = vmatpush3.bf16.msra.mxu0 %v14992_v58  ;;  %12295 = vmatprep.mubr.msk.f32.mxu0 %vm13748_vm0, %v13747_v17 }
0x9129   : > { %12752 = vmatprep.subr.bf16.mxu0 %v13749_v22 }
0x91fa   : > { %v7212_v35 = vpop.f32.mrb[86].mxu0 }
0x91fb   : > { %v7216_v14 = vadd.f32 %v7212_v35, %v15018_v0  ;;  %v12283_v36 = vpop.f32.mrb[87].mxu0 }
0x91fd   : > { %13335 = vtanh.f32 %v7216_v14  ;;  %v11204_v16 = vmul.f32 -1.442695, %v7216_v14 }
0x91ff   : > { %13337 = vpow2.f32 %v11204_v16 }
0x9207   : > { %v13336_v43 = vpop.eup %13335 }
0x9208   : > { %7226 = vrot.lane.b32.xlu0 %v13336_v43, %s13751_s13 }
0x9209   : > { %v13338_v27 = vpop.eup %13337 }
0x920a   : > { %v7220_v26 = vadd.f32 1.0, %v13338_v27 }
0x920c   : > { %13339 = vrcp.f32 %v7220_v26 }
0x9216   : > { %v13340_v37 = vpop.eup %13339 }
0x9217   : > { %v7224_v21 = vmul.f32 %v13340_v37, %v7132_v31 }
0x927a   : > { %v7227_v39 = vpop.permute.xlu0 %7226 }
0x927b   : > { %v7229_v46 = vmul.f32 %v13340_v37, %v7227_v39 }
0x927d   : > { %7231 = vrot.lane.b32.xlu1 %v7229_v46, %s13752_s15 }
0x92ef   : > { %v7232_v48 = vpop.permute.xlu1 %7231 }
0x92f0   : > { %v7234_v42 = vadd.f32 %v7232_v48, %v7224_v21 }
0x92f2   : > { %13341 = vtanh.f32 %v7234_v42 }
0x92fc   : > { %v13342_v7 = vpop.eup %13341 }
0x92fd   : > { %7237 = vrot.lane.b32.xlu0 %v13342_v7, %s13752_s15 }
0x936f   : > { %v7238_v52 = vpop.permute.xlu0 %7237 }
0x9370   : > { %v7240_v30 = vmul.f32 %v13340_v37, %v7238_v52 }
0x9372   : > { %7242 = vrot.lane.b32.xlu1 %v7240_v30, %s13753_s16 }
0x93e4   : > { %v7243_v53 = vpop.permute.xlu1 %7242 }
0x93e5   : > { %7245 = vst.msk [vmem:[#allocation2 + $0x28] sm:$0xff] %vm756_vm2, %v7243_v53  ;;  %12289 = vmatmul.mubr.msk.f32.vlgmr.msra.gmra.mrb[74].mxu1 %vm756_vm2, %v7243_v53 }
0x93e6   : > { %12751 = vmatpush3.bf16.msra.mxu1 %v14992_v58  ;;  %12302 = vmatprep.mubr.msk.f32.mxu1 %vm13748_vm0, %v13747_v17 }
0x93e7   : > { %12755 = vmatprep.subr.bf16.mxu1 %v13749_v22 }
0x94b8   : > { %v7314_v25 = vpop.f32.mrb[74].mxu1 }
0x94b9   : > { %v7318_v40 = vadd.f32 %v7314_v25, %v15018_v0  ;;  %v12290_v54 = vpop.f32.mrb[75].mxu1 }
0x94bb   : > { %13343 = vtanh.f32 %v7318_v40  ;;  %v11206_v56 = vmul.f32 -1.442695, %v7318_v40 }
0x94bd   : > { %13345 = vpow2.f32 %v11206_v56 }
0x94c5   : > { %v13344_v55 = vpop.eup %13343 }
0x94c6   : > { %7328 = vrot.lane.b32.xlu0 %v13344_v55, %s13751_s13 }
0x94c7   : > { %v13346_v23 = vpop.eup %13345 }
0x94c8   : > { %v7322_v12 = vadd.f32 1.0, %v13346_v23 }
0x94ca   : > { %13347 = vrcp.f32 %v7322_v12 }
0x94d4   : > { %v13348_v18 = vpop.eup %13347 }
0x94d5   : > { %v7326_v9 = vmul.f32 %v13348_v18, %v7234_v42 }
0x9538   : > { %v7329_v29 = vpop.permute.xlu0 %7328 }
0x9539   : > { %v7331_v59 = vmul.f32 %v13348_v18, %v7329_v29 }
0x953b   : > { %7333 = vrot.lane.b32.xlu1 %v7331_v59, %s13752_s15 }
0x95ad   : > { %v7334_v51 = vpop.permute.xlu1 %7333 }
0x95ae   : > { %v7336_v60 = vadd.f32 %v7334_v51, %v7326_v9 }
0x95b0   : > { %13349 = vtanh.f32 %v7336_v60 }
0x95ba   : > { %v13350_v10 = vpop.eup %13349 }
0x95bb   : > { %7339 = vrot.lane.b32.xlu0 %v13350_v10, %s13752_s15 }
0x962d   : > { %v7340_v62 = vpop.permute.xlu0 %7339 }
0x962e   : > { %v7342_v44 = vmul.f32 %v13348_v18, %v7340_v62 }
0x9630   : > { %7344 = vrot.lane.b32.xlu1 %v7342_v44, %s13753_s16 }
0x96a2   : > { %v7345_v63 = vpop.permute.xlu1 %7344 }
0x96a3   : > { %7347 = vst.msk [vmem:[#allocation2 + $0x30] sm:$0xff] %vm756_vm2, %v7345_v63  ;;  %12296 = vmatmul.mubr.msk.f32.vlgmr.msra.gmra.mrb[88].mxu0 %vm756_vm2, %v7345_v63 }
0x96a4   : > { %12754 = vmatpush3.bf16.msra.mxu0 %v14992_v58  ;;  %12309 = vmatprep.mubr.msk.f32.mxu0 %vm13748_vm0, %v13747_v17 }
0x96a5   : > { %12758 = vmatprep.subr.bf16.mxu0 %v13749_v22 }
0x9776   : > { %v7416_v19 = vpop.f32.mrb[88].mxu0 }
0x9777   : > { %v7420_v57 = vadd.f32 %v7416_v19, %v15018_v0  ;;  %v12297_v1 = vpop.f32.mrb[89].mxu0 }
0x9779   : > { %13351 = vtanh.f32 %v7420_v57  ;;  %v11208_v3 = vmul.f32 -1.442695, %v7420_v57 }
0x977b   : > { %13353 = vpow2.f32 %v11208_v3 }
0x9783   : > { %v13352_v2 = vpop.eup %13351 }
0x9784   : > { %7430 = vrot.lane.b32.xlu0 %v13352_v2, %s13751_s13 }
0x9785   : > { %v13354_v28 = vpop.eup %13353 }
0x9786   : > { %v7424_v38 = vadd.f32 1.0, %v13354_v28 }
0x9788   : > { %13355 = vrcp.f32 %v7424_v38 }
0x9792   : > { %v13356_v49 = vpop.eup %13355 }
0x9793   : > { %v7428_v5 = vmul.f32 %v13356_v49, %v7336_v60 }
0x97f6   : > { %v7431_v4 = vpop.permute.xlu0 %7430 }
0x97f7   : > { %v7433_v41 = vmul.f32 %v13356_v49, %v7431_v4 }
0x97f9   : > { %7435 = vrot.lane.b32.xlu1 %v7433_v41, %s13752_s15 }
0x986b   : > { %v7436_v50 = vpop.permute.xlu1 %7435 }
0x986c   : > { %v7438_v8 = vadd.f32 %v7436_v50, %v7428_v5 }
0x986e   : > { %13357 = vtanh.f32 %v7438_v8 }
0x9878   : > { %v13358_v6 = vpop.eup %13357 }
0x9879   : > { %7441 = vrot.lane.b32.xlu0 %v13358_v6, %s13752_s15 }
0x98eb   : > { %v7442_v11 = vpop.permute.xlu0 %7441 }
0x98ec   : > { %v7444_v47 = vmul.f32 %v13356_v49, %v7442_v11 }
0x98ee   : > { %7446 = vrot.lane.b32.xlu1 %v7444_v47, %s13753_s16 }
0x9960   : > { %v7447_v45 = vpop.permute.xlu1 %7446 }
0x9961   : > { %7449 = vst.msk [vmem:[#allocation2 + $0x38] sm:$0xff] %vm756_vm2, %v7447_v45  ;;  %12303 = vmatmul.mubr.msk.f32.vlgmr.msra.gmra.mrb[76].mxu1 %vm756_vm2, %v7447_v45 }
0x9962   : > { %12757 = vmatpush3.bf16.msra.mxu1 %v14992_v58  ;;  %12316 = vmatprep.mubr.msk.f32.mxu1 %vm13748_vm0, %v13747_v17 }
0x9963   : > { %12761 = vmatprep.subr.bf16.mxu1 %v13749_v22 }
0x9a34   : > { %v7518_v13 = vpop.f32.mrb[76].mxu1 }
0x9a35   : > { %v7522_v15 = vadd.f32 %v7518_v13, %v15018_v0  ;;  %v12304_v20 = vpop.f32.mrb[77].mxu1 }
0x9a37   : > { %13359 = vtanh.f32 %v7522_v15  ;;  %v11210_v32 = vmul.f32 -1.442695, %v7522_v15 }
0x9a39   : > { %13361 = vpow2.f32 %v11210_v32 }
0x9a41   : > { %v13360_v31 = vpop.eup %13359 }
0x9a42   : > { %7532 = vrot.lane.b32.xlu0 %v13360_v31, %s13751_s13 }
0x9a43   : > { %v13362_v24 = vpop.eup %13361 }
0x9a44   : > { %v7526_v33 = vadd.f32 1.0, %v13362_v24 }
0x9a46   : > { %13363 = vrcp.f32 %v7526_v33 }
0x9a50   : > { %v13364_v34 = vpop.eup %13363 }
0x9a51   : > { %v7530_v36 = vmul.f32 %v13364_v34, %v7438_v8 }
0x9ab4   : > { %v7533_v35 = vpop.permute.xlu0 %7532 }
0x9ab5   : > { %v7535_v14 = vmul.f32 %v13364_v34, %v7533_v35 }
0x9ab7   : > { %7537 = vrot.lane.b32.xlu1 %v7535_v14, %s13752_s15 }
0x9b29   : > { %v7538_v43 = vpop.permute.xlu1 %7537 }
0x9b2a   : > { %v7540_v16 = vadd.f32 %v7538_v43, %v7530_v36 }
0x9b2c   : > { %13365 = vtanh.f32 %v7540_v16 }
0x9b36   : > { %v13366_v27 = vpop.eup %13365 }
0x9b37   : > { %7543 = vrot.lane.b32.xlu0 %v13366_v27, %s13752_s15 }
0x9ba9   : > { %v7544_v26 = vpop.permute.xlu0 %7543 }
0x9baa   : > { %v7546_v37 = vmul.f32 %v13364_v34, %v7544_v26 }
0x9bac   : > { %7548 = vrot.lane.b32.xlu1 %v7546_v37, %s13753_s16 }
0x9c1e   : > { %v7549_v39 = vpop.permute.xlu1 %7548 }
0x9c1f   : > { %7551 = vst.msk [vmem:[#allocation2 + $0x40] sm:$0xff] %vm756_vm2, %v7549_v39  ;;  %12310 = vmatmul.mubr.msk.f32.vlgmr.msra.gmra.mrb[90].mxu0 %vm756_vm2, %v7549_v39 }
0x9c20   : > { %12760 = vmatpush3.bf16.msra.mxu0 %v14992_v58  ;;  %12323 = vmatprep.mubr.msk.f32.mxu0 %vm13748_vm0, %v13747_v17 }
0x9c21   : > { %12764 = vmatprep.subr.bf16.mxu0 %v13749_v22 }
0x9cf2   : > { %v7620_v46 = vpop.f32.mrb[90].mxu0 }
0x9cf3   : > { %v7624_v21 = vadd.f32 %v7620_v46, %v15018_v0  ;;  %v12311_v48 = vpop.f32.mrb[91].mxu0 }
0x9cf5   : > { %13367 = vtanh.f32 %v7624_v21  ;;  %v11212_v7 = vmul.f32 -1.442695, %v7624_v21 }
0x9cf7   : > { %13369 = vpow2.f32 %v11212_v7 }
0x9cff   : > { %v13368_v42 = vpop.eup %13367 }
0x9d00   : > { %7634 = vrot.lane.b32.xlu0 %v13368_v42, %s13751_s13 }
0x9d01   : > { %v13370_v52 = vpop.eup %13369 }
0x9d02   : > { %v7628_v30 = vadd.f32 1.0, %v13370_v52 }
0x9d04   : > { %13371 = vrcp.f32 %v7628_v30 }
0x9d0e   : > { %v13372_v53 = vpop.eup %13371 }
0x9d0f   : > { %v7632_v54 = vmul.f32 %v13372_v53, %v7540_v16 }
0x9d72   : > { %v7635_v25 = vpop.permute.xlu0 %7634 }
0x9d73   : > { %v7637_v40 = vmul.f32 %v13372_v53, %v7635_v25 }
0x9d75   : > { %7639 = vrot.lane.b32.xlu1 %v7637_v40, %s13752_s15 }
0x9de7   : > { %v7640_v55 = vpop.permute.xlu1 %7639 }
0x9de8   : > { %v7642_v56 = vadd.f32 %v7640_v55, %v7632_v54 }
0x9dea   : > { %13373 = vtanh.f32 %v7642_v56 }
0x9df4   : > { %v13374_v23 = vpop.eup %13373 }
0x9df5   : > { %7645 = vrot.lane.b32.xlu0 %v13374_v23, %s13752_s15 }
0x9e67   : > { %v7646_v12 = vpop.permute.xlu0 %7645 }
0x9e68   : > { %v7648_v18 = vmul.f32 %v13372_v53, %v7646_v12 }
0x9e6a   : > { %7650 = vrot.lane.b32.xlu1 %v7648_v18, %s13753_s16 }
0x9edc   : > { %v7651_v29 = vpop.permute.xlu1 %7650 }
0x9edd   : > { %7653 = vst.msk [vmem:[#allocation2 + $0x48] sm:$0xff] %vm756_vm2, %v7651_v29  ;;  %12317 = vmatmul.mubr.msk.f32.vlgmr.msra.gmra.mrb[78].mxu1 %vm756_vm2, %v7651_v29 }
0x9ede   : > { %12763 = vmatpush3.bf16.msra.mxu1 %v14992_v58  ;;  %12330 = vmatprep.mubr.msk.f32.mxu1 %vm13748_vm0, %v13747_v17 }
0x9edf   : > { %12767 = vmatprep.subr.bf16.mxu1 %v13749_v22 }
0x9fb0   : > { %v7722_v59 = vpop.f32.mrb[78].mxu1 }
0x9fb1   : > { %v7726_v9 = vadd.f32 %v7722_v59, %v15018_v0  ;;  %v12318_v51 = vpop.f32.mrb[79].mxu1 }
0x9fb3   : > { %13375 = vtanh.f32 %v7726_v9  ;;  %v11214_v10 = vmul.f32 -1.442695, %v7726_v9 }
0x9fb5   : > { %13377 = vpow2.f32 %v11214_v10 }
0x9fbd   : > { %v13376_v60 = vpop.eup %13375 }
0x9fbe   : > { %7736 = vrot.lane.b32.xlu0 %v13376_v60, %s13751_s13 }
0x9fbf   : > { %v13378_v62 = vpop.eup %13377 }
0x9fc0   : > { %v7730_v44 = vadd.f32 1.0, %v13378_v62  ;;  %v8282_v62 = vld [vmem:[%s15721_s5 + $0x88] sm:$0xff] }
0x9fc2   : > { %13379 = vrcp.f32 %v7730_v44  ;;  %v8283_v44 = vld [vmem:[%s15721_s5 + $0x90] sm:$0xff] }
0x9fcc   : > { %v13380_v63 = vpop.eup %13379 }
0x9fcd   : > { %v7734_v1 = vmul.f32 %v13380_v63, %v7642_v56 }
0xa030   : > { %v7737_v19 = vpop.permute.xlu0 %7736 }
0xa031   : > { %v7739_v57 = vmul.f32 %v13380_v63, %v7737_v19 }
0xa033   : > { %7741 = vrot.lane.b32.xlu1 %v7739_v57, %s13752_s15 }
0xa0a5   : > { %v7742_v2 = vpop.permute.xlu1 %7741 }
0xa0a6   : > { %v7744_v3 = vadd.f32 %v7742_v2, %v7734_v1  ;;  %v8266_v2 = vld [vmem:[#allocation2] sm:$0xff] }
0xa0a8   : > { %13381 = vtanh.f32 %v7744_v3 }
0xa0b2   : > { %v13382_v28 = vpop.eup %13381 }
0xa0b3   : > { %7747 = vrot.lane.b32.xlu0 %v13382_v28, %s13752_s15  ;;  %v8268_v28 = vld [vmem:[#allocation2 + $0x10] sm:$0xff] }
0xa125   : > { %v7748_v38 = vpop.permute.xlu0 %7747 }
0xa126   : > { %v7750_v49 = vmul.f32 %v13380_v63, %v7748_v38  ;;  %v12773_v63 = vpack.c.bf16 %v8283_v44, %v8282_v62  ;;  %v8269_v38 = vld [vmem:[#allocation2 + $0x18] sm:$0xff] }
0xa128   : > { %7752 = vrot.lane.b32.xlu1 %v7750_v49, %s13753_s16  ;;  %v8270_v49 = vld [vmem:[#allocation2 + $0x20] sm:$0xff] }
0xa19a   : > { %v7753_v4 = vpop.permute.xlu1 %7752 }
0xa19b   : > { %7755 = vst.msk [vmem:[#allocation2 + $0x50] sm:$0xff] %vm756_vm2, %v7753_v4  ;;  %12324 = vmatmul.mubr.msk.f32.vlgmr.msra.gmra.mrb[92].mxu0 %vm756_vm2, %v7753_v4  ;;  %v8271_v4 = vld [vmem:[#allocation2 + $0x28] sm:$0xff] }
0xa19c   : > { %12766 = vmatpush3.bf16.msra.mxu0 %v14992_v58  ;;  %12337 = vmatprep.mubr.msk.f32.mxu0 %vm13748_vm0, %v13747_v17 }
0xa19d   : > { %12770 = vmatprep.subr.bf16.mxu0 %v13749_v22 }
0xa26e   : > { %v7824_v41 = vpop.f32.mrb[92].mxu0 }
0xa26f   : > { %v7828_v5 = vadd.f32 %v7824_v41, %v15018_v0  ;;  %v12325_v50 = vpop.f32.mrb[93].mxu0  ;;  %v8272_v41 = vld [vmem:[#allocation2 + $0x30] sm:$0xff] }
0xa270   : > { %v8274_v50 = vld [vmem:[#allocation2 + $0x40] sm:$0xff] }
0xa271   : > { %13383 = vtanh.f32 %v7828_v5  ;;  %v11216_v6 = vmul.f32 -1.442695, %v7828_v5  ;;  %v8273_v5 = vld [vmem:[#allocation2 + $0x38] sm:$0xff] }
0xa273   : > { %13385 = vpow2.f32 %v11216_v6  ;;  %v8276_v6 = vld [vmem:[#allocation2 + $0x50] sm:$0xff] }
0xa27b   : > { %v13384_v8 = vpop.eup %13383 }
0xa27c   : > { %7838 = vrot.lane.b32.xlu0 %v13384_v8, %s13751_s13  ;;  %v8275_v8 = vld [vmem:[#allocation2 + $0x48] sm:$0xff] }
0xa27d   : > { %v13386_v11 = vpop.eup %13385 }
0xa27e   : > { %v7832_v47 = vadd.f32 1.0, %v13386_v11 }
0xa280   : > { %13387 = vrcp.f32 %v7832_v47 }
0xa28a   : > { %v13388_v45 = vpop.eup %13387 }
0xa28b   : > { %v7836_v20 = vmul.f32 %v13388_v45, %v7744_v3  ;;  %v8267_v3 = vld [vmem:[#allocation2 + $0x8] sm:$0xff] }
0xa2ee   : > { %v7839_v13 = vpop.permute.xlu0 %7838 }
0xa2ef   : > { %v7841_v15 = vmul.f32 %v13388_v45, %v7839_v13 }
0xa2f1   : > { %7843 = vrot.lane.b32.xlu1 %v7841_v15, %s13752_s15 }
0xa363   : > { %v7844_v31 = vpop.permute.xlu1 %7843 }
0xa364   : > { %v7846_v32 = vadd.f32 %v7844_v31, %v7836_v20 }
0xa366   : > { %13389 = vtanh.f32 %v7846_v32 }
0xa370   : > { %v13390_v24 = vpop.eup %13389 }
0xa371   : > { %7849 = vrot.lane.b32.xlu0 %v13390_v24, %s13752_s15 }
0xa3e3   : > { %v7850_v33 = vpop.permute.xlu0 %7849 }
0xa3e4   : > { %v7852_v34 = vmul.f32 %v13388_v45, %v7850_v33 }
0xa3e6   : > { %7854 = vrot.lane.b32.xlu1 %v7852_v34, %s13753_s16 }
0xa458   : > { %v7855_v35 = vpop.permute.xlu1 %7854 }
0xa459   : > { %7857 = vst.msk [vmem:[#allocation2 + $0x58] sm:$0xff] %vm756_vm2, %v7855_v35  ;;  %12331 = vmatmul.mubr.msk.f32.vlgmr.msra.gmra.mrb[80].mxu1 %vm756_vm2, %v7855_v35 }
0xa45a   : > { %12769 = vmatpush3.bf16.msra.mxu1 %v14992_v58  ;;  %12344 = vmatprep.mubr.msk.f32.mxu1 %vm13748_vm0, %v13747_v17 }
0xa45b   : > { %12774 = vmatprep.subr.bf16.mxu1 %v12773_v63 }
0xa460   : > { %v8277_v11 = vld [vmem:[#allocation2 + $0x58] sm:$0xff] }
0xa52c   : > { %v7926_v14 = vpop.f32.mrb[80].mxu1 }
0xa52d   : > { %v7930_v36 = vadd.f32 %v7926_v14, %v15018_v0  ;;  %v12332_v43 = vpop.f32.mrb[81].mxu1 }
0xa52f   : > { %13391 = vtanh.f32 %v7930_v36  ;;  %v11218_v27 = vmul.f32 -1.442695, %v7930_v36 }
0xa531   : > { %13393 = vpow2.f32 %v11218_v27 }
0xa539   : > { %v13392_v16 = vpop.eup %13391 }
0xa53a   : > { %7940 = vrot.lane.b32.xlu0 %v13392_v16, %s13751_s13 }
0xa53b   : > { %v13394_v26 = vpop.eup %13393 }
0xa53c   : > { %v7934_v37 = vadd.f32 1.0, %v13394_v26 }
0xa53e   : > { %13395 = vrcp.f32 %v7934_v37 }
0xa548   : > { %v13396_v39 = vpop.eup %13395 }
0xa549   : > { %v7938_v48 = vmul.f32 %v13396_v39, %v7846_v32 }
0xa5ac   : > { %v7941_v46 = vpop.permute.xlu0 %7940 }
0xa5ad   : > { %v7943_v21 = vmul.f32 %v13396_v39, %v7941_v46 }
0xa5af   : > { %7945 = vrot.lane.b32.xlu1 %v7943_v21, %s13752_s15 }
0xa621   : > { %v7946_v42 = vpop.permute.xlu1 %7945 }
0xa622   : > { %v7948_v7 = vadd.f32 %v7946_v42, %v7938_v48 }
0xa624   : > { %13397 = vtanh.f32 %v7948_v7 }
0xa62e   : > { %v13398_v52 = vpop.eup %13397 }
0xa62f   : > { %7951 = vrot.lane.b32.xlu0 %v13398_v52, %s13752_s15 }
0xa6a1   : > { %v7952_v30 = vpop.permute.xlu0 %7951 }
0xa6a2   : > { %v7954_v53 = vmul.f32 %v13396_v39, %v7952_v30 }
0xa6a4   : > { %7956 = vrot.lane.b32.xlu1 %v7954_v53, %s13753_s16 }
0xa716   : > { %v7957_v25 = vpop.permute.xlu1 %7956 }
0xa717   : > { %7959 = vst.msk [vmem:[#allocation2 + $0x60] sm:$0xff] %vm756_vm2, %v7957_v25  ;;  %12338 = vmatmul.mubr.msk.f32.vlgmr.msra.gmra.mrb[94].mxu0 %vm756_vm2, %v7957_v25 }
0xa718   : > { %12772 = vmatpush3.bf16.msra.mxu0 %v14992_v58  ;;  %12351 = vmatprep.mubr.msk.f32.mxu0 %vm13748_vm0, %v13747_v17 }
0xa719   : > { %12777 = vmatprep.subr.bf16.mxu0 %v13749_v22 }
0xa71e   : > { %v8278_v47 = vld [vmem:[#allocation2 + $0x60] sm:$0xff] }
0xa7ea   : > { %v8028_v40 = vpop.f32.mrb[94].mxu0 }
0xa7eb   : > { %v8032_v54 = vadd.f32 %v8028_v40, %v15018_v0  ;;  %v12339_v55 = vpop.f32.mrb[95].mxu0 }
0xa7ec   : > { %v8482_v55 = vld [vmem:[%s15721_s5 + $0x98] sm:$0xff] }
0xa7ed   : > { %13399 = vtanh.f32 %v8032_v54  ;;  %v11220_v23 = vmul.f32 -1.442695, %v8032_v54 }
0xa7ef   : > { %13401 = vpow2.f32 %v11220_v23 }
0xa7f7   : > { %v13400_v56 = vpop.eup %13399 }
0xa7f8   : > { %8042 = vrot.lane.b32.xlu0 %v13400_v56, %s13751_s13  ;;  %v8483_v56 = vld [vmem:[%s15721_s5 + $0xa0] sm:$0xff] }
0xa7f9   : > { %v13402_v12 = vpop.eup %13401  ;;  %v15233_v23 = vpack.c.bf16 %v8483_v56, %v8482_v55 }
0xa7fa   : > { %v8036_v18 = vadd.f32 1.0, %v13402_v12 }
0xa7fc   : > { %13403 = vrcp.f32 %v8036_v18 }
0xa806   : > { %v13404_v29 = vpop.eup %13403 }
0xa807   : > { %v8040_v9 = vmul.f32 %v13404_v29, %v7948_v7 }
0xa86a   : > { %v8043_v58 = vpop.permute.xlu0 %8042 }
0xa86b   : > { %v8045_v59 = vmul.f32 %v13404_v29, %v8043_v58 }
0xa86d   : > { %8047 = vrot.lane.b32.xlu1 %v8045_v59, %s13752_s15  ;;  %v15253_v59 = vld [vmem:[%s15721_s5 + $0xa8] ss:$0 sm:$0xff] }
0xa8df   : > { %v8048_v51 = vpop.permute.xlu1 %8047 }
0xa8e0   : > { %v15165_v60 = vadd.f32 %v8048_v51, %v8040_v9 }
0xa8e2   : > { %13405 = vtanh.f32 %v15165_v60 }
0xa8ec   : > { %v13406_v10 = vpop.eup %13405 }
0xa8ed   : > { %8053 = vrot.lane.b32.xlu0 %v13406_v10, %s13752_s15 }
0xa95f   : > { %v8054_v19 = vpop.permute.xlu0 %8053 }
0xa960   : > { %v8056_v57 = vmul.f32 %v13404_v29, %v8054_v19 }
0xa962   : > { %8058 = vrot.lane.b32.xlu1 %v8056_v57, %s13753_s16 }
0xa9d4   : > { %v8059_v1 = vpop.permute.xlu1 %8058 }
0xa9d5   : > { %8061 = vst.msk [vmem:[#allocation2 + $0x68] sm:$0xff] %vm756_vm2, %v8059_v1  ;;  %12345 = vmatmul.mubr.msk.f32.vlgmr.msra.gmra.mrb[82].mxu1 %vm756_vm2, %v8059_v1 }
0xa9d6   : > { %12776 = vmatpush3.bf16.msra.mxu1 %v12773_v63  ;;  %12358 = vmatprep.mubr.msk.f32.mxu1 %vm756_vm2, %v8266_v2 }
0xa9d7   : > { %12801 = vmatprep.subr.bf16.mxu1 %v13749_v22 }
0xa9d9   : > { %12359 = vmatmul.mubr.msk.f32.vlgmr.msra.gmra.mrb[84].mxu1 %vm756_vm2, %v8267_v3 }
0xa9da   : > { %12361 = vmatprep.mubr.msk.f32.mxu1 %vm756_vm2, %v8268_v28  ;;  %12803 = vmatpush3.bf16.msra.mxu1 %v15233_v23 }
0xa9db   : > { %12807 = vmatprep.subr.bf16.mxu1 %v13749_v22 }
0xa9dc   : > { %v8279_v45 = vld [vmem:[#allocation2 + $0x68] sm:$0xff] }
0xa9dd   : > { %12362 = vmatmul.mubr.msk.f32.gmra.mrb[86].mxu1 %vm756_vm2, %v8269_v38 }
0xa9de   : > { %12364 = vmatprep.mubr.msk.f32.mxu1 %vm756_vm2, %v8270_v49 }
0xa9e1   : > { %12365 = vmatmul.mubr.msk.f32.gmra.mrb[88].mxu1 %vm756_vm2, %v8271_v4 }
0xa9e2   : > { %12367 = vmatprep.mubr.msk.f32.mxu1 %vm756_vm2, %v8272_v41 }
0xa9e5   : > { %12368 = vmatmul.mubr.msk.f32.gmra.mrb[90].mxu1 %vm756_vm2, %v8273_v5 }
0xa9e6   : > { %12370 = vmatprep.mubr.msk.f32.mxu1 %vm756_vm2, %v8274_v50 }
0xa9e9   : > { %12371 = vmatmul.mubr.msk.f32.gmra.mrb[92].mxu1 %vm756_vm2, %v8275_v8 }
0xa9ea   : > { %12373 = vmatprep.mubr.msk.f32.mxu1 %vm756_vm2, %v8276_v6 }
0xa9ed   : > { %12374 = vmatmul.mubr.msk.f32.gmra.mrb[94].mxu1 %vm756_vm2, %v8277_v11 }
0xa9ee   : > { %12376 = vmatprep.mubr.msk.f32.mxu1 %vm756_vm2, %v8278_v47 }
0xa9f1   : > { %12377 = vmatmul.mubr.msk.f32.gmra.mrb[96].mxu1 %vm756_vm2, %v8279_v45 }
0xaaa8   : > { %v8130_v13 = vpop.f32.mrb[82].mxu1 }
0xaaa9   : > { %v8134_v15 = vadd.f32 %v8130_v13, %v15018_v0  ;;  %v12346_v20 = vpop.f32.mrb[83].mxu1 }
0xaaab   : > { %13407 = vtanh.f32 %v8134_v15  ;;  %v11222_v21 = vmul.f32 -1.442695, %v8134_v15 }
0xaaac   : > { %v15194_v31 = vpop.f32.mrb[84].mxu1 }
0xaaad   : > { %v8403_v32 = vpop.f32.mrb[85].mxu1  ;;  %13409 = vpow2.f32 %v11222_v21  ;;  %v8409_v6 = vadd.f32 %v15194_v31, %v15253_v59 }
0xaab0   : > { %v15196_v24 = vpop.f32.mrb[86].mxu1 }
0xaab1   : > { %v15198_v33 = vpop.f32.mrb[87].mxu1 }
0xaab4   : > { %v15200_v34 = vpop.f32.mrb[88].mxu1 }
0xaab5   : > { %v13408_v35 = vpop.eup %13407  ;;  %v15202_v14 = vpop.f32.mrb[89].mxu1 }
0xaab6   : > { %8144 = vrot.lane.b32.xlu0 %v13408_v35, %s13751_s13 }
0xaab7   : > { %v13410_v48 = vpop.eup %13409 }
0xaab8   : > { %v15205_v36 = vpop.f32.mrb[90].mxu1  ;;  %v8138_v42 = vadd.f32 1.0, %v13410_v48 }
0xaab9   : > { %v15207_v43 = vpop.f32.mrb[91].mxu1 }
0xaaba   : > { %13411 = vrcp.f32 %v8138_v42 }
0xaabc   : > { %v15209_v16 = vpop.f32.mrb[92].mxu1 }
0xaabd   : > { %v15211_v27 = vpop.f32.mrb[93].mxu1 }
0xaac0   : > { %v15213_v26 = vpop.f32.mrb[94].mxu1 }
0xaac1   : > { %v15215_v37 = vpop.f32.mrb[95].mxu1 }
0xaac4   : > { %v15217_v39 = vpop.f32.mrb[96].mxu1  ;;  %v13412_v7 = vpop.eup %13411 }
0xaac5   : > { %v15219_v46 = vpop.f32.mrb[97].mxu1  ;;  %v8142_v53 = vmul.f32 %v13412_v7, %v15165_v60  ;;  %v8404_v60 = vadd.f32 %v15253_v59, %v8403_v32 }
0xab28   : > { %v8145_v52 = vpop.permute.xlu0 %8144 }
0xab29   : > { %v8147_v30 = vmul.f32 %v13412_v7, %v8145_v52 }
0xab2b   : > { %8149 = vrot.lane.b32.xlu1 %v8147_v30, %s13752_s15 }
0xab9d   : > { %v8150_v25 = vpop.permute.xlu1 %8149 }
0xab9e   : > { %v15223_v40 = vadd.f32 %v8150_v25, %v8142_v53 }
0xaba0   : > { %13413 = vtanh.f32 %v15223_v40 }
0xabaa   : > { %v13414_v54 = vpop.eup %13413 }
0xabab   : > { %8155 = vrot.lane.b32.xlu0 %v13414_v54, %s13752_s15  ;;  %v8414_v54 = vadd.f32 %v15253_v59, %v15198_v33 }
0xac1d   : > { %v8156_v12 = vpop.permute.xlu0 %8155 }
0xac1e   : > { %v8158_v18 = vmul.f32 %v13412_v7, %v8156_v12 }
0xac20   : > { %8160 = vrot.lane.b32.xlu1 %v8158_v18, %s13753_s16 }
0xac92   : > { %v8161_v29 = vpop.permute.xlu1 %8160 }
0xac93   : > { %8163 = vst.msk [vmem:[#allocation2 + $0x70] sm:$0xff] %vm756_vm2, %v8161_v29  ;;  %12352 = vmatmul.mubr.msk.f32.vlgmr.msra.gmra.mrb[96].mxu0 %vm756_vm2, %v8161_v29 }
0xac94   : > { %12779 = vmatpush3.bf16.msra.mxu0 %v15233_v23  ;;  %12386 = vmatprep.mubr.msk.f32.mxu0 %vm13748_vm0, %v13747_v17 }
0xac95   : > { %12780 = vmatprep.subr.bf16.mxu0 %v13749_v22 }
0xac97   : > { %12387 = vmatmul.mubr.f32.vlgmr.msra.gmra.mrb[98].mxu0 %v13747_v17 }
0xac98   : > { %12782 = vmatpush3.bf16.msra.mxu0 %v15233_v23  ;;  %12393 = vmatprep.mubr.msk.f32.mxu0 %vm13748_vm0, %v13747_v17 }
0xac99   : > { %12783 = vmatprep.subr.bf16.mxu0 %v13749_v22 }
0xac9a   : > { %v8280_v58 = vld [vmem:[#allocation2 + $0x70] sm:$0xff] }
0xac9b   : > { %12379 = vmatprep.mubr.msk.f32.mxu1 %vm756_vm2, %v8280_v58 }
0xad66   : > { %v15255_v9 = vpop.f32.mrb[96].mxu0 }
0xad67   : > { %v12353_v51 = vpop.f32.mrb[97].mxu0 }
0xad6a   : > { %v8550_v10 = vpop.f32.mrb[98].mxu0 }
0xad6b   : > { %v8554_v62 = vadd.f32 %v8550_v10, %v8404_v60  ;;  %v12388_v44 = vpop.f32.mrb[99].mxu0 }
0xad6d   : > { %13415 = vtanh.f32 %v8554_v62  ;;  %v11242_v19 = vmul.f32 -1.442695, %v8554_v62 }
0xad6f   : > { %13417 = vpow2.f32 %v11242_v19 }
0xad77   : > { %v13416_v63 = vpop.eup %13415 }
0xad78   : > { %8564 = vrot.lane.b32.xlu0 %v13416_v63, %s13751_s13 }
0xad79   : > { %v13418_v57 = vpop.eup %13417 }
0xad7a   : > { %v8558_v1 = vadd.f32 1.0, %v13418_v57 }
0xad7c   : > { %13419 = vrcp.f32 %v8558_v1 }
0xad86   : > { %v13420_v2 = vpop.eup %13419 }
0xad87   : > { %v8562_v38 = vmul.f32 0.0, %v13420_v2 }
0xadea   : > { %v8565_v3 = vpop.permute.xlu0 %8564 }
0xadeb   : > { %v8567_v28 = vmul.f32 %v13420_v2, %v8565_v3  ;;  %v8419_v3 = vadd.f32 %v15196_v24, %v15253_v59 }
0xaded   : > { %8569 = vrot.lane.b32.xlu1 %v8567_v28, %s13752_s15 }
0xae5f   : > { %v8570_v49 = vpop.permute.xlu1 %8569 }
0xae60   : > { %v8572_v4 = vadd.f32 %v8570_v49, %v8562_v38 }
0xae62   : > { %13421 = vtanh.f32 %v8572_v4 }
0xae6c   : > { %v13422_v41 = vpop.eup %13421 }
0xae6d   : > { %8575 = vrot.lane.b32.xlu0 %v13422_v41, %s13752_s15 }
0xaedf   : > { %v8576_v5 = vpop.permute.xlu0 %8575 }
0xaee0   : > { %v8578_v50 = vmul.f32 %v13420_v2, %v8576_v5 }
0xaee2   : > { %8580 = vrot.lane.b32.xlu1 %v8578_v50, %s13753_s16 }
0xaf54   : > { %v8581_v8 = vpop.permute.xlu1 %8580 }
0xaf55   : > { %8583 = vst.msk [vmem:[#allocation2] sm:$0xff] %vm756_vm2, %v8581_v8  ;;  %12394 = vmatmul.mubr.msk.f32.vlgmr.msra.gmra.mrb[100].mxu0 %vm756_vm2, %v8581_v8 }
0xaf56   : > { %12785 = vmatpush3.bf16.msra.mxu0 %v15233_v23  ;;  %12400 = vmatprep.mubr.msk.f32.mxu0 %vm13748_vm0, %v13747_v17 }
0xaf57   : > { %12786 = vmatprep.subr.bf16.mxu0 %v13749_v22 }
0xb028   : > { %v8652_v11 = vpop.f32.mrb[100].mxu0 }
0xb029   : > { %v8656_v47 = vadd.f32 %v8652_v11, %v8409_v6  ;;  %v12395_v45 = vpop.f32.mrb[101].mxu0 }
0xb02b   : > { %13423 = vtanh.f32 %v8656_v47  ;;  %v11244_v15 = vmul.f32 -1.442695, %v8656_v47 }
0xb02d   : > { %13425 = vpow2.f32 %v11244_v15 }
0xb035   : > { %v13424_v13 = vpop.eup %13423 }
0xb036   : > { %8666 = vrot.lane.b32.xlu0 %v13424_v13, %s13751_s13 }
0xb037   : > { %v13426_v20 = vpop.eup %13425 }
0xb038   : > { %v8660_v32 = vadd.f32 1.0, %v13426_v20 }
0xb03a   : > { %13427 = vrcp.f32 %v8660_v32 }
0xb044   : > { %v13428_v35 = vpop.eup %13427 }
0xb045   : > { %v8664_v42 = vmul.f32 %v13428_v35, %v8572_v4 }
0xb0a8   : > { %v8667_v21 = vpop.permute.xlu0 %8666 }
0xb0a9   : > { %v8669_v48 = vmul.f32 %v13428_v35, %v8667_v21 }
0xb0ab   : > { %8671 = vrot.lane.b32.xlu1 %v8669_v48, %s13752_s15 }
0xb11d   : > { %v8672_v7 = vpop.permute.xlu1 %8671 }
0xb11e   : > { %v8674_v31 = vadd.f32 %v8672_v7, %v8664_v42 }
0xb120   : > { %13429 = vtanh.f32 %v8674_v31 }
0xb12a   : > { %v13430_v52 = vpop.eup %13429 }
0xb12b   : > { %8677 = vrot.lane.b32.xlu0 %v13430_v52, %s13752_s15 }
0xb19d   : > { %v8678_v30 = vpop.permute.xlu0 %8677 }
0xb19e   : > { %v8680_v53 = vmul.f32 %v13428_v35, %v8678_v30  ;;  %v8424_v35 = vadd.f32 %v15253_v59, %v15202_v14 }
0xb1a0   : > { %8682 = vrot.lane.b32.xlu1 %v8680_v53, %s13753_s16 }
0xb212   : > { %v8683_v25 = vpop.permute.xlu1 %8682 }
0xb213   : > { %8685 = vst.msk [vmem:[#allocation2 + $0x8] sm:$0xff] %vm756_vm2, %v8683_v25  ;;  %12401 = vmatmul.mubr.msk.f32.vlgmr.msra.gmra.mrb[102].mxu0 %vm756_vm2, %v8683_v25 }
0xb214   : > { %12788 = vmatpush3.bf16.msra.mxu0 %v15233_v23  ;;  %12407 = vmatprep.mubr.msk.f32.mxu0 %vm13748_vm0, %v13747_v17 }
0xb215   : > { %12789 = vmatprep.subr.bf16.mxu0 %v13749_v22 }
0xb2e6   : > { %v8754_v55 = vpop.f32.mrb[102].mxu0 }
0xb2e7   : > { %v8758_v56 = vadd.f32 %v8754_v55, %v8414_v54  ;;  %v12402_v12 = vpop.f32.mrb[103].mxu0 }
0xb2e9   : > { %13431 = vtanh.f32 %v8758_v56  ;;  %v11246_v29 = vmul.f32 -1.442695, %v8758_v56 }
0xb2eb   : > { %13433 = vpow2.f32 %v11246_v29 }
0xb2f3   : > { %v13432_v18 = vpop.eup %13431 }
0xb2f4   : > { %8768 = vrot.lane.b32.xlu0 %v13432_v18, %s13751_s13 }
0xb2f5   : > { %v13434_v58 = vpop.eup %13433 }
0xb2f6   : > { %v8762_v51 = vadd.f32 1.0, %v13434_v58 }
0xb2f8   : > { %13435 = vrcp.f32 %v8762_v51  ;;  %v8429_v51 = vadd.f32 %v15200_v34, %v15253_v59 }
0xb302   : > { %v13436_v60 = vpop.eup %13435 }
0xb303   : > { %v8766_v44 = vmul.f32 %v13436_v60, %v8674_v31 }
0xb366   : > { %v8769_v10 = vpop.permute.xlu0 %8768 }
0xb367   : > { %v8771_v62 = vmul.f32 %v13436_v60, %v8769_v10 }
0xb369   : > { %8773 = vrot.lane.b32.xlu1 %v8771_v62, %s13752_s15 }
0xb3db   : > { %v8774_v63 = vpop.permute.xlu1 %8773 }
0xb3dc   : > { %v8776_v33 = vadd.f32 %v8774_v63, %v8766_v44 }
0xb3de   : > { %13437 = vtanh.f32 %v8776_v33 }
0xb3e8   : > { %v13438_v19 = vpop.eup %13437 }
0xb3e9   : > { %8779 = vrot.lane.b32.xlu0 %v13438_v19, %s13752_s15 }
0xb45b   : > { %v8780_v57 = vpop.permute.xlu0 %8779 }
0xb45c   : > { %v8782_v1 = vmul.f32 %v13436_v60, %v8780_v57 }
0xb45e   : > { %8784 = vrot.lane.b32.xlu1 %v8782_v1, %s13753_s16 }
0xb4d0   : > { %v8785_v2 = vpop.permute.xlu1 %8784 }
0xb4d1   : > { %8787 = vst.msk [vmem:[#allocation2 + $0x10] sm:$0xff] %vm756_vm2, %v8785_v2  ;;  %12408 = vmatmul.mubr.msk.f32.vlgmr.msra.gmra.mrb[104].mxu0 %vm756_vm2, %v8785_v2 }
0xb4d2   : > { %12791 = vmatpush3.bf16.msra.mxu0 %v15233_v23  ;;  %12414 = vmatprep.mubr.msk.f32.mxu0 %vm13748_vm0, %v13747_v17 }
0xb4d3   : > { %12792 = vmatprep.subr.bf16.mxu0 %v13749_v22 }
0xb5a4   : > { %v8856_v28 = vpop.f32.mrb[104].mxu0 }
0xb5a5   : > { %v8860_v38 = vadd.f32 %v8856_v28, %v8419_v3  ;;  %v12409_v49 = vpop.f32.mrb[105].mxu0 }
0xb5a7   : > { %13439 = vtanh.f32 %v8860_v38  ;;  %v11248_v41 = vmul.f32 -1.442695, %v8860_v38 }
0xb5a9   : > { %13441 = vpow2.f32 %v11248_v41 }
0xb5b1   : > { %v13440_v4 = vpop.eup %13439 }
0xb5b2   : > { %8870 = vrot.lane.b32.xlu0 %v13440_v4, %s13751_s13 }
0xb5b3   : > { %v13442_v5 = vpop.eup %13441 }
0xb5b4   : > { %v8864_v50 = vadd.f32 1.0, %v13442_v5  ;;  %v8434_v5 = vadd.f32 %v15253_v59, %v15207_v43 }
0xb5b6   : > { %13443 = vrcp.f32 %v8864_v50 }
0xb5c0   : > { %v13444_v8 = vpop.eup %13443 }
0xb5c1   : > { %v8868_v47 = vmul.f32 %v13444_v8, %v8776_v33 }
0xb624   : > { %v8871_v6 = vpop.permute.xlu0 %8870 }
0xb625   : > { %v8873_v11 = vmul.f32 %v13444_v8, %v8871_v6 }
0xb627   : > { %8875 = vrot.lane.b32.xlu1 %v8873_v11, %s13752_s15 }
0xb699   : > { %v8876_v45 = vpop.permute.xlu1 %8875 }
0xb69a   : > { %v8878_v24 = vadd.f32 %v8876_v45, %v8868_v47 }
0xb69c   : > { %13445 = vtanh.f32 %v8878_v24 }
0xb6a6   : > { %v13446_v13 = vpop.eup %13445 }
0xb6a7   : > { %8881 = vrot.lane.b32.xlu0 %v13446_v13, %s13752_s15 }
0xb719   : > { %v8882_v15 = vpop.permute.xlu0 %8881 }
0xb71a   : > { %v8884_v20 = vmul.f32 %v13444_v8, %v8882_v15 }
0xb71c   : > { %8886 = vrot.lane.b32.xlu1 %v8884_v20, %s13753_s16 }
0xb78e   : > { %v8887_v32 = vpop.permute.xlu1 %8886 }
0xb78f   : > { %8889 = vst.msk [vmem:[#allocation2 + $0x18] sm:$0xff] %vm756_vm2, %v8887_v32  ;;  %12415 = vmatmul.mubr.msk.f32.vlgmr.msra.gmra.mrb[106].mxu0 %vm756_vm2, %v8887_v32 }
0xb790   : > { %12794 = vmatpush3.bf16.msra.mxu0 %v15233_v23  ;;  %12421 = vmatprep.mubr.msk.f32.mxu0 %vm13748_vm0, %v13747_v17 }
0xb791   : > { %12795 = vmatprep.subr.bf16.mxu0 %v13749_v22 }
0xb862   : > { %v8958_v21 = vpop.f32.mrb[106].mxu0 }
0xb863   : > { %v8962_v48 = vadd.f32 %v8958_v21, %v8424_v35  ;;  %v12416_v42 = vpop.f32.mrb[107].mxu0  ;;  %v8236_v21 = vadd.f32 %v15255_v9, %v15018_v0 }
0xb865   : > { %13447 = vtanh.f32 %v8962_v48  ;;  %v11250_v31 = vmul.f32 -1.442695, %v8962_v48 }
0xb867   : > { %13449 = vpow2.f32 %v11250_v31 }
0xb86f   : > { %v13448_v7 = vpop.eup %13447 }
0xb870   : > { %8972 = vrot.lane.b32.xlu0 %v13448_v7, %s13751_s13  ;;  %v11224_v7 = vmul.f32 -1.442695, %v8236_v21 }
0xb871   : > { %v13450_v52 = vpop.eup %13449 }
0xb872   : > { %v8966_v30 = vadd.f32 1.0, %v13450_v52 }
0xb874   : > { %13451 = vrcp.f32 %v8966_v30 }
0xb87e   : > { %v13452_v53 = vpop.eup %13451 }
0xb87f   : > { %v8970_v55 = vmul.f32 %v13452_v53, %v8878_v24 }
0xb8e2   : > { %v8973_v25 = vpop.permute.xlu0 %8972 }
0xb8e3   : > { %v8975_v54 = vmul.f32 %v13452_v53, %v8973_v25 }
0xb8e5   : > { %8977 = vrot.lane.b32.xlu1 %v8975_v54, %s13752_s15 }
0xb957   : > { %v8978_v56 = vpop.permute.xlu1 %8977 }
0xb958   : > { %v8980_v14 = vadd.f32 %v8978_v56, %v8970_v55 }
0xb95a   : > { %13453 = vtanh.f32 %v8980_v14 }
0xb964   : > { %v13454_v12 = vpop.eup %13453 }
0xb965   : > { %8983 = vrot.lane.b32.xlu0 %v13454_v12, %s13752_s15 }
0xb9d7   : > { %v8984_v18 = vpop.permute.xlu0 %8983 }
0xb9d8   : > { %v8986_v29 = vmul.f32 %v13452_v53, %v8984_v18 }
0xb9da   : > { %8988 = vrot.lane.b32.xlu1 %v8986_v29, %s13753_s16 }
0xba4c   : > { %v8989_v58 = vpop.permute.xlu1 %8988 }
0xba4d   : > { %8991 = vst.msk [vmem:[#allocation2 + $0x20] sm:$0xff] %vm756_vm2, %v8989_v58  ;;  %12422 = vmatmul.mubr.msk.f32.vlgmr.msra.gmra.mrb[108].mxu0 %vm756_vm2, %v8989_v58  ;;  %v8439_v58 = vadd.f32 %v15205_v36, %v15253_v59 }
0xba4e   : > { %12797 = vmatpush3.bf16.msra.mxu0 %v15233_v23  ;;  %12428 = vmatprep.mubr.msk.f32.mxu0 %vm13748_vm0, %v13747_v17 }
0xba4f   : > { %12798 = vmatprep.subr.bf16.mxu0 %v13749_v22 }
0xbb20   : > { %v9060_v60 = vpop.f32.mrb[108].mxu0 }
0xbb21   : > { %v9064_v10 = vadd.f32 %v9060_v60, %v8429_v51  ;;  %v12423_v62 = vpop.f32.mrb[109].mxu0 }
0xbb23   : > { %13455 = vtanh.f32 %v9064_v10  ;;  %v11252_v63 = vmul.f32 -1.442695, %v9064_v10 }
0xbb25   : > { %13457 = vpow2.f32 %v11252_v63 }
0xbb2d   : > { %v13456_v44 = vpop.eup %13455 }
0xbb2e   : > { %9074 = vrot.lane.b32.xlu0 %v13456_v44, %s13751_s13 }
0xbb2f   : > { %v13458_v33 = vpop.eup %13457 }
0xbb30   : > { %v9068_v19 = vadd.f32 1.0, %v13458_v33 }
0xbb32   : > { %13459 = vrcp.f32 %v9068_v19 }
0xbb3c   : > { %v13460_v57 = vpop.eup %13459 }
0xbb3d   : > { %v9072_v3 = vmul.f32 %v13460_v57, %v8980_v14 }
0xbba0   : > { %v9075_v1 = vpop.permute.xlu0 %9074 }
0xbba1   : > { %v9077_v2 = vmul.f32 %v13460_v57, %v9075_v1 }
0xbba3   : > { %9079 = vrot.lane.b32.xlu1 %v9077_v2, %s13752_s15 }
0xbc15   : > { %v9080_v28 = vpop.permute.xlu1 %9079 }
0xbc16   : > { %v9082_v34 = vadd.f32 %v9080_v28, %v9072_v3 }
0xbc18   : > { %13461 = vtanh.f32 %v9082_v34 }
0xbc22   : > { %v13462_v38 = vpop.eup %13461 }
0xbc23   : > { %9085 = vrot.lane.b32.xlu0 %v13462_v38, %s13752_s15 }
0xbc95   : > { %v9086_v49 = vpop.permute.xlu0 %9085 }
0xbc96   : > { %v9088_v4 = vmul.f32 %v13460_v57, %v9086_v49 }
0xbc98   : > { %9090 = vrot.lane.b32.xlu1 %v9088_v4, %s13753_s16 }
0xbd0a   : > { %v9091_v41 = vpop.permute.xlu1 %9090 }
0xbd0b   : > { %9093 = vst.msk [vmem:[#allocation2 + $0x28] sm:$0xff] %vm756_vm2, %v9091_v41  ;;  %12429 = vmatmul.mubr.msk.f32.vlgmr.msra.gmra.mrb[110].mxu0 %vm756_vm2, %v9091_v41 }
0xbd0c   : > { %12800 = vmatpush3.bf16.msra.mxu0 %v15233_v23  ;;  %12435 = vmatprep.mubr.msk.f32.mxu0 %vm13748_vm0, %v13747_v17 }
0xbd0d   : > { %12804 = vmatprep.subr.bf16.mxu0 %v13749_v22 }
0xbdde   : > { %v9162_v50 = vpop.f32.mrb[110].mxu0 }
0xbddf   : > { %v9166_v8 = vadd.f32 %v9162_v50, %v8434_v5  ;;  %v12430_v6 = vpop.f32.mrb[111].mxu0  ;;  %v8444_v50 = vadd.f32 %v15253_v59, %v15211_v27 }
0xbde1   : > { %13463 = vtanh.f32 %v9166_v8  ;;  %v11254_v47 = vmul.f32 -1.442695, %v9166_v8 }
0xbde3   : > { %13465 = vpow2.f32 %v11254_v47 }
0xbdeb   : > { %v13464_v11 = vpop.eup %13463 }
0xbdec   : > { %9176 = vrot.lane.b32.xlu0 %v13464_v11, %s13751_s13 }
0xbded   : > { %v13466_v45 = vpop.eup %13465 }
0xbdee   : > { %v9170_v24 = vadd.f32 1.0, %v13466_v45 }
0xbdf0   : > { %13467 = vrcp.f32 %v9170_v24 }
0xbdfa   : > { %v13468_v13 = vpop.eup %13467 }
0xbdfb   : > { %v9174_v32 = vmul.f32 %v13468_v13, %v9082_v34 }
0xbe5e   : > { %v9177_v15 = vpop.permute.xlu0 %9176 }
0xbe5f   : > { %v9179_v20 = vmul.f32 %v13468_v13, %v9177_v15 }
0xbe61   : > { %9181 = vrot.lane.b32.xlu1 %v9179_v20, %s13752_s15 }
0xbed3   : > { %v9182_v35 = vpop.permute.xlu1 %9181 }
0xbed4   : > { %v9184_v43 = vadd.f32 %v9182_v35, %v9174_v32 }
0xbed6   : > { %13469 = vtanh.f32 %v9184_v43 }
0xbed7   : > { %13471 = vtanh.f32 %v8236_v21 }
0xbed8   : > { %13473 = vpow2.f32 %v11224_v7 }
0xbee0   : > { %v13470_v48 = vpop.eup %13469 }
0xbee1   : > { %9187 = vrot.lane.b32.xlu0 %v13470_v48, %s13752_s15  ;;  %v13472_v42 = vpop.eup %13471 }
0xbee2   : > { %v13474_v31 = vpop.eup %13473 }
0xbee3   : > { %v8240_v52 = vadd.f32 1.0, %v13474_v31  ;;  %v8449_v31 = vadd.f32 %v15209_v16, %v15253_v59 }
0xbee5   : > { %8246 = vrot.lane.b32.xlu0 %v13472_v42, %s13751_s13  ;;  %13475 = vrcp.f32 %v8240_v52 }
0xbeef   : > { %v13476_v25 = vpop.eup %13475 }
0xbef0   : > { %v8244_v55 = vmul.f32 %v13476_v25, %v15223_v40 }
0xbf53   : > { %v9188_v30 = vpop.permute.xlu0 %9187 }
0xbf54   : > { %v9190_v53 = vmul.f32 %v13468_v13, %v9188_v30 }
0xbf56   : > { %9192 = vrot.lane.b32.xlu1 %v9190_v53, %s13753_s16 }
0xbf57   : > { %v8247_v54 = vpop.permute.xlu0 %8246 }
0xbf58   : > { %v8249_v0 = vmul.f32 %v13476_v25, %v8247_v54 }
0xbf5a   : > { %8251 = vrot.lane.b32.xlu0 %v8249_v0, %s13752_s15 }
0xbfc8   : > { %v9193_v9 = vpop.permute.xlu1 %9192 }
0xbfc9   : > { %9195 = vst.msk [vmem:[#allocation2 + $0x30] sm:$0xff] %vm756_vm2, %v9193_v9  ;;  %12436 = vmatmul.mubr.msk.f32.vlgmr.msra.gmra.mrb[112].mxu0 %vm756_vm2, %v9193_v9 }
0xbfca   : > { %12806 = vmatpush3.bf16.msra.mxu0 %v15233_v23  ;;  %12449 = vmatprep.mubr.msk.f32.mxu0 %vm13748_vm0, %v13747_v17 }
0xbfcb   : > { %12810 = vmatprep.subr.bf16.mxu0 %v13749_v22 }
0xbfcc   : > { %v8252_v56 = vpop.permute.xlu0 %8251 }
0xbfcd   : > { %v8254_v14 = vadd.f32 %v8252_v56, %v8244_v55 }
0xbfcf   : > { %13477 = vtanh.f32 %v8254_v14 }
0xbfd9   : > { %v13478_v12 = vpop.eup %13477 }
0xbfda   : > { %8257 = vrot.lane.b32.xlu0 %v13478_v12, %s13752_s15 }
0xc04c   : > { %v8258_v18 = vpop.permute.xlu0 %8257 }
0xc04d   : > { %v8260_v29 = vmul.f32 %v13476_v25, %v8258_v18 }
0xc04f   : > { %8262 = vrot.lane.b32.xlu0 %v8260_v29, %s13753_s16 }
0xc09c   : > { %v9264_v51 = vpop.f32.mrb[112].mxu0 }
0xc09d   : > { %v9268_v60 = vadd.f32 %v9264_v51, %v8439_v58  ;;  %v12437_v10 = vpop.f32.mrb[113].mxu0 }
0xc09e   : > { %v8454_v10 = vadd.f32 %v15253_v59, %v15215_v37 }
0xc09f   : > { %13479 = vtanh.f32 %v9268_v60  ;;  %v11256_v63 = vmul.f32 -1.442695, %v9268_v60 }
0xc0a1   : > { %13481 = vpow2.f32 %v11256_v63 }
0xc0a9   : > { %v13480_v40 = vpop.eup %13479 }
0xc0aa   : > { %9278 = vrot.lane.b32.xlu1 %v13480_v40, %s13751_s13 }
0xc0ab   : > { %v13482_v33 = vpop.eup %13481 }
0xc0ac   : > { %v9272_v36 = vadd.f32 1.0, %v13482_v33 }
0xc0ae   : > { %13483 = vrcp.f32 %v9272_v36 }
0xc0b8   : > { %v13484_v19 = vpop.eup %13483 }
0xc0b9   : > { %v9276_v2 = vmul.f32 %v13484_v19, %v9184_v43 }
0xc0c1   : > { %v8263_v62 = vpop.permute.xlu0 %8262 }
0xc0c2   : > { %8265 = vst.msk [vmem:[#allocation2 + $0x78] sm:$0xff] %vm756_vm2, %v8263_v62 }
0xc0c9   : > { %v8281_v44 = vld [vmem:[#allocation2 + $0x78] sm:$0xff] }
0xc0ca   : > { %12380 = vmatmul.mubr.msk.f32.gmra.mrb[98].mxu1 %vm756_vm2, %v8281_v44 }
0xc0cb   : > { %12442 = vmatprep.mubr.msk.f32.mxu1 %vm13748_vm0, %v13747_v17 }
0xc11c   : > { %v9279_v57 = vpop.permute.xlu1 %9278 }
0xc11d   : > { %v9281_v1 = vmul.f32 %v13484_v19, %v9279_v57 }
0xc11f   : > { %9283 = vrot.lane.b32.xlu1 %v9281_v1, %s13752_s15 }
0xc191   : > { %v9284_v3 = vpop.permute.xlu1 %9283 }
0xc192   : > { %v9286_v28 = vadd.f32 %v9284_v3, %v9276_v2 }
0xc194   : > { %13485 = vtanh.f32 %v9286_v28 }
0xc19d   : > { %v15355_v34 = vpop.f32.mrb[98].mxu1 }
0xc19e   : > { %v13486_v38 = vpop.eup %13485  ;;  %v15357_v49 = vpop.f32.mrb[99].mxu1 }
0xc19f   : > { %9289 = vrot.lane.b32.xlu1 %v13486_v38, %s13752_s15 }
0xc211   : > { %v9290_v4 = vpop.permute.xlu1 %9289 }
0xc212   : > { %v9292_v41 = vmul.f32 %v13484_v19, %v9290_v4 }
0xc214   : > { %9294 = vrot.lane.b32.xlu1 %v9292_v41, %s13753_s16 }
0xc286   : > { %v9295_v5 = vpop.permute.xlu1 %9294 }
0xc287   : > { %9297 = vst.msk [vmem:[#allocation2 + $0x38] sm:$0xff] %vm756_vm2, %v9295_v5  ;;  %12443 = vmatmul.mubr.msk.f32.vlgmr.msra.gmra.mrb[100].mxu1 %vm756_vm2, %v9295_v5 }
0xc288   : > { %12809 = vmatpush3.bf16.msra.mxu1 %v15233_v23  ;;  %12456 = vmatprep.mubr.msk.f32.mxu1 %vm13748_vm0, %v13747_v17 }
0xc289   : > { %12813 = vmatprep.subr.bf16.mxu1 %v13749_v22 }
0xc35a   : > { %v9366_v8 = vpop.f32.mrb[100].mxu1 }
0xc35b   : > { %v9370_v6 = vadd.f32 %v9366_v8, %v8444_v50  ;;  %v12444_v11 = vpop.f32.mrb[101].mxu1  ;;  %v8459_v50 = vadd.f32 %v15213_v26, %v15253_v59 }
0xc35d   : > { %13487 = vtanh.f32 %v9370_v6  ;;  %v11258_v45 = vmul.f32 -1.442695, %v9370_v6 }
0xc35f   : > { %13489 = vpow2.f32 %v11258_v45 }
0xc367   : > { %v13488_v47 = vpop.eup %13487 }
0xc368   : > { %9380 = vrot.lane.b32.xlu0 %v13488_v47, %s13751_s13 }
0xc369   : > { %v13490_v24 = vpop.eup %13489 }
0xc36a   : > { %v9374_v13 = vadd.f32 1.0, %v13490_v24 }
0xc36c   : > { %13491 = vrcp.f32 %v9374_v13 }
0xc376   : > { %v13492_v15 = vpop.eup %13491 }
0xc377   : > { %v9378_v35 = vmul.f32 %v13492_v15, %v9286_v28 }
0xc3da   : > { %v9381_v20 = vpop.permute.xlu0 %9380 }
0xc3db   : > { %v9383_v32 = vmul.f32 %v13492_v15, %v9381_v20 }
0xc3dd   : > { %9385 = vrot.lane.b32.xlu1 %v9383_v32, %s13752_s15 }
0xc44f   : > { %v9386_v43 = vpop.permute.xlu1 %9385 }
0xc450   : > { %v9388_v27 = vadd.f32 %v9386_v43, %v9378_v35 }
0xc452   : > { %13493 = vtanh.f32 %v9388_v27 }
0xc45c   : > { %v13494_v21 = vpop.eup %13493 }
0xc45d   : > { %9391 = vrot.lane.b32.xlu0 %v13494_v21, %s13752_s15 }
0xc4cf   : > { %v9392_v48 = vpop.permute.xlu0 %9391 }
0xc4d0   : > { %v9394_v42 = vmul.f32 %v13492_v15, %v9392_v48 }
0xc4d2   : > { %9396 = vrot.lane.b32.xlu1 %v9394_v42, %s13753_s16  ;;  %v8464_v42 = vadd.f32 %v15253_v59, %v15219_v46 }
0xc544   : > { %v9397_v7 = vpop.permute.xlu1 %9396 }
0xc545   : > { %9399 = vst.msk [vmem:[#allocation2 + $0x40] sm:$0xff] %vm756_vm2, %v9397_v7  ;;  %12450 = vmatmul.mubr.msk.f32.vlgmr.msra.gmra.mrb[114].mxu0 %vm756_vm2, %v9397_v7 }
0xc546   : > { %12812 = vmatpush3.bf16.msra.mxu0 %v15233_v23  ;;  %12463 = vmatprep.mubr.msk.f32.mxu0 %vm13748_vm0, %v13747_v17 }
0xc547   : > { %12816 = vmatprep.subr.bf16.mxu0 %v13749_v22 }
0xc618   : > { %v9468_v52 = vpop.f32.mrb[114].mxu0 }
0xc619   : > { %v9472_v30 = vadd.f32 %v9468_v52, %v8449_v31  ;;  %v12451_v53 = vpop.f32.mrb[115].mxu0 }
0xc61b   : > { %13495 = vtanh.f32 %v9472_v30  ;;  %v11260_v54 = vmul.f32 -1.442695, %v9472_v30 }
0xc61d   : > { %13497 = vpow2.f32 %v11260_v54 }
0xc625   : > { %v13496_v25 = vpop.eup %13495 }
0xc626   : > { %9482 = vrot.lane.b32.xlu0 %v13496_v25, %s13751_s13 }
0xc627   : > { %v13498_v0 = vpop.eup %13497 }
0xc628   : > { %v9476_v9 = vadd.f32 1.0, %v13498_v0 }
0xc62a   : > { %13499 = vrcp.f32 %v9476_v9 }
0xc634   : > { %v13500_v55 = vpop.eup %13499 }
0xc635   : > { %v9480_v12 = vmul.f32 %v13500_v55, %v9388_v27 }
0xc698   : > { %v9483_v56 = vpop.permute.xlu0 %9482 }
0xc699   : > { %v9485_v14 = vmul.f32 %v13500_v55, %v9483_v56 }
0xc69b   : > { %9487 = vrot.lane.b32.xlu1 %v9485_v14, %s13752_s15 }
0xc70d   : > { %v9488_v18 = vpop.permute.xlu1 %9487 }
0xc70e   : > { %v9490_v16 = vadd.f32 %v9488_v18, %v9480_v12 }
0xc710   : > { %13501 = vtanh.f32 %v9490_v16 }
0xc71a   : > { %v13502_v29 = vpop.eup %13501 }
0xc71b   : > { %9493 = vrot.lane.b32.xlu0 %v13502_v29, %s13752_s15 }
0xc78d   : > { %v9494_v58 = vpop.permute.xlu0 %9493 }
0xc78e   : > { %v9496_v51 = vmul.f32 %v13500_v55, %v9494_v58  ;;  %v8469_v58 = vadd.f32 %v15217_v39, %v15253_v59 }
0xc790   : > { %9498 = vrot.lane.b32.xlu1 %v9496_v51, %s13753_s16 }
0xc802   : > { %v9499_v60 = vpop.permute.xlu1 %9498 }
0xc803   : > { %9501 = vst.msk [vmem:[#allocation2 + $0x48] sm:$0xff] %vm756_vm2, %v9499_v60  ;;  %12457 = vmatmul.mubr.msk.f32.vlgmr.msra.gmra.mrb[102].mxu1 %vm756_vm2, %v9499_v60 }
0xc804   : > { %12815 = vmatpush3.bf16.msra.mxu1 %v15233_v23  ;;  %12470 = vmatprep.mubr.msk.f32.mxu1 %vm13748_vm0, %v13747_v17 }
0xc805   : > { %12819 = vmatprep.subr.bf16.mxu1 %v13749_v22 }
0xc8d6   : > { %v9570_v40 = vpop.f32.mrb[102].mxu1 }
0xc8d7   : > { %v9574_v62 = vadd.f32 %v9570_v40, %v8454_v10  ;;  %v12458_v44 = vpop.f32.mrb[103].mxu1 }
0xc8d9   : > { %13503 = vtanh.f32 %v9574_v62  ;;  %v11262_v33 = vmul.f32 -1.442695, %v9574_v62 }
0xc8db   : > { %13505 = vpow2.f32 %v11262_v33 }
0xc8e3   : > { %v13504_v63 = vpop.eup %13503 }
0xc8e4   : > { %9584 = vrot.lane.b32.xlu0 %v13504_v63, %s13751_s13 }
0xc8e5   : > { %v13506_v36 = vpop.eup %13505 }
0xc8e6   : > { %v9578_v19 = vadd.f32 1.0, %v13506_v36 }
0xc8e8   : > { %13507 = vrcp.f32 %v9578_v19 }
0xc8f2   : > { %v13508_v57 = vpop.eup %13507 }
0xc8f3   : > { %v9582_v3 = vmul.f32 %v13508_v57, %v9490_v16 }
0xc956   : > { %v9585_v1 = vpop.permute.xlu0 %9584 }
0xc957   : > { %v9587_v2 = vmul.f32 %v13508_v57, %v9585_v1  ;;  %v10131_v1 = vld [vmem:[%s15721_s5 + $0xb8] sm:$0xff] }
0xc959   : > { %9589 = vrot.lane.b32.xlu1 %v9587_v2, %s13752_s15 }
0xc9cb   : > { %v9590_v28 = vpop.permute.xlu1 %9589 }
0xc9cc   : > { %v9592_v37 = vadd.f32 %v9590_v28, %v9582_v3 }
0xc9ce   : > { %13509 = vtanh.f32 %v9592_v37 }
0xc9d8   : > { %v13510_v38 = vpop.eup %13509 }
0xc9d9   : > { %9595 = vrot.lane.b32.xlu0 %v13510_v38, %s13752_s15 }
0xca4b   : > { %v9596_v4 = vpop.permute.xlu0 %9595 }
0xca4c   : > { %v9598_v41 = vmul.f32 %v13508_v57, %v9596_v4  ;;  %v10130_v57 = vld [vmem:[%s15721_s5 + $0xb0] sm:$0xff]  ;;  %v10114_v4 = vld [vmem:[#allocation2] sm:$0xff] }
0xca4d   : > { %v12825_v2 = vpack.c.bf16 %v10131_v1, %v10130_v57 }
0xca4e   : > { %9600 = vrot.lane.b32.xlu1 %v9598_v41, %s13753_s16  ;;  %v10115_v41 = vld [vmem:[#allocation2 + $0x8] sm:$0xff] }
0xcac0   : > { %v9601_v5 = vpop.permute.xlu1 %9600 }
0xcac1   : > { %9603 = vst.msk [vmem:[#allocation2 + $0x50] sm:$0xff] %vm756_vm2, %v9601_v5  ;;  %12464 = vmatmul.mubr.msk.f32.vlgmr.msra.gmra.mrb[116].mxu0 %vm756_vm2, %v9601_v5  ;;  %v10116_v5 = vld [vmem:[#allocation2 + $0x10] sm:$0xff] }
0xcac2   : > { %12818 = vmatpush3.bf16.msra.mxu0 %v15233_v23  ;;  %12477 = vmatprep.mubr.msk.f32.mxu0 %vm13748_vm0, %v13747_v17 }
0xcac3   : > { %12822 = vmatprep.subr.bf16.mxu0 %v13749_v22 }
0xcb94   : > { %v9672_v8 = vpop.f32.mrb[116].mxu0 }
0xcb95   : > { %v9676_v6 = vadd.f32 %v9672_v8, %v8459_v50  ;;  %v12465_v11 = vpop.f32.mrb[117].mxu0  ;;  %v10117_v50 = vld [vmem:[#allocation2 + $0x18] sm:$0xff]  ;;  %v10118_v8 = vld [vmem:[#allocation2 + $0x20] sm:$0xff] }
0xcb96   : > { %v10120_v11 = vld [vmem:[#allocation2 + $0x30] sm:$0xff] }
0xcb97   : > { %13511 = vtanh.f32 %v9676_v6  ;;  %v11264_v45 = vmul.f32 -1.442695, %v9676_v6  ;;  %v10119_v6 = vld [vmem:[#allocation2 + $0x28] sm:$0xff] }
0xcb99   : > { %13513 = vpow2.f32 %v11264_v45  ;;  %v10122_v45 = vld [vmem:[#allocation2 + $0x40] sm:$0xff] }
0xcba1   : > { %v13512_v47 = vpop.eup %13511 }
0xcba2   : > { %9686 = vrot.lane.b32.xlu0 %v13512_v47, %s13751_s13  ;;  %v10121_v47 = vld [vmem:[#allocation2 + $0x38] sm:$0xff] }
0xcba3   : > { %v13514_v24 = vpop.eup %13513 }
0xcba4   : > { %v9680_v13 = vadd.f32 1.0, %v13514_v24  ;;  %v10123_v24 = vld [vmem:[#allocation2 + $0x48] sm:$0xff] }
0xcba6   : > { %13515 = vrcp.f32 %v9680_v13  ;;  %v10124_v13 = vld [vmem:[#allocation2 + $0x50] sm:$0xff] }
0xcbb0   : > { %v13516_v15 = vpop.eup %13515 }
0xcbb1   : > { %v9684_v22 = vmul.f32 %v13516_v15, %v9592_v37 }
0xcc14   : > { %v9687_v20 = vpop.permute.xlu0 %9686 }
0xcc15   : > { %v9689_v32 = vmul.f32 %v13516_v15, %v9687_v20 }
0xcc17   : > { %9691 = vrot.lane.b32.xlu1 %v9689_v32, %s13752_s15 }
0xcc89   : > { %v9692_v35 = vpop.permute.xlu1 %9691 }
0xcc8a   : > { %v9694_v26 = vadd.f32 %v9692_v35, %v9684_v22  ;;  %v8474_v22 = vadd.f32 %v15253_v59, %v15357_v49 }
0xcc8c   : > { %13517 = vtanh.f32 %v9694_v26 }
0xcc96   : > { %v13518_v43 = vpop.eup %13517 }
0xcc97   : > { %9697 = vrot.lane.b32.xlu0 %v13518_v43, %s13752_s15 }
0xcd09   : > { %v9698_v27 = vpop.permute.xlu0 %9697 }
0xcd0a   : > { %v9700_v21 = vmul.f32 %v13516_v15, %v9698_v27  ;;  %v15463_v27 = vld [vmem:[%s15721_s5 + $0xc0] ss:$0 sm:$0xff] }
0xcd0c   : > { %9702 = vrot.lane.b32.xlu1 %v9700_v21, %s13753_s16  ;;  %v15468_v21 = vld [vmem:[%s15721_s5 + $0xc8] ss:$0 sm:$0xff] }
0xcd7e   : > { %v9703_v48 = vpop.permute.xlu1 %9702 }
0xcd7f   : > { %9705 = vst.msk [vmem:[#allocation2 + $0x58] sm:$0xff] %vm756_vm2, %v9703_v48  ;;  %12471 = vmatmul.mubr.msk.f32.vlgmr.msra.gmra.mrb[104].mxu1 %vm756_vm2, %v9703_v48 }
0xcd80   : > { %12821 = vmatpush3.bf16.msra.mxu1 %v15233_v23  ;;  %12484 = vmatprep.mubr.msk.f32.mxu1 %vm13748_vm0, %v13747_v17 }
0xcd81   : > { %12826 = vmatprep.subr.bf16.mxu1 %v12825_v2 }
0xcd86   : > { %v10125_v15 = vld [vmem:[#allocation2 + $0x58] sm:$0xff] }
0xce52   : > { %v9774_v7 = vpop.f32.mrb[104].mxu1 }
0xce53   : > { %v9778_v31 = vadd.f32 %v9774_v7, %v8464_v42  ;;  %v12472_v52 = vpop.f32.mrb[105].mxu1  ;;  %v10335_v42 = vmul.f32 0.0, %v15463_v27 }
0xce55   : > { %13519 = vtanh.f32 %v9778_v31  ;;  %v11266_v53 = vmul.f32 -1.442695, %v9778_v31 }
0xce57   : > { %13521 = vpow2.f32 %v11266_v53 }
0xce5f   : > { %v13520_v30 = vpop.eup %13519 }
0xce60   : > { %9788 = vrot.lane.b32.xlu0 %v13520_v30, %s13751_s13 }
0xce61   : > { %v13522_v25 = vpop.eup %13521 }
0xce62   : > { %v9782_v54 = vadd.f32 1.0, %v13522_v25 }
0xce64   : > { %13523 = vrcp.f32 %v9782_v54 }
0xce6e   : > { %v13524_v0 = vpop.eup %13523 }
0xce6f   : > { %v9786_v56 = vmul.f32 %v13524_v0, %v9694_v26 }
0xced2   : > { %v9789_v9 = vpop.permute.xlu0 %9788 }
0xced3   : > { %v9791_v55 = vmul.f32 %v13524_v0, %v9789_v9 }
0xced5   : > { %9793 = vrot.lane.b32.xlu1 %v9791_v55, %s13752_s15 }
0xcf47   : > { %v9794_v14 = vpop.permute.xlu1 %9793 }
0xcf48   : > { %v9796_v46 = vadd.f32 %v9794_v14, %v9786_v56 }
0xcf4a   : > { %13525 = vtanh.f32 %v9796_v46 }
0xcf54   : > { %v13526_v12 = vpop.eup %13525 }
0xcf55   : > { %9799 = vrot.lane.b32.xlu0 %v13526_v12, %s13752_s15 }
0xcfc7   : > { %v9800_v18 = vpop.permute.xlu0 %9799 }
0xcfc8   : > { %v9802_v16 = vmul.f32 %v13524_v0, %v9800_v18 }
0xcfca   : > { %9804 = vrot.lane.b32.xlu1 %v9802_v16, %s13753_s16 }
0xd03c   : > { %v9805_v29 = vpop.permute.xlu1 %9804 }
0xd03d   : > { %9807 = vst.msk [vmem:[#allocation2 + $0x60] sm:$0xff] %vm756_vm2, %v9805_v29  ;;  %12478 = vmatmul.mubr.msk.f32.vlgmr.msra.gmra.mrb[118].mxu0 %vm756_vm2, %v9805_v29 }
0xd03e   : > { %12824 = vmatpush3.bf16.msra.mxu0 %v15233_v23  ;;  %12491 = vmatprep.mubr.msk.f32.mxu0 %vm13748_vm0, %v13747_v17  ;;  %vm10897_vm0 = vcmask 113664  }
0xd044   : > { %v10126_v20 = vld [vmem:[#allocation2 + $0x60] sm:$0xff] }
0xd110   : > { %v9876_v51 = vpop.f32.mrb[118].mxu0 }
0xd111   : > { %v9880_v60 = vadd.f32 %v9876_v51, %v8469_v58  ;;  %v12479_v10 = vpop.f32.mrb[119].mxu0 }
0xd113   : > { %13527 = vtanh.f32 %v9880_v60  ;;  %v11268_v62 = vmul.f32 -1.442695, %v9880_v60 }
0xd115   : > { %13529 = vpow2.f32 %v11268_v62 }
0xd11d   : > { %v13528_v40 = vpop.eup %13527 }
0xd11e   : > { %9890 = vrot.lane.b32.xlu0 %v13528_v40, %s13751_s13 }
0xd11f   : > { %v13530_v44 = vpop.eup %13529 }
0xd120   : > { %v9884_v63 = vadd.f32 1.0, %v13530_v44  ;;  %v13759_v44 = vmov 2  }
0xd121   : > { %12897 = vset.pattern.permute.xlu1 %v13759_v44  ;;  %12898 = vset.pattern.permute.xlu0 %v13759_v44 }
0xd122   : > { %13531 = vrcp.f32 %v9884_v63 }
0xd12c   : > { %v13532_v33 = vpop.eup %13531 }
0xd12d   : > { %v9888_v17 = vmul.f32 %v13532_v33, %v9796_v46 }
0xd190   : > { %v9891_v23 = vpop.permute.xlu0 %9890 }
0xd191   : > { %v9893_v36 = vmul.f32 %v13532_v33, %v9891_v23 }
0xd193   : > { %9895 = vrot.lane.b32.xlu1 %v9893_v36, %s13752_s15 }
0xd205   : > { %v9896_v19 = vpop.permute.xlu1 %9895 }
0xd206   : > { %v15429_v39 = vadd.f32 %v9896_v19, %v9888_v17 }
0xd208   : > { %13533 = vtanh.f32 %v15429_v39 }
0xd212   : > { %v13534_v3 = vpop.eup %13533 }
0xd213   : > { %9901 = vrot.lane.b32.xlu0 %v13534_v3, %s13752_s15 }
0xd285   : > { %v9902_v28 = vpop.permute.xlu0 %9901 }
0xd286   : > { %v9904_v37 = vmul.f32 %v13532_v33, %v9902_v28 }
0xd288   : > { %9906 = vrot.lane.b32.xlu1 %v9904_v37, %s13753_s16 }
0xd2fa   : > { %v9907_v38 = vpop.permute.xlu1 %9906 }
0xd2fb   : > { %9909 = vst.msk [vmem:[#allocation2 + $0x68] sm:$0xff] %vm756_vm2, %v9907_v38  ;;  %12485 = vmatmul.mubr.msk.f32.vlgmr.msra.gmra.mrb[106].mxu1 %vm756_vm2, %v9907_v38 }
0xd2fc   : > { %12828 = vmatpush3.bf16.msra.mxu1 %v12825_v2  ;;  %12498 = vmatprep.mubr.msk.f32.mxu1 %vm756_vm2, %v10114_v4 }
0xd2ff   : > { %12499 = vmatmul.mubr.msk.f32.vlgmr.msra.gmra.mrb[108].mxu1 %vm756_vm2, %v10115_v41 }
0xd300   : > { %12501 = vmatprep.mubr.msk.f32.mxu1 %vm756_vm2, %v10116_v5 }
0xd302   : > { %v10127_v32 = vld [vmem:[#allocation2 + $0x68] sm:$0xff] }
0xd303   : > { %12502 = vmatmul.mubr.msk.f32.gmra.mrb[110].mxu1 %vm756_vm2, %v10117_v50 }
0xd304   : > { %12504 = vmatprep.mubr.msk.f32.mxu1 %vm756_vm2, %v10118_v8 }
0xd307   : > { %12505 = vmatmul.mubr.msk.f32.gmra.mrb[112].mxu1 %vm756_vm2, %v10119_v6 }
0xd308   : > { %12507 = vmatprep.mubr.msk.f32.mxu1 %vm756_vm2, %v10120_v11 }
0xd30b   : > { %12508 = vmatmul.mubr.msk.f32.gmra.mrb[114].mxu1 %vm756_vm2, %v10121_v47 }
0xd30c   : > { %12510 = vmatprep.mubr.msk.f32.mxu1 %vm756_vm2, %v10122_v45 }
0xd30f   : > { %12511 = vmatmul.mubr.msk.f32.gmra.mrb[116].mxu1 %vm756_vm2, %v10123_v24 }
0xd310   : > { %12513 = vmatprep.mubr.msk.f32.mxu1 %vm756_vm2, %v10124_v13 }
0xd313   : > { %12514 = vmatmul.mubr.msk.f32.gmra.mrb[118].mxu1 %vm756_vm2, %v10125_v15 }
0xd314   : > { %12516 = vmatprep.mubr.msk.f32.mxu1 %vm756_vm2, %v10126_v20 }
0xd317   : > { %12517 = vmatmul.mubr.msk.f32.gmra.mrb[120].mxu1 %vm756_vm2, %v10127_v32 }
0xd3ce   : > { %v9978_v35 = vpop.f32.mrb[106].mxu1 }
0xd3cf   : > { %v15458_v26 = vadd.f32 %v9978_v35, %v8474_v22  ;;  %v12486_v43 = vpop.f32.mrb[107].mxu1 }
0xd3d2   : > { %v12500_v48 = vpop.f32.mrb[108].mxu1 }
0xd3d3   : > { %v10251_v7 = vpop.f32.mrb[109].mxu1  ;;  %v10257_v17 = vadd.f32 %v12500_v48, %v15468_v21 }
0xd3d4   : > { %v10252_v59 = vadd.f32 %v15468_v21, %v10251_v7 }
0xd3d6   : > { %v10336_v49 = vadd.f32 %v10335_v42, %v10252_v59  ;;  %v15472_v31 = vpop.f32.mrb[110].mxu1 }
0xd3d7   : > { %v15474_v52 = vpop.f32.mrb[111].mxu1 }
0xd3d8   : > { %13535 = vtanh.f32 %v10336_v49  ;;  %v11291_v18 = vmul.f32 -1.442695, %v10336_v49  ;;  %v10262_v45 = vadd.f32 %v15468_v21, %v15474_v52 }
0xd3da   : > { %v15476_v30 = vpop.f32.mrb[112].mxu1  ;;  %13537 = vpow2.f32 %v11291_v18 }
0xd3db   : > { %v15478_v53 = vpop.f32.mrb[113].mxu1 }
0xd3de   : > { %v15480_v25 = vpop.f32.mrb[114].mxu1 }
0xd3df   : > { %v15482_v54 = vpop.f32.mrb[115].mxu1 }
0xd3e2   : > { %v13536_v0 = vpop.eup %13535  ;;  %v15484_v9 = vpop.f32.mrb[116].mxu1 }
0xd3e3   : > { %v15486_v55 = vpop.f32.mrb[117].mxu1  ;;  %10346 = vrot.lane.b32.xlu0 %v13536_v0, %s13757_s21 }
0xd3e4   : > { %v13538_v16 = vpop.eup %13537 }
0xd3e5   : > { %v10340_v29 = vadd.f32 1.0, %v13538_v16  ;;  %v10267_v16 = vadd.f32 %v15472_v31, %v15468_v21 }
0xd3e6   : > { %v15489_v56 = vpop.f32.mrb[118].mxu1 }
0xd3e7   : > { %v15491_v14 = vpop.f32.mrb[119].mxu1  ;;  %13539 = vrcp.f32 %v10340_v29 }
0xd3ea   : > { %v15493_v46 = vpop.f32.mrb[120].mxu1 }
0xd3eb   : > { %v15495_v12 = vpop.f32.mrb[121].mxu1 }
0xd3f1   : > { %v13540_v58 = vpop.eup %13539 }
0xd3f2   : > { %v10344_v10 = vmul.f32 0.0, %v13540_v58 }
0xd455   : > { %v10347_v51 = vpop.permute.xlu0 %10346 }
0xd456   : > { %v10349_v60 = vmul.f32 %v13540_v58, %v10347_v51 }
0xd458   : > { %10351 = vrot.lane.b32.xlu1 %v10349_v60, %s13758_s20 }
0xd4ca   : > { %v10352_v40 = vpop.permute.xlu1 %10351 }
0xd4cb   : > { %v10354_v62 = vadd.f32 %v10352_v40, %v10344_v10 }
0xd4cd   : > { %13541 = vtanh.f32 %v10354_v62 }
0xd4d7   : > { %v13542_v63 = vpop.eup %13541 }
0xd4d8   : > { %10357 = vrot.lane.b32.xlu0 %v13542_v63, %s13758_s20 }
0xd54a   : > { %v10358_v33 = vpop.permute.xlu0 %10357 }
0xd54b   : > { %v15499_v23 = vmul.f32 %v13540_v58, %v10358_v33 }
0xd54d   : > { %10363 = vperm.xlu1 %12897, %v15499_v23  }
0xd5cc   : > { %v10364_v36 = vpop.permute.xlu1 %10363 }
0xd5cd   : > { %v10366_v19 = vmul.f32 %v15463_v27, %v10364_v36 }
0xd5cf   : > { %v10367_v57 = vadd.f32 %v10366_v19, %v10257_v17 }
0xd5d1   : > { %13543 = vtanh.f32 %v10367_v57  ;;  %v11292_v2 = vmul.f32 -1.442695, %v10367_v57 }
0xd5d3   : > { %13545 = vpow2.f32 %v11292_v2  ;;  %v10272_v2 = vadd.f32 %v15468_v21, %v15478_v53 }
0xd5db   : > { %v13544_v1 = vpop.eup %13543 }
0xd5dc   : > { %10377 = vrot.lane.b32.xlu0 %v13544_v1, %s13757_s21 }
0xd5dd   : > { %v13546_v3 = vpop.eup %13545 }
0xd5de   : > { %v10371_v28 = vadd.f32 1.0, %v13546_v3 }
0xd5e0   : > { %13547 = vrcp.f32 %v10371_v28 }
0xd5ea   : > { %v13548_v37 = vpop.eup %13547 }
0xd5eb   : > { %v10375_v41 = vmul.f32 %v13548_v37, %v10354_v62 }
0xd64e   : > { %v10378_v38 = vpop.permute.xlu0 %10377 }
0xd64f   : > { %v10380_v4 = vmul.f32 %v13548_v37, %v10378_v38 }
0xd651   : > { %10382 = vrot.lane.b32.xlu1 %v10380_v4, %s13758_s20 }
0xd6c3   : > { %v10383_v5 = vpop.permute.xlu1 %10382 }
0xd6c4   : > { %v10385_v50 = vadd.f32 %v10383_v5, %v10375_v41 }
0xd6c6   : > { %13549 = vtanh.f32 %v10385_v50 }
0xd6d0   : > { %v13550_v8 = vpop.eup %13549 }
0xd6d1   : > { %10388 = vrot.lane.b32.xlu0 %v13550_v8, %s13758_s20 }
0xd743   : > { %v10389_v6 = vpop.permute.xlu0 %10388 }
0xd744   : > { %v15507_v11 = vmul.f32 %v13548_v37, %v10389_v6 }
0xd746   : > { %10394 = vperm.xlu1 %12897, %v15507_v11  }
0xd7c5   : > { %v10395_v47 = vpop.permute.xlu1 %10394 }
0xd7c6   : > { %v10397_v24 = vmul.f32 %v15463_v27, %v10395_v47 }
0xd7c8   : > { %v10398_v13 = vadd.f32 %v10397_v24, %v10262_v45 }
0xd7ca   : > { %13551 = vtanh.f32 %v10398_v13  ;;  %v11293_v20 = vmul.f32 -1.442695, %v10398_v13 }
0xd7cc   : > { %13553 = vpow2.f32 %v11293_v20  ;;  %v10277_v20 = vadd.f32 %v15476_v30, %v15468_v21 }
0xd7d4   : > { %v13552_v15 = vpop.eup %13551 }
0xd7d5   : > { %10408 = vrot.lane.b32.xlu0 %v13552_v15, %s13757_s21 }
0xd7d6   : > { %v13554_v32 = vpop.eup %13553 }
0xd7d7   : > { %v10402_v22 = vadd.f32 1.0, %v13554_v32 }
0xd7d9   : > { %13555 = vrcp.f32 %v10402_v22 }
0xd7e3   : > { %v13556_v35 = vpop.eup %13555 }
0xd7e4   : > { %v10406_v42 = vmul.f32 %v13556_v35, %v10385_v50 }
0xd847   : > { %v10409_v43 = vpop.permute.xlu0 %10408 }
0xd848   : > { %v10411_v48 = vmul.f32 %v13556_v35, %v10409_v43 }
0xd84a   : > { %10413 = vrot.lane.b32.xlu1 %v10411_v48, %s13758_s20 }
0xd8bc   : > { %v10414_v7 = vpop.permute.xlu1 %10413 }
0xd8bd   : > { %v10416_v59 = vadd.f32 %v10414_v7, %v10406_v42 }
0xd8bf   : > { %13557 = vtanh.f32 %v10416_v59 }
0xd8c9   : > { %v13558_v49 = vpop.eup %13557 }
0xd8ca   : > { %10419 = vrot.lane.b32.xlu0 %v13558_v49, %s13758_s20 }
0xd93c   : > { %v10420_v52 = vpop.permute.xlu0 %10419 }
0xd93d   : > { %v15516_v0 = vmul.f32 %v13556_v35, %v10420_v52 }
0xd93f   : > { %10425 = vperm.xlu1 %12897, %v15516_v0  }
0xd9be   : > { %v10426_v18 = vpop.permute.xlu1 %10425 }
0xd9bf   : > { %v10428_v29 = vmul.f32 %v15463_v27, %v10426_v18 }
0xd9c1   : > { %v10429_v58 = vadd.f32 %v10428_v29, %v10267_v16 }
0xd9c3   : > { %13559 = vtanh.f32 %v10429_v58  ;;  %v11294_v60 = vmul.f32 -1.442695, %v10429_v58 }
0xd9c5   : > { %13561 = vpow2.f32 %v11294_v60  ;;  %v10282_v60 = vadd.f32 %v15468_v21, %v15482_v54 }
0xd9cd   : > { %v13560_v51 = vpop.eup %13559 }
0xd9ce   : > { %10439 = vrot.lane.b32.xlu0 %v13560_v51, %s13757_s21 }
0xd9cf   : > { %v13562_v10 = vpop.eup %13561 }
0xd9d0   : > { %v10433_v40 = vadd.f32 1.0, %v13562_v10 }
0xd9d2   : > { %13563 = vrcp.f32 %v10433_v40 }
0xd9dc   : > { %v13564_v62 = vpop.eup %13563 }
0xd9dd   : > { %v10437_v33 = vmul.f32 %v13564_v62, %v10416_v59 }
0xda40   : > { %v10440_v44 = vpop.permute.xlu0 %10439 }
0xda41   : > { %v10442_v63 = vmul.f32 %v13564_v62, %v10440_v44 }
0xda43   : > { %10444 = vrot.lane.b32.xlu1 %v10442_v63, %s13758_s20 }
0xdab5   : > { %v10445_v36 = vpop.permute.xlu1 %10444 }
0xdab6   : > { %v10447_v31 = vadd.f32 %v10445_v36, %v10437_v33 }
0xdab8   : > { %13565 = vtanh.f32 %v10447_v31 }
0xdac2   : > { %v13566_v17 = vpop.eup %13565 }
0xdac3   : > { %10450 = vrot.lane.b32.xlu0 %v13566_v17, %s13758_s20 }
0xdb35   : > { %v10451_v19 = vpop.permute.xlu0 %10450 }
0xdb36   : > { %v15525_v57 = vmul.f32 %v13564_v62, %v10451_v19 }
0xdb38   : > { %10456 = vperm.xlu1 %12897, %v15525_v57  }
0xdbb7   : > { %v10457_v1 = vpop.permute.xlu1 %10456 }
0xdbb8   : > { %v10459_v3 = vmul.f32 %v15463_v27, %v10457_v1 }
0xdbba   : > { %v10460_v28 = vadd.f32 %v10459_v3, %v10272_v2 }
0xdbbc   : > { %13567 = vtanh.f32 %v10460_v28  ;;  %v11295_v38 = vmul.f32 -1.442695, %v10460_v28 }
0xdbbe   : > { %13569 = vpow2.f32 %v11295_v38  ;;  %v10287_v38 = vadd.f32 %v15480_v25, %v15468_v21 }
0xdbc6   : > { %v13568_v37 = vpop.eup %13567 }
0xdbc7   : > { %10470 = vrot.lane.b32.xlu0 %v13568_v37, %s13757_s21 }
0xdbc8   : > { %v13570_v4 = vpop.eup %13569 }
0xdbc9   : > { %v10464_v41 = vadd.f32 1.0, %v13570_v4 }
0xdbcb   : > { %13571 = vrcp.f32 %v10464_v41 }
0xdbd5   : > { %v13572_v5 = vpop.eup %13571 }
0xdbd6   : > { %v10468_v6 = vmul.f32 %v13572_v5, %v10447_v31 }
0xdc39   : > { %v10471_v50 = vpop.permute.xlu0 %10470 }
0xdc3a   : > { %v10473_v8 = vmul.f32 %v13572_v5, %v10471_v50 }
0xdc3c   : > { %10475 = vrot.lane.b32.xlu1 %v10473_v8, %s13758_s20 }
0xdcae   : > { %v10476_v47 = vpop.permute.xlu1 %10475 }
0xdcaf   : > { %v10478_v53 = vadd.f32 %v10476_v47, %v10468_v6 }
0xdcb1   : > { %13573 = vtanh.f32 %v10478_v53 }
0xdcbb   : > { %v13574_v45 = vpop.eup %13573 }
0xdcbc   : > { %10481 = vrot.lane.b32.xlu0 %v13574_v45, %s13758_s20 }
0xdd2e   : > { %v10482_v24 = vpop.permute.xlu0 %10481 }
0xdd2f   : > { %v15534_v13 = vmul.f32 %v13572_v5, %v10482_v24 }
0xdd31   : > { %10487 = vperm.xlu1 %12897, %v15534_v13  }
0xddb0   : > { %v10488_v15 = vpop.permute.xlu1 %10487 }
0xddb1   : > { %v10490_v32 = vmul.f32 %v15463_v27, %v10488_v15 }
0xddb3   : > { %v10491_v22 = vadd.f32 %v10490_v32, %v10277_v20 }
0xddb5   : > { %13575 = vtanh.f32 %v10491_v22  ;;  %v11296_v43 = vmul.f32 -1.442695, %v10491_v22 }
0xddb7   : > { %13577 = vpow2.f32 %v11296_v43  ;;  %v10292_v43 = vadd.f32 %v15468_v21, %v15486_v55 }
0xddbf   : > { %v13576_v35 = vpop.eup %13575 }
0xddc0   : > { %10501 = vrot.lane.b32.xlu0 %v13576_v35, %s13757_s21 }
0xddc1   : > { %v13578_v48 = vpop.eup %13577 }
0xddc2   : > { %v10495_v42 = vadd.f32 1.0, %v13578_v48 }
0xddc4   : > { %13579 = vrcp.f32 %v10495_v42 }
0xddce   : > { %v13580_v7 = vpop.eup %13579 }
0xddcf   : > { %v10499_v52 = vmul.f32 %v13580_v7, %v10478_v53 }
0xde32   : > { %v10502_v59 = vpop.permute.xlu0 %10501 }
0xde33   : > { %v10504_v49 = vmul.f32 %v13580_v7, %v10502_v59 }
0xde35   : > { %10506 = vrot.lane.b32.xlu1 %v10504_v49, %s13758_s20 }
0xdea7   : > { %v10507_v18 = vpop.permute.xlu1 %10506 }
0xdea8   : > { %v10509_v30 = vadd.f32 %v10507_v18, %v10499_v52 }
0xdeaa   : > { %13581 = vtanh.f32 %v10509_v30 }
0xdeb4   : > { %v13582_v16 = vpop.eup %13581 }
0xdeb5   : > { %10512 = vrot.lane.b32.xlu0 %v13582_v16, %s13758_s20 }
0xdf27   : > { %v10513_v29 = vpop.permute.xlu0 %10512 }
0xdf28   : > { %v15543_v58 = vmul.f32 %v13580_v7, %v10513_v29 }
0xdf2a   : > { %10518 = vperm.xlu1 %12897, %v15543_v58  }
0xdfa9   : > { %v10519_v51 = vpop.permute.xlu1 %10518 }
0xdfaa   : > { %v10521_v10 = vmul.f32 %v15463_v27, %v10519_v51 }
0xdfac   : > { %v10522_v40 = vadd.f32 %v10521_v10, %v10282_v60 }
0xdfae   : > { %13583 = vtanh.f32 %v10522_v40  ;;  %v11297_v44 = vmul.f32 -1.442695, %v10522_v40 }
0xdfb0   : > { %13585 = vpow2.f32 %v11297_v44  ;;  %v10297_v44 = vadd.f32 %v15484_v9, %v15468_v21 }
0xdfb8   : > { %v13584_v62 = vpop.eup %13583 }
0xdfb9   : > { %10532 = vrot.lane.b32.xlu0 %v13584_v62, %s13757_s21 }
0xdfba   : > { %v13586_v63 = vpop.eup %13585 }
0xdfbb   : > { %v10526_v33 = vadd.f32 1.0, %v13586_v63 }
0xdfbd   : > { %13587 = vrcp.f32 %v10526_v33 }
0xdfc7   : > { %v13588_v36 = vpop.eup %13587 }
0xdfc8   : > { %v10530_v19 = vmul.f32 %v13588_v36, %v10509_v30 }
0xe02b   : > { %v10533_v31 = vpop.permute.xlu0 %10532 }
0xe02c   : > { %v10535_v17 = vmul.f32 %v13588_v36, %v10533_v31 }
0xe02e   : > { %10537 = vrot.lane.b32.xlu1 %v10535_v17, %s13758_s20 }
0xe0a0   : > { %v10538_v1 = vpop.permute.xlu1 %10537 }
0xe0a1   : > { %v10540_v54 = vadd.f32 %v10538_v1, %v10530_v19 }
0xe0a3   : > { %13589 = vtanh.f32 %v10540_v54 }
0xe0ad   : > { %v13590_v2 = vpop.eup %13589 }
0xe0ae   : > { %10543 = vrot.lane.b32.xlu0 %v13590_v2, %s13758_s20 }
0xe120   : > { %v10544_v3 = vpop.permute.xlu0 %10543 }
0xe121   : > { %v15552_v28 = vmul.f32 %v13588_v36, %v10544_v3 }
0xe123   : > { %10549 = vperm.xlu1 %12897, %v15552_v28  }
0xe1a2   : > { %v10550_v37 = vpop.permute.xlu1 %10549 }
0xe1a3   : > { %v10552_v4 = vmul.f32 %v15463_v27, %v10550_v37 }
0xe1a5   : > { %v10553_v41 = vadd.f32 %v10552_v4, %v10287_v38 }
0xe1a7   : > { %13591 = vtanh.f32 %v10553_v41  ;;  %v11298_v50 = vmul.f32 -1.442695, %v10553_v41 }
0xe1a9   : > { %13593 = vpow2.f32 %v11298_v50  ;;  %v10302_v50 = vadd.f32 %v15468_v21, %v15491_v14 }
0xe1b1   : > { %v13592_v5 = vpop.eup %13591 }
0xe1b2   : > { %10563 = vrot.lane.b32.xlu0 %v13592_v5, %s13757_s21 }
0xe1b3   : > { %v13594_v8 = vpop.eup %13593 }
0xe1b4   : > { %v10557_v6 = vadd.f32 1.0, %v13594_v8 }
0xe1b6   : > { %13595 = vrcp.f32 %v10557_v6 }
0xe1c0   : > { %v13596_v47 = vpop.eup %13595 }
0xe1c1   : > { %v10561_v24 = vmul.f32 %v13596_v47, %v10540_v54 }
0xe224   : > { %v10564_v53 = vpop.permute.xlu0 %10563 }
0xe225   : > { %v10566_v45 = vmul.f32 %v13596_v47, %v10564_v53 }
0xe227   : > { %10568 = vrot.lane.b32.xlu1 %v10566_v45, %s13758_s20 }
0xe299   : > { %v10569_v15 = vpop.permute.xlu1 %10568 }
0xe29a   : > { %v10571_v25 = vadd.f32 %v10569_v15, %v10561_v24  ;;  %v11270_v24 = vmul.f32 -1.442695, %v15458_v26 }
0xe29c   : > { %13597 = vtanh.f32 %v10571_v25 }
0xe2a6   : > { %v13598_v20 = vpop.eup %13597 }
0xe2a7   : > { %10574 = vrot.lane.b32.xlu0 %v13598_v20, %s13758_s20 }
0xe319   : > { %v10575_v32 = vpop.permute.xlu0 %10574 }
0xe31a   : > { %v15561_v22 = vmul.f32 %v13596_v47, %v10575_v32 }
0xe31c   : > { %10580 = vperm.xlu1 %12897, %v15561_v22  }
0xe39b   : > { %v10581_v35 = vpop.permute.xlu1 %10580 }
0xe39c   : > { %v10583_v48 = vmul.f32 %v15463_v27, %v10581_v35 }
0xe39e   : > { %v10584_v42 = vadd.f32 %v10583_v48, %v10292_v43 }
0xe3a0   : > { %13599 = vtanh.f32 %v10584_v42  ;;  %v11299_v59 = vmul.f32 -1.442695, %v10584_v42 }
0xe3a2   : > { %13601 = vpow2.f32 %v11299_v59 }
0xe3aa   : > { %v13600_v7 = vpop.eup %13599 }
0xe3ab   : > { %10594 = vrot.lane.b32.xlu0 %v13600_v7, %s13757_s21 }
0xe3ac   : > { %v13602_v49 = vpop.eup %13601 }
0xe3ad   : > { %v10588_v52 = vadd.f32 1.0, %v13602_v49 }
0xe3af   : > { %13603 = vrcp.f32 %v10588_v52 }
0xe3b9   : > { %v13604_v18 = vpop.eup %13603 }
0xe3ba   : > { %v10592_v29 = vmul.f32 %v13604_v18, %v10571_v25 }
0xe41d   : > { %v10595_v30 = vpop.permute.xlu0 %10594 }
0xe41e   : > { %v10597_v16 = vmul.f32 %v13604_v18, %v10595_v30 }
0xe420   : > { %10599 = vrot.lane.b32.xlu1 %v10597_v16, %s13758_s20 }
0xe492   : > { %v10600_v51 = vpop.permute.xlu1 %10599 }
0xe493   : > { %v10602_v55 = vadd.f32 %v10600_v51, %v10592_v29 }
0xe495   : > { %13605 = vtanh.f32 %v10602_v55 }
0xe49f   : > { %v13606_v60 = vpop.eup %13605 }
0xe4a0   : > { %10605 = vrot.lane.b32.xlu0 %v13606_v60, %s13758_s20 }
0xe512   : > { %v10606_v10 = vpop.permute.xlu0 %10605 }
0xe513   : > { %v15570_v40 = vmul.f32 %v13604_v18, %v10606_v10 }
0xe515   : > { %10611 = vperm.xlu1 %12897, %v15570_v40  }
0xe594   : > { %v10612_v62 = vpop.permute.xlu1 %10611 }
0xe595   : > { %v10614_v63 = vmul.f32 %v15463_v27, %v10612_v62 }
0xe597   : > { %v10615_v33 = vadd.f32 %v10614_v63, %v10297_v44  ;;  %v10307_v63 = vadd.f32 %v15489_v56, %v15468_v21  ;;  %v13682_v56 = vld [vmem:[%s15721_s5 + $0xa8] ss:$0 sm:$0xff] }
0xe599   : > { %13607 = vtanh.f32 %v10615_v33  ;;  %v11300_v31 = vmul.f32 -1.442695, %v10615_v33 }
0xe59b   : > { %13609 = vpow2.f32 %v11300_v31 }
0xe5a3   : > { %v13608_v36 = vpop.eup %13607 }
0xe5a4   : > { %10625 = vrot.lane.b32.xlu0 %v13608_v36, %s13757_s21 }
0xe5a5   : > { %v13610_v17 = vpop.eup %13609 }
0xe5a6   : > { %v10619_v19 = vadd.f32 1.0, %v13610_v17 }
0xe5a8   : > { %13611 = vrcp.f32 %v10619_v19 }
0xe5b2   : > { %v13612_v1 = vpop.eup %13611 }
0xe5b3   : > { %v10623_v3 = vmul.f32 %v13612_v1, %v10602_v55 }
0xe616   : > { %v10626_v54 = vpop.permute.xlu0 %10625 }
0xe617   : > { %v10628_v2 = vmul.f32 %v13612_v1, %v10626_v54 }
0xe619   : > { %10630 = vrot.lane.b32.xlu1 %v10628_v2, %s13758_s20 }
0xe68b   : > { %v10631_v37 = vpop.permute.xlu1 %10630 }
0xe68c   : > { %v10633_v9 = vadd.f32 %v10631_v37, %v10623_v3  ;;  %v8479_v37 = vadd.f32 %v13682_v56, %v15355_v34 }
0xe68e   : > { %13613 = vtanh.f32 %v10633_v9 }
0xe698   : > { %v13614_v38 = vpop.eup %13613 }
0xe699   : > { %10636 = vrot.lane.b32.xlu0 %v13614_v38, %s13758_s20 }
0xe70b   : > { %v10637_v4 = vpop.permute.xlu0 %10636 }
0xe70c   : > { %v15579_v41 = vmul.f32 %v13612_v1, %v10637_v4 }
0xe70e   : > { %10642 = vperm.xlu1 %12897, %v15579_v41  }
0xe78d   : > { %v10643_v5 = vpop.permute.xlu1 %10642 }
0xe78e   : > { %v10645_v8 = vmul.f32 %v15463_v27, %v10643_v5 }
0xe790   : > { %v10646_v6 = vadd.f32 %v10645_v8, %v10302_v50 }
0xe792   : > { %13615 = vtanh.f32 %v10646_v6  ;;  %v11301_v45 = vmul.f32 -1.442695, %v10646_v6 }
0xe793   : > { %13617 = vtanh.f32 %v15458_v26 }
0xe794   : > { %13619 = vpow2.f32 %v11301_v45 }
0xe795   : > { %13621 = vpow2.f32 %v11270_v24 }
0xe79c   : > { %v13616_v47 = vpop.eup %13615 }
0xe79d   : > { %10656 = vrot.lane.b32.xlu0 %v13616_v47, %s13757_s21  ;;  %v13618_v53 = vpop.eup %13617 }
0xe79e   : > { %v13620_v15 = vpop.eup %13619 }
0xe79f   : > { %v10650_v25 = vadd.f32 1.0, %v13620_v15  ;;  %v13622_v14 = vpop.eup %13621 }
0xe7a0   : > { %v9986_v20 = vadd.f32 1.0, %v13622_v14  ;;  %v10312_v14 = vadd.f32 %v15468_v21, %v15495_v12 }
0xe7a1   : > { %9992 = vrot.lane.b32.xlu0 %v13618_v53, %s13751_s13  ;;  %13623 = vrcp.f32 %v10650_v25 }
0xe7a2   : > { %13625 = vrcp.f32 %v9986_v20 }
0xe7ab   : > { %v13624_v32 = vpop.eup %13623 }
0xe7ac   : > { %v13626_v48 = vpop.eup %13625  ;;  %v10654_v59 = vmul.f32 %v13624_v32, %v10633_v9 }
0xe7ad   : > { %v9990_v52 = vmul.f32 %v13626_v48, %v15429_v39 }
0xe80f   : > { %v10657_v35 = vpop.permute.xlu0 %10656 }
0xe810   : > { %v10659_v43 = vmul.f32 %v13624_v32, %v10657_v35 }
0xe812   : > { %10661 = vrot.lane.b32.xlu1 %v10659_v43, %s13758_s20 }
0xe813   : > { %v9993_v42 = vpop.permute.xlu0 %9992 }
0xe814   : > { %v9995_v7 = vmul.f32 %v13626_v48, %v9993_v42 }
0xe816   : > { %9997 = vrot.lane.b32.xlu0 %v9995_v7, %s13752_s15 }
0xe884   : > { %v10662_v26 = vpop.permute.xlu1 %10661 }
0xe885   : > { %v10664_v49 = vadd.f32 %v10662_v26, %v10654_v59 }
0xe887   : > { %13627 = vtanh.f32 %v10664_v49 }
0xe888   : > { %v9998_v18 = vpop.permute.xlu0 %9997 }
0xe889   : > { %v15592_v30 = vadd.f32 %v9998_v18, %v9990_v52 }
0xe88b   : > { %13629 = vtanh.f32 %v15592_v30 }
0xe891   : > { %v13628_v16 = vpop.eup %13627 }
0xe892   : > { %10667 = vrot.lane.b32.xlu1 %v13628_v16, %s13758_s20 }
0xe895   : > { %v13630_v29 = vpop.eup %13629 }
0xe896   : > { %10003 = vrot.lane.b32.xlu0 %v13630_v29, %s13752_s15 }
0xe904   : > { %v10668_v51 = vpop.permute.xlu1 %10667 }
0xe905   : > { %v15597_v55 = vmul.f32 %v13624_v32, %v10668_v51 }
0xe907   : > { %10673 = vperm.xlu1 %12897, %v15597_v55  }
0xe908   : > { %v10004_v60 = vpop.permute.xlu0 %10003 }
0xe909   : > { %v10006_v10 = vmul.f32 %v13626_v48, %v10004_v60 }
0xe90b   : > { %10008 = vrot.lane.b32.xlu0 %v10006_v10, %s13753_s16 }
0xe97d   : > { %v10009_v39 = vpop.permute.xlu0 %10008 }
0xe97e   : > { %10011 = vst.msk [vmem:[#allocation2 + $0x70] sm:$0xff] %vm756_vm2, %v10009_v39  ;;  %12492 = vmatmul.mubr.msk.f32.vlgmr.msra.gmra.mrb[120].mxu0 %vm756_vm2, %v10009_v39 }
0xe985   : > { %v10128_v62 = vld [vmem:[#allocation2 + $0x70] sm:$0xff] }
0xe986   : > { %12519 = vmatprep.mubr.msk.f32.mxu1 %vm756_vm2, %v10128_v62  ;;  %v10674_v44 = vpop.permute.xlu1 %10673 }
0xe987   : > { %v10676_v33 = vmul.f32 %v15463_v27, %v10674_v44 }
0xe989   : > { %v10677_v36 = vadd.f32 %v10676_v33, %v10307_v63 }
0xe98b   : > { %13631 = vtanh.f32 %v10677_v36  ;;  %v11302_v17 = vmul.f32 -1.442695, %v10677_v36 }
0xe98d   : > { %13633 = vpow2.f32 %v11302_v17 }
0xe995   : > { %v13632_v31 = vpop.eup %13631 }
0xe996   : > { %10687 = vrot.lane.b32.xlu1 %v13632_v31, %s13757_s21 }
0xe997   : > { %v13634_v19 = vpop.eup %13633 }
0xe998   : > { %v10681_v1 = vadd.f32 1.0, %v13634_v19  ;;  %v10317_v19 = vadd.f32 %v15493_v46, %v15468_v21 }
0xe99a   : > { %13635 = vrcp.f32 %v10681_v1 }
0xe9a4   : > { %v13636_v54 = vpop.eup %13635 }
0xe9a5   : > { %v10685_v5 = vmul.f32 %v13636_v54, %v10664_v49 }
0xea08   : > { %v10688_v2 = vpop.permute.xlu1 %10687 }
0xea09   : > { %v10690_v3 = vmul.f32 %v13636_v54, %v10688_v2 }
0xea0b   : > { %10692 = vrot.lane.b32.xlu1 %v10690_v3, %s13758_s20 }
0xea51   : > { %v10080_v9 = vpop.f32.mrb[120].mxu0 }
0xea52   : > { %v10084_v38 = vadd.f32 %v10080_v9, %v8479_v37  ;;  %v12493_v4 = vpop.f32.mrb[121].mxu0 }
0xea54   : > { %v11272_v34 = vmul.f32 -1.442695, %v10084_v38 }
0xea7d   : > { %v10693_v50 = vpop.permute.xlu1 %10692 }
0xea7e   : > { %v10695_v8 = vadd.f32 %v10693_v50, %v10685_v5 }
0xea80   : > { %13637 = vtanh.f32 %v10695_v8 }
0xea81   : > { %13639 = vtanh.f32 %v10084_v38 }
0xea82   : > { %13641 = vpow2.f32 %v11272_v34 }
0xea8a   : > { %v13638_v6 = vpop.eup %13637 }
0xea8b   : > { %10698 = vrot.lane.b32.xlu0 %v13638_v6, %s13758_s20  ;;  %v13640_v45 = vpop.eup %13639 }
0xea8c   : > { %v13642_v24 = vpop.eup %13641 }
0xea8d   : > { %v10088_v15 = vadd.f32 1.0, %v13642_v24 }
0xea8f   : > { %13643 = vrcp.f32 %v10088_v15 }
0xea99   : > { %v13644_v35 = vpop.eup %13643 }
0xea9a   : > { %v10092_v49 = vmul.f32 %v13644_v35, %v15592_v30 }
0xeafd   : > { %v10699_v47 = vpop.permute.xlu0 %10698 }
0xeafe   : > { %v15614_v53 = vmul.f32 %v13636_v54, %v10699_v47 }
0xeb00   : > { %10704 = vperm.xlu1 %12897, %v15614_v53  }
0xeb04   : > { %10094 = vrot.lane.b32.xlu1 %v13640_v45, %s13751_s13  ;;  %s13760_s13 = smov 126  }
0xeb7f   : > { %v10705_v25 = vpop.permute.xlu1 %10704 }
0xeb80   : > { %v10707_v20 = vmul.f32 %v15463_v27, %v10705_v25 }
0xeb82   : > { %v10708_v32 = vadd.f32 %v10707_v20, %v10312_v14 }
0xeb83   : > { %v10095_v43 = vpop.permute.xlu1 %10094 }
0xeb84   : > { %13645 = vtanh.f32 %v10708_v32  ;;  %v10097_v48 = vmul.f32 %v13644_v35, %v10095_v43  ;;  %v11303_v7 = vmul.f32 -1.442695, %v10708_v32 }
0xeb86   : > { %10099 = vrot.lane.b32.xlu1 %v10097_v48, %s13752_s15  ;;  %13647 = vpow2.f32 %v11303_v7 }
0xeb8e   : > { %v13646_v42 = vpop.eup %13645 }
0xeb8f   : > { %10718 = vrot.lane.b32.xlu0 %v13646_v42, %s13757_s21 }
0xeb90   : > { %v13648_v59 = vpop.eup %13647 }
0xeb91   : > { %v10712_v26 = vadd.f32 1.0, %v13648_v59 }
0xeb93   : > { %13649 = vrcp.f32 %v10712_v26 }
0xeb9d   : > { %v13650_v18 = vpop.eup %13649 }
0xeb9e   : > { %v10716_v60 = vmul.f32 %v13650_v18, %v10695_v8 }
0xebf8   : > { %v10100_v12 = vpop.permute.xlu1 %10099 }
0xebf9   : > { %v10102_v52 = vadd.f32 %v10100_v12, %v10092_v49 }
0xebfb   : > { %13651 = vtanh.f32 %v10102_v52 }
0xec01   : > { %v10719_v16 = vpop.permute.xlu0 %10718 }
0xec02   : > { %v10721_v29 = vmul.f32 %v13650_v18, %v10719_v16 }
0xec04   : > { %10723 = vrot.lane.b32.xlu0 %v10721_v29, %s13758_s20 }
0xec05   : > { %v13652_v51 = vpop.eup %13651 }
0xec06   : > { %10105 = vrot.lane.b32.xlu1 %v13652_v51, %s13752_s15  ;;  %s13761_s15 = smov 3  }
0xec76   : > { %v10724_v10 = vpop.permute.xlu0 %10723 }
0xec77   : > { %v10726_v39 = vadd.f32 %v10724_v10, %v10716_v60 }
0xec78   : > { %v10106_v62 = vpop.permute.xlu1 %10105 }
0xec79   : > { %13653 = vtanh.f32 %v10726_v39  ;;  %v10108_v44 = vmul.f32 %v13644_v35, %v10106_v62 }
0xec7b   : > { %10110 = vrot.lane.b32.xlu1 %v10108_v44, %s13753_s16  ;;  %s13762_s16 = smov 5  }
0xec83   : > { %v13654_v30 = vpop.eup %13653 }
0xec84   : > { %10729 = vrot.lane.b32.xlu0 %v13654_v30, %s13758_s20 }
0xeced   : > { %v10111_v63 = vpop.permute.xlu1 %10110 }
0xecee   : > { %10113 = vst.msk [vmem:[#allocation2 + $0x78] sm:$0xff] %vm756_vm2, %v10111_v63 }
0xecf5   : > { %v10129_v33 = vld [vmem:[#allocation2 + $0x78] sm:$0xff] }
0xecf6   : > { %v10730_v36 = vpop.permute.xlu0 %10729  ;;  %12520 = vmatmul.mubr.msk.f32.gmra.mrb[122].mxu1 %vm756_vm2, %v10129_v33  ;;  %vm10899_vm2 = vcmask 121856  }
0xecf7   : > { %v15630_v31 = vmul.f32 %v13650_v18, %v10730_v36 }
0xecf9   : > { %10735 = vperm.xlu0 %12898, %v15630_v31  }
0xed78   : > { %v10736_v17 = vpop.permute.xlu0 %10735 }
0xed79   : > { %v10738_v1 = vmul.f32 %v15463_v27, %v10736_v17 }
0xed7b   : > { %v10739_v54 = vadd.f32 %v10738_v1, %v10317_v19 }
0xed7d   : > { %13655 = vtanh.f32 %v10739_v54  ;;  %v11304_v37 = vmul.f32 -1.442695, %v10739_v54 }
0xed7f   : > { %13657 = vpow2.f32 %v11304_v37 }
0xed87   : > { %v13656_v2 = vpop.eup %13655 }
0xed88   : > { %10749 = vrot.lane.b32.xlu1 %v13656_v2, %s13757_s21 }
0xed89   : > { %v13658_v9 = vpop.eup %13657 }
0xed8a   : > { %v10743_v38 = vadd.f32 1.0, %v13658_v9 }
0xed8c   : > { %13659 = vrcp.f32 %v10743_v38 }
0xed96   : > { %v13660_v4 = vpop.eup %13659 }
0xed97   : > { %v10747_v46 = vmul.f32 %v13660_v4, %v10726_v39 }
0xedc9   : > { %v12521_v3 = vpop.f32.mrb[122].mxu1 }
0xedca   : > { %v10321_v56 = vpop.f32.mrb[123].mxu1  ;;  %v10327_v29 = vadd.f32 %v12521_v3, %v15468_v21 }
0xedcb   : > { %v10322_v15 = vadd.f32 %v15468_v21, %v10321_v56 }
0xedfa   : > { %v10750_v5 = vpop.permute.xlu1 %10749 }
0xedfb   : > { %v10752_v50 = vmul.f32 %v13660_v4, %v10750_v5 }
0xedfd   : > { %10754 = vrot.lane.b32.xlu0 %v10752_v50, %s13758_s20 }
0xee6f   : > { %v10755_v8 = vpop.permute.xlu0 %10754 }
0xee70   : > { %v10757_v6 = vadd.f32 %v10755_v8, %v10747_v46 }
0xee72   : > { %13661 = vtanh.f32 %v10757_v6 }
0xee7c   : > { %v13662_v47 = vpop.eup %13661 }
0xee7d   : > { %10760 = vrot.lane.b32.xlu1 %v13662_v47, %s13758_s20 }
0xeeef   : > { %v10761_v45 = vpop.permute.xlu1 %10760 }
0xeef0   : > { %v10763_v34 = vmul.f32 %v13660_v4, %v10761_v45 }
0xeef2   : > { %10766 = vperm.xlu0 %12898, %v10763_v34  }
0xef71   : > { %v10767_v24 = vpop.permute.xlu0 %10766 }
0xef72   : > { %v10769_v25 = vmul.f32 %v15463_v27, %v10767_v24 }
0xef74   : > { %v10770_v14 = vadd.f32 %v10769_v25, %v10322_v15  ;;  %v1114_v15 = vmul.f32 0.015625, %v14261_v61 }
0xef76   : > { %13663 = vtanh.f32 %v10770_v14  ;;  %v11305_v32 = vmul.f32 -1.442695, %v10770_v14 }
0xef78   : > { %13665 = vpow2.f32 %v11305_v32 }
0xef80   : > { %v13664_v20 = vpop.eup %13663 }
0xef81   : > { %10780 = vrot.lane.b32.xlu1 %v13664_v20, %s13757_s21 }
0xef82   : > { %v13666_v35 = vpop.eup %13665 }
0xef83   : > { %v10774_v43 = vadd.f32 1.0, %v13666_v35 }
0xef85   : > { %13667 = vrcp.f32 %v10774_v43 }
0xef8f   : > { %v13668_v48 = vpop.eup %13667 }
0xef90   : > { %v10778_v59 = vmul.f32 %v13668_v48, %v10757_v6 }
0xeff3   : > { %v10781_v42 = vpop.permute.xlu1 %10780 }
0xeff4   : > { %v10783_v7 = vmul.f32 %v13668_v48, %v10781_v42 }
0xeff6   : > { %10785 = vrot.lane.b32.xlu0 %v10783_v7, %s13758_s20 }
0xf068   : > { %v10786_v26 = vpop.permute.xlu0 %10785 }
0xf069   : > { %v10788_v49 = vadd.f32 %v10786_v26, %v10778_v59 }
0xf06b   : > { %13669 = vtanh.f32 %v10788_v49 }
0xf075   : > { %v13670_v12 = vpop.eup %13669 }
0xf076   : > { %10791 = vrot.lane.b32.xlu1 %v13670_v12, %s13758_s20 }
0xf0e8   : > { %v10792_v52 = vpop.permute.xlu1 %10791 }
0xf0e9   : > { %v10794_v18 = vmul.f32 %v13668_v48, %v10792_v52 }
0xf0eb   : > { %10797 = vperm.xlu0 %12898, %v10794_v18  }
0xf16a   : > { %v10798_v16 = vpop.permute.xlu0 %10797 }
0xf16b   : > { %v10800_v51 = vmul.f32 %v15463_v27, %v10798_v16 }
0xf16d   : > { %v10801_v60 = vadd.f32 %v10800_v51, %v10327_v29 }
0xf16f   : > { %13671 = vtanh.f32 %v10801_v60  ;;  %v11306_v39 = vmul.f32 -1.442695, %v10801_v60 }
0xf171   : > { %13673 = vpow2.f32 %v11306_v39 }
0xf179   : > { %v13672_v10 = vpop.eup %13671 }
0xf17a   : > { %10811 = vrot.lane.b32.xlu1 %v13672_v10, %s13757_s21  ;;  %s13768_s21 = smov 4  }
0xf17b   : > { %v13674_v62 = vpop.eup %13673 }
0xf17c   : > { %v10805_v44 = vadd.f32 1.0, %v13674_v62 }
0xf17e   : > { %13675 = vrcp.f32 %v10805_v44 }
0xf188   : > { %v13676_v30 = vpop.eup %13675 }
0xf189   : > { %v10809_v27 = vmul.f32 %v13676_v30, %v10788_v49 }
0xf1ec   : > { %v10812_v63 = vpop.permute.xlu1 %10811 }
0xf1ed   : > { %v10814_v33 = vmul.f32 %v13676_v30, %v10812_v63 }
0xf1ef   : > { %10816 = vrot.lane.b32.xlu0 %v10814_v33, %s13758_s20 }
0xf1f3   : > { %10826 = vrot.lane.b32.xlu0 %v15499_v23, %s13760_s13  ;;  %s13771_s13 = smov 12  }
0xf1f7   : > { %10832 = vrot.lane.b32.xlu0 %v15525_v57, %s13758_s20 }
0xf1fb   : > { %10838 = vrot.lane.b32.xlu0 %v15543_v58, %s13761_s15  ;;  %s11038_s15 = sshll.u32 %s14182_s14, 3 }
0xf1ff   : > { %10844 = vrot.lane.b32.xlu0 %v15561_v22, %s13762_s16  ;;  %s11308_s16 = sshll.u32 %s13836_s28, 7 }
0xf203   : > { %10850 = vrot.lane.b32.xlu0 %v15579_v41, %s13763_s23  ;;  %s390_s23 = scalar_lea.vmem [#allocation4], %s11038_s15 }
0xf207   : > { %10856 = vrot.lane.b32.xlu0 %v15614_v53, %s13764_s8  ;;  %s10930_s8 = sshll.u32 %s390_s23, 4  ;;  %s15673_s8 = int_to_ptr.vmem [resolvable:$true] %s10930_s8 }
0xf208   : > { %s13683_s28 = scalar_lea.vmem %s15673_s8, 128 }
0xf209   : > { %p13684_p0 = scmp.ne.s32.totalorder %s15673_s8, %s13683_s28 }
0xf20b   : > { %10862 = vrot.lane.b32.xlu0 %v10763_v34, %s13765_s9  ;;  %p13685_p1 = pnand %p13684_p0, %p13854_p6 }
0xf20d   : > { %p13686_p2 = pneg %p13685_p1 }
0xf261   : > { %v10817_v21 = vpop.permute.xlu0 %10816 }
0xf262   : > { %v10819_v23 = vadd.f32 %v10817_v21, %v10809_v27 }
0xf264   : > { %13677 = vtanh.f32 %v10819_v23 }
0xf26e   : > { %v13678_v36 = vpop.eup %13677 }
0xf26f   : > { %10822 = vrot.lane.b32.xlu1 %v13678_v36, %s13758_s20  ;;  %s13772_s20 = smov 13  }
0xf273   : > { %10829 = vrot.lane.b32.xlu1 %v15507_v11, %s13766_s22  ;;  %v10827_v11 = vpop.permute.xlu0 %10826 }
0xf277   : > { %10835 = vrot.lane.b32.xlu1 %v15534_v13, %s13767_s29  ;;  %v10833_v22 = vpop.permute.xlu0 %10832  ;;  %s15671_s29 = scalar_lea.hbm %s15723_s7, %s11308_s16 }
0xf27b   : > { %10841 = vrot.lane.b32.xlu1 %v15552_v28, %s13768_s21  ;;  %s10914_s21 = scalar_lea.sflag [#allocation5], %s14182_s14 }
0xf27f   : > { %10847 = vrot.lane.b32.xlu1 %v15570_v40, %s13769_s17  ;;  %v10839_v40 = vpop.permute.xlu0 %10838  ;;  %s13774_s17 = smov [#allocation4]  }
0xf283   : > { %10853 = vrot.lane.b32.xlu1 %v15597_v55, %s13755_s19  ;;  %s13773_s19 = smov 48  }
0xf287   : > { %10859 = vrot.lane.b32.xlu1 %v15630_v31, %s13770_s18  ;;  %v10845_v31 = vpop.permute.xlu0 %10844  ;;  %s13687_s18 = sshll.u32 %s13774_s17, 4  ;;  %s13688_s18 = int_to_ptr.vmem [resolvable:$false] %s13687_s18 }
0xf288   : > { %p13690_p3 = scmp.lt.s32.totalorder %s15673_s8, %s13688_s18 }
0xf28b   : > { %10865 = vrot.lane.b32.xlu1 %v10794_v18, %s13771_s13  ;;  %v10851_v2 = vpop.permute.xlu0 %10850  ;;  %s13689_s13 = scalar_lea.vmem %s13688_s18, 256 }
0xf28c   : > { %p13691_p4 = scmp.lt.s32.totalorder %s13689_s13, %s13683_s28 }
0xf28e   : > { %p13692_p5 = por %p13691_p4, %p13690_p3 }
0xf28f   : > { %v10857_v38 = vpop.permute.xlu0 %10856 }
0xf290   : > { %p13693_p7 = pnand %p13692_p5, %p13686_p2 }
0xf293   : > { %v10863_v46 = vpop.permute.xlu0 %10862 }
0xf2e1   : > { %v10823_v57 = vpop.permute.xlu1 %10822 }
0xf2e2   : > { %v10825_v58 = vmul.f32 %v13676_v30, %v10823_v57 }
0xf2e4   : > { %10869 = vrot.lane.b32.xlu0 %v10825_v58, %s13772_s20 }
0xf2e5   : > { %v10830_v13 = vpop.permute.xlu1 %10829 }
0xf2e6   : > { %v10873_v28 = vsel %vm10872_vm4, %v10827_v11, %v10830_v13 }
0xf2e7   : > { %v10875_v55 = vsel %vm10874_vm5, %v10873_v28, %v15516_v0 }
0xf2e8   : > { %v10877_v17 = vsel %vm10876_vm6, %v10875_v55, %v10833_v22 }
0xf2e9   : > { %v10836_v41 = vpop.permute.xlu1 %10835 }
0xf2ea   : > { %v10879_v1 = vsel %vm10878_vm7, %v10877_v17, %v10836_v41 }
0xf2eb   : > { %v10881_v54 = vsel %vm10880_vm8, %v10879_v1, %v10839_v40 }
0xf2ed   : > { %v10842_v53 = vpop.permute.xlu1 %10841 }
0xf2ee   : > { %v10883_v3 = vsel %vm10882_vm9, %v10881_v54, %v10842_v53 }
0xf2ef   : > { %v10885_v37 = vsel %vm10884_vm10, %v10883_v3, %v10845_v31 }
0xf2f1   : > { %v10848_v19 = vpop.permute.xlu1 %10847 }
0xf2f2   : > { %v10886_v9 = vsel %vm4953_vm3, %v10885_v37, %v10848_v19  ;;  %vm10906_vm3 = vcmask 392192  }
0xf2f3   : > { %v10888_v0 = vsel %vm10887_vm11, %v10886_v9, %v10851_v2 }
0xf2f5   : > { %v10854_v56 = vpop.permute.xlu1 %10853 }
0xf2f6   : > { %v10890_v5 = vsel %vm10889_vm12, %v10888_v0, %v10854_v56 }
0xf2f7   : > { %v10892_v50 = vsel %vm10891_vm13, %v10890_v5, %v10857_v38 }
0xf2f9   : > { %v10860_v4 = vpop.permute.xlu1 %10859 }
0xf2fa   : > { %v10894_v8 = vsel %vm10893_vm14, %v10892_v50, %v10860_v4 }
0xf2fb   : > { %v10896_v47 = vsel %vm10895_vm15, %v10894_v8, %v10863_v46 }
0xf2fd   : > { %v10866_v6 = vpop.permute.xlu1 %10865 }
0xf2fe   : > { %v10898_v45 = vsel %vm10897_vm0, %v10896_v47, %v10866_v6 }
0xf356   : > { %v10870_v34 = vpop.permute.xlu0 %10869 }
0xf357   : > { %v10900_v24 = vsel %vm10899_vm2, %v10898_v45, %v10870_v34 }
0xf358   : > { %10902 = vrot.lane.b32.xlu1 %v10900_v24, %s13773_s19 }
0xf3ca   : > { %v10903_v25 = vpop.permute.xlu1 %10902 }
0xf3cb   : > { %v10905_v14 = vadd.f32 %v10903_v25, %v1114_v15 }
0xf3cd   : > { %v10907_v20 = vsel %vm10906_vm3, %v1114_v15, %v10905_v14 }
0xf3ce   : > { %10908 = vst.msk [vmem:[%s390_s23] sm:$0xff] %vm434_vm1, %v10907_v20 }
0xf3cf   : > { %13696 = shalt.err (!%p13693_p7)
}
0xf3d0   : > { %s13697_s14 = scalar_lea.hbm %s15671_s29, 128  ;;  %s13701_s15 = scalar_lea.hbm %s15723_s7, 256 }
0xf3d1   : > { %p13698_p10 = scmp.ne.s32.totalorder %s15671_s29, %s13697_s14  ;;  %p13702_p13 = scmp.lt.u32.totalorder %s15671_s29, %s15723_s7 }
0xf3d2   : > { %p13703_p0 = scmp.lt.u32.totalorder %s13701_s15, %s13697_s14  ;;  %p13705_p2 = scmp.lt.u32.totalorder %s13697_s14, %s15671_s29 }
0xf3d3   : > { %p13699_p11 = pnand %p13698_p10, %p13854_p6 }
0xf3d4   : > { %p13704_p1 = por %p13703_p0, %p13702_p13 }
0xf3d5   : > { %p13700_p12 = pneg %p13699_p11 }
0xf3d6   : > { %p13706_p3 = por %p13705_p2, %p13704_p1 }
0xf3d8   : > { %p13707_p4 = pnand %p13706_p3, %p13700_p12 }
0xf3da   : > { %13710 = shalt.err (!%p13707_p4)
}
0xf3db   : > { %12829 = dma.vmem_to_hbm [thread:$0]  (%p13854_p6), %s15673_s8, 128, %s15671_s29, %s10914_s21  }
0xf3dc PF: > { %s10949_s9 = sand.u32 1, %s13733_s24   ;;  %p12832_p5 = pnand %p11033_p9, %p13858_p8 }
0xf3dd   : > { %s10950_s22 = scalar_lea.sflag [#allocation5], %s10949_s9 }
0xf3de   : > { %13728 = dma.done.wait (!%p12832_p5), %s10950_s22, 128  }
0xf3df   : > { %13730 = vsyncadd (!%p12832_p5), %s10950_s22, 4294967168  ;;  %p18_p7 = scmp.ge.s32.totalorder %s13840_s30, 4   ;;  %s15726_s24 = smov %s13737_s25 }
0xf3e0   : > { %s15727_s25 = smov %s13741_s26  ;;  %s15728_s26 = smov %s13852_s10 }
0xf3e1   : > { %s15729_s27 = smov %s13840_s30  ;;  %20 = sbr.rel (!%p18_p7) target bundleno = 3 (0x3), region = 137 }
0xf3e8   :  { %10955 = vsyncpa [#allocation5], 1 }
0xf3e9   :  { %10957 = vsyncpa [#allocation5 + $0x1], 1 }

</bundles_post_ra>
